<compile_context>
chip_gen: v7x
topology: tpu7x:2x2x1
jax: 0.10.0
libtpu: 0.0.40
codegen_flags: <defaults>
</compile_context>

<pallas_src>
import functools

import numpy as np
import jax
import jax.numpy as jnp
from jax.experimental import pallas as pl
from jax.experimental.pallas import tpu as pltpu

_VMEM = pl.BlockSpec(memory_space=pltpu.MemorySpace.VMEM)


# ----------------------------------------------------------------------------
# Constant operator matrices (built once from static shapes, numpy)
# ----------------------------------------------------------------------------
def _adaptive_pool_matrix(in_size, out_size):
    # PyTorch adaptive pooling bins: [floor(i*in/out), ceil((i+1)*in/out))
    P = np.zeros((out_size, in_size), np.float32)
    for i in range(out_size):
        s = (i * in_size) // out_size
        e = -((-(i + 1) * in_size) // out_size)
        P[i, s:e] = 1.0 / (e - s)
    return P


def _row_pad_ops(k, pad, hi, ho):
    # P[dh, r, src] = 1  iff  src == r - pad + dh  (H-direction pad as matmul)
    P = np.zeros((k, ho, hi), np.float32)
    for dh in range(k):
        for r in range(ho):
            src = r - pad + dh
            if 0 <= src < hi:
                P[dh, r, src] = 1.0
    return P


def _col_toeplitz(w_hwio, wi, wo, pad):
    # Per-dh Toeplitz weight [kh, Wi*Cin, Wo*Cout] folding kw taps + W zero pad.
    kh, kw, cin, cout = w_hwio.shape
    S = np.zeros((kw, wi, wo), np.float32)
    for dw in range(kw):
        for o in range(wo):
            src = o - pad + dw
            if 0 <= src < wi:
                S[dw, src, o] = 1.0
    # T[dh, wi, ci, wo, co] = sum_dw w[dh, dw, ci, co] * S[dw, wi, wo]
    T = jnp.einsum('hwic,wpq->hpiqc', w_hwio, jnp.asarray(S))
    return T.reshape(kh, wi * cin, wo * cout)


def _pool_pair(size):
    # 0/1 selectors picking even / odd positions of a 2x2 non-overlapping pool.
    half = size // 2
    a = np.zeros((size, half), np.float32)
    b = np.zeros((size, half), np.float32)
    a[2 * np.arange(half), np.arange(half)] = 1.0
    b[2 * np.arange(half) + 1, np.arange(half)] = 1.0
    return a, b


def _block_diag(mat, n):
    # n copies of mat [r, c] on the diagonal -> [n*r, n*c]
    return np.kron(np.eye(n, dtype=np.float32), mat)


# ----------------------------------------------------------------------------
# The fused kernel (whole batch = one 2-D tile per stage)
# ----------------------------------------------------------------------------
def _loc_backbone_kernel(x_ref, w1t_ref, g1_ref, be1_ref, padh1_ref,
                         fold1_ref, bcast1_ref, selwa_ref, selwb_ref,
                         selhe_ref, selho_ref,
                         w2t_ref, g2_ref, be2_ref, padh2_ref,
                         fold2_ref, bcast2_ref, qw_ref, ph_ref,
                         out_ref, *, eps, neg_slope, count1, count2):
    kh = w1t_ref.shape[0]

    def dot(a, b):
        return jnp.dot(a, b, preferred_element_type=jnp.float32)

    def conv_rows(x2d, padh_ref, wt_ref):
        # x2d: [N*Hi, Wi*Cin]  ->  [N*Ho, Wo*Cout]
        # y = sum_dh (rowpad_blk[dh] @ x) @ W_toep[dh]
        acc = dot(dot(padh_ref[0], x2d), wt_ref[0])
        for dh in range(1, kh):
            acc = acc + dot(dot(padh_ref[dh], x2d), wt_ref[dh])
        return acc

    def bn_scale_shift(y, gamma, beta, fold, bcast, count):
        # Batch-statistic BN folded into per-lane scale/shift (two-pass var).
        inv_n = 1.0 / count
        row_sum = y.sum(axis=0, keepdims=True)          # [1, W*C]
        mean_c = dot(row_sum, fold) * inv_n             # [1, C]
        mean_l = dot(mean_c, bcast)                     # [1, W*C]
        d = y - mean_l
        var_c = jnp.maximum(
            dot((d * d).sum(axis=0, keepdims=True), fold) * inv_n, 0.0)
        scale_c = gamma * jax.lax.rsqrt(var_c + eps)
        shift_c = beta - mean_c * scale_c
        return dot(scale_c, bcast), dot(shift_c, bcast)

    def lrelu(z):
        return jnp.where(z >= 0, z, neg_slope * z)

    x = x_ref[...]                                       # [N*16, 48]

    # ---- stage 1: conv1 -> BN1(batch stats) -> leaky_relu -> maxpool 2x2 ----
    y1 = conv_rows(x, padh1_ref, w1t_ref)                # [N*18, 576]
    sc1, sh1 = bn_scale_shift(y1, g1_ref[...], be1_ref[...],
                              fold1_ref[...], bcast1_ref[...], count1)
    a1 = lrelu(y1 * sc1 + sh1)
    mw = jnp.maximum(dot(a1, selwa_ref[...]),
                     dot(a1, selwb_ref[...]))            # W pairs: [N*18, 288]
    pooled = jnp.maximum(dot(selhe_ref[...], mw),
                         dot(selho_ref[...], mw))        # H pairs: [N*9, 288]

    # ---- stage 2: conv2 -> BN2 -> leaky_relu -> adaptive_avg_pool (8,8) -----
    y2 = conv_rows(pooled, padh2_ref, w2t_ref)           # [N*11, 352]
    sc2, sh2 = bn_scale_shift(y2, g2_ref[...], be2_ref[...],
                              fold2_ref[...], bcast2_ref[...], count2)
    a2 = lrelu(y2 * sc2 + sh2)
    out_ref[...] = dot(ph_ref[...], dot(a2, qw_ref[...]))  # [N*8, 256]


# ----------------------------------------------------------------------------
# Forward wrapper
# ----------------------------------------------------------------------------
def loc_backbone_forward(x_nchw, params):
    N, cin, H, W = x_nchw.shape
    w1, w2 = params['w1'], params['w2']                  # HWIO
    c1, c2 = w1.shape[-1], w2.shape[-1]
    k, pad = 3, 2
    H1, W1 = H + 2 * pad - k + 1, W + 2 * pad - k + 1    # conv1 out: 18, 18
    Hp, Wp = H1 // 2, W1 // 2                            # maxpool:    9,  9
    H2, W2 = Hp + 2 * pad - k + 1, Wp + 2 * pad - k + 1  # conv2 out: 11, 11
    Oh = Ow = 8

    # Layout prep on the (tiny) input only: NCHW -> batch-stacked rows.
    x_rows = jnp.transpose(x_nchw, (0, 2, 3, 1)).reshape(N * H, W * cin)

    # Constant operator matrices (H-direction ones block-diagonal over N).
    padh1 = _row_pad_ops(k, pad, H, H1)
    padh1_blk = np.stack([_block_diag(padh1[d], N) for d in range(k)])   # [3, N*18, N*16]
    padh2 = _row_pad_ops(k, pad, Hp, H2)
    padh2_blk = np.stack([_block_diag(padh2[d], N) for d in range(k)])   # [3, N*11, N*9]

    sa_w, sb_w = _pool_pair(W1)
    eye1 = np.eye(c1, dtype=np.float32)
    selwa = np.kron(sa_w, eye1)                          # [576, 288]
    selwb = np.kron(sb_w, eye1)
    sa_h, sb_h = _pool_pair(H1)
    selhe_blk = _block_diag(sa_h.T, N)                   # [N*9, N*18]
    selho_blk = _block_diag(sb_h.T, N)

    fold1 = np.tile(eye1, (W1, 1))                       # [576, 32] lane->channel
    fold2 = np.tile(np.eye(c2, dtype=np.float32), (W2, 1))   # [352, 32]
    qw = np.kron(_adaptive_pool_matrix(W2, Ow).T,
                 np.eye(c2, dtype=np.float32))           # [352, 256]
    ph_blk = _block_diag(_adaptive_pool_matrix(H2, Oh), N)   # [N*8, N*11]

    # Weight preprocessing (once): fold kw taps + W padding into Toeplitz mats.
    w1t = _col_toeplitz(w1, W, W1, pad)                  # [3,  48, 576]
    w2t = _col_toeplitz(w2, Wp, W2, pad)                 # [3, 288, 352]

    g1 = params['g1'].reshape(1, c1)
    be1 = params['be1'].reshape(1, c1)
    g2 = params['g2'].reshape(1, c2)
    be2 = params['be2'].reshape(1, c2)
    # NOTE: conv biases are intentionally NOT passed -- they cancel exactly
    # under batch-statistic BatchNorm.

    kern = functools.partial(
        _loc_backbone_kernel, eps=1e-5, neg_slope=0.01,
        count1=float(N * H1 * W1), count2=float(N * H2 * W2))
    out = pl.pallas_call(
        kern,
        out_shape=jax.ShapeDtypeStruct((N * Oh, Ow * c2), jnp.float32),
        in_specs=[_VMEM] * 19,
        out_specs=_VMEM,
    )(x_rows, w1t, g1, be1,
      jnp.asarray(padh1_blk), jnp.asarray(fold1), jnp.asarray(fold1.T),
      jnp.asarray(selwa), jnp.asarray(selwb), jnp.asarray(selhe_blk),
      jnp.asarray(selho_blk),
      w2t, g2, be2,
      jnp.asarray(padh2_blk), jnp.asarray(fold2), jnp.asarray(fold2.T),
      jnp.asarray(qw), jnp.asarray(ph_blk))

    # [N*8, 8*C] -> NCHW [N, C, 8, 8]  (matches the PyTorch module)
    return out.reshape(N, Oh, Ow, c2).transpose(0, 3, 1, 2)


# ----------------------------------------------------------------------------
# Pure-JAX reference (PyTorch semantics) for a numerical cross-check
# ----------------------------------------------------------------------------
def _reference_forward(x_nchw, params, eps=1e-5, neg_slope=0.01):
    hi = jax.lax.Precision.HIGHEST

    def conv(x, w, b):
        y = jax.lax.conv_general_dilated(
            x, w, window_strides=(1, 1), padding=((2, 2), (2, 2)),
            dimension_numbers=('NHWC', 'HWIO', 'NHWC'), precision=hi)
        return y + b

    def bn_lrelu(y, gamma, beta):
        mean = jnp.mean(y, axis=(0, 1, 2), keepdims=True)
        var = jnp.mean((y - mean) ** 2, axis=(0, 1, 2), keepdims=True)
        z = (y - mean) * jax.lax.rsqrt(var + eps) * gamma + beta
        return jnp.where(z >= 0, z, neg_slope * z)

    x = jnp.transpose(x_nchw, (0, 2, 3, 1))
    a1 = bn_lrelu(conv(x, params['w1'], params['b1']), params['g1'], params['be1'])
    n, h, w, c = a1.shape
    p1 = a1.reshape(n, h // 2, 2, w // 2, 2, c).max(axis=(2, 4))
    a2 = bn_lrelu(conv(p1, params['w2'], params['b2']), params['g2'], params['be2'])
    ph = jnp.asarray(_adaptive_pool_matrix(a2.shape[1], 8))
    pw = jnp.asarray(_adaptive_pool_matrix(a2.shape[2], 8))
    out = jnp.einsum('ih,nhwc,jw->nijc', ph, a2, pw, precision=hi)
    return jnp.transpose(out, (0, 3, 1, 2))


if __name__ == "__main__":
    key = jax.random.PRNGKey(0)
    k_x, k_w1, k_b1, k_w2, k_b2 = jax.random.split(key, 5)
    in_depth = out_depth = 32

    # Deterministic synthetic parameters (shapes from LocBackbone.__init__).
    params = dict(
        w1=jax.random.normal(k_w1, (3, 3, 3, in_depth), jnp.float32) * 0.1,   # HWIO
        b1=jax.random.normal(k_b1, (in_depth,), jnp.float32) * 0.1,
        g1=jnp.ones((in_depth,), jnp.float32),      # BN gamma (PyTorch init)
        be1=jnp.zeros((in_depth,), jnp.float32),    # BN beta
        w2=jax.random.normal(k_w2, (3, 3, in_depth, out_depth), jnp.float32) * 0.1,
        b2=jax.random.normal(k_b2, (out_depth,), jnp.float32) * 0.1,
        g2=jnp.ones((out_depth,), jnp.float32),
        be2=jnp.zeros((out_depth,), jnp.float32),
    )

    x = jax.random.normal(k_x, (2, 3, 16, 16), jnp.float32)   # NCHW input

    fwd = jax.jit(loc_backbone_forward)
    out = jax.block_until_ready(fwd(x, params))

    assert out.shape == (2, out_depth, 8, 8), out.shape
    assert out.dtype == jnp.float32
    assert bool(jnp.all(jnp.isfinite(out)))

    ref = jax.block_until_ready(jax.jit(_reference_forward)(x, params))
    np.testing.assert_allclose(np.asarray(out), np.asarray(ref),
                               rtol=2e-3, atol=2e-3)
    print("KERNEL_OK")
</pallas_src>

<mosaic_0001>
module attributes {stable_mosaic.version = 11 : i64} {
  func.func @_loc_backbone_kernel(%arg0: memref<32x48xf32, #tpu.memory_space<vmem>>, %arg1: memref<3x48x576xf32, #tpu.memory_space<vmem>>, %arg2: memref<1x32xf32, #tpu.memory_space<vmem>>, %arg3: memref<1x32xf32, #tpu.memory_space<vmem>>, %arg4: memref<3x36x32xf32, #tpu.memory_space<vmem>>, %arg5: memref<576x32xf32, #tpu.memory_space<vmem>>, %arg6: memref<32x576xf32, #tpu.memory_space<vmem>>, %arg7: memref<576x288xf32, #tpu.memory_space<vmem>>, %arg8: memref<576x288xf32, #tpu.memory_space<vmem>>, %arg9: memref<18x36xf32, #tpu.memory_space<vmem>>, %arg10: memref<18x36xf32, #tpu.memory_space<vmem>>, %arg11: memref<3x288x352xf32, #tpu.memory_space<vmem>>, %arg12: memref<1x32xf32, #tpu.memory_space<vmem>>, %arg13: memref<1x32xf32, #tpu.memory_space<vmem>>, %arg14: memref<3x22x18xf32, #tpu.memory_space<vmem>>, %arg15: memref<352x32xf32, #tpu.memory_space<vmem>>, %arg16: memref<32x352xf32, #tpu.memory_space<vmem>>, %arg17: memref<352x256xf32, #tpu.memory_space<vmem>>, %arg18: memref<16x22xf32, #tpu.memory_space<vmem>>, %arg19: memref<16x256xf32, #tpu.memory_space<vmem>>) attributes {dimension_semantics = [], scalar_prefetch = 0 : i64, scratch_operands = 0 : i64, tpu.core_type = #tpu.core_type<tc>} {
    %c0 = arith.constant 0 : index
    %c0_0 = arith.constant 0 : index
    %0 = vector.load %arg0[%c0, %c0_0] : memref<32x48xf32, #tpu.memory_space<vmem>>, vector<32x48xf32>
    %c0_1 = arith.constant 0 : index
    %c0_2 = arith.constant 0 : index
    %c0_3 = arith.constant 0 : index
    %1 = vector.load %arg4[%c0_1, %c0_2, %c0_3] : memref<3x36x32xf32, #tpu.memory_space<vmem>>, vector<1x36x32xf32>
    %2 = vector.shape_cast %1 : vector<1x36x32xf32> to vector<36x32xf32>
    %cst = arith.constant dense<0.000000e+00> : vector<36x48xf32>
    %3 = tpu.matmul %2, %0, %cst {dimension_numbers = #tpu.dot_dimension_numbers<[1], [0], [0], [1], [0, 0, 1, 1], [], []>} : vector<36x32xf32>, vector<32x48xf32>, vector<36x48xf32> -> vector<36x48xf32>
    %c0_4 = arith.constant 0 : index
    %c0_5 = arith.constant 0 : index
    %c0_6 = arith.constant 0 : index
    %4 = vector.load %arg1[%c0_4, %c0_5, %c0_6] : memref<3x48x576xf32, #tpu.memory_space<vmem>>, vector<1x48x576xf32>
    %5 = vector.shape_cast %4 : vector<1x48x576xf32> to vector<48x576xf32>
    %cst_7 = arith.constant dense<0.000000e+00> : vector<36x576xf32>
    %6 = tpu.matmul %3, %5, %cst_7 {dimension_numbers = #tpu.dot_dimension_numbers<[1], [0], [0], [1], [0, 0, 1, 1], [], []>} : vector<36x48xf32>, vector<48x576xf32>, vector<36x576xf32> -> vector<36x576xf32>
    %c1 = arith.constant 1 : index
    %c0_8 = arith.constant 0 : index
    %c0_9 = arith.constant 0 : index
    %7 = vector.load %arg4[%c1, %c0_8, %c0_9] : memref<3x36x32xf32, #tpu.memory_space<vmem>>, vector<1x36x32xf32>
    %8 = vector.shape_cast %7 : vector<1x36x32xf32> to vector<36x32xf32>
    %cst_10 = arith.constant dense<0.000000e+00> : vector<36x48xf32>
    %9 = tpu.matmul %8, %0, %cst_10 {dimension_numbers = #tpu.dot_dimension_numbers<[1], [0], [0], [1], [0, 0, 1, 1], [], []>} : vector<36x32xf32>, vector<32x48xf32>, vector<36x48xf32> -> vector<36x48xf32>
    %c1_11 = arith.constant 1 : index
    %c0_12 = arith.constant 0 : index
    %c0_13 = arith.constant 0 : index
    %10 = vector.load %arg1[%c1_11, %c0_12, %c0_13] : memref<3x48x576xf32, #tpu.memory_space<vmem>>, vector<1x48x576xf32>
    %11 = vector.shape_cast %10 : vector<1x48x576xf32> to vector<48x576xf32>
    %cst_14 = arith.constant dense<0.000000e+00> : vector<36x576xf32>
    %12 = tpu.matmul %9, %11, %cst_14 {dimension_numbers = #tpu.dot_dimension_numbers<[1], [0], [0], [1], [0, 0, 1, 1], [], []>} : vector<36x48xf32>, vector<48x576xf32>, vector<36x576xf32> -> vector<36x576xf32>
    %13 = arith.addf %6, %12 : vector<36x576xf32>
    %c2 = arith.constant 2 : index
    %c0_15 = arith.constant 0 : index
    %c0_16 = arith.constant 0 : index
    %14 = vector.load %arg4[%c2, %c0_15, %c0_16] : memref<3x36x32xf32, #tpu.memory_space<vmem>>, vector<1x36x32xf32>
    %15 = vector.shape_cast %14 : vector<1x36x32xf32> to vector<36x32xf32>
    %cst_17 = arith.constant dense<0.000000e+00> : vector<36x48xf32>
    %16 = tpu.matmul %15, %0, %cst_17 {dimension_numbers = #tpu.dot_dimension_numbers<[1], [0], [0], [1], [0, 0, 1, 1], [], []>} : vector<36x32xf32>, vector<32x48xf32>, vector<36x48xf32> -> vector<36x48xf32>
    %c2_18 = arith.constant 2 : index
    %c0_19 = arith.constant 0 : index
    %c0_20 = arith.constant 0 : index
    %17 = vector.load %arg1[%c2_18, %c0_19, %c0_20] : memref<3x48x576xf32, #tpu.memory_space<vmem>>, vector<1x48x576xf32>
    %18 = vector.shape_cast %17 : vector<1x48x576xf32> to vector<48x576xf32>
    %cst_21 = arith.constant dense<0.000000e+00> : vector<36x576xf32>
    %19 = tpu.matmul %16, %18, %cst_21 {dimension_numbers = #tpu.dot_dimension_numbers<[1], [0], [0], [1], [0, 0, 1, 1], [], []>} : vector<36x48xf32>, vector<48x576xf32>, vector<36x576xf32> -> vector<36x576xf32>
    %20 = arith.addf %13, %19 : vector<36x576xf32>
    %c0_22 = arith.constant 0 : index
    %c0_23 = arith.constant 0 : index
    %21 = vector.load %arg2[%c0_22, %c0_23] : memref<1x32xf32, #tpu.memory_space<vmem>>, vector<1x32xf32>
    %c0_24 = arith.constant 0 : index
    %c0_25 = arith.constant 0 : index
    %22 = vector.load %arg3[%c0_24, %c0_25] : memref<1x32xf32, #tpu.memory_space<vmem>>, vector<1x32xf32>
    %c0_26 = arith.constant 0 : index
    %c0_27 = arith.constant 0 : index
    %23 = vector.load %arg5[%c0_26, %c0_27] : memref<576x32xf32, #tpu.memory_space<vmem>>, vector<576x32xf32>
    %c0_28 = arith.constant 0 : index
    %c0_29 = arith.constant 0 : index
    %24 = vector.load %arg6[%c0_28, %c0_29] : memref<32x576xf32, #tpu.memory_space<vmem>>, vector<32x576xf32>
    %cst_30 = arith.constant dense<0.000000e+00> : vector<576xf32>
    %25 = vector.multi_reduction <add>, %20, %cst_30 [0] : vector<36x576xf32> to vector<576xf32>
    %26 = vector.shape_cast %25 : vector<576xf32> to vector<1x576xf32>
    %cst_31 = arith.constant dense<0.000000e+00> : vector<1x32xf32>
    %27 = tpu.matmul %26, %23, %cst_31 {dimension_numbers = #tpu.dot_dimension_numbers<[1], [0], [0], [1], [0, 0, 1, 1], [], []>} : vector<1x576xf32>, vector<576x32xf32>, vector<1x32xf32> -> vector<1x32xf32>
    %cst_32 = arith.constant 0.00154320989 : f32
    %28 = vector.broadcast %cst_32 : f32 to vector<1x32xf32>
    %29 = arith.mulf %27, %28 : vector<1x32xf32>
    %cst_33 = arith.constant dense<0.000000e+00> : vector<1x576xf32>
    %30 = tpu.matmul %29, %24, %cst_33 {dimension_numbers = #tpu.dot_dimension_numbers<[1], [0], [0], [1], [0, 0, 1, 1], [], []>} : vector<1x32xf32>, vector<32x576xf32>, vector<1x576xf32> -> vector<1x576xf32>
    %31 = vector.broadcast %30 : vector<1x576xf32> to vector<36x576xf32>
    %32 = arith.subf %20, %31 : vector<36x576xf32>
    %33 = arith.mulf %32, %32 : vector<36x576xf32>
    %cst_34 = arith.constant dense<0.000000e+00> : vector<576xf32>
    %34 = vector.multi_reduction <add>, %33, %cst_34 [0] : vector<36x576xf32> to vector<576xf32>
    %35 = vector.shape_cast %34 : vector<576xf32> to vector<1x576xf32>
    %cst_35 = arith.constant dense<0.000000e+00> : vector<1x32xf32>
    %36 = tpu.matmul %35, %23, %cst_35 {dimension_numbers = #tpu.dot_dimension_numbers<[1], [0], [0], [1], [0, 0, 1, 1], [], []>} : vector<1x576xf32>, vector<576x32xf32>, vector<1x32xf32> -> vector<1x32xf32>
    %cst_36 = arith.constant 0.00154320989 : f32
    %37 = vector.broadcast %cst_36 : f32 to vector<1x32xf32>
    %38 = arith.mulf %36, %37 : vector<1x32xf32>
    %cst_37 = arith.constant 0.000000e+00 : f32
    %39 = vector.broadcast %cst_37 : f32 to vector<1x32xf32>
    %40 = arith.maximumf %38, %39 : vector<1x32xf32>
    %cst_38 = arith.constant 9.99999974E-6 : f32
    %41 = vector.broadcast %cst_38 : f32 to vector<1x32xf32>
    %42 = arith.addf %40, %41 : vector<1x32xf32>
    %43 = math.rsqrt %42 : vector<1x32xf32>
    %44 = arith.mulf %21, %43 : vector<1x32xf32>
    %45 = arith.mulf %29, %44 : vector<1x32xf32>
    %46 = arith.subf %22, %45 : vector<1x32xf32>
    %cst_39 = arith.constant dense<0.000000e+00> : vector<1x576xf32>
    %47 = tpu.matmul %44, %24, %cst_39 {dimension_numbers = #tpu.dot_dimension_numbers<[1], [0], [0], [1], [0, 0, 1, 1], [], []>} : vector<1x32xf32>, vector<32x576xf32>, vector<1x576xf32> -> vector<1x576xf32>
    %cst_40 = arith.constant dense<0.000000e+00> : vector<1x576xf32>
    %48 = tpu.matmul %46, %24, %cst_40 {dimension_numbers = #tpu.dot_dimension_numbers<[1], [0], [0], [1], [0, 0, 1, 1], [], []>} : vector<1x32xf32>, vector<32x576xf32>, vector<1x576xf32> -> vector<1x576xf32>
    %49 = vector.broadcast %47 : vector<1x576xf32> to vector<36x576xf32>
    %50 = arith.mulf %20, %49 : vector<36x576xf32>
    %51 = vector.broadcast %48 : vector<1x576xf32> to vector<36x576xf32>
    %52 = arith.addf %50, %51 : vector<36x576xf32>
    %cst_41 = arith.constant 0.000000e+00 : f32
    %53 = vector.broadcast %cst_41 : f32 to vector<36x576xf32>
    %54 = arith.cmpf oge, %52, %53 : vector<36x576xf32>
    %cst_42 = arith.constant 0.00999999977 : f32
    %55 = vector.broadcast %cst_42 : f32 to vector<36x576xf32>
    %56 = arith.mulf %55, %52 : vector<36x576xf32>
    %57 = arith.select %54, %52, %56 : vector<36x576xi1>, vector<36x576xf32>
    %c0_43 = arith.constant 0 : index
    %c0_44 = arith.constant 0 : index
    %58 = vector.load %arg7[%c0_43, %c0_44] : memref<576x288xf32, #tpu.memory_space<vmem>>, vector<576x288xf32>
    %cst_45 = arith.constant dense<0.000000e+00> : vector<36x288xf32>
    %59 = tpu.matmul %57, %58, %cst_45 {dimension_numbers = #tpu.dot_dimension_numbers<[1], [0], [0], [1], [0, 0, 1, 1], [], []>} : vector<36x576xf32>, vector<576x288xf32>, vector<36x288xf32> -> vector<36x288xf32>
    %c0_46 = arith.constant 0 : index
    %c0_47 = arith.constant 0 : index
    %60 = vector.load %arg8[%c0_46, %c0_47] : memref<576x288xf32, #tpu.memory_space<vmem>>, vector<576x288xf32>
    %cst_48 = arith.constant dense<0.000000e+00> : vector<36x288xf32>
    %61 = tpu.matmul %57, %60, %cst_48 {dimension_numbers = #tpu.dot_dimension_numbers<[1], [0], [0], [1], [0, 0, 1, 1], [], []>} : vector<36x576xf32>, vector<576x288xf32>, vector<36x288xf32> -> vector<36x288xf32>
    %62 = arith.maximumf %59, %61 : vector<36x288xf32>
    %c0_49 = arith.constant 0 : index
    %c0_50 = arith.constant 0 : index
    %63 = vector.load %arg9[%c0_49, %c0_50] : memref<18x36xf32, #tpu.memory_space<vmem>>, vector<18x36xf32>
    %cst_51 = arith.constant dense<0.000000e+00> : vector<18x288xf32>
    %64 = tpu.matmul %63, %62, %cst_51 {dimension_numbers = #tpu.dot_dimension_numbers<[1], [0], [0], [1], [0, 0, 1, 1], [], []>} : vector<18x36xf32>, vector<36x288xf32>, vector<18x288xf32> -> vector<18x288xf32>
    %c0_52 = arith.constant 0 : index
    %c0_53 = arith.constant 0 : index
    %65 = vector.load %arg10[%c0_52, %c0_53] : memref<18x36xf32, #tpu.memory_space<vmem>>, vector<18x36xf32>
    %cst_54 = arith.constant dense<0.000000e+00> : vector<18x288xf32>
    %66 = tpu.matmul %65, %62, %cst_54 {dimension_numbers = #tpu.dot_dimension_numbers<[1], [0], [0], [1], [0, 0, 1, 1], [], []>} : vector<18x36xf32>, vector<36x288xf32>, vector<18x288xf32> -> vector<18x288xf32>
    %67 = arith.maximumf %64, %66 : vector<18x288xf32>
    %c0_55 = arith.constant 0 : index
    %c0_56 = arith.constant 0 : index
    %c0_57 = arith.constant 0 : index
    %68 = vector.load %arg14[%c0_55, %c0_56, %c0_57] : memref<3x22x18xf32, #tpu.memory_space<vmem>>, vector<1x22x18xf32>
    %69 = vector.shape_cast %68 : vector<1x22x18xf32> to vector<22x18xf32>
    %cst_58 = arith.constant dense<0.000000e+00> : vector<22x288xf32>
    %70 = tpu.matmul %69, %67, %cst_58 {dimension_numbers = #tpu.dot_dimension_numbers<[1], [0], [0], [1], [0, 0, 1, 1], [], []>} : vector<22x18xf32>, vector<18x288xf32>, vector<22x288xf32> -> vector<22x288xf32>
    %c0_59 = arith.constant 0 : index
    %c0_60 = arith.constant 0 : index
    %c0_61 = arith.constant 0 : index
    %71 = vector.load %arg11[%c0_59, %c0_60, %c0_61] : memref<3x288x352xf32, #tpu.memory_space<vmem>>, vector<1x288x352xf32>
    %72 = vector.shape_cast %71 : vector<1x288x352xf32> to vector<288x352xf32>
    %cst_62 = arith.constant dense<0.000000e+00> : vector<22x352xf32>
    %73 = tpu.matmul %70, %72, %cst_62 {dimension_numbers = #tpu.dot_dimension_numbers<[1], [0], [0], [1], [0, 0, 1, 1], [], []>} : vector<22x288xf32>, vector<288x352xf32>, vector<22x352xf32> -> vector<22x352xf32>
    %c1_63 = arith.constant 1 : index
    %c0_64 = arith.constant 0 : index
    %c0_65 = arith.constant 0 : index
    %74 = vector.load %arg14[%c1_63, %c0_64, %c0_65] : memref<3x22x18xf32, #tpu.memory_space<vmem>>, vector<1x22x18xf32>
    %75 = vector.shape_cast %74 : vector<1x22x18xf32> to vector<22x18xf32>
    %cst_66 = arith.constant dense<0.000000e+00> : vector<22x288xf32>
    %76 = tpu.matmul %75, %67, %cst_66 {dimension_numbers = #tpu.dot_dimension_numbers<[1], [0], [0], [1], [0, 0, 1, 1], [], []>} : vector<22x18xf32>, vector<18x288xf32>, vector<22x288xf32> -> vector<22x288xf32>
    %c1_67 = arith.constant 1 : index
    %c0_68 = arith.constant 0 : index
    %c0_69 = arith.constant 0 : index
    %77 = vector.load %arg11[%c1_67, %c0_68, %c0_69] : memref<3x288x352xf32, #tpu.memory_space<vmem>>, vector<1x288x352xf32>
    %78 = vector.shape_cast %77 : vector<1x288x352xf32> to vector<288x352xf32>
    %cst_70 = arith.constant dense<0.000000e+00> : vector<22x352xf32>
    %79 = tpu.matmul %76, %78, %cst_70 {dimension_numbers = #tpu.dot_dimension_numbers<[1], [0], [0], [1], [0, 0, 1, 1], [], []>} : vector<22x288xf32>, vector<288x352xf32>, vector<22x352xf32> -> vector<22x352xf32>
    %80 = arith.addf %73, %79 : vector<22x352xf32>
    %c2_71 = arith.constant 2 : index
    %c0_72 = arith.constant 0 : index
    %c0_73 = arith.constant 0 : index
    %81 = vector.load %arg14[%c2_71, %c0_72, %c0_73] : memref<3x22x18xf32, #tpu.memory_space<vmem>>, vector<1x22x18xf32>
    %82 = vector.shape_cast %81 : vector<1x22x18xf32> to vector<22x18xf32>
    %cst_74 = arith.constant dense<0.000000e+00> : vector<22x288xf32>
    %83 = tpu.matmul %82, %67, %cst_74 {dimension_numbers = #tpu.dot_dimension_numbers<[1], [0], [0], [1], [0, 0, 1, 1], [], []>} : vector<22x18xf32>, vector<18x288xf32>, vector<22x288xf32> -> vector<22x288xf32>
    %c2_75 = arith.constant 2 : index
    %c0_76 = arith.constant 0 : index
    %c0_77 = arith.constant 0 : index
    %84 = vector.load %arg11[%c2_75, %c0_76, %c0_77] : memref<3x288x352xf32, #tpu.memory_space<vmem>>, vector<1x288x352xf32>
    %85 = vector.shape_cast %84 : vector<1x288x352xf32> to vector<288x352xf32>
    %cst_78 = arith.constant dense<0.000000e+00> : vector<22x352xf32>
    %86 = tpu.matmul %83, %85, %cst_78 {dimension_numbers = #tpu.dot_dimension_numbers<[1], [0], [0], [1], [0, 0, 1, 1], [], []>} : vector<22x288xf32>, vector<288x352xf32>, vector<22x352xf32> -> vector<22x352xf32>
    %87 = arith.addf %80, %86 : vector<22x352xf32>
    %c0_79 = arith.constant 0 : index
    %c0_80 = arith.constant 0 : index
    %88 = vector.load %arg12[%c0_79, %c0_80] : memref<1x32xf32, #tpu.memory_space<vmem>>, vector<1x32xf32>
    %c0_81 = arith.constant 0 : index
    %c0_82 = arith.constant 0 : index
    %89 = vector.load %arg13[%c0_81, %c0_82] : memref<1x32xf32, #tpu.memory_space<vmem>>, vector<1x32xf32>
    %c0_83 = arith.constant 0 : index
    %c0_84 = arith.constant 0 : index
    %90 = vector.load %arg15[%c0_83, %c0_84] : memref<352x32xf32, #tpu.memory_space<vmem>>, vector<352x32xf32>
    %c0_85 = arith.constant 0 : index
    %c0_86 = arith.constant 0 : index
    %91 = vector.load %arg16[%c0_85, %c0_86] : memref<32x352xf32, #tpu.memory_space<vmem>>, vector<32x352xf32>
    %cst_87 = arith.constant dense<0.000000e+00> : vector<352xf32>
    %92 = vector.multi_reduction <add>, %87, %cst_87 [0] : vector<22x352xf32> to vector<352xf32>
    %93 = vector.shape_cast %92 : vector<352xf32> to vector<1x352xf32>
    %cst_88 = arith.constant dense<0.000000e+00> : vector<1x32xf32>
    %94 = tpu.matmul %93, %90, %cst_88 {dimension_numbers = #tpu.dot_dimension_numbers<[1], [0], [0], [1], [0, 0, 1, 1], [], []>} : vector<1x352xf32>, vector<352x32xf32>, vector<1x32xf32> -> vector<1x32xf32>
    %cst_89 = arith.constant 0.00413223123 : f32
    %95 = vector.broadcast %cst_89 : f32 to vector<1x32xf32>
    %96 = arith.mulf %94, %95 : vector<1x32xf32>
    %cst_90 = arith.constant dense<0.000000e+00> : vector<1x352xf32>
    %97 = tpu.matmul %96, %91, %cst_90 {dimension_numbers = #tpu.dot_dimension_numbers<[1], [0], [0], [1], [0, 0, 1, 1], [], []>} : vector<1x32xf32>, vector<32x352xf32>, vector<1x352xf32> -> vector<1x352xf32>
    %98 = vector.broadcast %97 : vector<1x352xf32> to vector<22x352xf32>
    %99 = arith.subf %87, %98 : vector<22x352xf32>
    %100 = arith.mulf %99, %99 : vector<22x352xf32>
    %cst_91 = arith.constant dense<0.000000e+00> : vector<352xf32>
    %101 = vector.multi_reduction <add>, %100, %cst_91 [0] : vector<22x352xf32> to vector<352xf32>
    %102 = vector.shape_cast %101 : vector<352xf32> to vector<1x352xf32>
    %cst_92 = arith.constant dense<0.000000e+00> : vector<1x32xf32>
    %103 = tpu.matmul %102, %90, %cst_92 {dimension_numbers = #tpu.dot_dimension_numbers<[1], [0], [0], [1], [0, 0, 1, 1], [], []>} : vector<1x352xf32>, vector<352x32xf32>, vector<1x32xf32> -> vector<1x32xf32>
    %cst_93 = arith.constant 0.00413223123 : f32
    %104 = vector.broadcast %cst_93 : f32 to vector<1x32xf32>
    %105 = arith.mulf %103, %104 : vector<1x32xf32>
    %cst_94 = arith.constant 0.000000e+00 : f32
    %106 = vector.broadcast %cst_94 : f32 to vector<1x32xf32>
    %107 = arith.maximumf %105, %106 : vector<1x32xf32>
    %cst_95 = arith.constant 9.99999974E-6 : f32
    %108 = vector.broadcast %cst_95 : f32 to vector<1x32xf32>
    %109 = arith.addf %107, %108 : vector<1x32xf32>
    %110 = math.rsqrt %109 : vector<1x32xf32>
    %111 = arith.mulf %88, %110 : vector<1x32xf32>
    %112 = arith.mulf %96, %111 : vector<1x32xf32>
    %113 = arith.subf %89, %112 : vector<1x32xf32>
    %cst_96 = arith.constant dense<0.000000e+00> : vector<1x352xf32>
    %114 = tpu.matmul %111, %91, %cst_96 {dimension_numbers = #tpu.dot_dimension_numbers<[1], [0], [0], [1], [0, 0, 1, 1], [], []>} : vector<1x32xf32>, vector<32x352xf32>, vector<1x352xf32> -> vector<1x352xf32>
    %cst_97 = arith.constant dense<0.000000e+00> : vector<1x352xf32>
    %115 = tpu.matmul %113, %91, %cst_97 {dimension_numbers = #tpu.dot_dimension_numbers<[1], [0], [0], [1], [0, 0, 1, 1], [], []>} : vector<1x32xf32>, vector<32x352xf32>, vector<1x352xf32> -> vector<1x352xf32>
    %116 = vector.broadcast %114 : vector<1x352xf32> to vector<22x352xf32>
    %117 = arith.mulf %87, %116 : vector<22x352xf32>
    %118 = vector.broadcast %115 : vector<1x352xf32> to vector<22x352xf32>
    %119 = arith.addf %117, %118 : vector<22x352xf32>
    %cst_98 = arith.constant 0.000000e+00 : f32
    %120 = vector.broadcast %cst_98 : f32 to vector<22x352xf32>
    %121 = arith.cmpf oge, %119, %120 : vector<22x352xf32>
    %cst_99 = arith.constant 0.00999999977 : f32
    %122 = vector.broadcast %cst_99 : f32 to vector<22x352xf32>
    %123 = arith.mulf %122, %119 : vector<22x352xf32>
    %124 = arith.select %121, %119, %123 : vector<22x352xi1>, vector<22x352xf32>
    %c0_100 = arith.constant 0 : index
    %c0_101 = arith.constant 0 : index
    %125 = vector.load %arg18[%c0_100, %c0_101] : memref<16x22xf32, #tpu.memory_space<vmem>>, vector<16x22xf32>
    %c0_102 = arith.constant 0 : index
    %c0_103 = arith.constant 0 : index
    %126 = vector.load %arg17[%c0_102, %c0_103] : memref<352x256xf32, #tpu.memory_space<vmem>>, vector<352x256xf32>
    %cst_104 = arith.constant dense<0.000000e+00> : vector<22x256xf32>
    %127 = tpu.matmul %124, %126, %cst_104 {dimension_numbers = #tpu.dot_dimension_numbers<[1], [0], [0], [1], [0, 0, 1, 1], [], []>} : vector<22x352xf32>, vector<352x256xf32>, vector<22x256xf32> -> vector<22x256xf32>
    %cst_105 = arith.constant dense<0.000000e+00> : vector<16x256xf32>
    %128 = tpu.matmul %125, %127, %cst_105 {dimension_numbers = #tpu.dot_dimension_numbers<[1], [0], [0], [1], [0, 0, 1, 1], [], []>} : vector<16x22xf32>, vector<22x256xf32>, vector<16x256xf32> -> vector<16x256xf32>
    %c0_106 = arith.constant 0 : index
    %c0_107 = arith.constant 0 : index
    %129 = vector.load %arg19[%c0_106, %c0_107] : memref<16x256xf32, #tpu.memory_space<vmem>>, vector<16x256xf32>
    tpu.vector_store %arg19[%c0_106, %c0_107], %128 {strides = array<i32>} : memref<16x256xf32, #tpu.memory_space<vmem>>, vector<16x256xf32>,
    return
  }
}

</mosaic_0001>

<bundles_post_ra>
// kernel: loc_backbone_forward.1
= control target key start
LH: loop header
LB: loop body
LE: loop exit
PB: predicated region body
PF: predicated region fallthrough
CT: control target
= control target key end

     0   :  { %v16329_v0 = vmov 0.0|0.0   ;;  %vm11315_vm0 = vmmov 0   ;;  %v16331_v4 = vmov 0.0   ;;  %vm71_vm1 = vcmask 261120   ;;  %s16305_s0 = inlined_call_operand.vmem [shape: f32[32,48], index: 0, kind: input, shape index: {}]   ;;  %s16306_s1 = inlined_call_operand.vmem [shape: f32[3,48,576], index: 1, kind: input, shape index: {}]   ;;  %s16307_s4 = inlined_call_operand.vmem [shape: f32[3,36,32], index: 4, kind: input, shape index: {}]   ;;  %s16308_s5 = inlined_call_operand.vmem [shape: f32[576,32], index: 5, kind: input, shape index: {}]   ;;  %s16309_s6 = inlined_call_operand.vmem [shape: f32[32,576], index: 6, kind: input, shape index: {}]   ;;  %s16310_s2 = inlined_call_operand.vmem [shape: f32[1,32], index: 2, kind: input, shape index: {}]   ;;  %s16311_s7 = inlined_call_operand.vmem [shape: f32[576,288], index: 7, kind: input, shape index: {}]   ;;  %s16312_s3 = inlined_call_operand.vmem [shape: f32[1,32], index: 3, kind: input, shape index: {}]   ;;  %s16313_s8 = inlined_call_operand.vmem [shape: f32[576,288], index: 8, kind: input, shape index: {}]   ;;  %s16314_s9 = inlined_call_operand.vmem [shape: f32[18,36], index: 9, kind: input, shape index: {}]   ;;  %s16315_s10 = inlined_call_operand.vmem [shape: f32[18,36], index: 10, kind: input, shape index: {}]   ;;  %s16316_s14 = inlined_call_operand.vmem [shape: f32[3,22,18], index: 14, kind: input, shape index: {}]   ;;  %s16317_s11 = inlined_call_operand.vmem [shape: f32[3,288,352], index: 11, kind: input, shape index: {}]   ;;  %s16318_s15 = inlined_call_operand.vmem [shape: f32[352,32], index: 15, kind: input, shape index: {}]   ;;  %s16319_s16 = inlined_call_operand.vmem [shape: f32[32,352], index: 16, kind: input, shape index: {}]   ;;  %s16320_s12 = inlined_call_operand.vmem [shape: f32[1,32], index: 12, kind: input, shape index: {}]   ;;  %s16321_s17 = inlined_call_operand.vmem [shape: f32[352,256], index: 17, kind: input, shape index: {}]   ;;  %s16322_s13 = inlined_call_operand.vmem [shape: f32[1,32], index: 13, kind: input, shape index: {}]   ;;  %s16323_s18 = inlined_call_operand.vmem [shape: f32[16,22], index: 18, kind: input, shape index: {}]   ;;  %s16324_s19 = inlined_call_operand.vmem [shape: f32[16,256], index: 19, kind: output, shape index: {}]  }
   0x1   :  { %16364 = sst [smem:[#allocation30_spill]] %s16305_s0  ;;  %11146 = vmatprep.subr.bf16.mxu1 %v16329_v0  ;;  %9271 = vmatprep.mubr.msk.f32.mxu1 %vm11315_vm0, %v16331_v4  ;;  %vm349_vm2 = vcmask 392192   ;;  %vm1499_vm3 = vcmask 1043456   ;;  %vm1541_vm4 = vcmask 523264   ;;  %vm1549_vm5 = vcmask 519168  }
   0x2   :  { %16365 = sst [smem:[#allocation31_spill]] %s16306_s1  ;;  %s16368_s20 = sld [smem:[#allocation30_spill]]  ;;  %9758 = vmatprep.subr.bf16.mxu0 %v16329_v0  ;;  %9262 = vmatprep.mubr.msk.f32.mxu0 %vm11315_vm0, %v16331_v4 }
   0x3   :  { %16366 = sst [smem:[#allocation32_spill]] %s16307_s4  ;;  %s16369_s26 = sld [smem:[#allocation31_spill]] }
   0x4   :  { %16367 = sst [smem:[#allocation33_spill]] %s16308_s5  ;;  %s16370_s21 = sld [smem:[#allocation32_spill]] }
   0x5   :  { %s16371_s5 = sld [smem:[#allocation33_spill]] }
   0x8   :  { %v62_v1 = vld [vmem:[%s16368_s20] sm:$0xff]  ;;  %v63_v2 = vld [vmem:[%s16368_s20 + $0x8] sm:$0xff]  ;;  %v64_v3 = vld [vmem:[%s16368_s20 + $0x10] sm:$0xff] }
   0x9   :  { %v11429_v5 = vpack.c.bf16 %v63_v2, %v62_v1  ;;  %v65_v6 = vld [vmem:[%s16368_s20 + $0x18] sm:$0xff]  ;;  %v8078_v9 = vld [vmem:[%s16369_s26 + $0x120] sm:$0xff]  ;;  %v8072_v11 = vld [vmem:[%s16369_s26 + $0xf0] sm:$0xff] }
   0xa   :  { %v11438_v7 = vpack.c.bf16 %v65_v6, %v64_v3  ;;  %v8073_v8 = vld [vmem:[%s16369_s26 + $0xf8] sm:$0xff]  ;;  %v66_v13 = vld [vmem:[%s16370_s21] sm:$0xff]  ;;  %v8075_v15 = vld [vmem:[%s16369_s26 + $0x108] sm:$0xff] }
   0xb   :  { %11148 = vmatpush3.bf16.msra.mxu1 %v11429_v5  ;;  %9760 = vmatpush3.bf16.msra.mxu0 %v11429_v5  ;;  %v9770_v10 = vpack.c.bf16 %v8078_v9, %v8073_v8  ;;  %v69_v12 = vld [vmem:[%s16370_s21 + $0x18] sm:$0xff]  ;;  %v8080_v16 = vld [vmem:[%s16369_s26 + $0x130] sm:$0xff]  ;;  %v70_v18 = vld [vmem:[%s16370_s21 + $0x20] sm:$0xf] }
   0xc   :  { %11147 = vmatprep.subr.bf16.mxu1 %v16329_v0  ;;  %9761 = vmatprep.subr.bf16.mxu0 %v16329_v0  ;;  %v8077_v14 = vld [vmem:[%s16369_s26 + $0x118] sm:$0xff]  ;;  %v67_v19 = vld [vmem:[%s16370_s21 + $0x8] sm:$0xff]  ;;  %v9782_v20 = vpack.c.bf16 %v8080_v16, %v8075_v15  ;;  %v8074_v21 = vld [vmem:[%s16369_s26 + $0x100] sm:$0xff] }
   0xd   :  { %v9772_v17 = vpack.c.bf16 %v8077_v14, %v8072_v11  ;;  %v8079_v22 = vld [vmem:[%s16369_s26 + $0x128] sm:$0xff]  ;;  %v68_v24 = vld [vmem:[%s16370_s21 + $0x10] sm:$0xff]  ;;  %v8064_v27 = vld [vmem:[%s16370_s21 + $0x38] sm:$0xff] }
   0xe   :  { %v8062_v23 = vld [vmem:[%s16370_s21 + $0x28] sm:$0xff]  ;;  %v9784_v25 = vpack.c.bf16 %v8079_v22, %v8074_v21  ;;  %v8063_v26 = vld [vmem:[%s16370_s21 + $0x30] sm:$0xff]  ;;  %v8065_v28 = vld [vmem:[%s16370_s21 + $0x40] sm:$0xff] }
   0xf   :  { %11149 = vmatpush3.bf16.msra.mxu1 %v11438_v7  ;;  %9763 = vmatpush3.bf16.msra.mxu0 %v11438_v7  ;;  %v8066_v29 = vld [vmem:[%s16370_s21 + $0x48] sm:$0xf]  ;;  %v8088_v31 = vld [vmem:[%s16369_s26 + $0x170] sm:$0xff]  ;;  %v8085_v32 = vld [vmem:[%s16369_s26 + $0x158] sm:$0xff] }
  0x10   :  { %9764 = vmatprep.subr.bf16.mxu1 %v16329_v0  ;;  %9771 = vmatprep.subr.bf16.mxu0 %v9770_v10  ;;  %v8083_v30 = vld [vmem:[%s16369_s26 + $0x148] sm:$0xff]  ;;  %v8090_v34 = vld [vmem:[%s16369_s26 + $0x180] sm:$0xff]  ;;  %v8084_v39 = vld [vmem:[%s16369_s26 + $0x150] sm:$0xff] }
  0x11   :  { %v9774_v33 = vpack.c.bf16 %v8088_v31, %v8083_v30  ;;  %v8082_v35 = vld [vmem:[%s16369_s26 + $0x140] sm:$0xff]  ;;  %v8087_v36 = vld [vmem:[%s16369_s26 + $0x168] sm:$0xff]  ;;  %v9786_v37 = vpack.c.bf16 %v8090_v34, %v8085_v32  ;;  %v8089_v40 = vld [vmem:[%s16369_s26 + $0x178] sm:$0xff] }
  0x12   :  { %9272 = vmatmul.mubr.msk.f32.vlgmr.msra.gmra.mrb[0].mxu1 %vm71_vm1, %v69_v12  ;;  %9263 = vmatmul.mubr.msk.f32.vlgmr.msra.gmra.mrb[0].mxu0 %vm71_vm1, %v66_v13  ;;  %v9776_v38 = vpack.c.bf16 %v8087_v36, %v8082_v35  ;;  %v9788_v41 = vpack.c.bf16 %v8089_v40, %v8084_v39  ;;  %v8093_v42 = vld [vmem:[%s16369_s26 + $0x198] sm:$0xff]  ;;  %v8098_v43 = vld [vmem:[%s16369_s26 + $0x1c0] sm:$0xff]  ;;  %v8095_v44 = vld [vmem:[%s16369_s26 + $0x1a8] sm:$0xff] }
  0x13   :  { %9766 = vmatpush3.bf16.msra.mxu1 %v11429_v5  ;;  %9274 = vmatprep.mubr.msk.f32.mxu1 %vm11315_vm0, %v16331_v4  ;;  %v9778_v45 = vpack.c.bf16 %v8098_v43, %v8093_v42  ;;  %v8100_v46 = vld [vmem:[%s16369_s26 + $0x1d0] sm:$0xff]  ;;  %v8097_v48 = vld [vmem:[%s16369_s26 + $0x1b8] sm:$0xff]  ;;  %v8094_v51 = vld [vmem:[%s16369_s26 + $0x1a0] sm:$0xff] }
  0x14   :  { %9767 = vmatprep.subr.bf16.mxu1 %v16329_v0  ;;  %9265 = vmatprep.mubr.msk.f32.mxu0 %vm11315_vm0, %v16331_v4  ;;  %v8092_v47 = vld [vmem:[%s16369_s26 + $0x190] sm:$0xff]  ;;  %v9790_v49 = vpack.c.bf16 %v8100_v46, %v8095_v44  ;;  %v8099_v52 = vld [vmem:[%s16369_s26 + $0x1c8] sm:$0xff]  ;;  %v180_v54 = vld [vmem:[%s16369_s26 + $0x18] sm:$0xff] }
  0x15   :  { %9773 = vmatpush1.bf16.msra.mxu0 %v9772_v17  ;;  %v9780_v50 = vpack.c.bf16 %v8097_v48, %v8092_v47  ;;  %v9792_v53 = vpack.c.bf16 %v8099_v52, %v8094_v51  ;;  %v185_v55 = vld [vmem:[%s16369_s26 + $0x40] sm:$0xff]  ;;  %v179_v61 = vld [vmem:[%s16369_s26 + $0x10] sm:$0xff]  ;;  %v184_v63 = vld [vmem:[%s16369_s26 + $0x38] sm:$0xff] }
  0x16   :  { %9275 = vmatmul.mubr.msk.f32.gmra.mrb[2].mxu1 %vm71_vm1, %v70_v18  ;;  %9266 = vmatmul.mubr.msk.f32.gmra.mrb[2].mxu0 %vm71_vm1, %v67_v19  ;;  %v9815_v56 = vpack.c.bf16 %v185_v55, %v180_v54  ;;  %v8076_v1 = vld [vmem:[%s16369_s26 + $0x110] sm:$0xff]  ;;  %v8081_v2 = vld [vmem:[%s16369_s26 + $0x138] sm:$0xff]  ;;  %v190_v8 = vld [vmem:[%s16369_s26 + $0x68] sm:$0xff]  ;;  %v9817_v11 = vpack.c.bf16 %v184_v63, %v179_v61 }
  0x17   :  { %9769 = vmatpush3.bf16.msra.mxu1 %v11438_v7  ;;  %9285 = vmatprep.mubr.msk.f32.mxu1 %vm11315_vm0, %v16331_v4  ;;  %v195_v9 = vld [vmem:[%s16369_s26 + $0x90] sm:$0xff]  ;;  %v9795_v12 = vpack.c.bf16 %v8081_v2, %v8076_v1  ;;  %v8086_v13 = vld [vmem:[%s16369_s26 + $0x160] sm:$0xff]  ;;  %v8091_v16 = vld [vmem:[%s16369_s26 + $0x188] sm:$0xff] }
  0x18   :  { %9268 = vmatprep.mubr.msk.f32.mxu0 %vm11315_vm0, %v16331_v4  ;;  %9783 = vmatprep.subr.bf16.mxu1 %v9782_v20  ;;  %v9819_v15 = vpack.c.bf16 %v195_v9, %v190_v8  ;;  %v189_v17 = vld [vmem:[%s16369_s26 + $0x60] sm:$0xff]  ;;  %v194_v18 = vld [vmem:[%s16369_s26 + $0x88] sm:$0xff]  ;;  %v200_v21 = vld [vmem:[%s16369_s26 + $0xb8] sm:$0xff] }
  0x19   :  { %9775 = vmatprep.subr.bf16.mxu0 %v9774_v33  ;;  %v205_v22 = vld [vmem:[%s16369_s26 + $0xe0] sm:$0xff]  ;;  %v199_v30 = vld [vmem:[%s16369_s26 + $0xb0] sm:$0xff]  ;;  %v204_v31 = vld [vmem:[%s16369_s26 + $0xd8] sm:$0xff] }
  0x1a   :  { %9286 = vmatmul.mubr.msk.f32.vlgmr.msra.gmra.mrb[4].mxu1 %vm71_vm1, %v8062_v23  ;;  %9269 = vmatmul.mubr.msk.f32.gmra.mrb[4].mxu0 %vm71_vm1, %v68_v24  ;;  %v9798_v24 = vpack.c.bf16 %v8091_v16, %v8086_v13  ;;  %v178_v33 = vld [vmem:[%s16369_s26 + $0x8] sm:$0xff]  ;;  %v183_v34 = vld [vmem:[%s16369_s26 + $0x30] sm:$0xff]  ;;  %v9825_v36 = vpack.c.bf16 %v204_v31, %v199_v30  ;;  %v177_v43 = vld [vmem:[%s16369_s26] sm:$0xff] }
  0x1b   :  { %9288 = vmatprep.mubr.msk.f32.mxu1 %vm11315_vm0, %v16331_v4  ;;  %9785 = vmatpush1.bf16.msra.mxu1 %v9784_v25  ;;  %v9821_v25 = vpack.c.bf16 %v194_v18, %v189_v17  ;;  %v182_v44 = vld [vmem:[%s16369_s26 + $0x28] sm:$0xff]  ;;  %v188_v46 = vld [vmem:[%s16369_s26 + $0x58] sm:$0xff]  ;;  %v193_v47 = vld [vmem:[%s16369_s26 + $0x80] sm:$0xff] }
  0x1c   :  { %429 = vmatprep.mubr.f32.mxu0 %v16331_v4  ;;  %9787 = vmatprep.subr.bf16.mxu1 %v9786_v37  ;;  %v9805_v48 = vpack.c.bf16 %v182_v44, %v177_v43  ;;  %v192_v51 = vld [vmem:[%s16369_s26 + $0x78] sm:$0xff]  ;;  %v198_v52 = vld [vmem:[%s16369_s26 + $0xa8] sm:$0xff]  ;;  %v8150_v55 = vld [vmem:[%s16369_s26 + $0x220] sm:$0xff] }
  0x1d   :  { %9777 = vmatpush1.bf16.msra.mxu0 %v9776_v38  ;;  %v9803_v38 = vpack.c.bf16 %v183_v34, %v178_v33  ;;  %v8145_v54 = vld [vmem:[%s16369_s26 + $0x1f8] sm:$0xff]  ;;  %v202_v61 = vld [vmem:[%s16369_s26 + $0xc8] sm:$0xff]  ;;  %v8144_v2 = vld [vmem:[%s16369_s26 + $0x1f0] sm:$0xff] }
  0x1e   :  { %9289 = vmatmul.mubr.msk.f32.gmra.mrb[6].mxu1 %vm71_vm1, %v8063_v26  ;;  %9779 = vmatprep.subr.bf16.mxu0 %v9778_v45  ;;  %v8096_v26 = vld [vmem:[%s16369_s26 + $0x1b0] sm:$0xff]  ;;  %v9854_v63 = vpack.c.bf16 %v8150_v55, %v8145_v54  ;;  %v186_v1 = vld [vmem:[%s16369_s26 + $0x48] sm:$0xff]  ;;  %v8154_v16 = vld [vmem:[%s16369_s26 + $0x240] sm:$0xff] }
  0x1f   :  { %9291 = vmatprep.mubr.msk.f32.mxu1 %vm11315_vm0, %v16331_v4  ;;  %9789 = vmatpush1.bf16.msra.mxu1 %v9788_v41  ;;  %v8155_v8 = vld [vmem:[%s16369_s26 + $0x248] sm:$0xff]  ;;  %v8160_v9 = vld [vmem:[%s16369_s26 + $0x270] sm:$0xff]  ;;  %v8165_v18 = vld [vmem:[%s16369_s26 + $0x298] sm:$0xff] }
  0x20   :  { %9791 = vmatprep.subr.bf16.mxu1 %v9790_v49  ;;  %v9807_v49 = vpack.c.bf16 %v193_v47, %v188_v46  ;;  %v8159_v17 = vld [vmem:[%s16369_s26 + $0x268] sm:$0xff]  ;;  %v8148_v30 = vld [vmem:[%s16369_s26 + $0x210] sm:$0xff]  ;;  %v8134_v31 = vld [vmem:[%s16370_s21 + $0x60] sm:$0xff] }
  0x21   :  { %9781 = vmatpush1.bf16.msra.mxu0 %v9780_v50  ;;  %v187_v50 = vld [vmem:[%s16369_s26 + $0x50] sm:$0xff]  ;;  %v8157_v44 = vld [vmem:[%s16369_s26 + $0x258] sm:$0xff] }
  0x22   :  { %9292 = vmatmul.mubr.msk.f32.gmra.mrb[8].mxu1 %vm71_vm1, %v8064_v27  ;;  %9794 = vmatprep.subr.bf16.mxu0 %v16329_v0  ;;  %v8152_v43 = vld [vmem:[%s16369_s26 + $0x230] sm:$0xff] }
  0x23   :  { %9294 = vmatprep.mubr.msk.f32.mxu1 %vm11315_vm0, %v16331_v4  ;;  %9793 = vmatpush1.bf16.msra.mxu1 %v9792_v53  ;;  %v203_v53 = vld [vmem:[%s16369_s26 + $0xd0] sm:$0xff]  ;;  %v9848_v47 = vpack.c.bf16 %v8157_v44, %v8152_v43  ;;  %v1415_v43 = vld [vmem:[%s16371_s5 + $0x58] sm:$0xff] }
  0x24   :  { %9816 = vmatprep.subr.bf16.mxu1 %v9815_v56  ;;  %v9809_v56 = vpack.c.bf16 %v192_v51, %v187_v50  ;;  %v8168_v46 = vld [vmem:[%s16369_s26 + $0x2b0] sm:$0xff]  ;;  %v8167_v50 = vld [vmem:[%s16369_s26 + $0x2a8] sm:$0xff] }
  0x26   :  { %9295 = vmatmul.mubr.msk.f32.gmra.mrb[10].mxu1 %vm71_vm1, %v8065_v28  ;;  %v9823_v28 = vpack.c.bf16 %v205_v22, %v200_v21  ;;  %v8133_v21 = vld [vmem:[%s16370_s21 + $0x58] sm:$0xff] }
  0x27   :  { %9297 = vmatprep.mubr.msk.f32.mxu1 %vm11315_vm0, %v16331_v4 }
  0x2a   :  { %9298 = vmatmul.mubr.msk.f32.gmra.mrb[12].mxu1 %vm71_vm1, %v8066_v29  ;;  %v8101_v29 = vld [vmem:[%s16369_s26 + $0x1d8] sm:$0xff] }
  0x2b   :  { %524 = vmatprep.mubr.f32.mxu1 %v16331_v4  ;;  %v9801_v35 = vpack.c.bf16 %v8101_v29, %v8096_v26  ;;  %v8143_v29 = vld [vmem:[%s16369_s26 + $0x1e8] sm:$0xff] }
  0x2c   :  { %v9842_v34 = vpack.c.bf16 %v8148_v30, %v8143_v29  ;;  %v1410_v30 = vld [vmem:[%s16371_s5 + $0x30] sm:$0xff] }
  0xe5   :  { %v11586_v57 = vpop.f32.mrb[0].mxu1  ;;  %v11588_v58 = vpop.f32.mrb[0].mxu0 }
  0xe6   :  { %v9273_v59 = vpop.f32.mrb[1].mxu1  ;;  %v9264_v60 = vpop.f32.mrb[1].mxu0 }
  0xe7   :  { %v9811_v59 = vpack.c.bf16 %v203_v53, %v198_v52  ;;  %v197_v60 = vld [vmem:[%s16369_s26 + $0xa0] sm:$0xff] }
  0xe9   :  { %v11593_v62 = vpop.f32.mrb[2].mxu1  ;;  %v11604_v3 = vpop.f32.mrb[2].mxu0 }
  0xea   :  { %v9276_v6 = vpop.f32.mrb[3].mxu1  ;;  %v9267_v10 = vpop.f32.mrb[3].mxu0 }
  0xeb   :  { %v8149_v6 = vld [vmem:[%s16369_s26 + $0x218] sm:$0xff]  ;;  %v8132_v10 = vld [vmem:[%s16370_s21 + $0x50] sm:$0xff] }
  0xec   :  { %v9856_v13 = vpack.c.bf16 %v8149_v6, %v8144_v2 }
  0xed   :  { %v11615_v14 = vpop.f32.mrb[4].mxu1  ;;  %v11626_v19 = vpop.f32.mrb[4].mxu0 }
  0xee   :  { %v9287_v20 = vpop.f32.mrb[5].mxu1  ;;  %8102 = vmatmul.mubr.msk.f32.vlgmr.msra.gmra.mrb[6].mxu0 %vm349_vm2, %v11615_v14  ;;  %8107 = vmatmul.mubr.msk.f32.vlgmr.msra.gmra.mrb[14].mxu1 %vm349_vm2, %v11615_v14  ;;  %v9270_v23 = vpop.f32.mrb[5].mxu0 }
  0xef   :  { %435 = vmatprep.mubr.f32.mxu0 %v16331_v4  ;;  %530 = vmatprep.mubr.f32.mxu1 %v16331_v4  ;;  %v8170_v20 = vld [vmem:[%s16369_s26 + $0x2c0] sm:$0xff] }
  0xf0   :  { %9818 = vmatpush1.bf16.msra.mxu1 %v9817_v11  ;;  %9796 = vmatpush3.bf16.msra.mxu0 %v9795_v12  ;;  %v191_v12 = vld [vmem:[%s16369_s26 + $0x70] sm:$0xff]  ;;  %v201_v23 = vld [vmem:[%s16369_s26 + $0xc0] sm:$0xff]  ;;  %v9862_v26 = vpack.c.bf16 %v8170_v20, %v8165_v18  ;;  %v1407_v18 = vld [vmem:[%s16371_s5 + $0x18] sm:$0xff] }
  0xf1   :  { %v11643_v27 = vpop.f32.mrb[6].mxu1  ;;  %9797 = vmatprep.subr.bf16.mxu0 %v16329_v0  ;;  %9820 = vmatprep.subr.bf16.mxu1 %v9819_v15  ;;  %v9858_v15 = vpack.c.bf16 %v8160_v9, %v8155_v8  ;;  %v1420_v8 = vld [vmem:[%s16371_s5 + $0x80] sm:$0xff]  ;;  %v1421_v9 = vld [vmem:[%s16371_s5 + $0x88] sm:$0xff] }
  0xf2   :  { %v9290_v32 = vpop.f32.mrb[7].mxu1  ;;  %8103 = vmatmul.mubr.msk.f32.gmra.mrb[8].mxu0 %vm349_vm2, %v11643_v27  ;;  %8108 = vmatmul.mubr.msk.f32.gmra.mrb[16].mxu1 %vm349_vm2, %v11643_v27 }
  0xf3   :  { %441 = vmatprep.mubr.f32.mxu0 %v16331_v4  ;;  %536 = vmatprep.mubr.f32.mxu1 %v16331_v4 }
  0xf4   :  { %9799 = vmatpush3.bf16.msra.mxu0 %v9798_v24  ;;  %9822 = vmatpush1.bf16.msra.mxu1 %v9821_v25  ;;  %v9860_v24 = vpack.c.bf16 %v8159_v17, %v8154_v16  ;;  %v206_v25 = vld [vmem:[%s16369_s26 + $0xe8] sm:$0xff]  ;;  %v1406_v17 = vld [vmem:[%s16371_s5 + $0x10] sm:$0xff] }
  0xf5   :  { %v304_v37 = vpop.f32.mrb[8].mxu1  ;;  %9800 = vmatprep.subr.bf16.mxu0 %v16329_v0  ;;  %9824 = vmatprep.subr.bf16.mxu1 %v9823_v28  ;;  %v8169_v28 = vld [vmem:[%s16369_s26 + $0x2b8] sm:$0xff]  ;;  %v9834_v32 = vpack.c.bf16 %v206_v25, %v201_v23  ;;  %v11993_v20 = vpack.c.bf16 %v1407_v18, %v1406_v17  ;;  %v1409_v25 = vld [vmem:[%s16371_s5 + $0x28] sm:$0xff] }
  0xf6   :  { %v9293_v39 = vpop.f32.mrb[9].mxu1  ;;  %8104 = vmatmul.mubr.msk.f32.gmra.mrb[10].mxu0 %vm349_vm2, %v304_v37  ;;  %8109 = vmatmul.mubr.msk.f32.gmra.mrb[18].mxu1 %vm349_vm2, %v304_v37 }
  0xf7   :  { %447 = vmatprep.mubr.f32.mxu0 %v16331_v4  ;;  %542 = vmatprep.mubr.f32.mxu1 %v16331_v4  ;;  %v8153_v39 = vld [vmem:[%s16369_s26 + $0x238] sm:$0xff] }
  0xf8   :  { %9802 = vmatpush3.bf16.msra.mxu0 %v9801_v35  ;;  %9826 = vmatpush1.bf16.msra.mxu1 %v9825_v36  ;;  %v8135_v35 = vld [vmem:[%s16370_s21 + $0x68] sm:$0xff]  ;;  %v8136_v36 = vld [vmem:[%s16370_s21 + $0x70] sm:$0xf] }
  0xf9   :  { %v309_v40 = vpop.f32.mrb[10].mxu1  ;;  %9836 = vmatprep.subr.bf16.mxu1 %v16329_v0  ;;  %9804 = vmatprep.subr.bf16.mxu0 %v9803_v38  ;;  %v8147_v38 = vld [vmem:[%s16369_s26 + $0x208] sm:$0xff] }
  0xfa   :  { %v9296_v41 = vpop.f32.mrb[11].mxu1  ;;  %8105 = vmatmul.mubr.msk.f32.gmra.mrb[12].mxu0 %vm349_vm2, %v309_v40  ;;  %8110 = vmatmul.mubr.msk.f32.gmra.mrb[20].mxu1 %vm349_vm2, %v309_v40 }
  0xfb   :  { %453 = vmatprep.mubr.f32.mxu0 %v16331_v4  ;;  %548 = vmatprep.mubr.f32.mxu1 %v16331_v4 }
  0xfd   :  { %v314_v42 = vpop.f32.mrb[12].mxu1 }
  0xfe   :  { %v9299_v45 = vpop.f32.mrb[13].mxu1  ;;  %8106 = vmatmul.mubr.msk.f32.gmra.mrb[14].mxu0 %vm349_vm2, %v314_v42  ;;  %8111 = vmatmul.mubr.msk.f32.gmra.mrb[22].mxu1 %vm349_vm2, %v314_v42 }
  0xff   :  { %9312 = vmatprep.mubr.msk.f32.mxu0 %vm11315_vm0, %v16331_v4  ;;  %819 = vmatprep.mubr.f32.mxu1 %v16331_v4  ;;  %v8163_v45 = vld [vmem:[%s16369_s26 + $0x288] sm:$0xff] }
 0x102   :  { %9313 = vmatmul.mubr.msk.f32.vlgmr.msra.gmra.mrb[16].mxu0 %vm349_vm2, %v11615_v14  ;;  %8122 = vmatmul.mubr.msk.f32.vlgmr.msra.gmra.mrb[14].mxu1 %vm349_vm2, %v11588_v58  ;;  %v196_v14 = vld [vmem:[%s16369_s26 + $0x98] sm:$0xff] }
 0x103   :  { %9315 = vmatprep.mubr.msk.f32.mxu0 %vm11315_vm0, %v16331_v4  ;;  %825 = vmatprep.mubr.f32.mxu1 %v16331_v4  ;;  %v9831_v22 = vpack.c.bf16 %v196_v14, %v191_v12  ;;  %v1405_v12 = vld [vmem:[%s16371_s5 + $0x8] sm:$0xff]  ;;  %v1422_v14 = vld [vmem:[%s16371_s5 + $0x90] sm:$0xff] }
 0x104   :  { %9838 = vmatpush3.bf16.msra.mxu1 %v11429_v5  ;;  %9806 = vmatpush1.bf16.msra.mxu0 %v9805_v48  ;;  %v9813_v5 = vpack.c.bf16 %v202_v61, %v197_v60  ;;  %v9850_v48 = vpack.c.bf16 %v8168_v46, %v8163_v45  ;;  %v1432_v45 = vld [vmem:[%s16371_s5 + $0xe0] sm:$0xff]  ;;  %v1433_v46 = vld [vmem:[%s16371_s5 + $0xe8] sm:$0xff] }
 0x105   :  { %9808 = vmatprep.subr.bf16.mxu0 %v9807_v49  ;;  %9839 = vmatprep.subr.bf16.mxu1 %v16329_v0  ;;  %v8162_v49 = vld [vmem:[%s16369_s26 + $0x280] sm:$0xff] }
 0x106   :  { %9316 = vmatmul.mubr.msk.f32.gmra.mrb[18].mxu0 %vm349_vm2, %v11643_v27  ;;  %8123 = vmatmul.mubr.msk.f32.gmra.mrb[16].mxu1 %vm349_vm2, %v11604_v3  ;;  %v8164_v27 = vld [vmem:[%s16369_s26 + $0x290] sm:$0xff] }
 0x107   :  { %9318 = vmatprep.mubr.msk.f32.mxu0 %vm11315_vm0, %v16331_v4  ;;  %831 = vmatprep.mubr.f32.mxu1 %v16331_v4  ;;  %v9864_v33 = vpack.c.bf16 %v8169_v28, %v8164_v27  ;;  %v1426_v27 = vld [vmem:[%s16371_s5 + $0xb0] sm:$0xff]  ;;  %v1427_v28 = vld [vmem:[%s16371_s5 + $0xb8] sm:$0xff] }
 0x108   :  { %9810 = vmatpush1.bf16.msra.mxu0 %v9809_v56  ;;  %9841 = vmatpush3.bf16.msra.mxu1 %v11438_v7  ;;  %v181_v7 = vld [vmem:[%s16369_s26 + $0x20] sm:$0xff]  ;;  %v12021_v29 = vpack.c.bf16 %v1427_v28, %v1426_v27 }
 0x109   :  { %9812 = vmatprep.subr.bf16.mxu0 %v9811_v59  ;;  %9855 = vmatprep.subr.bf16.mxu1 %v9854_v63  ;;  %v9828_v11 = vpack.c.bf16 %v186_v1, %v181_v7  ;;  %v8166_v56 = vld [vmem:[%s16369_s26 + $0x2a0] sm:$0xff]  ;;  %v8171_v59 = vld [vmem:[%s16369_s26 + $0x2c8] sm:$0xff] }
 0x10a   :  { %9319 = vmatmul.mubr.msk.f32.gmra.mrb[20].mxu0 %vm349_vm2, %v304_v37  ;;  %8124 = vmatmul.mubr.msk.f32.gmra.mrb[18].mxu1 %vm349_vm2, %v11626_v19  ;;  %v8142_v37 = vld [vmem:[%s16369_s26 + $0x1e0] sm:$0xff]  ;;  %v9873_v61 = vpack.c.bf16 %v8171_v59, %v8166_v56  ;;  %v1469_v56 = vld [vmem:[%s16371_s5 + $0x208] sm:$0xff] }
 0x10b   :  { %9321 = vmatprep.mubr.msk.f32.mxu0 %vm11315_vm0, %v16331_v4  ;;  %837 = vmatprep.mubr.f32.mxu1 %v16331_v4  ;;  %v9844_v41 = vpack.c.bf16 %v8147_v38, %v8142_v37  ;;  %v1413_v37 = vld [vmem:[%s16371_s5 + $0x48] sm:$0xff] }
 0x10c   :  { %9814 = vmatpush1.bf16.msra.mxu0 %v9813_v5 }
 0x10d   :  { %9827 = vmatprep.subr.bf16.mxu0 %v16329_v0 }
 0x10e   :  { %9322 = vmatmul.mubr.msk.f32.gmra.mrb[22].mxu0 %vm349_vm2, %v309_v40  ;;  %8125 = vmatmul.mubr.msk.f32.gmra.mrb[20].mxu1 %vm349_vm2, %v11586_v57  ;;  %v8158_v40 = vld [vmem:[%s16369_s26 + $0x260] sm:$0xff] }
 0x10f   :  { %9324 = vmatprep.mubr.msk.f32.mxu0 %vm11315_vm0, %v16331_v4  ;;  %843 = vmatprep.mubr.f32.mxu1 %v16331_v4 }
 0x112   :  { %9325 = vmatmul.mubr.msk.f32.gmra.mrb[24].mxu0 %vm349_vm2, %v314_v42  ;;  %8126 = vmatmul.mubr.msk.f32.gmra.mrb[22].mxu1 %vm349_vm2, %v11593_v62  ;;  %v9846_v42 = vpack.c.bf16 %v8158_v40, %v8153_v39  ;;  %v1430_v39 = vld [vmem:[%s16371_s5 + $0xd0] sm:$0xff]  ;;  %v1431_v40 = vld [vmem:[%s16371_s5 + $0xd8] sm:$0xff] }
 0x113   :  { %724 = vmatprep.mubr.f32.mxu0 %v16331_v4  ;;  %9362 = vmatprep.mubr.msk.f32.mxu1 %vm11315_vm0, %v16331_v4 }
 0x116   :  { %8117 = vmatmul.mubr.msk.f32.vlgmr.msra.gmra.mrb[6].mxu0 %vm349_vm2, %v11588_v58  ;;  %9363 = vmatmul.mubr.msk.f32.vlgmr.msra.gmra.mrb[24].mxu1 %vm71_vm1, %v8132_v10  ;;  %v11967_v10 = vpack.c.bf16 %v1421_v9, %v1420_v8 }
 0x117   :  { %730 = vmatprep.mubr.f32.mxu0 %v16331_v4  ;;  %9365 = vmatprep.mubr.msk.f32.mxu1 %vm11315_vm0, %v16331_v4 }
 0x118   :  { %9829 = vmatpush3.bf16.msra.mxu0 %v9828_v11  ;;  %9857 = vmatpush1.bf16.msra.mxu1 %v9856_v13  ;;  %v1404_v11 = vld [vmem:[%s16371_s5] sm:$0xff] }
 0x119   :  { %9830 = vmatprep.subr.bf16.mxu0 %v16329_v0  ;;  %9859 = vmatprep.subr.bf16.mxu1 %v9858_v15  ;;  %v11975_v13 = vpack.c.bf16 %v1405_v12, %v1404_v11  ;;  %v1423_v15 = vld [vmem:[%s16371_s5 + $0x98] sm:$0xff] }
 0x11a   :  { %8118 = vmatmul.mubr.msk.f32.gmra.mrb[8].mxu0 %vm349_vm2, %v11604_v3  ;;  %9366 = vmatmul.mubr.msk.f32.gmra.mrb[26].mxu1 %vm71_vm1, %v8133_v21  ;;  %v11985_v16 = vpack.c.bf16 %v1423_v15, %v1422_v14  ;;  %v1424_v21 = vld [vmem:[%s16371_s5 + $0xa0] sm:$0xff] }
 0x11b   :  { %736 = vmatprep.mubr.f32.mxu0 %v16331_v4  ;;  %9368 = vmatprep.mubr.msk.f32.mxu1 %vm11315_vm0, %v16331_v4 }
 0x11c   :  { %9832 = vmatpush3.bf16.msra.mxu0 %v9831_v22  ;;  %9861 = vmatpush1.bf16.msra.mxu1 %v9860_v24  ;;  %v1425_v22 = vld [vmem:[%s16371_s5 + $0xa8] sm:$0xff]  ;;  %v1408_v24 = vld [vmem:[%s16371_s5 + $0x20] sm:$0xff] }
 0x11d   :  { %9833 = vmatprep.subr.bf16.mxu0 %v16329_v0  ;;  %9863 = vmatprep.subr.bf16.mxu1 %v9862_v26  ;;  %v12003_v23 = vpack.c.bf16 %v1425_v22, %v1424_v21  ;;  %v12011_v26 = vpack.c.bf16 %v1409_v25, %v1408_v24 }
 0x11e   :  { %8119 = vmatmul.mubr.msk.f32.gmra.mrb[10].mxu0 %vm349_vm2, %v11626_v19  ;;  %9369 = vmatmul.mubr.msk.f32.gmra.mrb[28].mxu1 %vm71_vm1, %v8134_v31  ;;  %v1411_v31 = vld [vmem:[%s16371_s5 + $0x38] sm:$0xff] }
 0x11f   :  { %742 = vmatprep.mubr.f32.mxu0 %v16331_v4  ;;  %9371 = vmatprep.mubr.msk.f32.mxu1 %vm11315_vm0, %v16331_v4 }
 0x120   :  { %9835 = vmatpush3.bf16.msra.mxu0 %v9834_v32  ;;  %9865 = vmatpush1.bf16.msra.mxu1 %v9864_v33  ;;  %v12029_v32 = vpack.c.bf16 %v1411_v31, %v1410_v30  ;;  %v1428_v33 = vld [vmem:[%s16371_s5 + $0xc0] sm:$0xff] }
 0x121   :  { %9843 = vmatprep.subr.bf16.mxu0 %v9842_v34  ;;  %9876 = vmatprep.subr.bf16.mxu1 %v11967_v10  ;;  %v1429_v34 = vld [vmem:[%s16371_s5 + $0xc8] sm:$0xff] }
 0x122   :  { %8120 = vmatmul.mubr.msk.f32.gmra.mrb[12].mxu0 %vm349_vm2, %v11586_v57  ;;  %9372 = vmatmul.mubr.msk.f32.gmra.mrb[30].mxu1 %vm71_vm1, %v8135_v35  ;;  %v12039_v35 = vpack.c.bf16 %v1429_v34, %v1428_v33 }
 0x123   :  { %748 = vmatprep.mubr.f32.mxu0 %v16331_v4  ;;  %9374 = vmatprep.mubr.msk.f32.mxu1 %vm11315_vm0, %v16331_v4 }
 0x126   :  { %8121 = vmatmul.mubr.msk.f32.gmra.mrb[14].mxu0 %vm349_vm2, %v11593_v62  ;;  %9375 = vmatmul.mubr.msk.f32.gmra.mrb[32].mxu1 %vm71_vm1, %v8136_v36  ;;  %v1412_v36 = vld [vmem:[%s16371_s5 + $0x40] sm:$0xff] }
 0x127   :  { %9339 = vmatprep.mubr.msk.f32.mxu0 %vm11315_vm0, %v16331_v4  ;;  %1256 = vmatprep.mubr.f32.mxu1 %v16331_v4  ;;  %v12047_v38 = vpack.c.bf16 %v1413_v37, %v1412_v36 }
 0x12a   :  { %9340 = vmatmul.mubr.msk.f32.vlgmr.msra.gmra.mrb[16].mxu0 %vm349_vm2, %v11588_v58  ;;  %v9852_v58 = vpack.c.bf16 %v8167_v50, %v8162_v49  ;;  %v1417_v49 = vld [vmem:[%s16371_s5 + $0x68] sm:$0xff] }
 0x12b   :  { %9342 = vmatprep.mubr.msk.f32.mxu0 %vm11315_vm0, %v16331_v4  ;;  %9845 = vmatpush1.bf16.msra.mxu0 %v9844_v41  ;;  %v12057_v41 = vpack.c.bf16 %v1431_v40, %v1430_v39 }
 0x12c   :  { %9847 = vmatprep.subr.bf16.mxu0 %v9846_v42  ;;  %v1414_v42 = vld [vmem:[%s16371_s5 + $0x50] sm:$0xff] }
 0x12d   :  { %v12065_v44 = vpack.c.bf16 %v1415_v43, %v1414_v42 }
 0x12e   :  { %9343 = vmatmul.mubr.msk.f32.gmra.mrb[18].mxu0 %vm349_vm2, %v11604_v3  ;;  %v8146_v3 = vld [vmem:[%s16369_s26 + $0x200] sm:$0xff] }
 0x12f   :  { %9345 = vmatprep.mubr.msk.f32.mxu0 %vm11315_vm0, %v16331_v4  ;;  %9849 = vmatpush1.bf16.msra.mxu0 %v9848_v47  ;;  %v12075_v47 = vpack.c.bf16 %v1433_v46, %v1432_v45 }
 0x130   :  { %9851 = vmatprep.subr.bf16.mxu0 %v9850_v48  ;;  %v1416_v48 = vld [vmem:[%s16371_s5 + $0x60] sm:$0xff] }
 0x131   :  { %v12083_v50 = vpack.c.bf16 %v1417_v49, %v1416_v48 }
 0x132   :  { %9346 = vmatmul.mubr.msk.f32.gmra.mrb[20].mxu0 %vm349_vm2, %v11626_v19  ;;  %v8151_v19 = vld [vmem:[%s16369_s26 + $0x228] sm:$0xff] }
 0x133   :  { %9348 = vmatprep.mubr.msk.f32.mxu0 %vm11315_vm0, %v16331_v4  ;;  %9853 = vmatpush1.bf16.msra.mxu0 %v9852_v58  ;;  %v9867_v51 = vpack.c.bf16 %v8151_v19, %v8146_v3  ;;  %v1434_v58 = vld [vmem:[%s16371_s5 + $0xf0] sm:$0xff]  ;;  %v1435_v3 = vld [vmem:[%s16371_s5 + $0xf8] sm:$0xff] }
 0x134   :  { %9866 = vmatprep.subr.bf16.mxu0 %v16329_v0  ;;  %v12093_v19 = vpack.c.bf16 %v1435_v3, %v1434_v58 }
 0x136   :  { %9349 = vmatmul.mubr.msk.f32.gmra.mrb[22].mxu0 %vm349_vm2, %v11586_v57  ;;  %v8156_v57 = vld [vmem:[%s16369_s26 + $0x250] sm:$0xff] }
 0x137   :  { %9351 = vmatprep.mubr.msk.f32.mxu0 %vm11315_vm0, %v16331_v4 }
 0x13a   :  { %9352 = vmatmul.mubr.msk.f32.gmra.mrb[24].mxu0 %vm349_vm2, %v11593_v62  ;;  %v8161_v62 = vld [vmem:[%s16369_s26 + $0x278] sm:$0xff] }
 0x13b   :  { %1161 = vmatprep.mubr.f32.mxu0 %v16331_v4  ;;  %v9870_v54 = vpack.c.bf16 %v8161_v62, %v8156_v57  ;;  %v1452_v62 = vld [vmem:[%s16371_s5 + $0x180] sm:$0xff] }
 0x1e9   :  { %v1027_v52 = vpop.f32.mrb[24].mxu1 }
 0x1ea   :  { %v9364_v53 = vpop.f32.mrb[25].mxu1  ;;  %8172 = vmatmul.mubr.msk.f32.vlgmr.msra.gmra.mrb[6].mxu0 %vm349_vm2, %v1027_v52  ;;  %8177 = vmatmul.mubr.msk.f32.vlgmr.msra.gmra.mrb[14].mxu1 %vm349_vm2, %v1027_v52 }
 0x1eb   :  { %1167 = vmatprep.mubr.f32.mxu0 %v16331_v4  ;;  %1262 = vmatprep.mubr.f32.mxu1 %v16331_v4  ;;  %v1453_v53 = vld [vmem:[%s16371_s5 + $0x188] sm:$0xff] }
 0x1ec   :  { %9868 = vmatpush3.bf16.msra.mxu0 %v9867_v51  ;;  %9878 = vmatpush3.bf16.msra.mxu1 %v11975_v13  ;;  %v1418_v51 = vld [vmem:[%s16371_s5 + $0x70] sm:$0xff] }
 0x1ed   :  { %v1032_v55 = vpop.f32.mrb[26].mxu1  ;;  %9869 = vmatprep.subr.bf16.mxu0 %v16329_v0  ;;  %9880 = vmatprep.subr.bf16.mxu1 %v11985_v16 }
 0x1ee   :  { %v9367_v60 = vpop.f32.mrb[27].mxu1  ;;  %8173 = vmatmul.mubr.msk.f32.gmra.mrb[8].mxu0 %vm349_vm2, %v1032_v55  ;;  %8178 = vmatmul.mubr.msk.f32.gmra.mrb[16].mxu1 %vm349_vm2, %v1032_v55 }
 0x1ef   :  { %1173 = vmatprep.mubr.f32.mxu0 %v16331_v4  ;;  %1268 = vmatprep.mubr.f32.mxu1 %v16331_v4  ;;  %v1470_v60 = vld [vmem:[%s16371_s5 + $0x210] sm:$0xff] }
 0x1f0   :  { %9871 = vmatpush3.bf16.msra.mxu0 %v9870_v54  ;;  %9882 = vmatpush3.bf16.msra.mxu1 %v11993_v20  ;;  %v12111_v54 = vpack.c.bf16 %v1453_v53, %v1452_v62 }
 0x1f1   :  { %v1037_v63 = vpop.f32.mrb[28].mxu1  ;;  %9872 = vmatprep.subr.bf16.mxu0 %v16329_v0  ;;  %9884 = vmatprep.subr.bf16.mxu1 %v12003_v23 }
 0x1f2   :  { %v9370_v5 = vpop.f32.mrb[29].mxu1  ;;  %8174 = vmatmul.mubr.msk.f32.gmra.mrb[10].mxu0 %vm349_vm2, %v1037_v63  ;;  %8179 = vmatmul.mubr.msk.f32.gmra.mrb[18].mxu1 %vm349_vm2, %v1037_v63 }
 0x1f3   :  { %1179 = vmatprep.mubr.f32.mxu0 %v16331_v4  ;;  %1274 = vmatprep.mubr.f32.mxu1 %v16331_v4  ;;  %v1472_v5 = vld [vmem:[%s16371_s5 + $0x220] sm:$0xff] }
 0x1f4   :  { %9874 = vmatpush3.bf16.msra.mxu0 %v9873_v61  ;;  %9886 = vmatpush3.bf16.msra.mxu1 %v12011_v26  ;;  %v1471_v61 = vld [vmem:[%s16371_s5 + $0x218] sm:$0xff] }
 0x1f5   :  { %v1042_v7 = vpop.f32.mrb[30].mxu1  ;;  %9939 = vmatprep.subr.bf16.mxu0 %v16329_v0  ;;  %9888 = vmatprep.subr.bf16.mxu1 %v12021_v29 }
 0x1f6   :  { %v9373_v1 = vpop.f32.mrb[31].mxu1  ;;  %8175 = vmatmul.mubr.msk.f32.gmra.mrb[12].mxu0 %vm349_vm2, %v1042_v7  ;;  %8180 = vmatmul.mubr.msk.f32.gmra.mrb[20].mxu1 %vm349_vm2, %v1042_v7 }
 0x1f7   :  { %1185 = vmatprep.mubr.f32.mxu0 %v16331_v4  ;;  %1280 = vmatprep.mubr.f32.mxu1 %v16331_v4 }
 0x1f8   :  { %9890 = vmatpush3.bf16.msra.mxu1 %v12029_v32 }
 0x1f9   :  { %v1047_v2 = vpop.f32.mrb[32].mxu1  ;;  %9892 = vmatprep.subr.bf16.mxu1 %v12039_v35 }
 0x1fa   :  { %v9376_v6 = vpop.f32.mrb[33].mxu1  ;;  %8176 = vmatmul.mubr.msk.f32.gmra.mrb[14].mxu0 %vm349_vm2, %v1047_v2  ;;  %8181 = vmatmul.mubr.msk.f32.gmra.mrb[22].mxu1 %vm349_vm2, %v1047_v2 }
 0x1fb   :  { %9389 = vmatprep.mubr.msk.f32.mxu0 %vm11315_vm0, %v16331_v4  ;;  %v1475_v6 = vld [vmem:[%s16371_s5 + $0x238] sm:$0xff] }
 0x1fc   :  { %9894 = vmatpush3.bf16.msra.mxu1 %v12047_v38 }
 0x1fd   :  { %9896 = vmatprep.subr.bf16.mxu1 %v12057_v41 }
 0x1fe   :  { %9390 = vmatmul.mubr.msk.f32.vlgmr.msra.gmra.mrb[16].mxu0 %vm349_vm2, %v1027_v52  ;;  %v1419_v52 = vld [vmem:[%s16371_s5 + $0x78] sm:$0xff] }
 0x1ff   :  { %9392 = vmatprep.mubr.msk.f32.mxu0 %vm11315_vm0, %v16331_v4  ;;  %v12101_v57 = vpack.c.bf16 %v1419_v52, %v1418_v51 }
 0x200   :  { %9898 = vmatpush3.bf16.msra.mxu1 %v12065_v44 }
 0x201   :  { %9900 = vmatprep.subr.bf16.mxu1 %v12075_v47 }
 0x202   :  { %9393 = vmatmul.mubr.msk.f32.gmra.mrb[18].mxu0 %vm349_vm2, %v1032_v55  ;;  %v1468_v55 = vld [vmem:[%s16371_s5 + $0x200] sm:$0xff] }
 0x203   :  { %9395 = vmatprep.mubr.msk.f32.mxu0 %vm11315_vm0, %v16331_v4  ;;  %v12120_v59 = vpack.c.bf16 %v1469_v56, %v1468_v55 }
 0x204   :  { %9902 = vmatpush3.bf16.msra.mxu1 %v12083_v50 }
 0x205   :  { %9904 = vmatprep.subr.bf16.mxu1 %v12093_v19  ;;  %16372 = vst [vmem:[#allocation2_spill] sm:$0xff] %v12120_v59  ;;  %9941 = vmatpush3.bf16.msra.mxu0 %v12120_v59  ;;  %v1446_v59 = vld [vmem:[%s16371_s5 + $0x150] sm:$0xff] }
 0x206   :  { %9396 = vmatmul.mubr.msk.f32.gmra.mrb[20].mxu0 %vm349_vm2, %v1037_v63  ;;  %9942 = vmatprep.subr.bf16.mxu0 %v16329_v0  ;;  %v12130_v63 = vpack.c.bf16 %v1471_v61, %v1470_v60 }
 0x207   :  { %9398 = vmatprep.mubr.msk.f32.mxu0 %vm11315_vm0, %v16331_v4 }
 0x208   :  { %9906 = vmatpush3.bf16.msra.mxu1 %v12101_v57  ;;  %16373 = vst [vmem:[#allocation3_spill] sm:$0xff] %v12130_v63 }
 0x209   :  { %9908 = vmatprep.subr.bf16.mxu1 %v12111_v54  ;;  %9944 = vmatpush3.bf16.msra.mxu0 %v12130_v63 }
 0x20a   :  { %9399 = vmatmul.mubr.msk.f32.gmra.mrb[22].mxu0 %vm349_vm2, %v1042_v7  ;;  %9945 = vmatprep.subr.bf16.mxu0 %v16329_v0  ;;  %v1473_v7 = vld [vmem:[%s16371_s5 + $0x228] sm:$0xff] }
 0x20b   :  { %9401 = vmatprep.mubr.msk.f32.mxu0 %vm11315_vm0, %v16331_v4  ;;  %v12140_v1 = vpack.c.bf16 %v1473_v7, %v1472_v5 }
 0x20d   :  { %16374 = vst [vmem:[#allocation4_spill] sm:$0xff] %v12140_v1  ;;  %9947 = vmatpush3.bf16.msra.mxu0 %v12140_v1 }
 0x20e   :  { %9402 = vmatmul.mubr.msk.f32.gmra.mrb[24].mxu0 %vm349_vm2, %v1047_v2  ;;  %v1474_v2 = vld [vmem:[%s16371_s5 + $0x230] sm:$0xff]  ;;  %9948 = vmatprep.subr.bf16.mxu0 %v16329_v0 }
 0x20f   :  { %9420 = vmatprep.mubr.msk.f32.mxu0 %vm11315_vm0, %v16331_v4  ;;  %v12150_v8 = vpack.c.bf16 %v1475_v6, %v1474_v2 }
 0x211   :  { %16375 = vst [vmem:[#allocation5_spill] sm:$0xff] %v12150_v8  ;;  %9950 = vmatpush3.bf16.msra.mxu0 %v12150_v8  ;;  %v1439_v8 = vld [vmem:[%s16371_s5 + $0x118] sm:$0xff] }
 0x2bd   :  { %v12153_v9 = vpop.f32.mrb[6].mxu0  ;;  %v12155_v11 = vpop.f32.mrb[14].mxu1 }
 0x2be   :  { %v12157_v12 = vpop.f32.mrb[7].mxu0  ;;  %v12159_v14 = vpop.f32.mrb[15].mxu1 }
 0x2bf   :  { %16376 = vst [vmem:[#allocation6_spill] sm:$0xff] %v12159_v14 }
 0x2c1   :  { %v12161_v15 = vpop.f32.mrb[8].mxu0  ;;  %v12163_v17 = vpop.f32.mrb[16].mxu1 }
 0x2c2   :  { %v1496_v18 = vadd.f32 %v12161_v15, %v12153_v9  ;;  %v1519_v21 = vadd.f32 %v12163_v17, %v12155_v11  ;;  %v12169_v22 = vpop.f32.mrb[9].mxu0  ;;  %v12171_v24 = vpop.f32.mrb[17].mxu1 }
 0x2c3   :  { %16377 = vst [vmem:[#allocation7_spill] sm:$0xff] %v12171_v24  ;;  %v1508_v25 = vadd.f32 %v12169_v22, %v12157_v12  ;;  %v1530_v27 = vadd.f32 %v12171_v24, %v12159_v14 }
 0x2c5   :  { %v12177_v28 = vpop.f32.mrb[10].mxu0  ;;  %v12179_v30 = vpop.f32.mrb[18].mxu1 }
 0x2c6   :  { %16378 = vst [vmem:[#allocation8_spill] sm:$0xff] %v12179_v30  ;;  %v1497_v31 = vadd.f32 %v1496_v18, %v12177_v28  ;;  %v1520_v33 = vadd.f32 %v1519_v21, %v12179_v30  ;;  %v12183_v34 = vpop.f32.mrb[11].mxu0  ;;  %v12185_v36 = vpop.f32.mrb[19].mxu1 }
 0x2c7   :  { %16379 = vst [vmem:[#allocation9_spill] sm:$0xff] %v12185_v36  ;;  %v1509_v37 = vadd.f32 %v1508_v25, %v12183_v34  ;;  %v1531_v39 = vadd.f32 %v1530_v27, %v12185_v36 }
 0x2c9   :  { %v12189_v40 = vpop.f32.mrb[12].mxu0  ;;  %v12191_v42 = vpop.f32.mrb[20].mxu1 }
 0x2ca   :  { %16380 = vst [vmem:[#allocation10_spill] sm:$0xff] %v12191_v42  ;;  %v1498_v43 = vadd.f32 %v1497_v31, %v12189_v40  ;;  %v1521_v45 = vadd.f32 %v1520_v33, %v12191_v42  ;;  %v12195_v46 = vpop.f32.mrb[13].mxu0  ;;  %v12197_v48 = vpop.f32.mrb[21].mxu1 }
 0x2cb   :  { %16381 = vst [vmem:[#allocation11_spill] sm:$0xff] %v12197_v48  ;;  %v1510_v49 = vadd.f32 %v1509_v37, %v12195_v46  ;;  %v1532_v58 = vadd.f32 %v1531_v39, %v12197_v48 }
 0x2cd   :  { %v12201_v3 = vpop.f32.mrb[14].mxu0  ;;  %v12203_v51 = vpop.f32.mrb[22].mxu1 }
 0x2ce   :  { %16382 = vst [vmem:[#allocation12_spill] sm:$0xff] %v12203_v51  ;;  %v1500_v52 = vsel %vm1499_vm3, %v12201_v3, 0.0  ;;  %v1522_v62 = vsel %vm1499_vm3, %v12203_v51, 0.0  ;;  %v12209_v53 = vpop.f32.mrb[15].mxu0  ;;  %v12211_v55 = vpop.f32.mrb[23].mxu1 }
 0x2cf   :  { %16383 = vst [vmem:[#allocation13_spill] sm:$0xff] %v12211_v55  ;;  %v1501_v56 = vadd.f32 %v1500_v52, %v1498_v43  ;;  %v12213_v60 = vadd.f32 %v1522_v62, %v1521_v45  ;;  %v1511_v61 = vsel %vm1499_vm3, %v12209_v53, 0.0  ;;  %v1533_v5 = vsel %vm1499_vm3, %v12211_v55, 0.0 }
 0x2d0   :  { %v1512_v7 = vadd.f32 %v1511_v61, %v1510_v49  ;;  %v1534_v2 = vadd.f32 %v1533_v5, %v1532_v58 }
 0x2d1   :  { %v1502_v6 = vrot.slane %v1501_v56, 4  ;;  %v12219_v18 = vpop.f32.mrb[16].mxu0 }
 0x2d2   :  { %v1513_v21 = vrot.slane %v1512_v7, 4  ;;  %v1535_v25 = vrot.slane %v1534_v2, 4  ;;  %v9391_v27 = vpop.f32.mrb[17].mxu0  ;;  %v1542_v45 = vsel %vm1541_vm4, %v12219_v18, 0.0 }
 0x2d3   :  { %v1503_v31 = vadd.f32 %v1502_v6, %v1501_v56 }
 0x2d4   :  { %v1514_v33 = vadd.f32 %v1513_v21, %v1512_v7  ;;  %v1536_v37 = vadd.f32 %v1535_v25, %v1534_v2  ;;  %v1436_v7 = vld [vmem:[%s16371_s5 + $0x100] sm:$0xff]  ;;  %v1437_v2 = vld [vmem:[%s16371_s5 + $0x108] sm:$0xff] }
 0x2d5   :  { %v1504_v39 = vrot.slane %v1503_v31, 2  ;;  %v12221_v43 = vpop.f32.mrb[18].mxu0 }
 0x2d6   :  { %v1543_v49 = vsel %vm1541_vm4, %v12221_v43, 0.0  ;;  %v9394_v58 = vpop.f32.mrb[19].mxu0  ;;  %v1515_v52 = vrot.slane %v1514_v33, 2  ;;  %v1537_v62 = vrot.slane %v1536_v37, 2 }
 0x2d7   :  { %v1505_v61 = vadd.f32 %v1504_v39, %v1503_v31  ;;  %v1544_v5 = vadd.f32 %v1543_v49, %v1542_v45  ;;  %v12243_v49 = vpack.c.bf16 %v1437_v2, %v1436_v7 }
 0x2d8   :  { %v1516_v0 = vadd.f32 %v1515_v52, %v1514_v33  ;;  %v1538_v27 = vadd.f32 %v1537_v62, %v1536_v37  ;;  %v1454_v33 = vld [vmem:[%s16371_s5 + $0x190] sm:$0xff]  ;;  %v1455_v37 = vld [vmem:[%s16371_s5 + $0x198] sm:$0xff] }
 0x2d9   :  { %v1506_v56 = vrot.slane %v1505_v61, 1  ;;  %v12227_v6 = vpop.f32.mrb[20].mxu0  ;;  %v12247_v4 = vpack.c.bf16 %v1455_v37, %v1454_v33  ;;  %v1459_v37 = vld [vmem:[%s16371_s5 + $0x1b8] sm:$0xff] }
 0x2da   :  { %v1545_v21 = vsel %vm1541_vm4, %v12227_v6, 0.0  ;;  %v9397_v25 = vpop.f32.mrb[21].mxu0  ;;  %v1517_v58 = vrot.slane %v1516_v0, 1  ;;  %v1539_v31 = vrot.slane %v1538_v27, 1 }
 0x2db   :  { %v1546_v39 = vadd.f32 %v1545_v21, %v1544_v5  ;;  %v1507_v52 = vadd.f32 %v1506_v56, %v1505_v61  ;;  %v1438_v25 = vld [vmem:[%s16371_s5 + $0x110] sm:$0xff]  ;;  %v1456_v61 = vld [vmem:[%s16371_s5 + $0x1a0] sm:$0xff]  ;;  %v1457_v56 = vld [vmem:[%s16371_s5 + $0x1a8] sm:$0xff] }
 0x2dc   :  { %v1518_v45 = vadd.f32 %v1517_v58, %v1516_v0  ;;  %v1540_v0 = vadd.f32 %v1539_v31, %v1538_v27  ;;  %v12264_v2 = vpack.c.bf16 %v1439_v8, %v1438_v25  ;;  %v12269_v27 = vpack.c.bf16 %v1457_v56, %v1456_v61  ;;  %v1440_v58 = vld [vmem:[%s16371_s5 + $0x120] sm:$0xff]  ;;  %v1458_v8 = vld [vmem:[%s16371_s5 + $0x1b0] sm:$0xff]  ;;  %v1461_v56 = vld [vmem:[%s16371_s5 + $0x1c8] sm:$0xff] }
 0x2dd   :  { %v12245_v62 = vpop.f32.mrb[22].mxu0  ;;  %v12289_v25 = vpack.c.bf16 %v1459_v37, %v1458_v8  ;;  %v1460_v61 = vld [vmem:[%s16371_s5 + $0x1c0] sm:$0xff]  ;;  %v1445_v37 = vld [vmem:[%s16371_s5 + $0x148] sm:$0xff] }
 0x2de   :  { %v1547_v1 = vsel %vm1541_vm4, %v12245_v62, 0.0  ;;  %v9400_v5 = vpop.f32.mrb[23].mxu0  ;;  %1625 = vmatprep.mubr.f32.mxu1 %v1518_v45  ;;  %16384 = vst [vmem:[#allocation14_spill] sm:$0xff] %v12264_v2  ;;  %16385 = vst [vmem:[#allocation15_spill] sm:$0xff] %v12269_v27  ;;  %v1444_v8 = vld [vmem:[%s16371_s5 + $0x140] sm:$0xff] }
 0x2df   :  { %v1548_v7 = vadd.f32 %v1547_v1, %v1546_v39  ;;  %1626 = vmatmul.mubr.f32.vlgmr.msra.gmra.mrb[34].mxu1 %v1507_v52  ;;  %v1441_v1 = vld [vmem:[%s16371_s5 + $0x128] sm:$0xff]  ;;  %16387 = vst [vmem:[#allocation17_spill] sm:$0xff] %v12289_v25  ;;  %v1442_v5 = vld [vmem:[%s16371_s5 + $0x130] sm:$0xff] }
 0x2e0   :  { %9910 = vmatpush3.bf16.msra.mxu1 %v12243_v49  ;;  %1695 = vmatprep.mubr.f32.mxu1 %v1540_v0  ;;  %v12286_v45 = vpack.c.bf16 %v1441_v1, %v1440_v58  ;;  %v1443_v0 = vld [vmem:[%s16371_s5 + $0x138] sm:$0xff]  ;;  %v1524_v1 = vrot.slane %v12213_v60, 4 }
 0x2e1   :  { %v12266_v21 = vpop.f32.mrb[24].mxu0  ;;  %9912 = vmatprep.subr.bf16.mxu1 %v12247_v4  ;;  %v12304_v58 = vpack.c.bf16 %v1443_v0, %v1442_v5  ;;  %v12323_v0 = vpack.c.bf16 %v1445_v37, %v1444_v8 }
 0x2e2   :  { %v1550_v31 = vsel %vm1549_vm5, %v12266_v21, 0.0  ;;  %v9403_v33 = vpop.f32.mrb[25].mxu0  ;;  %16386 = vst [vmem:[#allocation16_spill] sm:$0xff] %v12286_v45 }
 0x2e3   :  { %v1551_v39 = vadd.f32 %v1550_v31, %v1548_v7  ;;  %16388 = vst [vmem:[#allocation18_spill] sm:$0xff] %v12304_v58  ;;  %v12308_v33 = vpack.c.bf16 %v1461_v56, %v1460_v61  ;;  %16390 = vst [vmem:[#allocation20_spill] sm:$0xff] %v12323_v0  ;;  %v1525_v61 = vadd.f32 %v1524_v1, %v12213_v60  ;;  %v1465_v60 = vld [vmem:[%s16371_s5 + $0x1e8] sm:$0xff] }
 0x2e4   :  { %9914 = vmatpush3.bf16.msra.mxu1 %v12264_v2 }
 0x2e5   :  { %v1552_v52 = vrot.slane %v1551_v39, 4  ;;  %9916 = vmatprep.subr.bf16.mxu1 %v12269_v27  ;;  %16389 = vst [vmem:[#allocation19_spill] sm:$0xff] %v12308_v33  ;;  %v1526_v8 = vrot.slane %v1525_v61, 2 }
 0x2e7   :  { %v1553_v7 = vadd.f32 %v1552_v52, %v1551_v39  ;;  %v1462_v39 = vld [vmem:[%s16371_s5 + $0x1d0] sm:$0xff]  ;;  %v1463_v52 = vld [vmem:[%s16371_s5 + $0x1d8] sm:$0xff] }
 0x2e8   :  { %9918 = vmatpush3.bf16.msra.mxu1 %v12286_v45  ;;  %v12327_v63 = vpack.c.bf16 %v1463_v52, %v1462_v39  ;;  %v1448_v39 = vld [vmem:[%s16371_s5 + $0x160] sm:$0xff]  ;;  %v1449_v52 = vld [vmem:[%s16371_s5 + $0x168] sm:$0xff] }
 0x2e9   :  { %v1554_v31 = vrot.slane %v1553_v7, 2  ;;  %9920 = vmatprep.subr.bf16.mxu1 %v12289_v25  ;;  %v1447_v25 = vld [vmem:[%s16371_s5 + $0x158] sm:$0xff] }
 0x2ea   :  { %16391 = vst [vmem:[#allocation21_spill] sm:$0xff] %v12327_v63 }
 0x2eb   :  { %v1555_v5 = vadd.f32 %v1554_v31, %v1553_v7  ;;  %v1464_v7 = vld [vmem:[%s16371_s5 + $0x1e0] sm:$0xff]  ;;  %v12342_v31 = vpack.c.bf16 %v1447_v25, %v1446_v59  ;;  %v1466_v59 = vld [vmem:[%s16371_s5 + $0x1f0] sm:$0xff]  ;;  %v1467_v25 = vld [vmem:[%s16371_s5 + $0x1f8] sm:$0xff] }
 0x2ec   :  { %9922 = vmatpush3.bf16.msra.mxu1 %v12304_v58  ;;  %v12346_v37 = vpack.c.bf16 %v1465_v60, %v1464_v7  ;;  %v1527_v7 = vadd.f32 %v1526_v8, %v1525_v61  ;;  %v12365_v60 = vpack.c.bf16 %v1467_v25, %v1466_v59  ;;  %v1477_v8 = vld [vmem:[%s16309_s6 + $0x8] sm:$0xff] }
 0x2ed   :  { %v1556_v56 = vrot.slane %v1555_v5, 1  ;;  %9924 = vmatprep.subr.bf16.mxu1 %v12308_v33  ;;  %16392 = vst [vmem:[#allocation22_spill] sm:$0xff] %v12342_v31  ;;  %v1481_v25 = vld [vmem:[%s16309_s6 + $0x28] sm:$0xff] }
 0x2ee   :  { %16393 = vst [vmem:[#allocation23_spill] sm:$0xff] %v12346_v37  ;;  %16396 = vst [vmem:[#allocation25_spill] sm:$0xff] %v12365_v60 }
 0x2ef   :  { %v1557_v1 = vadd.f32 %v1556_v56, %v1555_v5  ;;  %v16394_v5 = vmov 0.0   ;;  %v12362_v56 = vpack.c.bf16 %v1449_v52, %v1448_v39  ;;  %v1528_v39 = vrot.slane %v1527_v7, 1  ;;  %v1482_v52 = vld [vmem:[%s16309_s6 + $0x30] sm:$0xff] }
 0x2f0   :  { %9926 = vmatpush3.bf16.msra.mxu1 %v12323_v0  ;;  %v12385_v59 = vpack.c.bf16 %v1482_v52, %v1477_v8  ;;  %v1483_v8 = vld [vmem:[%s16309_s6 + $0x38] sm:$0xff] }
 0x2f1   :  { %9421 = vmatmul.mubr.msk.f32.vlgmr.msra.gmra.mrb[26].mxu0 %vm1541_vm4, %v1557_v1  ;;  %9928 = vmatprep.subr.bf16.mxu1 %v12327_v63  ;;  %16395 = vst [vmem:[#allocation24_spill] sm:$0xff] %v12362_v56  ;;  %v1450_v1 = vld [vmem:[%s16371_s5 + $0x170] sm:$0xff]  ;;  %v1451_v63 = vld [vmem:[%s16371_s5 + $0x178] sm:$0xff]  ;;  %v1529_v61 = vadd.f32 %v1528_v39, %v1527_v7  ;;  %v1484_v39 = vld [vmem:[%s16309_s6 + $0x40] sm:$0xff] }
 0x2f2   :  { %1839 = vmatprep.mubr.f32.mxu0 %v16394_v5  ;;  %v12374_v0 = vpack.c.bf16 %v1451_v63, %v1450_v1  ;;  %v1476_v63 = vld [vmem:[%s16309_s6] sm:$0xff]  ;;  %v1479_v7 = vld [vmem:[%s16309_s6 + $0x18] sm:$0xff]  ;;  %9952 = vmatprep.subr.bf16.mxu0 %v12385_v59 }
 0x2f3   :  { %v12396_v1 = vpack.c.bf16 %v1481_v25, %v1476_v63  ;;  %v12408_v52 = vpack.c.bf16 %v1484_v39, %v1479_v7  ;;  %v1487_v63 = vld [vmem:[%s16309_s6 + $0x58] sm:$0xff]  ;;  %v1492_v25 = vld [vmem:[%s16309_s6 + $0x80] sm:$0xff]  ;;  %v1486_v7 = vld [vmem:[%s16309_s6 + $0x50] sm:$0xff] }
 0x2f4   :  { %9930 = vmatpush3.bf16.msra.mxu1 %v12342_v31  ;;  %16397 = vst [vmem:[#allocation26_spill] sm:$0xff] %v12374_v0  ;;  %v1491_v39 = vld [vmem:[%s16309_s6 + $0x78] sm:$0xff] }
 0x2f5   :  { %9932 = vmatprep.subr.bf16.mxu1 %v12346_v37  ;;  %9954 = vmatpush1.bf16.msra.mxu0 %v12396_v1 }
 0x2f8   :  { %9934 = vmatpush3.bf16.msra.mxu1 %v12362_v56  ;;  %v1493_v56 = vld [vmem:[%s16309_s6 + $0x88] sm:$0xff] }
 0x2f9   :  { %9936 = vmatprep.subr.bf16.mxu1 %v12365_v60  ;;  %v12420_v60 = vpack.c.bf16 %v1492_v25, %v1487_v63  ;;  %v1494_v63 = vld [vmem:[%s16309_s6 + $0x90] sm:$0xff]  ;;  %v1488_v25 = vld [vmem:[%s16309_s6 + $0x60] sm:$0xff] }
 0x2fa   :  { %v12446_v31 = vpack.c.bf16 %v1493_v56, %v1488_v25  ;;  %v1480_v25 = vld [vmem:[%s16309_s6 + $0x20] sm:$0xff] }
 0x2fb   :  { %9956 = vmatprep.subr.bf16.mxu0 %v12420_v60 }
 0x2fc   :  { %9938 = vmatpush3.bf16.msra.mxu1 %v12374_v0  ;;  %16400 = vst [vmem:[#allocation29_spill] sm:$0xff] %v12446_v31 }
 0x2fd   :  { %9960 = vmatprep.subr.bf16.mxu1 %v12408_v52 }
 0x2ff   :  { %1696 = vmatmul.mubr.f32.vlgmr.msra.gmra.mrb[36].mxu1 %v1529_v61  ;;  %v1478_v61 = vld [vmem:[%s16309_s6 + $0x10] sm:$0xff] }
 0x300   :  { %1910 = vmatprep.mubr.f32.mxu1 %v16394_v5  ;;  %v12410_v0 = vpack.c.bf16 %v1483_v8, %v1478_v61  ;;  %v1489_v61 = vld [vmem:[%s16309_s6 + $0x68] sm:$0xff]  ;;  %v12432_v8 = vpack.c.bf16 %v1491_v39, %v1486_v7  ;;  %v16401_v7 = vmov 0.0|0.0  }
 0x301   :  { %v12444_v37 = vpack.c.bf16 %v1494_v63, %v1489_v61 }
 0x302   :  { %16398 = vst [vmem:[#allocation27_spill] sm:$0xff] %v12410_v0  ;;  %9962 = vmatpush1.bf16.msra.mxu1 %v12410_v0  ;;  %9958 = vmatpush1.bf16.msra.mxu0 %v12432_v8 }
 0x303   :  { %16399 = vst [vmem:[#allocation28_spill] sm:$0xff] %v12444_v37  ;;  %9964 = vmatprep.subr.bf16.mxu1 %v12444_v37  ;;  %9967 = vmatprep.subr.bf16.mxu0 %v16401_v7  ;;  %v1485_v37 = vld [vmem:[%s16309_s6 + $0x48] sm:$0xff] }
 0x304   :  { %v12459_v2 = vpack.c.bf16 %v1485_v37, %v1480_v25 }
 0x306   :  { %9966 = vmatpush1.bf16.msra.mxu1 %v12446_v31 }
 0x307   :  { %9974 = vmatprep.subr.bf16.mxu1 %v11967_v10 }
 0x3b2   :  { %v8610_v39 = vpop.f32.mrb[34].mxu1 }
 0x3b3   :  { %v8611_v0 = vpop.f32.mrb[35].mxu1 }
 0x3b4   :  { %v8612_v33 = vadd.f32 %v8611_v0, %v8610_v39 }
 0x3c4   :  { %v1767_v58 = vpop.f32.mrb[26].mxu0 }
 0x3c5   :  { %v9422_v45 = vpop.f32.mrb[27].mxu0 }
 0x3c6   :  { %v1490_v45 = vld [vmem:[%s16309_s6 + $0x70] sm:$0xff] }
 0x3d2   :  { %v8645_v27 = vpop.f32.mrb[36].mxu1 }
 0x3d3   :  { %v8646_v61 = vpop.f32.mrb[37].mxu1 }
 0x3d4   :  { %v8647_v63 = vadd.f32 %v8646_v61, %v8645_v27  ;;  %v1495_v27 = vld [vmem:[%s16309_s6 + $0x98] sm:$0xff] }
 0x3d6   :  { %v1698_v56 = vadd.f32 %v8647_v63, %v8612_v33 }
 0x3d8   :  { %v1768_v31 = vadd.f32 %v1767_v58, %v1698_v56  ;;  %v12474_v58 = vpack.c.bf16 %v1495_v27, %v1490_v45 }
 0x3da   :  { %v12461_v10 = vmul.f32 0.0015432099, %v1768_v31 }
 0x3dc   :  { %8188 = vmatmul.mubr.msk.f32.vlgmr.msra.gmra.mrb[28].mxu0 %vm71_vm1, %v12461_v10  ;;  %8189 = vmatmul.mubr.msk.f32.vlgmr.msra.gmra.mrb[38].mxu1 %vm71_vm1, %v12461_v10 }
 0x3dd   :  { %9969 = vmatpush3.bf16.msra.mxu0 %v12459_v2  ;;  %9431 = vmatprep.mubr.msk.f32.mxu0 %vm11315_vm0, %v16394_v5 }
 0x3de   :  { %9970 = vmatprep.subr.bf16.mxu0 %v16401_v7  ;;  %9976 = vmatpush3.bf16.msra.mxu1 %v11975_v13  ;;  %v1987_v13 = vlaneseq }
 0x3df   :  { %9978 = vmatprep.subr.bf16.mxu1 %v11985_v16 }
 0x3e0   :  { %v1988_v16 = vshrl.u32 %v1987_v13, 7 }
 0x3e1   :  { %9972 = vmatpush3.bf16.msra.mxu0 %v12474_v58 }
 0x3e2   :  { %9980 = vmatpush3.bf16.msra.mxu1 %v11993_v20  ;;  %10050 = vmatprep.subr.bf16.mxu0 %v12385_v59  ;;  %v12504_v20 = vsub.s32 0, %v1988_v16 }
 0x3e3   :  { %9982 = vmatprep.subr.bf16.mxu1 %v12003_v23 }
 0x3e4   :  { %9432 = vmatmul.mubr.msk.f32.vlgmr.msra.gmra.mrb[30].mxu0 %vm71_vm1, %v12461_v10 }
 0x3e5   :  { %10052 = vmatpush1.bf16.msra.mxu0 %v12396_v1  ;;  %2403 = vmatprep.mubr.f32.mxu0 %v16394_v5 }
 0x3e6   :  { %9984 = vmatpush3.bf16.msra.mxu1 %v12011_v26  ;;  %10054 = vmatprep.subr.bf16.mxu0 %v12420_v60 }
 0x3e7   :  { %9986 = vmatprep.subr.bf16.mxu1 %v12021_v29 }
 0x3e9   :  { %10056 = vmatpush1.bf16.msra.mxu0 %v12432_v8 }
 0x3ea   :  { %9988 = vmatpush3.bf16.msra.mxu1 %v12029_v32  ;;  %10058 = vmatprep.subr.bf16.mxu0 %v12408_v52 }
 0x3eb   :  { %9990 = vmatprep.subr.bf16.mxu1 %v12039_v35 }
 0x3ee   :  { %9992 = vmatpush3.bf16.msra.mxu1 %v12047_v38 }
 0x3ef   :  { %9994 = vmatprep.subr.bf16.mxu1 %v12057_v41 }
 0x3f2   :  { %9996 = vmatpush3.bf16.msra.mxu1 %v12065_v44 }
 0x3f3   :  { %9998 = vmatprep.subr.bf16.mxu1 %v12075_v47 }
 0x3f6   :  { %10000 = vmatpush3.bf16.msra.mxu1 %v12083_v50 }
 0x3f7   :  { %10002 = vmatprep.subr.bf16.mxu1 %v12093_v19 }
 0x3fa   :  { %10004 = vmatpush3.bf16.msra.mxu1 %v12101_v57 }
 0x3fb   :  { %10006 = vmatprep.subr.bf16.mxu1 %v12111_v54 }
 0x4af   :  { %v1841_v23 = vpop.f32.mrb[28].mxu0  ;;  %v1912_v26 = vpop.f32.mrb[38].mxu1 }
 0x4b0   :  { %v1990_v29 = vrot.slane %v1841_v23, %v12504_v20  ;;  %v1998_v32 = vrot.slane %v1912_v26, %v12504_v20  ;;  %v1843_v35 = vpop.f32.mrb[29].mxu0  ;;  %v1914_v38 = vpop.f32.mrb[39].mxu1 }
 0x4b1   :  { %v1994_v41 = vrot.slane %v1843_v35, %v12504_v20  ;;  %v2002_v56 = vrot.slane %v1914_v38, %v12504_v20 }
 0x4b2   :  { %v2007_v44 = vsub.f32 %v12153_v9, %v1990_v29  ;;  %v2012_v47 = vsub.f32 %v12161_v15, %v1990_v29  ;;  %v2017_v50 = vsub.f32 %v12177_v28, %v1990_v29  ;;  %v2022_v19 = vsub.f32 %v12189_v40, %v1990_v29 }
 0x4b3   :  { %v2027_v57 = vsub.f32 %v12201_v3, %v1990_v29  ;;  %v2009_v54 = vsub.f32 %v12155_v11, %v1998_v32  ;;  %v2014_v33 = vsub.f32 %v12163_v17, %v1998_v32  ;;  %v2019_v0 = vsub.f32 %v12179_v30, %v1998_v32 }
 0x4b4   :  { %v2032_v31 = vmul.f32 %v2007_v44, %v2007_v44  ;;  %v2037_v37 = vmul.f32 %v2012_v47, %v2012_v47  ;;  %v2024_v39 = vsub.f32 %v12191_v42, %v1998_v32  ;;  %v2029_v61 = vsub.f32 %v12203_v51, %v1998_v32 }
 0x4b5   :  { %v2034_v63 = vmul.f32 %v2009_v54, %v2009_v54  ;;  %v2042_v25 = vmul.f32 %v2017_v50, %v2017_v50  ;;  %v2039_v27 = vmul.f32 %v2014_v33, %v2014_v33  ;;  %v2008_v13 = vsub.f32 %v12157_v12, %v1994_v41 }
 0x4b6   :  { %v2057_v45 = vadd.f32 %v2037_v37, %v2032_v31  ;;  %v2047_v16 = vmul.f32 %v2022_v19, %v2022_v19  ;;  %v2044_v23 = vmul.f32 %v2019_v0, %v2019_v0  ;;  %v2013_v26 = vsub.f32 %v12169_v22, %v1994_v41 }
 0x4b7   :  { %v2018_v29 = vsub.f32 %v12183_v34, %v1994_v41  ;;  %v1983_v35 = vpop.f32.mrb[30].mxu0  ;;  %v2079_v47 = vadd.f32 %v2039_v27, %v2034_v63  ;;  %v2023_v42 = vsub.f32 %v12195_v46, %v1994_v41  ;;  %v2028_v32 = vsub.f32 %v12209_v53, %v1994_v41 }
 0x4b8   :  { %v2058_v44 = vadd.f32 %v2057_v45, %v2042_v25  ;;  %v9433_v54 = vpop.f32.mrb[31].mxu0  ;;  %v2052_v38 = vmul.f32 %v2027_v57, %v2027_v57  ;;  %v2033_v50 = vmul.f32 %v2008_v13, %v2008_v13  ;;  %v2038_v31 = vmul.f32 %v2013_v26, %v2013_v26 }
 0x4b9   :  { %v2010_v33 = vsub.f32 %v12159_v14, %v2002_v56  ;;  %v2080_v37 = vadd.f32 %v2079_v47, %v2044_v23  ;;  %v2043_v19 = vmul.f32 %v2018_v29, %v2018_v29  ;;  %v2015_v0 = vsub.f32 %v12171_v24, %v2002_v56 }
 0x4ba   :  { %v2020_v51 = vsub.f32 %v12185_v36, %v2002_v56  ;;  %v2068_v30 = vadd.f32 %v2038_v31, %v2033_v50  ;;  %v2025_v25 = vsub.f32 %v12197_v48, %v2002_v56  ;;  %v2030_v63 = vsub.f32 %v12211_v55, %v2002_v56 }
 0x4bb   :  { %v2035_v45 = vmul.f32 %v2010_v33, %v2010_v33  ;;  %v2049_v27 = vmul.f32 %v2024_v39, %v2024_v39  ;;  %v2040_v41 = vmul.f32 %v2015_v0, %v2015_v0  ;;  %v2006_v57 = vrot.slane %v1983_v35, %v12504_v20 }
 0x4bc   :  { %v2053_v13 = vmul.f32 %v2028_v32, %v2028_v32  ;;  %v2048_v26 = vmul.f32 %v2023_v42, %v2023_v42  ;;  %v2069_v54 = vadd.f32 %v2068_v30, %v2043_v19  ;;  %v2059_v14 = vadd.f32 %v2058_v44, %v2047_v16 }
 0x4bd   :  { %v2060_v23 = vsel %vm1499_vm3, %v2052_v38, 0.0  ;;  %v2090_v29 = vadd.f32 %v2040_v41, %v2035_v45  ;;  %v2011_v47 = vsub.f32 %v12219_v18, %v2006_v57  ;;  %v2016_v50 = vsub.f32 %v12221_v43, %v2006_v57 }
 0x4be   :  { %v2021_v31 = vsub.f32 %v12227_v6, %v2006_v57  ;;  %v2026_v56 = vsub.f32 %v12245_v62, %v2006_v57  ;;  %v2031_v39 = vsub.f32 %v12266_v21, %v2006_v57  ;;  %v2070_v33 = vadd.f32 %v2069_v54, %v2048_v26 }
 0x4bf   :  { %v2071_v35 = vsel %vm1499_vm3, %v2053_v13, 0.0  ;;  %v2036_v32 = vmul.f32 %v2011_v47, %v2011_v47  ;;  %v2041_v42 = vmul.f32 %v2016_v50, %v2016_v50  ;;  %v2061_v16 = vadd.f32 %v2060_v23, %v2059_v14 }
 0x4c0   :  { %v2046_v30 = vmul.f32 %v2021_v31, %v2021_v31  ;;  %v2054_v44 = vmul.f32 %v2029_v61, %v2029_v61  ;;  %v2045_v38 = vmul.f32 %v2020_v51, %v2020_v51  ;;  %v2050_v19 = vmul.f32 %v2025_v25, %v2025_v25 }
 0x4c1   :  { %v2072_v0 = vadd.f32 %v2071_v35, %v2070_v33  ;;  %v2051_v45 = vmul.f32 %v2026_v56, %v2026_v56  ;;  %v2101_v41 = vsel %vm1541_vm4, %v2036_v32, 0.0  ;;  %v2102_v55 = vsel %vm1541_vm4, %v2041_v42, 0.0 }
 0x4c2   :  { %v2062_v48 = vrot.slane %v2061_v16, 4  ;;  %v2056_v36 = vmul.f32 %v2031_v39, %v2031_v39  ;;  %v2103_v24 = vadd.f32 %v2102_v55, %v2101_v41  ;;  %v2055_v26 = vmul.f32 %v2030_v63, %v2030_v63  ;;  %v16404_v41 = vld [vmem:[#allocation16_spill] sm:$0xff] }
 0x4c3   :  { %v2073_v57 = vrot.slane %v2072_v0, 4  ;;  %v2104_v13 = vsel %vm1541_vm4, %v2046_v30, 0.0  ;;  %v2091_v47 = vadd.f32 %v2090_v29, %v2045_v38  ;;  %v2081_v50 = vadd.f32 %v2080_v37, %v2049_v27 }
 0x4c4   :  { %v2063_v54 = vadd.f32 %v2062_v48, %v2061_v16  ;;  %v2105_v14 = vadd.f32 %v2104_v13, %v2103_v24  ;;  %v2082_v51 = vsel %vm1499_vm3, %v2054_v44, 0.0  ;;  %v2106_v25 = vsel %vm1541_vm4, %v2051_v45, 0.0  ;;  %v16403_v45 = vld [vmem:[#allocation15_spill] sm:$0xff]  ;;  %v16406_v13 = vld [vmem:[#allocation18_spill] sm:$0xff] }
 0x4c5   :  { %v2074_v61 = vadd.f32 %v2073_v57, %v2072_v0  ;;  %v2092_v31 = vadd.f32 %v2091_v47, %v2050_v19  ;;  %v2083_v56 = vadd.f32 %v2082_v51, %v2081_v50  ;;  %v2093_v55 = vsel %vm1499_vm3, %v2055_v26, 0.0  ;;  %v16402_v0 = vld [vmem:[#allocation14_spill] sm:$0xff]  ;;  %v16405_v57 = vld [vmem:[#allocation17_spill] sm:$0xff] }
 0x4c6   :  { %v2064_v23 = vrot.slane %v2063_v54, 2  ;;  %v2107_v33 = vadd.f32 %v2106_v25, %v2105_v14  ;;  %v2108_v63 = vsel %vm1549_vm5, %v2056_v36, 0.0  ;;  %v16409_v50 = vld [vmem:[#allocation21_spill] sm:$0xff]  ;;  %v16410_v14 = vld [vmem:[#allocation22_spill] sm:$0xff]  ;;  %v16412_v25 = vld [vmem:[#allocation24_spill] sm:$0xff] }
 0x4c7   :  { %v2075_v35 = vrot.slane %v2074_v61, 2  ;;  %v2094_v32 = vadd.f32 %v2093_v55, %v2092_v31  ;;  %v2084_v26 = vrot.slane %v2083_v56, 4 }
 0x4c8   :  { %v2065_v39 = vadd.f32 %v2064_v23, %v2063_v54  ;;  %v2109_v48 = vadd.f32 %v2108_v63, %v2107_v33  ;;  %v16407_v54 = vld [vmem:[#allocation19_spill] sm:$0xff]  ;;  %v16413_v23 = vld [vmem:[#allocation25_spill] sm:$0xff]  ;;  %v16415_v63 = vld [vmem:[#allocation2_spill] sm:$0xff] }
 0x4c9   :  { %v2076_v29 = vadd.f32 %v2075_v35, %v2074_v61  ;;  %v2095_v24 = vrot.slane %v2094_v32, 4  ;;  %v2085_v47 = vadd.f32 %v2084_v26, %v2083_v56  ;;  %v16411_v61 = vld [vmem:[#allocation23_spill] sm:$0xff]  ;;  %v16414_v35 = vld [vmem:[#allocation26_spill] sm:$0xff] }
 0x4ca   :  { %v2066_v37 = vrot.slane %v2065_v39, 1  ;;  %v2110_v33 = vrot.slane %v2109_v48, 4 }
 0x4cb   :  { %v2077_v27 = vrot.slane %v2076_v29, 1  ;;  %v2096_v42 = vadd.f32 %v2095_v24, %v2094_v32  ;;  %v16416_v32 = vld [vmem:[#allocation3_spill] sm:$0xff] }
 0x4cc   :  { %v2067_v16 = vadd.f32 %v2066_v37, %v2065_v39  ;;  %v2111_v56 = vadd.f32 %v2110_v33, %v2109_v48  ;;  %v16417_v37 = vld [vmem:[#allocation4_spill] sm:$0xff]  ;;  %v16418_v48 = vld [vmem:[#allocation5_spill] sm:$0xff] }
 0x4cd   :  { %v2078_v30 = vadd.f32 %v2077_v27, %v2076_v29  ;;  %v2097_v44 = vrot.slane %v2096_v42, 2  ;;  %v2941_v33 = vld [vmem:[%s16311_s7 + $0x50] sm:$0xff] }
 0x4ce   :  { %v2112_v39 = vrot.slane %v2111_v56, 2 }
 0x4cf   :  { %2183 = vmatprep.mubr.f32.mxu1 %v2078_v30  ;;  %v2098_v38 = vadd.f32 %v2097_v44, %v2096_v42 }
 0x4d0   :  { %2184 = vmatmul.mubr.f32.vlgmr.msra.gmra.mrb[40].mxu1 %v2067_v16  ;;  %v2113_v29 = vadd.f32 %v2112_v39, %v2111_v56  ;;  %v2937_v39 = vld [vmem:[%s16311_s7 + $0x30] sm:$0xff] }
 0x4d1   :  { %10008 = vmatpush3.bf16.msra.mxu1 %v12243_v49  ;;  %v2099_v19 = vrot.slane %v2098_v38, 1  ;;  %v16408_v49 = vld [vmem:[#allocation20_spill] sm:$0xff] }
 0x4d2   :  { %10010 = vmatprep.subr.bf16.mxu1 %v12247_v4  ;;  %v2086_v4 = vrot.slane %v2085_v47, 2  ;;  %v2114_v24 = vrot.slane %v2113_v29, 1 }
 0x4d3   :  { %v2100_v36 = vadd.f32 %v2099_v19, %v2098_v38 }
 0x4d4   :  { %v2087_v51 = vadd.f32 %v2086_v4, %v2085_v47  ;;  %v2115_v27 = vadd.f32 %v2114_v24, %v2113_v29  ;;  %v16419_v4 = vld [vmem:[#allocation27_spill] sm:$0xff]  ;;  %v2947_v29 = vld [vmem:[%s16311_s7 + $0x80] sm:$0xff] }
 0x4d5   :  { %10012 = vmatpush3.bf16.msra.mxu1 %v16402_v0  ;;  %2253 = vmatprep.mubr.f32.mxu1 %v2100_v36 }
 0x4d6   :  { %10014 = vmatprep.subr.bf16.mxu1 %v16403_v45  ;;  %v2088_v31 = vrot.slane %v2087_v51, 1 }
 0x4d8   :  { %v2089_v55 = vadd.f32 %v2088_v31, %v2087_v51  ;;  %v2934_v31 = vld [vmem:[%s16311_s7 + $0x18] sm:$0xff] }
 0x4d9   :  { %10016 = vmatpush3.bf16.msra.mxu1 %v16404_v41 }
 0x4da   :  { %10018 = vmatprep.subr.bf16.mxu1 %v16405_v57 }
 0x4dd   :  { %10020 = vmatpush3.bf16.msra.mxu1 %v16406_v13 }
 0x4de   :  { %10022 = vmatprep.subr.bf16.mxu1 %v16407_v54  ;;  %v1402_v54 = vld [vmem:[%s16310_s2] sm:$0x1] }
 0x4e1   :  { %10024 = vmatpush3.bf16.msra.mxu1 %v16408_v49  ;;  %v2932_v49 = vld [vmem:[%s16311_s7 + $0x8] sm:$0xff] }
 0x4e2   :  { %10026 = vmatprep.subr.bf16.mxu1 %v16409_v50  ;;  %v2935_v50 = vld [vmem:[%s16311_s7 + $0x20] sm:$0xff] }
 0x4e3   :  { %v10093_v51 = vpack.c.bf16 %v2935_v50, %v2932_v49  ;;  %v2965_v49 = vld [vmem:[%s16311_s7 + $0x110] sm:$0xff] }
 0x4e5   :  { %10028 = vmatpush3.bf16.msra.mxu1 %v16410_v14  ;;  %v16420_v14 = vld [vmem:[#allocation28_spill] sm:$0xff] }
 0x4e6   :  { %10030 = vmatprep.subr.bf16.mxu1 %v16411_v61 }
 0x4e9   :  { %10032 = vmatpush3.bf16.msra.mxu1 %v16412_v25  ;;  %v1403_v25 = vld [vmem:[%s16312_s3] sm:$0x1] }
 0x4ea   :  { %10034 = vmatprep.subr.bf16.mxu1 %v16413_v23  ;;  %v2931_v23 = vld [vmem:[%s16311_s7] sm:$0xff] }
 0x4eb   :  { %v10095_v56 = vpack.c.bf16 %v2934_v31, %v2931_v23  ;;  %v2961_v23 = vld [vmem:[%s16311_s7 + $0xf0] sm:$0xff]  ;;  %v2968_v31 = vld [vmem:[%s16311_s7 + $0x128] sm:$0xff] }
 0x4ed   :  { %10036 = vmatpush3.bf16.msra.mxu1 %v16414_v35  ;;  %v16421_v35 = vld [vmem:[#allocation29_spill] sm:$0xff] }
 0x4ee   :  { %10037 = vmatprep.subr.bf16.mxu1 %v16401_v7 }
 0x4f0   :  { %2254 = vmatmul.mubr.f32.vlgmr.msra.gmra.mrb[42].mxu1 %v2089_v55 }
 0x4f1   :  { %10039 = vmatpush3.bf16.msra.mxu1 %v16415_v63  ;;  %9450 = vmatprep.mubr.msk.f32.mxu1 %vm11315_vm0, %v16394_v5 }
 0x4f2   :  { %10040 = vmatprep.subr.bf16.mxu1 %v16401_v7 }
 0x4f5   :  { %10042 = vmatpush3.bf16.msra.mxu1 %v16416_v32  ;;  %v2940_v32 = vld [vmem:[%s16311_s7 + $0x48] sm:$0xff] }
 0x4f6   :  { %10043 = vmatprep.subr.bf16.mxu1 %v16401_v7 }
 0x4f9   :  { %10045 = vmatpush3.bf16.msra.mxu1 %v16417_v37  ;;  %v10099_v37 = vpack.c.bf16 %v2940_v32, %v2937_v39  ;;  %v2974_v39 = vld [vmem:[%s16311_s7 + $0x158] sm:$0xff]  ;;  %v2977_v32 = vld [vmem:[%s16311_s7 + $0x170] sm:$0xff] }
 0x4fa   :  { %10046 = vmatprep.subr.bf16.mxu1 %v16401_v7 }
 0x4fd   :  { %10048 = vmatpush3.bf16.msra.mxu1 %v16418_v48  ;;  %v2943_v48 = vld [vmem:[%s16311_s7 + $0x60] sm:$0xff] }
 0x4fe   :  { %10065 = vmatprep.subr.bf16.mxu1 %v16401_v7 }
 0x500   :  { %9451 = vmatmul.mubr.msk.f32.vlgmr.msra.gmra.mrb[44].mxu1 %vm1541_vm4, %v2115_v27  ;;  %v2946_v27 = vld [vmem:[%s16311_s7 + $0x78] sm:$0xff] }
 0x501   :  { %10067 = vmatpush3.bf16.msra.mxu1 %v12459_v2  ;;  %9461 = vmatprep.mubr.msk.f32.mxu1 %vm11315_vm0, %v16394_v5 }
 0x502   :  { %10068 = vmatprep.subr.bf16.mxu1 %v16401_v7 }
 0x505   :  { %10070 = vmatpush3.bf16.msra.mxu1 %v12474_v58 }
 0x506   :  { %10080 = vmatprep.subr.bf16.mxu1 %v12408_v52 }
 0x5a3   :  { %v8694_v42 = vpop.f32.mrb[40].mxu1 }
 0x5a4   :  { %v8695_v30 = vpop.f32.mrb[41].mxu1 }
 0x5a5   :  { %v8696_v16 = vadd.f32 %v8695_v30, %v8694_v42  ;;  %v10103_v42 = vpack.c.bf16 %v2946_v27, %v2943_v48  ;;  %v2949_v30 = vld [vmem:[%s16311_s7 + $0x90] sm:$0xff]  ;;  %v2980_v48 = vld [vmem:[%s16311_s7 + $0x188] sm:$0xff]  ;;  %v2983_v27 = vld [vmem:[%s16311_s7 + $0x1a0] sm:$0xff] }
 0x5c3   :  { %v8729_v44 = vpop.f32.mrb[42].mxu1 }
 0x5c4   :  { %v8730_v38 = vpop.f32.mrb[43].mxu1 }
 0x5c5   :  { %v8731_v19 = vadd.f32 %v8730_v38, %v8729_v44  ;;  %v2952_v44 = vld [vmem:[%s16311_s7 + $0xa8] sm:$0xff]  ;;  %v2981_v38 = vld [vmem:[%s16311_s7 + $0x190] sm:$0xff] }
 0x5c7   :  { %v2256_v36 = vadd.f32 %v8731_v19, %v8696_v16  ;;  %v2956_v19 = vld [vmem:[%s16311_s7 + $0xc8] sm:$0xff] }
 0x5d3   :  { %v2325_v0 = vpop.f32.mrb[44].mxu1 }
 0x5d4   :  { %v2326_v45 = vadd.f32 %v2325_v0, %v2256_v36  ;;  %v9452_v41 = vpop.f32.mrb[45].mxu1  ;;  %v2959_v36 = vld [vmem:[%s16311_s7 + $0xe0] sm:$0xff]  ;;  %v10107_v0 = vpack.c.bf16 %v2952_v44, %v2949_v30  ;;  %v2982_v30 = vld [vmem:[%s16311_s7 + $0x198] sm:$0xff]  ;;  %v2989_v44 = vld [vmem:[%s16311_s7 + $0x1d0] sm:$0xff] }
 0x5d6   :  { %v2329_v57 = vmul.f32 0.0015432099, %v2326_v45  ;;  %v2955_v45 = vld [vmem:[%s16311_s7 + $0xc0] sm:$0xff] }
 0x5d8   :  { %v2330_v26 = vmax.f32 %v2329_v57, 0.0  ;;  %v2933_v57 = vld [vmem:[%s16311_s7 + $0x10] sm:$0xff] }
 0x5da   :  { %v2331_v13 = vadd.f32 1e-05, %v2330_v26  ;;  %v10109_v26 = vpack.c.bf16 %v2959_v36, %v2956_v19  ;;  %v2985_v19 = vld [vmem:[%s16311_s7 + $0x1b0] sm:$0xff]  ;;  %v2988_v36 = vld [vmem:[%s16311_s7 + $0x1c8] sm:$0xff] }
 0x5dc   :  { %11310 = vrsqrt.f32 %v2331_v13  ;;  %v2958_v13 = vld [vmem:[%s16311_s7 + $0xd8] sm:$0xff] }
 0x5e6   :  { %v11311_v47 = vpop.eup %11310 }
 0x5e7   :  { %v2333_v52 = vmul.f32 %v11311_v47, %v1402_v54  ;;  %v2987_v54 = vld [vmem:[%s16311_s7 + $0x1c0] sm:$0xff]  ;;  %v2990_v47 = vld [vmem:[%s16311_s7 + $0x1d8] sm:$0xff] }
 0x5e9   :  { %8192 = vmatmul.mubr.msk.f32.vlgmr.msra.gmra.mrb[32].mxu0 %vm71_vm1, %v2333_v52  ;;  %9462 = vmatmul.mubr.msk.f32.vlgmr.msra.gmra.mrb[46].mxu1 %vm71_vm1, %v2333_v52  ;;  %v2334_v61 = vmul.f32 %v2333_v52, %v12461_v10  ;;  %v2938_v10 = vld [vmem:[%s16311_s7 + $0x38] sm:$0xff] }
 0x5ea   :  { %10060 = vmatpush1.bf16.msra.mxu0 %v16419_v4  ;;  %10082 = vmatpush1.bf16.msra.mxu1 %v16419_v4  ;;  %v10097_v63 = vpack.c.bf16 %v2941_v33, %v2938_v10  ;;  %v10111_v4 = vpack.c.bf16 %v2958_v13, %v2955_v45  ;;  %v2971_v10 = vld [vmem:[%s16311_s7 + $0x140] sm:$0xff]  ;;  %v2992_v45 = vld [vmem:[%s16311_s7 + $0x1e8] sm:$0xff] }
 0x5eb   :  { %10062 = vmatprep.subr.bf16.mxu0 %v16420_v14  ;;  %10084 = vmatprep.subr.bf16.mxu1 %v16420_v14  ;;  %v2335_v55 = vsub.f32 %v1403_v25, %v2334_v61  ;;  %v10241_v14 = vpack.c.bf16 %v2990_v47, %v2987_v54  ;;  %v2939_v61 = vld [vmem:[%s16311_s7 + $0x40] sm:$0xff]  ;;  %v2994_v54 = vld [vmem:[%s16311_s7 + $0x1f8] sm:$0xff] }
 0x5ec   :  { %2474 = vmatprep.mubr.f32.mxu0 %v16394_v5  ;;  %2689 = vmatprep.mubr.f32.mxu1 %v16394_v5  ;;  %v2991_v13 = vld [vmem:[%s16311_s7 + $0x1e0] sm:$0xff] }
 0x5ee   :  { %10064 = vmatpush1.bf16.msra.mxu0 %v16421_v35  ;;  %10086 = vmatpush1.bf16.msra.mxu1 %v16421_v35 }
 0x5ef   :  { %10072 = vmatprep.subr.bf16.mxu0 %v12385_v59  ;;  %10094 = vmatprep.subr.bf16.mxu1 %v10093_v51  ;;  %v2944_v59 = vld [vmem:[%s16311_s7 + $0x68] sm:$0xff]  ;;  %v2942_v51 = vld [vmem:[%s16311_s7 + $0x58] sm:$0xff] }
 0x5f0   :  { %v10101_v24 = vpack.c.bf16 %v2947_v29, %v2944_v59  ;;  %v10243_v33 = vpack.c.bf16 %v2942_v51, %v2939_v61  ;;  %v10121_v29 = vpack.c.bf16 %v2977_v32, %v2974_v39  ;;  %v3001_v61 = vld [vmem:[%s16311_s7 + $0x230] sm:$0xff]  ;;  %v2999_v51 = vld [vmem:[%s16311_s7 + $0x220] sm:$0xff] }
 0x5f1   :  { %8193 = vmatmul.mubr.msk.f32.vlgmr.msra.gmra.mrb[34].mxu0 %vm71_vm1, %v2333_v52  ;;  %8196 = vmatmul.mubr.msk.f32.vlgmr.msra.gmra.mrb[48].mxu1 %vm71_vm1, %v2335_v55  ;;  %v2962_v52 = vld [vmem:[%s16311_s7 + $0xf8] sm:$0xff]  ;;  %v3007_v39 = vld [vmem:[%s16311_s7 + $0x260] sm:$0xff]  ;;  %v3005_v32 = vld [vmem:[%s16311_s7 + $0x250] sm:$0xff] }
 0x5f2   :  { %10074 = vmatpush1.bf16.msra.mxu0 %v12396_v1  ;;  %2618 = vmatprep.mubr.f32.mxu0 %v16394_v5  ;;  %v2950_v1 = vld [vmem:[%s16311_s7 + $0x98] sm:$0xff]  ;;  %v10113_v25 = vpack.c.bf16 %v2965_v49, %v2962_v52  ;;  %v10135_v52 = vpack.c.bf16 %v2994_v54, %v2991_v13  ;;  %v2945_v49 = vld [vmem:[%s16311_s7 + $0x70] sm:$0xff]  ;;  %v3019_v13 = vld [vmem:[%s16311_s7 + $0x2c0] sm:$0xff] }
 0x5f3   :  { %10076 = vmatprep.subr.bf16.mxu0 %v12420_v60  ;;  %10096 = vmatpush1.bf16.msra.mxu1 %v10095_v56  ;;  %v2953_v60 = vld [vmem:[%s16311_s7 + $0xb0] sm:$0xff]  ;;  %v10117_v56 = vpack.c.bf16 %v2971_v10, %v2968_v31  ;;  %v3000_v10 = vld [vmem:[%s16311_s7 + $0x228] sm:$0xff] }
 0x5f4   :  { %10098 = vmatprep.subr.bf16.mxu1 %v10097_v63  ;;  %v10105_v16 = vpack.c.bf16 %v2953_v60, %v2950_v1  ;;  %v2967_v63 = vld [vmem:[%s16311_s7 + $0x120] sm:$0xff]  ;;  %v10125_v60 = vpack.c.bf16 %v2983_v27, %v2980_v48  ;;  %v2997_v31 = vld [vmem:[%s16311_s7 + $0x210] sm:$0xff] }
 0x5f5   :  { %v3017_v54 = vld [vmem:[%s16311_s7 + $0x2b0] sm:$0xff] }
 0x5f6   :  { %10078 = vmatpush1.bf16.msra.mxu0 %v12432_v8  ;;  %v2984_v8 = vld [vmem:[%s16311_s7 + $0x1a8] sm:$0xff] }
 0x5f7   :  { %10087 = vmatprep.subr.bf16.mxu0 %v16401_v7  ;;  %10100 = vmatpush1.bf16.msra.mxu1 %v10099_v37  ;;  %v10237_v41 = vpack.c.bf16 %v2984_v8, %v2981_v38  ;;  %v2973_v37 = vld [vmem:[%s16311_s7 + $0x150] sm:$0xff] }
 0x5f8   :  { %10102 = vmatprep.subr.bf16.mxu1 %v10101_v24  ;;  %v2976_v24 = vld [vmem:[%s16311_s7 + $0x168] sm:$0xff] }
 0x5f9   :  { %8195 = vmatmul.mubr.msk.f32.vlgmr.msra.gmra.mrb[36].mxu0 %vm71_vm1, %v2335_v55  ;;  %v10123_v1 = vpack.c.bf16 %v2976_v24, %v2973_v37  ;;  %v3003_v37 = vld [vmem:[%s16311_s7 + $0x240] sm:$0xff]  ;;  %v3006_v24 = vld [vmem:[%s16311_s7 + $0x258] sm:$0xff] }
 0x5fa   :  { %10089 = vmatpush3.bf16.msra.mxu0 %v12459_v2  ;;  %9472 = vmatprep.mubr.msk.f32.mxu0 %vm11315_vm0, %v16394_v5  ;;  %v2936_v2 = vld [vmem:[%s16311_s7 + $0x28] sm:$0xff]  ;;  %v10143_v27 = vpack.c.bf16 %v3006_v24, %v3003_v37  ;;  %v3031_v37 = vld [vmem:[%s16311_s7 + $0x320] sm:$0xff]  ;;  %v3077_v24 = vld [vmem:[%s16311_s7 + $0x490] sm:$0xff] }
 0x5fb   :  { %10090 = vmatprep.subr.bf16.mxu0 %v16401_v7  ;;  %10104 = vmatpush1.bf16.msra.mxu1 %v10103_v42  ;;  %v10239_v50 = vpack.c.bf16 %v2936_v2, %v2933_v57  ;;  %v2979_v42 = vld [vmem:[%s16311_s7 + $0x180] sm:$0xff]  ;;  %v2993_v57 = vld [vmem:[%s16311_s7 + $0x1f0] sm:$0xff] }
 0x5fc   :  { %10106 = vmatprep.subr.bf16.mxu1 %v10105_v16  ;;  %v2986_v16 = vld [vmem:[%s16311_s7 + $0x1b8] sm:$0xff]  ;;  %v10127_v38 = vpack.c.bf16 %v2982_v30, %v2979_v42 }
 0x5fd   :  { %v10129_v8 = vpack.c.bf16 %v2989_v44, %v2986_v16  ;;  %v3010_v42 = vld [vmem:[%s16311_s7 + $0x278] sm:$0xff]  ;;  %v3013_v16 = vld [vmem:[%s16311_s7 + $0x290] sm:$0xff]  ;;  %v3011_v44 = vld [vmem:[%s16311_s7 + $0x280] sm:$0xff] }
 0x5fe   :  { %10092 = vmatpush3.bf16.msra.mxu0 %v12474_v58  ;;  %v2964_v58 = vld [vmem:[%s16311_s7 + $0x108] sm:$0xff] }
 0x5ff   :  { %10108 = vmatpush1.bf16.msra.mxu1 %v10107_v0  ;;  %10238 = vmatprep.subr.bf16.mxu0 %v10237_v41  ;;  %v10115_v35 = vpack.c.bf16 %v2964_v58, %v2961_v23  ;;  %v10131_v0 = vpack.c.bf16 %v2988_v36, %v2985_v19  ;;  %v2995_v41 = vld [vmem:[%s16311_s7 + $0x200] sm:$0xff]  ;;  %v3009_v36 = vld [vmem:[%s16311_s7 + $0x270] sm:$0xff] }
 0x600   :  { %10110 = vmatprep.subr.bf16.mxu1 %v10109_v26  ;;  %v10133_v2 = vpack.c.bf16 %v2995_v41, %v2992_v45  ;;  %v2996_v26 = vld [vmem:[%s16311_s7 + $0x208] sm:$0xff]  ;;  %v2963_v45 = vld [vmem:[%s16311_s7 + $0x100] sm:$0xff] }
 0x601   :  { %9473 = vmatmul.mubr.msk.f32.vlgmr.msra.gmra.mrb[38].mxu0 %vm71_vm1, %v2335_v55  ;;  %v2970_v55 = vld [vmem:[%s16311_s7 + $0x138] sm:$0xff]  ;;  %v10245_v47 = vpack.c.bf16 %v2996_v26, %v2993_v57  ;;  %v3016_v26 = vld [vmem:[%s16311_s7 + $0x2a8] sm:$0xff] }
 0x602   :  { %10240 = vmatpush3.bf16.msra.mxu0 %v10239_v50  ;;  %v10119_v59 = vpack.c.bf16 %v2970_v55, %v2967_v63  ;;  %v2948_v50 = vld [vmem:[%s16311_s7 + $0x88] sm:$0xff]  ;;  %v2966_v57 = vld [vmem:[%s16311_s7 + $0x118] sm:$0xff] }
 0x603   :  { %10112 = vmatpush1.bf16.msra.mxu1 %v10111_v4  ;;  %10242 = vmatprep.subr.bf16.mxu0 %v10241_v14  ;;  %v2998_v4 = vld [vmem:[%s16311_s7 + $0x218] sm:$0xff]  ;;  %v10247_v14 = vpack.c.bf16 %v2948_v50, %v2945_v49  ;;  %v3004_v55 = vld [vmem:[%s16311_s7 + $0x248] sm:$0xff]  ;;  %v3015_v49 = vld [vmem:[%s16311_s7 + $0x2a0] sm:$0xff] }
 0x604   :  { %10114 = vmatprep.subr.bf16.mxu1 %v10113_v25  ;;  %v3002_v25 = vld [vmem:[%s16311_s7 + $0x238] sm:$0xff]  ;;  %v10137_v23 = vpack.c.bf16 %v3001_v61, %v2998_v4  ;;  %v2969_v61 = vld [vmem:[%s16311_s7 + $0x130] sm:$0xff] }
 0x605   :  { %v10249_v58 = vpack.c.bf16 %v3002_v25, %v2999_v51  ;;  %v3018_v50 = vld [vmem:[%s16311_s7 + $0x2b8] sm:$0xff]  ;;  %v2972_v51 = vld [vmem:[%s16311_s7 + $0x148] sm:$0xff] }
 0x606   :  { %10244 = vmatpush3.bf16.msra.mxu0 %v10243_v33  ;;  %v2951_v33 = vld [vmem:[%s16311_s7 + $0xa0] sm:$0xff]  ;;  %v3022_v25 = vld [vmem:[%s16311_s7 + $0x2d8] sm:$0xff] }
 0x607   :  { %10116 = vmatpush1.bf16.msra.mxu1 %v10115_v35  ;;  %10246 = vmatprep.subr.bf16.mxu0 %v10245_v47  ;;  %v10139_v35 = vpack.c.bf16 %v3000_v10, %v2997_v31  ;;  %v10149_v47 = vpack.c.bf16 %v3019_v13, %v3016_v26  ;;  %v3023_v31 = vld [vmem:[%s16311_s7 + $0x2e0] sm:$0xff]  ;;  %v3026_v10 = vld [vmem:[%s16311_s7 + $0x2f8] sm:$0xff] }
 0x608   :  { %10118 = vmatprep.subr.bf16.mxu1 %v10117_v56  ;;  %v2954_v56 = vld [vmem:[%s16311_s7 + $0xb8] sm:$0xff] }
 0x609   :  { %v10251_v63 = vpack.c.bf16 %v2954_v56, %v2951_v33  ;;  %v3021_v56 = vld [vmem:[%s16311_s7 + $0x2d0] sm:$0xff] }
 0x60a   :  { %10248 = vmatpush3.bf16.msra.mxu0 %v10247_v14  ;;  %v10151_v14 = vpack.c.bf16 %v3018_v50, %v3015_v49  ;;  %v16423_v49 = vld [vmem:[#allocation10_spill] sm:$0xff] }
 0x60b   :  { %10120 = vmatpush1.bf16.msra.mxu1 %v10119_v59  ;;  %10250 = vmatprep.subr.bf16.mxu0 %v10249_v58  ;;  %v10141_v59 = vpack.c.bf16 %v3007_v39, %v3004_v55  ;;  %v3025_v58 = vld [vmem:[%s16311_s7 + $0x2f0] sm:$0xff]  ;;  %v2975_v55 = vld [vmem:[%s16311_s7 + $0x160] sm:$0xff] }
 0x60c   :  { %10122 = vmatprep.subr.bf16.mxu1 %v10121_v29  ;;  %v3008_v29 = vld [vmem:[%s16311_s7 + $0x268] sm:$0xff]  ;;  %v10153_v33 = vpack.c.bf16 %v3025_v58, %v3022_v25  ;;  %v16426_v25 = vld [vmem:[#allocation9_spill] sm:$0xff] }
 0x60d   :  { %v10253_v48 = vpack.c.bf16 %v3008_v29, %v3005_v32  ;;  %v2978_v32 = vld [vmem:[%s16311_s7 + $0x178] sm:$0xff]  ;;  %v3028_v29 = vld [vmem:[%s16311_s7 + $0x308] sm:$0xff] }
 0x60e   :  { %10252 = vmatpush3.bf16.msra.mxu0 %v10251_v63  ;;  %v3024_v63 = vld [vmem:[%s16311_s7 + $0x2e8] sm:$0xff] }
 0x60f   :  { %10124 = vmatpush1.bf16.msra.mxu1 %v10123_v1  ;;  %v2957_v1 = vld [vmem:[%s16311_s7 + $0xd0] sm:$0xff]  ;;  %10254 = vmatprep.subr.bf16.mxu0 %v10253_v48  ;;  %v10155_v39 = vpack.c.bf16 %v3024_v63, %v3021_v56  ;;  %v10157_v48 = vpack.c.bf16 %v3031_v37, %v3028_v29  ;;  %v16427_v58 = vld [vmem:[#allocation11_spill] sm:$0xff] }
 0x610   :  { %10126 = vmatprep.subr.bf16.mxu1 %v10125_v60  ;;  %v2960_v60 = vld [vmem:[%s16311_s7 + $0xe8] sm:$0xff] }
 0x611   :  { %v10255_v30 = vpack.c.bf16 %v2960_v60, %v2957_v1 }
 0x613   :  { %10128 = vmatpush1.bf16.msra.mxu1 %v10127_v38  ;;  %v3014_v38 = vld [vmem:[%s16311_s7 + $0x298] sm:$0xff]  ;;  %10256 = vmatpush3.bf16.msra.mxu0 %v10255_v30 }
 0x614   :  { %10130 = vmatprep.subr.bf16.mxu1 %v10129_v8  ;;  %v10145_v8 = vpack.c.bf16 %v3013_v16, %v3010_v42  ;;  %v10257_v19 = vpack.c.bf16 %v3014_v38, %v3011_v44 }
 0x616   :  { %10258 = vmatprep.subr.bf16.mxu0 %v10257_v19 }
 0x617   :  { %10132 = vmatpush1.bf16.msra.mxu1 %v10131_v0  ;;  %v3012_v0 = vld [vmem:[%s16311_s7 + $0x288] sm:$0xff] }
 0x618   :  { %10134 = vmatprep.subr.bf16.mxu1 %v10133_v2  ;;  %v10147_v41 = vpack.c.bf16 %v3012_v0, %v3009_v36  ;;  %v10259_v2 = vpack.c.bf16 %v2966_v57, %v2963_v45 }
 0x61a   :  { %10260 = vmatpush3.bf16.msra.mxu0 %v10259_v2 }
 0x61b   :  { %10136 = vmatpush1.bf16.msra.mxu1 %v10135_v52  ;;  %v3020_v52 = vld [vmem:[%s16311_s7 + $0x2c8] sm:$0xff] }
 0x61c   :  { %10138 = vmatprep.subr.bf16.mxu1 %v10137_v23  ;;  %v10261_v4 = vpack.c.bf16 %v3020_v52, %v3017_v54  ;;  %v10263_v23 = vpack.c.bf16 %v2972_v51, %v2969_v61  ;;  %v16425_v61 = vld [vmem:[#allocation7_spill] sm:$0xff] }
 0x61e   :  { %10262 = vmatprep.subr.bf16.mxu0 %v10261_v4  ;;  %v16424_v4 = vld [vmem:[#allocation6_spill] sm:$0xff] }
 0x61f   :  { %10140 = vmatpush1.bf16.msra.mxu1 %v10139_v35  ;;  %v10265_v35 = vpack.c.bf16 %v3026_v10, %v3023_v31  ;;  %10264 = vmatpush3.bf16.msra.mxu0 %v10263_v23 }
 0x620   :  { %10142 = vmatprep.subr.bf16.mxu1 %v10141_v59  ;;  %v10267_v59 = vpack.c.bf16 %v2978_v32, %v2975_v55 }
 0x621   :  { %10266 = vmatprep.subr.bf16.mxu0 %v10265_v35 }
 0x623   :  { %10144 = vmatpush1.bf16.msra.mxu1 %v10143_v27  ;;  %v3080_v27 = vld [vmem:[%s16311_s7 + $0x4a8] sm:$0xff]  ;;  %10268 = vmatpush3.bf16.msra.mxu0 %v10267_v59 }
 0x624   :  { %10146 = vmatprep.subr.bf16.mxu1 %v10145_v8  ;;  %v10269_v1 = vpack.c.bf16 %v3080_v27, %v3077_v24  ;;  %v3027_v24 = vld [vmem:[%s16311_s7 + $0x300] sm:$0xff] }
 0x626   :  { %10270 = vmatprep.subr.bf16.mxu0 %v10269_v1 }
 0x627   :  { %10148 = vmatpush1.bf16.msra.mxu1 %v10147_v41 }
 0x628   :  { %10150 = vmatprep.subr.bf16.mxu1 %v10149_v47  ;;  %v16422_v47 = vld [vmem:[#allocation8_spill] sm:$0xff] }
 0x62b   :  { %10152 = vmatpush1.bf16.msra.mxu1 %v10151_v14 }
 0x62c   :  { %10154 = vmatprep.subr.bf16.mxu1 %v10153_v33 }
 0x62f   :  { %10156 = vmatpush1.bf16.msra.mxu1 %v10155_v39 }
 0x630   :  { %10158 = vmatprep.subr.bf16.mxu1 %v10157_v48 }
 0x6bc   :  { %v2405_v60 = vpop.f32.mrb[32].mxu0  ;;  %v2547_v42 = vpop.f32.mrb[46].mxu1 }
 0x6bd   :  { %v2769_v30 = vrot.slane %v2405_v60, %v12504_v20  ;;  %v2785_v16 = vrot.slane %v2547_v42, %v12504_v20  ;;  %v2407_v44 = vpop.f32.mrb[33].mxu0  ;;  %v9463_v38 = vpop.f32.mrb[47].mxu1  ;;  %v3030_v42 = vld [vmem:[%s16311_s7 + $0x318] sm:$0xff] }
 0x6be   :  { %v2773_v8 = vrot.slane %v2407_v44, %v12504_v20 }
 0x6bf   :  { %v12914_v19 = vmul.f32 %v2785_v16, %v12219_v18  ;;  %v2786_v36 = vmul.f32 %v2769_v30, %v12153_v9  ;;  %v2791_v0 = vmul.f32 %v2769_v30, %v12161_v15  ;;  %v2796_v45 = vmul.f32 %v2769_v30, %v12177_v28 }
 0x6c0   :  { %v2787_v41 = vmul.f32 %v2773_v8, %v12157_v12  ;;  %v2792_v57 = vmul.f32 %v2773_v8, %v12169_v22  ;;  %v2797_v2 = vmul.f32 %v2773_v8, %v12183_v34  ;;  %v2802_v26 = vmul.f32 %v2773_v8, %v12195_v46 }
 0x6c1   :  { %v2801_v13 = vmul.f32 %v2769_v30, %v12189_v40  ;;  %v12925_v54 = vmul.f32 %v2773_v8, %v12209_v53  ;;  %v12928_v18 = vmul.f32 %v2769_v30, %v12201_v3  ;;  %v12931_v9 = vmul.f32 %v2785_v16, %v12221_v43  ;;  %v3029_v30 = vld [vmem:[%s16311_s7 + $0x310] sm:$0xff] }
 0x6c2   :  { %v12934_v15 = vmul.f32 %v2785_v16, %v12227_v6  ;;  %v12937_v12 = vmul.f32 %v2785_v16, %v12245_v62  ;;  %v12940_v22 = vmul.f32 %v2785_v16, %v12266_v21  ;;  %v3032_v16 = vld [vmem:[%s16311_s7 + $0x328] sm:$0xff] }
 0x6c4   :  { %v2476_v28 = vpop.f32.mrb[34].mxu0  ;;  %v2691_v34 = vpop.f32.mrb[48].mxu1 }
 0x6c5   :  { %v12943_v40 = vrot.slane %v2476_v28, %v12504_v20  ;;  %v2478_v46 = vpop.f32.mrb[35].mxu0  ;;  %v2693_v3 = vpop.f32.mrb[49].mxu1  ;;  %v12946_v53 = vrot.slane %v2691_v34, %v12504_v20  ;;  %v3033_v34 = vld [vmem:[%s16311_s7 + $0x330] sm:$0xff] }
 0x6c6   :  { %v12949_v43 = vrot.slane %v2478_v46, %v12504_v20  ;;  %v12952_v6 = vrot.slane %v2693_v3, %v12504_v20  ;;  %v3036_v46 = vld [vmem:[%s16311_s7 + $0x348] sm:$0xff] }
 0x6c7   :  { %v2788_v62 = vmul.f32 %v12943_v40, %v12155_v11  ;;  %v2793_v21 = vmul.f32 %v12943_v40, %v12163_v17  ;;  %v2798_v52 = vmul.f32 %v12943_v40, %v16422_v47  ;;  %v2803_v50 = vmul.f32 %v12943_v40, %v16423_v49  ;;  %v3038_v47 = vld [vmem:[%s16311_s7 + $0x358] sm:$0xff] }
 0x6c8   :  { %v2789_v14 = vmul.f32 %v12949_v43, %v16424_v4  ;;  %v2794_v51 = vmul.f32 %v12949_v43, %v16425_v61  ;;  %v2799_v23 = vmul.f32 %v12949_v43, %v16426_v25  ;;  %v2804_v11 = vmul.f32 %v12949_v43, %v16427_v58  ;;  %v3089_v25 = vld [vmem:[%s16311_s7 + $0x4f0] sm:$0xff] }
 0x6c9   :  { %v12971_v17 = vadd.f32 %v12946_v53, %v2788_v62  ;;  %v12974_v31 = vadd.f32 %v12946_v53, %v2793_v21  ;;  %v12977_v10 = vadd.f32 %v12946_v53, %v2798_v52  ;;  %v12980_v33 = vadd.f32 %v12946_v53, %v2803_v50  ;;  %v3035_v21 = vld [vmem:[%s16311_s7 + $0x340] sm:$0xff]  ;;  %v3040_v52 = vld [vmem:[%s16311_s7 + $0x368] sm:$0xff] }
 0x6ca   :  { %v12983_v35 = vadd.f32 %v12952_v6, %v2789_v14  ;;  %v12986_v56 = vadd.f32 %v12952_v6, %v2794_v51  ;;  %v12989_v63 = vadd.f32 %v12952_v6, %v2799_v23  ;;  %v12992_v55 = vadd.f32 %v12952_v6, %v2804_v11  ;;  %v3043_v51 = vld [vmem:[%s16311_s7 + $0x380] sm:$0xff]  ;;  %v3092_v23 = vld [vmem:[%s16311_s7 + $0x508] sm:$0xff] }
 0x6cb   :  { %v10163_v58 = vpack.c.bf16 %v3036_v46, %v3033_v34  ;;  %v3039_v11 = vld [vmem:[%s16311_s7 + $0x360] sm:$0xff]  ;;  %v16428_v34 = vld [vmem:[#allocation13_spill] sm:$0xff]  ;;  %vm2858_vm5 = vcmp.ge.f32.partialorder %v12971_v17, 0.0 }
 0x6cc   :  { %v2620_v39 = vpop.f32.mrb[36].mxu0  ;;  %v2809_v46 = vmul.f32 %v12949_v43, %v16428_v34  ;;  %v3050_v43 = vld [vmem:[%s16311_s7 + $0x3b8] sm:$0xff]  ;;  %vm2859_vm2 = vcmp.ge.f32.partialorder %v12983_v35, 0.0 }
 0x6cd   :  { %v2814_v32 = vrot.slane %v2620_v39, %v12504_v20  ;;  %v2622_v59 = vpop.f32.mrb[37].mxu0  ;;  %v3042_v39 = vld [vmem:[%s16311_s7 + $0x378] sm:$0xff] }
 0x6ce   :  { %v2818_v29 = vrot.slane %v2622_v59, %v12504_v20  ;;  %v3041_v59 = vld [vmem:[%s16311_s7 + $0x370] sm:$0xff] }
 0x6cf   :  { %v2831_v37 = vadd.f32 %v2814_v32, %v2786_v36  ;;  %v12999_v48 = vadd.f32 %v2814_v32, %v2791_v0  ;;  %v13001_v27 = vadd.f32 %v2814_v32, %v2796_v45  ;;  %v13003_v1 = vadd.f32 %v2814_v32, %v2801_v13  ;;  %v3034_v0 = vld [vmem:[%s16311_s7 + $0x338] sm:$0xff]  ;;  %v3037_v45 = vld [vmem:[%s16311_s7 + $0x350] sm:$0xff] }
 0x6d0   :  { %v2832_v60 = vadd.f32 %v2818_v29, %v2787_v41  ;;  %v2837_v44 = vadd.f32 %v2818_v29, %v2792_v57  ;;  %v13014_v38 = vadd.f32 %v2818_v29, %v2797_v2  ;;  %v13016_v8 = vadd.f32 %v2818_v29, %v2802_v26  ;;  %v3083_v57 = vld [vmem:[%s16311_s7 + $0x4c0] sm:$0xff]  ;;  %v3086_v2 = vld [vmem:[%s16311_s7 + $0x4d8] sm:$0xff] }
 0x6d1   :  { %v2881_v36 = vmul.f32 0.01, %v2831_v37  ;;  %vm2856_vm7 = vcmp.ge.f32.partialorder %v2831_v37, 0.0  ;;  %v10159_v26 = vpack.c.bf16 %v3030_v42, %v3027_v24  ;;  %v10271_v13 = vpack.c.bf16 %v3032_v16, %v3029_v30  ;;  %v3044_v30 = vld [vmem:[%s16311_s7 + $0x388] sm:$0xff]  ;;  %v13087_v16 = vld [vmem:[%s16311_s7 + $0x398] sm:$0xff] }
 0x6d2   :  { %vm2857_vm6 = vcmp.ge.f32.partialorder %v2832_v60, 0.0  ;;  %v2882_v41 = vmul.f32 0.01, %v2832_v60  ;;  %v2887_v28 = vmul.f32 0.01, %v2837_v44  ;;  %vm2862_vm8 = vcmp.ge.f32.partialorder %v2837_v44, 0.0 }
 0x6d3   :  { %v13050_v50 = vsel %vm2856_vm7, %v2831_v37, %v2881_v36  ;;  %v10161_v4 = vpack.c.bf16 %v3037_v45, %v3034_v0  ;;  %v10273_v14 = vpack.c.bf16 %v3086_v2, %v3083_v57  ;;  %v2886_v61 = vmul.f32 0.01, %v12999_v48  ;;  %v3095_v45 = vld [vmem:[%s16311_s7 + $0x520] sm:$0xff] }
 0x6d4   :  { %v2762_v3 = vpop.f32.mrb[38].mxu0  ;;  %v13036_v62 = vsel %vm2857_vm6, %v2832_v60, %v2882_v41  ;;  %vm2861_vm9 = vcmp.ge.f32.partialorder %v12999_v48, 0.0  ;;  %v13075_v37 = vadd.f32 %v2818_v29, %v12925_v54  ;;  %v13078_v24 = vsel %vm2862_vm8, %v2837_v44, %v2887_v28  ;;  %v13092_v54 = vld [vmem:[%s16311_s7 + $0x3b0] sm:$0xff]  ;;  %v3098_v41 = vld [vmem:[%s16311_s7 + $0x538] sm:$0xff] }
 0x6d5   :  { %v9474_v49 = vpop.f32.mrb[39].mxu0  ;;  %3226 = vmatprep.mubr.f32.mxu1 %v13036_v62  ;;  %3511 = vmatprep.mubr.f32.mxu0 %v13036_v62  ;;  %v10275_v60 = vpack.c.bf16 %v3038_v47, %v3035_v21  ;;  %v2892_v42 = vmul.f32 0.01, %v13014_v38  ;;  %v13095_v29 = vadd.f32 %v2814_v32, %v12928_v18  ;;  %v13098_v44 = vrot.slane %v2762_v3, %v12504_v20  ;;  %v3045_v28 = vld [vmem:[%s16311_s7 + $0x390] sm:$0xff] }
 0x6d6   :  { %3227 = vmatmul.mubr.f32.vlgmr.msra.gmra.mrb[50].mxu1 %v13050_v50  ;;  %3512 = vmatmul.mubr.f32.vlgmr.msra.gmra.mrb[40].mxu0 %v13050_v50  ;;  %vm2867_vm10 = vcmp.ge.f32.partialorder %v13014_v38, 0.0  ;;  %v2891_v36 = vmul.f32 0.01, %v13001_v27  ;;  %v13107_v0 = vsel %vm2861_vm9, %v12999_v48, %v2886_v61  ;;  %v10165_v18 = vpack.c.bf16 %v3043_v51, %v3040_v52  ;;  %v16429_v3 = vld [vmem:[#allocation12_spill] sm:$0xff]  ;;  %v3048_v52 = vld [vmem:[%s16311_s7 + $0x3a8] sm:$0xff] }
 0x6d7   :  { %10160 = vmatpush1.bf16.msra.mxu1 %v10159_v26  ;;  %10272 = vmatpush3.bf16.msra.mxu0 %v10271_v13  ;;  %v10277_v32 = vpack.c.bf16 %v3092_v23, %v3089_v25  ;;  %vm2866_vm11 = vcmp.ge.f32.partialorder %v13001_v27, 0.0  ;;  %v10167_v57 = vpack.c.bf16 %v3042_v39, %v3039_v11  ;;  %v10279_v2 = vpack.c.bf16 %v3044_v30, %v3041_v59  ;;  %v3056_v59 = vld [vmem:[%s16311_s7 + $0x3e8] sm:$0xff] }
 0x6d8   :  { %3232 = vmatprep.mubr.f32.mxu1 %v13078_v24  ;;  %3516 = vmatprep.mubr.f32.mxu0 %v13078_v24  ;;  %v10169_v48 = vpack.c.bf16 %v13092_v54, %v13087_v16  ;;  %v13123_v26 = vsel %vm2867_vm10, %v13014_v38, %v2892_v42  ;;  %v2897_v13 = vmul.f32 0.01, %v13016_v8  ;;  %v2808_v21 = vmul.f32 %v12943_v40, %v16429_v3  ;;  %v3047_v40 = vld [vmem:[%s16311_s7 + $0x3a0] sm:$0xff]  ;;  %v3058_v54 = vld [vmem:[%s16311_s7 + $0x3f8] sm:$0xff] }
 0x6d9   :  { %10162 = vmatprep.subr.bf16.mxu1 %v10161_v4  ;;  %10274 = vmatprep.subr.bf16.mxu0 %v10273_v14  ;;  %v13138_v38 = vsel %vm2866_vm11, %v13001_v27, %v2891_v36  ;;  %vm2872_vm12 = vcmp.ge.f32.partialorder %v13016_v8, 0.0  ;;  %v10281_v47 = vpack.c.bf16 %v3098_v41, %v3095_v45  ;;  %v13152_v49 = vadd.f32 %v13098_v44, %v12914_v19  ;;  %v3052_v4 = vld [vmem:[%s16311_s7 + $0x3c8] sm:$0xff]  ;;  %v3055_v19 = vld [vmem:[%s16311_s7 + $0x3e0] sm:$0xff]  ;;  %v3061_v36 = vld [vmem:[%s16311_s7 + $0x410] sm:$0xff] }
 0x6da   :  { %3233 = vmatmul.mubr.f32.gmra.mrb[52].mxu1 %v13107_v0  ;;  %3517 = vmatmul.mubr.f32.gmra.mrb[42].mxu0 %v13107_v0  ;;  %v2896_v27 = vmul.f32 0.01, %v13003_v1  ;;  %v13159_v14 = vadd.f32 %v12952_v6, %v2809_v46  ;;  %v13162_v61 = vadd.f32 %v12946_v53, %v2808_v21  ;;  %v13166_v51 = vadd.f32 %v13098_v44, %v12931_v9  ;;  %v3101_v6 = vld [vmem:[%s16311_s7 + $0x550] sm:$0xff]  ;;  %v3104_v53 = vld [vmem:[%s16311_s7 + $0x568] sm:$0xff]  ;;  %v3067_v3 = vld [vmem:[%s16311_s7 + $0x440] sm:$0xff] }
 0x6db   :  { %10164 = vmatpush1.bf16.msra.mxu1 %v10163_v58  ;;  %10276 = vmatpush3.bf16.msra.mxu0 %v10275_v60  ;;  %vm2871_vm13 = vcmp.ge.f32.partialorder %v13003_v1, 0.0  ;;  %v13182_v9 = vadd.f32 %v13098_v44, %v12934_v15  ;;  %v13186_v25 = vadd.f32 %v13098_v44, %v12937_v12  ;;  %v13191_v23 = vsel %vm2872_vm12, %v13016_v8, %v2897_v13  ;;  %v3051_v15 = vld [vmem:[%s16311_s7 + $0x3c0] sm:$0xff]  ;;  %v3054_v12 = vld [vmem:[%s16311_s7 + $0x3d8] sm:$0xff]  ;;  %v3053_v8 = vld [vmem:[%s16311_s7 + $0x3d0] sm:$0xff] }
 0x6dc   :  { %3238 = vmatprep.mubr.f32.mxu1 %v13123_v26  ;;  %3521 = vmatprep.mubr.f32.mxu0 %v13123_v26  ;;  %v10171_v58 = vpack.c.bf16 %v3048_v52, %v3045_v28  ;;  %v10283_v11 = vpack.c.bf16 %v3050_v43, %v3047_v40  ;;  %v2902_v39 = vmul.f32 0.01, %v13075_v37  ;;  %vm2877_vm14 = vcmp.ge.f32.partialorder %v13075_v37, 0.0  ;;  %v3064_v13 = vld [vmem:[%s16311_s7 + $0x428] sm:$0xff]  ;;  %v3113_v21 = vld [vmem:[%s16311_s7 + $0x5b0] sm:$0xff]  ;;  %v3063_v43 = vld [vmem:[%s16311_s7 + $0x420] sm:$0xff] }
 0x6dd   :  { %10166 = vmatprep.subr.bf16.mxu1 %v10165_v18  ;;  %10278 = vmatprep.subr.bf16.mxu0 %v10277_v32  ;;  %v13212_v60 = vsel %vm2871_vm13, %v13003_v1, %v2896_v27  ;;  %v10173_v42 = vpack.c.bf16 %v3055_v19, %v3052_v4  ;;  %v10285_v30 = vpack.c.bf16 %v3104_v53, %v3101_v6  ;;  %v2901_v16 = vmul.f32 0.01, %v13095_v29  ;;  %v3107_v1 = vld [vmem:[%s16311_s7 + $0x580] sm:$0xff]  ;;  %v3110_v18 = vld [vmem:[%s16311_s7 + $0x598] sm:$0xff]  ;;  %v3068_v6 = vld [vmem:[%s16311_s7 + $0x448] sm:$0xff] }
 0x6de   :  { %3239 = vmatmul.mubr.f32.gmra.mrb[54].mxu1 %v13138_v38  ;;  %3522 = vmatmul.mubr.f32.gmra.mrb[44].mxu0 %v13138_v38  ;;  %vm2876_vm15 = vcmp.ge.f32.partialorder %v13095_v29, 0.0  ;;  %v13232_v32 = vadd.f32 %v13098_v44, %v12940_v22  ;;  %v13237_v45 = vsel %vm2877_vm14, %v13075_v37, %v2902_v39  ;;  %v10175_v41 = vpack.c.bf16 %v3054_v12, %v3051_v15  ;;  %v3060_v22 = vld [vmem:[%s16311_s7 + $0x408] sm:$0xff]  ;;  %v3059_v37 = vld [vmem:[%s16311_s7 + $0x400] sm:$0xff]  ;;  %v3062_v44 = vld [vmem:[%s16311_s7 + $0x418] sm:$0xff] }
 0x6df   :  { %10168 = vmatpush1.bf16.msra.mxu1 %v10167_v57  ;;  %10280 = vmatpush3.bf16.msra.mxu0 %v10279_v2  ;;  %v10287_v57 = vpack.c.bf16 %v3056_v59, %v3053_v8  ;;  %v2884_v2 = vmul.f32 0.01, %v12983_v35  ;;  %v13261_v28 = vsel %vm2876_vm15, %v13095_v29, %v2901_v16  ;;  %v10177_v34 = vpack.c.bf16 %v3061_v36, %v3058_v54  ;;  %v3066_v27 = vld [vmem:[%s16311_s7 + $0x438] sm:$0xff]  ;;  %v3069_v8 = vld [vmem:[%s16311_s7 + $0x450] sm:$0xff]  ;;  %v3071_v16 = vld [vmem:[%s16311_s7 + $0x460] sm:$0xff] }
 0x6e0   :  { %3244 = vmatprep.mubr.f32.mxu1 %v13191_v23  ;;  %3526 = vmatprep.mubr.f32.mxu0 %v13191_v23  ;;  %v10289_v46 = vpack.c.bf16 %v3110_v18, %v3107_v1  ;;  %v10291_v40 = vpack.c.bf16 %v3062_v44, %v3059_v37  ;;  %v10181_v4 = vpack.c.bf16 %v3067_v3, %v3064_v13  ;;  %v3070_v53 = vld [vmem:[%s16311_s7 + $0x458] sm:$0xff]  ;;  %v3076_v36 = vld [vmem:[%s16311_s7 + $0x488] sm:$0xff]  ;;  %v3079_v1 = vld [vmem:[%s16311_s7 + $0x4a0] sm:$0xff]  ;;  %v2883_v37 = vmul.f32 0.01, %v12971_v17 }
 0x6e1   :  { %10170 = vmatprep.subr.bf16.mxu1 %v10169_v48  ;;  %10282 = vmatprep.subr.bf16.mxu0 %v10281_v47  ;;  %v3057_v48 = vld [vmem:[%s16311_s7 + $0x3f0] sm:$0xff]  ;;  %v3116_v47 = vld [vmem:[%s16311_s7 + $0x5c8] sm:$0xff]  ;;  %v13277_v29 = vsel %vm2859_vm2, %v12983_v35, %v2884_v2  ;;  %v3122_v39 = vld [vmem:[%s16311_s7 + $0x5f8] sm:$0xff]  ;;  %v10183_v15 = vpack.c.bf16 %v3066_v27, %v3063_v43  ;;  %vm2864_vm6 = vcmp.ge.f32.partialorder %v12986_v56, 0.0  ;;  %vm2863_vm7 = vcmp.ge.f32.partialorder %v12974_v31, 0.0 }
 0x6e2   :  { %3245 = vmatmul.mubr.f32.gmra.mrb[56].mxu1 %v13212_v60  ;;  %3527 = vmatmul.mubr.f32.gmra.mrb[46].mxu0 %v13212_v60  ;;  %v10179_v52 = vpack.c.bf16 %v3060_v22, %v3057_v48  ;;  %v10293_v19 = vpack.c.bf16 %v3116_v47, %v3113_v21  ;;  %v3065_v35 = vld [vmem:[%s16311_s7 + $0x430] sm:$0xff]  ;;  %v3074_v54 = vld [vmem:[%s16311_s7 + $0x478] sm:$0xff]  ;;  %v3075_v2 = vld [vmem:[%s16311_s7 + $0x480] sm:$0xff]  ;;  %v13356_v27 = vsel %vm2858_vm5, %v12971_v17, %v2883_v37  ;;  %v2894_v17 = vmul.f32 0.01, %v12989_v63 }
 0x6e3   :  { %10172 = vmatpush1.bf16.msra.mxu1 %v10171_v58  ;;  %10284 = vmatpush3.bf16.msra.mxu0 %v10283_v11  ;;  %v3073_v58 = vld [vmem:[%s16311_s7 + $0x470] sm:$0xff]  ;;  %v3119_v11 = vld [vmem:[%s16311_s7 + $0x5e0] sm:$0xff]  ;;  %v10295_v12 = vpack.c.bf16 %v3068_v6, %v3065_v35  ;;  %v3078_v48 = vld [vmem:[%s16311_s7 + $0x498] sm:$0xff]  ;;  %vm2869_vm8 = vcmp.ge.f32.partialorder %v12989_v63, 0.0  ;;  %vm2868_vm9 = vcmp.ge.f32.partialorder %v12977_v10, 0.0  ;;  %vm2874_vm10 = vcmp.ge.f32.partialorder %v12992_v55, 0.0 }
 0x6e4   :  { %3250 = vmatprep.mubr.f32.mxu1 %v13237_v45  ;;  %3531 = vmatprep.mubr.f32.mxu0 %v13237_v45  ;;  %v10185_v59 = vpack.c.bf16 %v3073_v58, %v3070_v53  ;;  %v3082_v22 = vld [vmem:[%s16311_s7 + $0x4b8] sm:$0xff]  ;;  %v3085_v44 = vld [vmem:[%s16311_s7 + $0x4d0] sm:$0xff]  ;;  %v10191_v3 = vpack.c.bf16 %v3078_v48, %v3075_v2  ;;  %v3088_v43 = vld [vmem:[%s16311_s7 + $0x4e8] sm:$0xff]  ;;  %v2898_v48 = vmul.f32 0.01, %v12980_v33  ;;  %vm2873_vm11 = vcmp.ge.f32.partialorder %v12980_v33, 0.0 }
 0x6e5   :  { %10174 = vmatprep.subr.bf16.mxu1 %v10173_v42  ;;  %10286 = vmatprep.subr.bf16.mxu0 %v10285_v30  ;;  %v10297_v42 = vpack.c.bf16 %v3122_v39, %v3119_v11  ;;  %v3072_v30 = vld [vmem:[%s16311_s7 + $0x468] sm:$0xff]  ;;  %v3125_v13 = vld [vmem:[%s16311_s7 + $0x610] sm:$0xff]  ;;  %v10193_v21 = vpack.c.bf16 %v3085_v44, %v3082_v22  ;;  %v3131_v35 = vld [vmem:[%s16311_s7 + $0x640] sm:$0xff]  ;;  %vm2879_vm12 = vcmp.ge.f32.partialorder %v13159_v14, 0.0  ;;  %vm2878_vm13 = vcmp.ge.f32.partialorder %v13162_v61, 0.0 }
 0x6e6   :  { %3251 = vmatmul.mubr.f32.gmra.mrb[58].mxu1 %v13261_v28  ;;  %3532 = vmatmul.mubr.f32.gmra.mrb[48].mxu0 %v13261_v28  ;;  %v10187_v18 = vpack.c.bf16 %v3072_v30, %v3069_v8  ;;  %v3134_v6 = vld [vmem:[%s16311_s7 + $0x658] sm:$0xff]  ;;  %v3137_v30 = vld [vmem:[%s16311_s7 + $0x670] sm:$0xff]  ;;  %v3103_v22 = vld [vmem:[%s16311_s7 + $0x560] sm:$0xff]  ;;  %vm2860_vm14 = vcmp.ge.f32.partialorder %v13152_v49, 0.0  ;;  %vm2865_vm15 = vcmp.ge.f32.partialorder %v13166_v51, 0.0  ;;  %vm2870_vm2 = vcmp.ge.f32.partialorder %v13182_v9, 0.0 }
 0x6e7   :  { %10176 = vmatpush1.bf16.msra.mxu1 %v10175_v41  ;;  %10288 = vmatpush3.bf16.msra.mxu0 %v10287_v57  ;;  %v10299_v41 = vpack.c.bf16 %v3074_v54, %v3071_v16  ;;  %v10189_v57 = vpack.c.bf16 %v3079_v1, %v3076_v36  ;;  %v10305_v39 = vpack.c.bf16 %v3134_v6, %v3131_v35  ;;  %v3140_v16 = vld [vmem:[%s16311_s7 + $0x688] sm:$0xff]  ;;  %v2899_v54 = vmul.f32 0.01, %v12992_v55  ;;  %v3143_v37 = vld [vmem:[%s16311_s7 + $0x6a0] sm:$0xff]  ;;  %v3146_v44 = vld [vmem:[%s16311_s7 + $0x6b8] sm:$0xff] }
 0x6e8   :  { %3321 = vmatprep.mubr.f32.mxu1 %v13277_v29  ;;  %3601 = vmatprep.mubr.f32.mxu0 %v13277_v29  ;;  %v3109_v35 = vld [vmem:[%s16311_s7 + $0x590] sm:$0xff]  ;;  %vm2875_vm5 = vcmp.ge.f32.partialorder %v13186_v25, 0.0 }
 0x6e9   :  { %10178 = vmatprep.subr.bf16.mxu1 %v10177_v34  ;;  %10290 = vmatprep.subr.bf16.mxu0 %v10289_v46  ;;  %v3128_v34 = vld [vmem:[%s16311_s7 + $0x628] sm:$0xff]  ;;  %v2889_v46 = vmul.f32 0.01, %v12986_v56 }
 0x6ea   :  { %v10302_v47 = vpack.c.bf16 %v3128_v34, %v3125_v13  ;;  %v2904_v13 = vmul.f32 0.01, %v13159_v14  ;;  %v3718_v34 = vld [vmem:[%s16313_s8 + $0x8] sm:$0xff] }
 0x6eb   :  { %10180 = vmatpush1.bf16.msra.mxu1 %v10179_v52  ;;  %10292 = vmatpush3.bf16.msra.mxu0 %v10291_v40  ;;  %v3081_v52 = vld [vmem:[%s16311_s7 + $0x4b0] sm:$0xff]  ;;  %v3084_v40 = vld [vmem:[%s16311_s7 + $0x4c8] sm:$0xff]  ;;  %v13370_v53 = vsel %vm2864_vm6, %v12986_v56, %v2889_v46  ;;  %v3090_v56 = vld [vmem:[%s16311_s7 + $0x4f8] sm:$0xff]  ;;  %vm2880_vm6 = vcmp.ge.f32.partialorder %v13232_v32, 0.0 }
 0x6ec   :  { %10182 = vmatprep.subr.bf16.mxu1 %v10181_v4  ;;  %10294 = vmatprep.subr.bf16.mxu0 %v10293_v19  ;;  %v2888_v4 = vmul.f32 0.01, %v12974_v31  ;;  %v3091_v19 = vld [vmem:[%s16311_s7 + $0x500] sm:$0xff]  ;;  %v10195_v58 = vpack.c.bf16 %v3084_v40, %v3081_v52  ;;  %v3102_v52 = vld [vmem:[%s16311_s7 + $0x558] sm:$0xff]  ;;  %v13453_v40 = vsel %vm2873_vm11, %v12980_v33, %v2898_v48  ;;  %v13465_v6 = vsel %vm2879_vm12, %v13159_v14, %v2904_v13  ;;  %v3105_v14 = vld [vmem:[%s16311_s7 + $0x570] sm:$0xff] }
 0x6ed   :  { %v10197_v11 = vpack.c.bf16 %v3091_v19, %v3088_v43  ;;  %v3721_v46 = vld [vmem:[%s16313_s8 + $0x20] sm:$0xff]  ;;  %v2903_v43 = vmul.f32 0.01, %v13162_v61  ;;  %v3106_v19 = vld [vmem:[%s16311_s7 + $0x578] sm:$0xff]  ;;  %v2890_v48 = vmul.f32 0.01, %v13166_v51 }
 0x6ee   :  { %v13386_v8 = vsel %vm2863_vm7, %v12974_v31, %v2888_v4  ;;  %v13401_v31 = vsel %vm2869_vm8, %v12989_v63, %v2894_v17  ;;  %v3096_v63 = vld [vmem:[%s16311_s7 + $0x528] sm:$0xff]  ;;  %v10313_v4 = vpack.c.bf16 %v3721_v46, %v3718_v34  ;;  %v3717_v17 = vld [vmem:[%s16313_s8] sm:$0xff]  ;;  %vm4875_vm7 = vcmask 146432  }
 0x6ef   :  { %10184 = vmatpush1.bf16.msra.mxu1 %v10183_v15  ;;  %10296 = vmatpush3.bf16.msra.mxu0 %v10295_v12  ;;  %v3087_v15 = vld [vmem:[%s16311_s7 + $0x4e0] sm:$0xff]  ;;  %v3094_v12 = vld [vmem:[%s16311_s7 + $0x518] sm:$0xff]  ;;  %vm6809_vm8 = vcmask 1045504  }
 0x6f0   :  { %10186 = vmatprep.subr.bf16.mxu1 %v10185_v59  ;;  %10298 = vmatprep.subr.bf16.mxu0 %v10297_v42  ;;  %v2893_v59 = vmul.f32 0.01, %v12977_v10  ;;  %v3097_v42 = vld [vmem:[%s16311_s7 + $0x530] sm:$0xff]  ;;  %v10199_v36 = vpack.c.bf16 %v3090_v56, %v3087_v15  ;;  %v13482_v15 = vsel %vm2878_vm13, %v13162_v61, %v2903_v43  ;;  %v2885_v56 = vmul.f32 0.01, %v13152_v49  ;;  %v3112_v61 = vld [vmem:[%s16311_s7 + $0x5a8] sm:$0xff] }
 0x6f1   :  { %v10201_v1 = vpack.c.bf16 %v3097_v42, %v3094_v12  ;;  %v3724_v12 = vld [vmem:[%s16313_s8 + $0x38] sm:$0xff]  ;;  %v3115_v42 = vld [vmem:[%s16311_s7 + $0x5c0] sm:$0xff] }
 0x6f2   :  { %v13417_v2 = vsel %vm2868_vm9, %v12977_v10, %v2893_v59  ;;  %v13434_v10 = vsel %vm2874_vm10, %v12992_v55, %v2899_v54  ;;  %v3727_v59 = vld [vmem:[%s16313_s8 + $0x50] sm:$0xff]  ;;  %v3729_v46 = vld [vmem:[%s16313_s8 + $0x60] sm:$0xff]  ;;  %vm6827_vm9 = vcmask 785408   ;;  %vm6831_vm10 = vcmask 783360  }
 0x6f3   :  { %10188 = vmatpush1.bf16.msra.mxu1 %v10187_v18  ;;  %10300 = vmatpush3.bf16.msra.mxu0 %v10299_v41  ;;  %v10308_v18 = vpack.c.bf16 %v3140_v16, %v3137_v30  ;;  %v3093_v41 = vld [vmem:[%s16311_s7 + $0x510] sm:$0xff] }
 0x6f4   :  { %10190 = vmatprep.subr.bf16.mxu1 %v10189_v57  ;;  %10301 = vmatprep.subr.bf16.mxu0 %v16401_v7  ;;  %v3100_v57 = vld [vmem:[%s16311_s7 + $0x548] sm:$0xff]  ;;  %v3723_v54 = vld [vmem:[%s16313_s8 + $0x30] sm:$0xff] }
 0x6f5   :  { %v10205_v55 = vpack.c.bf16 %v3103_v22, %v3100_v57  ;;  %v10213_v57 = vpack.c.bf16 %v3115_v42, %v3112_v61  ;;  %v3730_v22 = vld [vmem:[%s16313_s8 + $0x68] sm:$0xff]  ;;  %v3745_v42 = vld [vmem:[%s16313_s8 + $0xe0] sm:$0xff] }
 0x6f6   :  { %3602 = vmatmul.mubr.f32.vlgmr.msra.gmra.mrb[50].mxu0 %v13356_v27  ;;  %v3742_v61 = vld [vmem:[%s16313_s8 + $0xc8] sm:$0xff] }
 0x6f7   :  { %10192 = vmatpush1.bf16.msra.mxu1 %v10191_v3  ;;  %3606 = vmatprep.mubr.f32.mxu0 %v13370_v53  ;;  %v10203_v3 = vpack.c.bf16 %v3096_v63, %v3093_v41  ;;  %v3114_v41 = vld [vmem:[%s16311_s7 + $0x5b8] sm:$0xff]  ;;  %v13514_v63 = vsel %vm2860_vm14, %v13152_v49, %v2885_v56 }
 0x6f8   :  { %10194 = vmatprep.subr.bf16.mxu1 %v10193_v21  ;;  %10303 = vmatpush3.bf16.msra.mxu0 %v10302_v47  ;;  %v10311_v21 = vpack.c.bf16 %v3146_v44, %v3143_v37  ;;  %v3099_v47 = vld [vmem:[%s16311_s7 + $0x540] sm:$0xff]  ;;  %v3118_v49 = vld [vmem:[%s16311_s7 + $0x5d8] sm:$0xff]  ;;  %v3121_v44 = vld [vmem:[%s16311_s7 + $0x5f0] sm:$0xff] }
 0x6f9   :  { %10304 = vmatprep.subr.bf16.mxu0 %v16401_v7  ;;  %v10207_v33 = vpack.c.bf16 %v3102_v52, %v3099_v47  ;;  %v3733_v37 = vld [vmem:[%s16313_s8 + $0x80] sm:$0xff]  ;;  %v3120_v47 = vld [vmem:[%s16311_s7 + $0x5e8] sm:$0xff]  ;;  %v13547_v52 = vsel %vm2865_vm15, %v13166_v51, %v2890_v48  ;;  %v10217_v43 = vpack.c.bf16 %v3121_v44, %v3118_v49  ;;  %v3130_v48 = vld [vmem:[%s16311_s7 + $0x638] sm:$0xff] }
 0x6fa   :  { %3607 = vmatmul.mubr.f32.gmra.mrb[52].mxu0 %v13386_v8  ;;  %v3124_v51 = vld [vmem:[%s16311_s7 + $0x608] sm:$0xff]  ;;  %v3129_v49 = vld [vmem:[%s16311_s7 + $0x630] sm:$0xff] }
 0x6fb   :  { %10196 = vmatpush1.bf16.msra.mxu1 %v10195_v58  ;;  %3611 = vmatprep.mubr.f32.mxu0 %v13401_v31  ;;  %v10209_v58 = vpack.c.bf16 %v3109_v35, %v3106_v19  ;;  %v3736_v19 = vld [vmem:[%s16313_s8 + $0x98] sm:$0xff]  ;;  %v3739_v35 = vld [vmem:[%s16313_s8 + $0xb0] sm:$0xff]  ;;  %v3132_v44 = vld [vmem:[%s16311_s7 + $0x648] sm:$0xff] }
 0x6fc   :  { %10198 = vmatprep.subr.bf16.mxu1 %v10197_v11  ;;  %10306 = vmatpush3.bf16.msra.mxu0 %v10305_v39  ;;  %v3720_v11 = vld [vmem:[%s16313_s8 + $0x18] sm:$0xff]  ;;  %v3108_v39 = vld [vmem:[%s16311_s7 + $0x588] sm:$0xff] }
 0x6fd   :  { %10307 = vmatprep.subr.bf16.mxu0 %v16401_v7  ;;  %v10315_v30 = vpack.c.bf16 %v3720_v11, %v3717_v17  ;;  %v10211_v16 = vpack.c.bf16 %v3108_v39, %v3105_v14  ;;  %v10325_v11 = vpack.c.bf16 %v3739_v35, %v3736_v19  ;;  %v3735_v14 = vld [vmem:[%s16313_s8 + $0x90] sm:$0xff]  ;;  %v3738_v39 = vld [vmem:[%s16313_s8 + $0xa8] sm:$0xff]  ;;  %v3757_v35 = vld [vmem:[%s16313_s8 + $0x140] sm:$0xff] }
 0x6fe   :  { %3612 = vmatmul.mubr.f32.gmra.mrb[54].mxu0 %v13417_v2  ;;  %v3754_v19 = vld [vmem:[%s16313_s8 + $0x128] sm:$0xff] }
 0x6ff   :  { %10200 = vmatpush1.bf16.msra.mxu1 %v10199_v36  ;;  %3616 = vmatprep.mubr.f32.mxu0 %v13434_v10  ;;  %v10317_v36 = vpack.c.bf16 %v3727_v59, %v3724_v12  ;;  %v2900_v12 = vmul.f32 0.01, %v13186_v25 }
 0x700   :  { %10202 = vmatprep.subr.bf16.mxu1 %v10201_v1  ;;  %10309 = vmatpush3.bf16.msra.mxu0 %v10308_v18  ;;  %v3726_v1 = vld [vmem:[%s16313_s8 + $0x48] sm:$0xff]  ;;  %v3111_v18 = vld [vmem:[%s16311_s7 + $0x5a0] sm:$0xff] }
 0x701   :  { %10310 = vmatprep.subr.bf16.mxu0 %v16401_v7  ;;  %v10319_v13 = vpack.c.bf16 %v3726_v1, %v3723_v54  ;;  %v10215_v34 = vpack.c.bf16 %v3114_v41, %v3111_v18  ;;  %v10329_v54 = vpack.c.bf16 %v3745_v42, %v3742_v61  ;;  %v3744_v1 = vld [vmem:[%s16313_s8 + $0xd8] sm:$0xff]  ;;  %v13601_v18 = vsel %vm2875_vm5, %v13186_v25, %v2900_v12  ;;  %v3751_v25 = vld [vmem:[%s16313_s8 + $0x110] sm:$0xff] }
 0x702   :  { %3617 = vmatmul.mubr.f32.gmra.mrb[56].mxu0 %v13453_v40  ;;  %v3756_v12 = vld [vmem:[%s16313_s8 + $0x138] sm:$0xff]  ;;  %v3763_v42 = vld [vmem:[%s16313_s8 + $0x170] sm:$0xff] }
 0x703   :  { %10204 = vmatpush1.bf16.msra.mxu1 %v10203_v3  ;;  %3621 = vmatprep.mubr.f32.mxu0 %v13465_v6  ;;  %v10321_v3 = vpack.c.bf16 %v3733_v37, %v3730_v22  ;;  %v3133_v22 = vld [vmem:[%s16311_s7 + $0x650] sm:$0xff]  ;;  %v3748_v37 = vld [vmem:[%s16313_s8 + $0xf8] sm:$0xff] }
 0x704   :  { %10206 = vmatprep.subr.bf16.mxu1 %v10205_v55  ;;  %10312 = vmatpush3.bf16.msra.mxu0 %v10311_v21  ;;  %v3732_v55 = vld [vmem:[%s16313_s8 + $0x78] sm:$0xff]  ;;  %v3117_v21 = vld [vmem:[%s16311_s7 + $0x5d0] sm:$0xff] }
 0x705   :  { %10314 = vmatprep.subr.bf16.mxu0 %v10313_v4  ;;  %v2895_v4 = vmul.f32 0.01, %v13182_v9  ;;  %v10323_v17 = vpack.c.bf16 %v3732_v55, %v3729_v46  ;;  %v3139_v46 = vld [vmem:[%s16311_s7 + $0x680] sm:$0xff]  ;;  %v3747_v55 = vld [vmem:[%s16313_s8 + $0xf0] sm:$0xff]  ;;  %v3760_v61 = vld [vmem:[%s16313_s8 + $0x158] sm:$0xff] }
 0x706   :  { %3622 = vmatmul.mubr.f32.gmra.mrb[58].mxu0 %v13482_v15 }
 0x707   :  { %10208 = vmatpush1.bf16.msra.mxu1 %v10207_v33  ;;  %9491 = vmatprep.mubr.msk.f32.mxu0 %vm11315_vm0, %v16394_v5  ;;  %v3127_v33 = vld [vmem:[%s16311_s7 + $0x620] sm:$0xff]  ;;  %v13574_v56 = vsel %vm2870_vm2, %v13182_v9, %v2895_v4  ;;  %v10227_v4 = vpack.c.bf16 %v3132_v44, %v3129_v49 }
 0x708   :  { %10210 = vmatprep.subr.bf16.mxu1 %v10209_v58  ;;  %v10219_v58 = vpack.c.bf16 %v3120_v47, %v3117_v21  ;;  %v10221_v59 = vpack.c.bf16 %v3127_v33, %v3124_v51  ;;  %v3123_v9 = vld [vmem:[%s16311_s7 + $0x600] sm:$0xff]  ;;  %v3750_v21 = vld [vmem:[%s16313_s8 + $0x108] sm:$0xff]  ;;  %v3138_v33 = vld [vmem:[%s16311_s7 + $0x678] sm:$0xff] }
 0x70a   :  { %9492 = vmatmul.mubr.msk.f32.vlgmr.msra.gmra.mrb[60].mxu0 %vm1541_vm4, %v13514_v63 }
 0x70b   :  { %10316 = vmatpush1.bf16.msra.mxu0 %v10315_v30  ;;  %10212 = vmatpush1.bf16.msra.mxu1 %v10211_v16  ;;  %v3126_v30 = vld [vmem:[%s16311_s7 + $0x618] sm:$0xff]  ;;  %v10327_v16 = vpack.c.bf16 %v3738_v39, %v3735_v14  ;;  %v10337_v14 = vpack.c.bf16 %v3757_v35, %v3754_v19  ;;  %v3753_v39 = vld [vmem:[%s16313_s8 + $0x120] sm:$0xff] }
 0x70c   :  { %9494 = vmatprep.mubr.msk.f32.mxu0 %vm11315_vm0, %v16394_v5  ;;  %10318 = vmatprep.subr.bf16.mxu0 %v10317_v36  ;;  %v3741_v36 = vld [vmem:[%s16313_s8 + $0xc0] sm:$0xff]  ;;  %v10223_v41 = vpack.c.bf16 %v3126_v30, %v3123_v9  ;;  %v3141_v30 = vld [vmem:[%s16311_s7 + $0x690] sm:$0xff]  ;;  %v3776_v19 = vld [vmem:[%s16313_s8 + $0x1d8] sm:$0xff] }
 0x70d   :  { %10214 = vmatprep.subr.bf16.mxu1 %v10213_v57  ;;  %v2905_v57 = vmul.f32 0.01, %v13232_v32 }
 0x70e   :  { %9495 = vmatmul.mubr.msk.f32.gmra.mrb[62].mxu0 %vm1541_vm4, %v13547_v52 }
 0x70f   :  { %10320 = vmatpush1.bf16.msra.mxu0 %v10319_v13  ;;  %10216 = vmatpush1.bf16.msra.mxu1 %v10215_v34  ;;  %v10331_v13 = vpack.c.bf16 %v3744_v1, %v3741_v36  ;;  %v3136_v34 = vld [vmem:[%s16311_s7 + $0x668] sm:$0xff]  ;;  %v13642_v47 = vsel %vm2880_vm6, %v13232_v32, %v2905_v57  ;;  %v3135_v32 = vld [vmem:[%s16311_s7 + $0x660] sm:$0xff]  ;;  %v3767_v36 = vld [vmem:[%s16313_s8 + $0x190] sm:$0xff]  ;;  %vm7959_vm6 = vcmask 179200  }
 0x710   :  { %9497 = vmatprep.mubr.msk.f32.mxu0 %vm11315_vm0, %v16394_v5  ;;  %10322 = vmatprep.subr.bf16.mxu0 %v10321_v3  ;;  %v10225_v3 = vpack.c.bf16 %v3133_v22, %v3130_v48  ;;  %v10229_v51 = vpack.c.bf16 %v3139_v46, %v3136_v34  ;;  %v3770_v1 = vld [vmem:[%s16313_s8 + $0x1a8] sm:$0xff]  ;;  %v3759_v57 = vld [vmem:[%s16313_s8 + $0x150] sm:$0xff]  ;;  %v3768_v46 = vld [vmem:[%s16313_s8 + $0x198] sm:$0xff] }
 0x711   :  { %10218 = vmatprep.subr.bf16.mxu1 %v10217_v43  ;;  %v10333_v43 = vpack.c.bf16 %v3751_v25, %v3748_v37  ;;  %v3762_v48 = vld [vmem:[%s16313_s8 + $0x168] sm:$0xff]  ;;  %v3769_v25 = vld [vmem:[%s16313_s8 + $0x1a0] sm:$0xff]  ;;  %v10457_v49 = vpack.c.bf16 %v3770_v1, %v3767_v36  ;;  %v3731_v36 = vld [vmem:[%s16313_s8 + $0x70] sm:$0xff] }
 0x712   :  { %9498 = vmatmul.mubr.msk.f32.gmra.mrb[64].mxu0 %vm1541_vm4, %v13574_v56  ;;  %v3766_v37 = vld [vmem:[%s16313_s8 + $0x188] sm:$0xff]  ;;  %v10343_v44 = vpack.c.bf16 %v3762_v48, %v3759_v57  ;;  %v3784_v57 = vld [vmem:[%s16313_s8 + $0x218] sm:$0xff]  ;;  %v3787_v48 = vld [vmem:[%s16313_s8 + $0x230] sm:$0xff] }
 0x713   :  { %10324 = vmatpush1.bf16.msra.mxu0 %v10323_v17  ;;  %10220 = vmatpush1.bf16.msra.mxu1 %v10219_v58  ;;  %v10335_v17 = vpack.c.bf16 %v3750_v21, %v3747_v55  ;;  %v3142_v58 = vld [vmem:[%s16311_s7 + $0x698] sm:$0xff]  ;;  %v10345_v34 = vpack.c.bf16 %v3769_v25, %v3766_v37  ;;  %v3722_v55 = vld [vmem:[%s16313_s8 + $0x28] sm:$0xff] }
 0x714   :  { %9500 = vmatprep.mubr.msk.f32.mxu0 %vm11315_vm0, %v16394_v5  ;;  %10326 = vmatprep.subr.bf16.mxu0 %v10325_v11  ;;  %v3145_v11 = vld [vmem:[%s16311_s7 + $0x6b0] sm:$0xff]  ;;  %v3772_v21 = vld [vmem:[%s16313_s8 + $0x1b8] sm:$0xff]  ;;  %v3734_v1 = vld [vmem:[%s16313_s8 + $0x88] sm:$0xff] }
 0x715   :  { %10222 = vmatprep.subr.bf16.mxu1 %v10221_v59  ;;  %v10231_v59 = vpack.c.bf16 %v3138_v33, %v3135_v32  ;;  %v10233_v9 = vpack.c.bf16 %v3145_v11, %v3142_v58  ;;  %v3771_v32 = vld [vmem:[%s16313_s8 + $0x1b0] sm:$0xff]  ;;  %v3725_v58 = vld [vmem:[%s16313_s8 + $0x40] sm:$0xff]  ;;  %v3728_v11 = vld [vmem:[%s16313_s8 + $0x58] sm:$0xff] }
 0x716   :  { %3322 = vmatmul.mubr.f32.vlgmr.msra.gmra.mrb[50].mxu1 %v13356_v27  ;;  %9501 = vmatmul.mubr.msk.f32.gmra.mrb[66].mxu0 %vm1541_vm4, %v13601_v18  ;;  %v3788_v37 = vld [vmem:[%s16313_s8 + $0x238] sm:$0xff] }
 0x717   :  { %10328 = vmatpush1.bf16.msra.mxu0 %v10327_v16  ;;  %3327 = vmatprep.mubr.f32.mxu1 %v13370_v53  ;;  %v3144_v16 = vld [vmem:[%s16311_s7 + $0x6a8] sm:$0xff] }
 0x718   :  { %9503 = vmatprep.mubr.msk.f32.mxu0 %vm11315_vm0, %v16394_v5  ;;  %10330 = vmatprep.subr.bf16.mxu0 %v10329_v54  ;;  %v10339_v54 = vpack.c.bf16 %v3756_v12, %v3753_v39  ;;  %v10235_v22 = vpack.c.bf16 %v3144_v16, %v3141_v30  ;;  %v3778_v39 = vld [vmem:[%s16313_s8 + $0x1e8] sm:$0xff]  ;;  %v3781_v12 = vld [vmem:[%s16313_s8 + $0x200] sm:$0xff] }
 0x719   :  { %10224 = vmatpush1.bf16.msra.mxu1 %v10223_v41  ;;  %v10341_v41 = vpack.c.bf16 %v3763_v42, %v3760_v61  ;;  %v3782_v61 = vld [vmem:[%s16313_s8 + $0x208] sm:$0xff]  ;;  %v3777_v30 = vld [vmem:[%s16313_s8 + $0x1e0] sm:$0xff]  ;;  %v10353_v16 = vpack.c.bf16 %v3781_v12, %v3778_v39  ;;  %v3796_v39 = vld [vmem:[%s16313_s8 + $0x278] sm:$0xff] }
 0x71a   :  { %3328 = vmatmul.mubr.f32.gmra.mrb[52].mxu1 %v13386_v8  ;;  %9504 = vmatmul.mubr.msk.f32.gmra.mrb[68].mxu0 %vm1541_vm4, %v13642_v47  ;;  %v3799_v12 = vld [vmem:[%s16313_s8 + $0x290] sm:$0xff] }
 0x71b   :  { %10332 = vmatpush1.bf16.msra.mxu0 %v10331_v13  ;;  %3333 = vmatprep.mubr.f32.mxu1 %v13401_v31  ;;  %v3765_v13 = vld [vmem:[%s16313_s8 + $0x180] sm:$0xff] }
 0x71c   :  { %3997 = vmatprep.mubr.f32.mxu0 %v13036_v62  ;;  %10226 = vmatprep.subr.bf16.mxu1 %v10225_v3  ;;  %v3719_v3 = vld [vmem:[%s16313_s8 + $0x10] sm:$0xff]  ;;  %v10347_v35 = vpack.c.bf16 %v3768_v46, %v3765_v13  ;;  %v10357_v13 = vpack.c.bf16 %v3787_v48, %v3784_v57  ;;  %v3737_v46 = vld [vmem:[%s16313_s8 + $0xa0] sm:$0xff] }
 0x71d   :  { %10334 = vmatprep.subr.bf16.mxu0 %v10333_v43  ;;  %10228 = vmatpush1.bf16.msra.mxu1 %v10227_v4  ;;  %v3775_v43 = vld [vmem:[%s16313_s8 + $0x1d0] sm:$0xff]  ;;  %v3773_v4 = vld [vmem:[%s16313_s8 + $0x1c0] sm:$0xff] }
 0x71e   :  { %3334 = vmatmul.mubr.f32.gmra.mrb[54].mxu1 %v13417_v2  ;;  %10230 = vmatprep.subr.bf16.mxu1 %v10229_v51  ;;  %v10459_v51 = vpack.c.bf16 %v3722_v55, %v3719_v3  ;;  %v10349_v33 = vpack.c.bf16 %v3775_v43, %v3772_v21  ;;  %v3740_v3 = vld [vmem:[%s16313_s8 + $0xb8] sm:$0xff]  ;;  %v3790_v21 = vld [vmem:[%s16313_s8 + $0x248] sm:$0xff]  ;;  %v3793_v43 = vld [vmem:[%s16313_s8 + $0x260] sm:$0xff] }
 0x71f   :  { %10336 = vmatpush1.bf16.msra.mxu0 %v10335_v17  ;;  %3339 = vmatprep.mubr.f32.mxu1 %v13434_v10  ;;  %v3774_v17 = vld [vmem:[%s16313_s8 + $0x1c8] sm:$0xff]  ;;  %v3805_v48 = vld [vmem:[%s16313_s8 + $0x2c0] sm:$0xff] }
 0x720   :  { %10338 = vmatprep.subr.bf16.mxu0 %v10337_v14  ;;  %v10461_v14 = vpack.c.bf16 %v3776_v19, %v3773_v4  ;;  %v10351_v42 = vpack.c.bf16 %v3774_v17, %v3771_v32  ;;  %v3791_v4 = vld [vmem:[%s16313_s8 + $0x250] sm:$0xff]  ;;  %v3794_v19 = vld [vmem:[%s16313_s8 + $0x268] sm:$0xff]  ;;  %v3789_v32 = vld [vmem:[%s16313_s8 + $0x240] sm:$0xff] }
 0x721   :  { %10232 = vmatpush1.bf16.msra.mxu1 %v10231_v59  ;;  %v3779_v59 = vld [vmem:[%s16313_s8 + $0x1f0] sm:$0xff]  ;;  %v3792_v17 = vld [vmem:[%s16313_s8 + $0x258] sm:$0xff] }
 0x722   :  { %3340 = vmatmul.mubr.f32.gmra.mrb[56].mxu1 %v13453_v40  ;;  %10234 = vmatprep.subr.bf16.mxu1 %v10233_v9  ;;  %v10463_v9 = vpack.c.bf16 %v3728_v11, %v3725_v58  ;;  %v3743_v58 = vld [vmem:[%s16313_s8 + $0xd0] sm:$0xff]  ;;  %v3746_v11 = vld [vmem:[%s16313_s8 + $0xe8] sm:$0xff] }
 0x723   :  { %10340 = vmatpush1.bf16.msra.mxu0 %v10339_v54  ;;  %3345 = vmatprep.mubr.f32.mxu1 %v13465_v6  ;;  %v3780_v54 = vld [vmem:[%s16313_s8 + $0x1f8] sm:$0xff] }
 0x724   :  { %10342 = vmatprep.subr.bf16.mxu0 %v10341_v41  ;;  %v10465_v41 = vpack.c.bf16 %v3782_v61, %v3779_v59  ;;  %v10355_v25 = vpack.c.bf16 %v3780_v54, %v3777_v30  ;;  %v3797_v59 = vld [vmem:[%s16313_s8 + $0x280] sm:$0xff]  ;;  %v3800_v61 = vld [vmem:[%s16313_s8 + $0x298] sm:$0xff]  ;;  %v3795_v30 = vld [vmem:[%s16313_s8 + $0x270] sm:$0xff]  ;;  %v10365_v54 = vpack.c.bf16 %v3799_v12, %v3796_v39 }
 0x725   :  { %10236 = vmatpush1.bf16.msra.mxu1 %v10235_v22  ;;  %v3785_v22 = vld [vmem:[%s16313_s8 + $0x220] sm:$0xff]  ;;  %v10477_v57 = vpack.c.bf16 %v3800_v61, %v3797_v59  ;;  %v3863_v12 = vld [vmem:[%s16313_s8 + $0x490] sm:$0xff]  ;;  %v3866_v59 = vld [vmem:[%s16313_s8 + $0x4a8] sm:$0xff] }
 0x726   :  { %3346 = vmatmul.mubr.f32.gmra.mrb[58].mxu1 %v13482_v15  ;;  %10458 = vmatprep.subr.bf16.mxu1 %v10457_v49  ;;  %v10467_v49 = vpack.c.bf16 %v3734_v1, %v3731_v36  ;;  %v10469_v55 = vpack.c.bf16 %v3788_v37, %v3785_v22  ;;  %v3749_v36 = vld [vmem:[%s16313_s8 + $0x100] sm:$0xff]  ;;  %v3752_v1 = vld [vmem:[%s16313_s8 + $0x118] sm:$0xff]  ;;  %v3803_v22 = vld [vmem:[%s16313_s8 + $0x2b0] sm:$0xff] }
 0x727   :  { %10344 = vmatpush1.bf16.msra.mxu0 %v10343_v44  ;;  %3416 = vmatprep.mubr.f32.mxu1 %v16394_v5  ;;  %v3783_v44 = vld [vmem:[%s16313_s8 + $0x210] sm:$0xff]  ;;  %v3806_v37 = vld [vmem:[%s16313_s8 + $0x2c8] sm:$0xff]  ;;  %v3817_v39 = vld [vmem:[%s16313_s8 + $0x320] sm:$0xff] }
 0x728   :  { %10346 = vmatprep.subr.bf16.mxu0 %v10345_v34  ;;  %v3786_v34 = vld [vmem:[%s16313_s8 + $0x228] sm:$0xff] }
 0x72a   :  { %8198 = vmatmul.mubr.msk.f32.vlgmr.msra.gmra.mrb[50].mxu1 %vm1541_vm4, %v13514_v63 }
 0x72b   :  { %10348 = vmatpush1.bf16.msra.mxu0 %v10347_v35  ;;  %10460 = vmatpush3.bf16.msra.mxu1 %v10459_v51  ;;  %v10359_v35 = vpack.c.bf16 %v3786_v34, %v3783_v44  ;;  %v10471_v51 = vpack.c.bf16 %v3740_v3, %v3737_v46  ;;  %v3801_v44 = vld [vmem:[%s16313_s8 + $0x2a0] sm:$0xff]  ;;  %v10481_v46 = vpack.c.bf16 %v3806_v37, %v3803_v22  ;;  %v3755_v3 = vld [vmem:[%s16313_s8 + $0x130] sm:$0xff]  ;;  %v3872_v22 = vld [vmem:[%s16313_s8 + $0x4d8] sm:$0xff] }
 0x72c   :  { %3422 = vmatprep.mubr.f32.mxu1 %v16394_v5  ;;  %10350 = vmatprep.subr.bf16.mxu0 %v10349_v33  ;;  %v10361_v33 = vpack.c.bf16 %v3793_v43, %v3790_v21  ;;  %v3808_v21 = vld [vmem:[%s16313_s8 + $0x2d8] sm:$0xff]  ;;  %v3809_v43 = vld [vmem:[%s16313_s8 + $0x2e0] sm:$0xff] }
 0x72d   :  { %10462 = vmatprep.subr.bf16.mxu1 %v10461_v14  ;;  %v10473_v14 = vpack.c.bf16 %v3794_v19, %v3791_v4  ;;  %v3812_v4 = vld [vmem:[%s16313_s8 + $0x2f8] sm:$0xff] }
 0x72e   :  { %8199 = vmatmul.mubr.msk.f32.gmra.mrb[52].mxu1 %vm1541_vm4, %v13547_v52 }
 0x72f   :  { %10352 = vmatpush1.bf16.msra.mxu0 %v10351_v42  ;;  %10464 = vmatpush3.bf16.msra.mxu1 %v10463_v9  ;;  %v10363_v42 = vpack.c.bf16 %v3792_v17, %v3789_v32  ;;  %v10475_v9 = vpack.c.bf16 %v3746_v11, %v3743_v58  ;;  %v3810_v32 = vld [vmem:[%s16313_s8 + $0x2e8] sm:$0xff]  ;;  %v10485_v17 = vpack.c.bf16 %v3812_v4, %v3809_v43  ;;  %v3761_v58 = vld [vmem:[%s16313_s8 + $0x160] sm:$0xff]  ;;  %v3764_v11 = vld [vmem:[%s16313_s8 + $0x178] sm:$0xff] }
 0x730   :  { %3428 = vmatprep.mubr.f32.mxu1 %v16394_v5  ;;  %10354 = vmatprep.subr.bf16.mxu0 %v10353_v16  ;;  %v3798_v16 = vld [vmem:[%s16313_s8 + $0x288] sm:$0xff] }
 0x731   :  { %10466 = vmatprep.subr.bf16.mxu1 %v10465_v41  ;;  %v3802_v41 = vld [vmem:[%s16313_s8 + $0x2a8] sm:$0xff] }
 0x732   :  { %8200 = vmatmul.mubr.msk.f32.gmra.mrb[54].mxu1 %vm1541_vm4, %v13574_v56  ;;  %v10369_v34 = vpack.c.bf16 %v3805_v48, %v3802_v41  ;;  %v3820_v41 = vld [vmem:[%s16313_s8 + $0x338] sm:$0xff]  ;;  %v3869_v48 = vld [vmem:[%s16313_s8 + $0x4c0] sm:$0xff]  ;;  %v3878_v43 = vld [vmem:[%s16313_s8 + $0x508] sm:$0xff] }
 0x733   :  { %10356 = vmatpush1.bf16.msra.mxu0 %v10355_v25  ;;  %10468 = vmatpush3.bf16.msra.mxu1 %v10467_v49  ;;  %v10367_v25 = vpack.c.bf16 %v3798_v16, %v3795_v30  ;;  %v10479_v49 = vpack.c.bf16 %v3752_v1, %v3749_v36  ;;  %v10489_v30 = vpack.c.bf16 %v3866_v59, %v3863_v12  ;;  %v3813_v16 = vld [vmem:[%s16313_s8 + $0x300] sm:$0xff]  ;;  %v3815_v36 = vld [vmem:[%s16313_s8 + $0x310] sm:$0xff]  ;;  %v3818_v1 = vld [vmem:[%s16313_s8 + $0x328] sm:$0xff] }
 0x734   :  { %3434 = vmatprep.mubr.f32.mxu1 %v16394_v5  ;;  %10358 = vmatprep.subr.bf16.mxu0 %v10357_v13  ;;  %v3804_v13 = vld [vmem:[%s16313_s8 + $0x2b8] sm:$0xff]  ;;  %v3831_v12 = vld [vmem:[%s16313_s8 + $0x390] sm:$0xff]  ;;  %v3834_v59 = vld [vmem:[%s16313_s8 + $0x3a8] sm:$0xff] }
 0x735   :  { %10470 = vmatprep.subr.bf16.mxu1 %v10469_v55  ;;  %v3758_v55 = vld [vmem:[%s16313_s8 + $0x148] sm:$0xff]  ;;  %v10371_v19 = vpack.c.bf16 %v3804_v13, %v3801_v44 }
 0x736   :  { %8201 = vmatmul.mubr.msk.f32.gmra.mrb[56].mxu1 %vm1541_vm4, %v13601_v18  ;;  %v3822_v44 = vld [vmem:[%s16313_s8 + $0x348] sm:$0xff] }
 0x737   :  { %10360 = vmatpush1.bf16.msra.mxu0 %v10359_v35  ;;  %10472 = vmatpush3.bf16.msra.mxu1 %v10471_v51  ;;  %v10483_v35 = vpack.c.bf16 %v3758_v55, %v3755_v3  ;;  %v3807_v51 = vld [vmem:[%s16313_s8 + $0x2d0] sm:$0xff]  ;;  %v3824_v3 = vld [vmem:[%s16313_s8 + $0x358] sm:$0xff]  ;;  %v3826_v55 = vld [vmem:[%s16313_s8 + $0x368] sm:$0xff] }
 0x738   :  { %3440 = vmatprep.mubr.f32.mxu1 %v16394_v5  ;;  %10362 = vmatprep.subr.bf16.mxu0 %v10361_v33  ;;  %v10375_v61 = vpack.c.bf16 %v3810_v32, %v3807_v51 }
 0x739   :  { %10474 = vmatprep.subr.bf16.mxu1 %v10473_v14  ;;  %v3814_v14 = vld [vmem:[%s16313_s8 + $0x308] sm:$0xff] }
 0x73a   :  { %8202 = vmatmul.mubr.msk.f32.gmra.mrb[58].mxu1 %vm1541_vm4, %v13642_v47 }
 0x73b   :  { %10364 = vmatpush1.bf16.msra.mxu0 %v10363_v42  ;;  %10476 = vmatpush3.bf16.msra.mxu1 %v10475_v9  ;;  %v10487_v42 = vpack.c.bf16 %v3764_v11, %v3761_v58  ;;  %v10377_v9 = vpack.c.bf16 %v3817_v39, %v3814_v14  ;;  %v3835_v58 = vld [vmem:[%s16313_s8 + $0x3b0] sm:$0xff]  ;;  %v3881_v11 = vld [vmem:[%s16313_s8 + $0x520] sm:$0xff]  ;;  %v3884_v14 = vld [vmem:[%s16313_s8 + $0x538] sm:$0xff] }
 0x73c   :  { %4282 = vmatprep.mubr.f32.mxu1 %v13036_v62  ;;  %10366 = vmatprep.subr.bf16.mxu0 %v10365_v54  ;;  %v3811_v62 = vld [vmem:[%s16313_s8 + $0x2f0] sm:$0xff]  ;;  %v3816_v54 = vld [vmem:[%s16313_s8 + $0x318] sm:$0xff] }
 0x73d   :  { %10478 = vmatprep.subr.bf16.mxu1 %v10477_v57  ;;  %v10373_v33 = vpack.c.bf16 %v3811_v62, %v3808_v21  ;;  %v3823_v57 = vld [vmem:[%s16313_s8 + $0x350] sm:$0xff]  ;;  %v10379_v37 = vpack.c.bf16 %v3816_v54, %v3813_v16  ;;  %v3829_v21 = vld [vmem:[%s16313_s8 + $0x380] sm:$0xff] }
 0x73e   :  { %v10381_v13 = vpack.c.bf16 %v3823_v57, %v3820_v41  ;;  %v3875_v62 = vld [vmem:[%s16313_s8 + $0x4f0] sm:$0xff]  ;;  %v10385_v51 = vpack.c.bf16 %v3829_v21, %v3826_v55  ;;  %v3841_v16 = vld [vmem:[%s16313_s8 + $0x3e0] sm:$0xff]  ;;  %v3840_v57 = vld [vmem:[%s16313_s8 + $0x3d8] sm:$0xff] }
 0x73f   :  { %10368 = vmatpush1.bf16.msra.mxu0 %v10367_v25  ;;  %10480 = vmatpush3.bf16.msra.mxu1 %v10479_v49  ;;  %v10491_v25 = vpack.c.bf16 %v3818_v1, %v3815_v36  ;;  %v3819_v49 = vld [vmem:[%s16313_s8 + $0x330] sm:$0xff]  ;;  %v10497_v32 = vpack.c.bf16 %v3878_v43, %v3875_v62  ;;  %v3890_v36 = vld [vmem:[%s16313_s8 + $0x568] sm:$0xff]  ;;  %v10391_v1 = vpack.c.bf16 %v3834_v59, %v3831_v12  ;;  %v3837_v41 = vld [vmem:[%s16313_s8 + $0x3c0] sm:$0xff] }
 0x740   :  { %10370 = vmatprep.subr.bf16.mxu0 %v10369_v34  ;;  %10482 = vmatprep.subr.bf16.mxu1 %v10481_v46  ;;  %v10493_v34 = vpack.c.bf16 %v3872_v22, %v3869_v48  ;;  %v3821_v46 = vld [vmem:[%s16313_s8 + $0x340] sm:$0xff]  ;;  %v10383_v4 = vpack.c.bf16 %v3822_v44, %v3819_v49  ;;  %v3887_v54 = vld [vmem:[%s16313_s8 + $0x550] sm:$0xff]  ;;  %v3850_v43 = vld [vmem:[%s16313_s8 + $0x428] sm:$0xff] }
 0x741   :  { %v10505_v22 = vpack.c.bf16 %v3890_v36, %v3887_v54  ;;  %v3847_v49 = vld [vmem:[%s16313_s8 + $0x410] sm:$0xff]  ;;  %v3893_v44 = vld [vmem:[%s16313_s8 + $0x580] sm:$0xff] }
 0x742   :  { %v3845_v55 = vld [vmem:[%s16313_s8 + $0x400] sm:$0xff] }
 0x743   :  { %10372 = vmatpush1.bf16.msra.mxu0 %v10371_v19  ;;  %10484 = vmatpush3.bf16.msra.mxu1 %v10483_v35  ;;  %v3825_v19 = vld [vmem:[%s16313_s8 + $0x360] sm:$0xff]  ;;  %v3828_v35 = vld [vmem:[%s16313_s8 + $0x378] sm:$0xff] }
 0x744   :  { %10374 = vmatprep.subr.bf16.mxu0 %v10373_v33  ;;  %10486 = vmatprep.subr.bf16.mxu1 %v10485_v17  ;;  %v3827_v33 = vld [vmem:[%s16313_s8 + $0x370] sm:$0xff]  ;;  %v3832_v17 = vld [vmem:[%s16313_s8 + $0x398] sm:$0xff]  ;;  %v10387_v39 = vpack.c.bf16 %v3828_v35, %v3825_v19  ;;  %v3902_v19 = vld [vmem:[%s16313_s8 + $0x5c8] sm:$0xff] }
 0x745   :  { %v3865_v54 = vld [vmem:[%s16313_s8 + $0x4a0] sm:$0xff] }
 0x747   :  { %10376 = vmatpush1.bf16.msra.mxu0 %v10375_v61  ;;  %10488 = vmatpush3.bf16.msra.mxu1 %v10487_v42  ;;  %v10389_v61 = vpack.c.bf16 %v3835_v58, %v3832_v17  ;;  %v10501_v42 = vpack.c.bf16 %v3884_v14, %v3881_v11  ;;  %v3856_v58 = vld [vmem:[%s16313_s8 + $0x458] sm:$0xff]  ;;  %v3859_v11 = vld [vmem:[%s16313_s8 + $0x470] sm:$0xff]  ;;  %v3905_v14 = vld [vmem:[%s16313_s8 + $0x5e0] sm:$0xff] }
 0x748   :  { %10378 = vmatprep.subr.bf16.mxu0 %v10377_v9  ;;  %10490 = vmatprep.subr.bf16.mxu1 %v10489_v30  ;;  %v3833_v9 = vld [vmem:[%s16313_s8 + $0x3a0] sm:$0xff]  ;;  %v3838_v30 = vld [vmem:[%s16313_s8 + $0x3c8] sm:$0xff]  ;;  %v10405_v59 = vpack.c.bf16 %v3859_v11, %v3856_v58 }
 0x749   :  { %v10393_v48 = vpack.c.bf16 %v3841_v16, %v3838_v30  ;;  %v3860_v30 = vld [vmem:[%s16313_s8 + $0x478] sm:$0xff]  ;;  %v3862_v16 = vld [vmem:[%s16313_s8 + $0x488] sm:$0xff]  ;;  %v3889_v58 = vld [vmem:[%s16313_s8 + $0x560] sm:$0xff] }
 0x74a   :  { %3998 = vmatmul.mubr.f32.vlgmr.msra.gmra.mrb[70].mxu0 %v13050_v50  ;;  %4283 = vmatmul.mubr.f32.vlgmr.msra.gmra.mrb[60].mxu1 %v13050_v50  ;;  %v10495_v50 = vpack.c.bf16 %v3824_v3, %v3821_v46  ;;  %v3843_v46 = vld [vmem:[%s16313_s8 + $0x3f0] sm:$0xff]  ;;  %v3846_v3 = vld [vmem:[%s16313_s8 + $0x408] sm:$0xff]  ;;  %v3929_v11 = vld [vmem:[%s16313_s8 + $0x6a0] sm:$0xff] }
 0x74b   :  { %4003 = vmatprep.mubr.f32.mxu0 %v13078_v24  ;;  %10380 = vmatpush1.bf16.msra.mxu0 %v10379_v37  ;;  %v3839_v37 = vld [vmem:[%s16313_s8 + $0x3d0] sm:$0xff]  ;;  %v10399_v35 = vpack.c.bf16 %v3846_v3, %v3843_v46  ;;  %v3877_v46 = vld [vmem:[%s16313_s8 + $0x500] sm:$0xff] }
 0x74c   :  { %4287 = vmatprep.mubr.f32.mxu1 %v13078_v24  ;;  %10492 = vmatpush3.bf16.msra.mxu1 %v10491_v25  ;;  %v3830_v24 = vld [vmem:[%s16313_s8 + $0x388] sm:$0xff]  ;;  %v3844_v25 = vld [vmem:[%s16313_s8 + $0x3f8] sm:$0xff]  ;;  %v3917_v3 = vld [vmem:[%s16313_s8 + $0x640] sm:$0xff] }
 0x74d   :  { %10382 = vmatprep.subr.bf16.mxu0 %v10381_v13  ;;  %10494 = vmatprep.subr.bf16.mxu1 %v10493_v34  ;;  %v3896_v13 = vld [vmem:[%s16313_s8 + $0x598] sm:$0xff]  ;;  %v10395_v34 = vpack.c.bf16 %v3840_v57, %v3837_v41  ;;  %v10397_v21 = vpack.c.bf16 %v3847_v49, %v3844_v25  ;;  %v3861_v41 = vld [vmem:[%s16313_s8 + $0x480] sm:$0xff] }
 0x74e   :  { %4004 = vmatmul.mubr.f32.gmra.mrb[72].mxu0 %v13107_v0  ;;  %4288 = vmatmul.mubr.f32.gmra.mrb[62].mxu1 %v13107_v0  ;;  %v10499_v0 = vpack.c.bf16 %v3830_v24, %v3827_v33  ;;  %v10509_v62 = vpack.c.bf16 %v3896_v13, %v3893_v44  ;;  %v3852_v33 = vld [vmem:[%s16313_s8 + $0x438] sm:$0xff]  ;;  %v3851_v24 = vld [vmem:[%s16313_s8 + $0x430] sm:$0xff]  ;;  %v3870_v13 = vld [vmem:[%s16313_s8 + $0x4c8] sm:$0xff] }
 0x74f   :  { %4009 = vmatprep.mubr.f32.mxu0 %v13123_v26  ;;  %10384 = vmatpush1.bf16.msra.mxu0 %v10383_v4  ;;  %v3853_v4 = vld [vmem:[%s16313_s8 + $0x440] sm:$0xff]  ;;  %v3864_v57 = vld [vmem:[%s16313_s8 + $0x498] sm:$0xff]  ;;  %v3867_v44 = vld [vmem:[%s16313_s8 + $0x4b0] sm:$0xff] }
 0x750   :  { %4292 = vmatprep.mubr.f32.mxu1 %v13123_v26  ;;  %10496 = vmatpush3.bf16.msra.mxu1 %v10495_v50  ;;  %v3836_v26 = vld [vmem:[%s16313_s8 + $0x3b8] sm:$0xff]  ;;  %v3899_v50 = vld [vmem:[%s16313_s8 + $0x5b0] sm:$0xff]  ;;  %v10411_v25 = vpack.c.bf16 %v3864_v57, %v3861_v41  ;;  %v3897_v57 = vld [vmem:[%s16313_s8 + $0x5a0] sm:$0xff] }
 0x751   :  { %10386 = vmatprep.subr.bf16.mxu0 %v10385_v51  ;;  %10498 = vmatprep.subr.bf16.mxu1 %v10497_v32  ;;  %v10401_v32 = vpack.c.bf16 %v3853_v4, %v3850_v43  ;;  %v10513_v17 = vpack.c.bf16 %v3902_v19, %v3899_v50  ;;  %v3876_v43 = vld [vmem:[%s16313_s8 + $0x4f8] sm:$0xff]  ;;  %v3883_v19 = vld [vmem:[%s16313_s8 + $0x530] sm:$0xff] }
 0x752   :  { %4010 = vmatmul.mubr.f32.gmra.mrb[74].mxu0 %v13138_v38  ;;  %4293 = vmatmul.mubr.f32.gmra.mrb[64].mxu1 %v13138_v38  ;;  %v10503_v38 = vpack.c.bf16 %v3836_v26, %v3833_v9  ;;  %v3857_v9 = vld [vmem:[%s16313_s8 + $0x460] sm:$0xff]  ;;  %v3880_v50 = vld [vmem:[%s16313_s8 + $0x518] sm:$0xff] }
 0x753   :  { %4015 = vmatprep.mubr.f32.mxu0 %v13191_v23  ;;  %10388 = vmatpush1.bf16.msra.mxu0 %v10387_v39  ;;  %v3908_v39 = vld [vmem:[%s16313_s8 + $0x5f8] sm:$0xff] }
 0x754   :  { %4297 = vmatprep.mubr.f32.mxu1 %v13191_v23  ;;  %10500 = vmatpush3.bf16.msra.mxu1 %v10499_v0  ;;  %v3842_v23 = vld [vmem:[%s16313_s8 + $0x3e8] sm:$0xff]  ;;  %v10517_v26 = vpack.c.bf16 %v3908_v39, %v3905_v14  ;;  %v3932_v14 = vld [vmem:[%s16313_s8 + $0x6b8] sm:$0xff] }
 0x755   :  { %10390 = vmatprep.subr.bf16.mxu0 %v10389_v61  ;;  %10502 = vmatprep.subr.bf16.mxu1 %v10501_v42  ;;  %v3855_v61 = vld [vmem:[%s16313_s8 + $0x450] sm:$0xff]  ;;  %v3858_v42 = vld [vmem:[%s16313_s8 + $0x468] sm:$0xff] }
 0x756   :  { %4016 = vmatmul.mubr.f32.gmra.mrb[76].mxu0 %v13212_v60  ;;  %4298 = vmatmul.mubr.f32.gmra.mrb[66].mxu1 %v13212_v60  ;;  %v10507_v60 = vpack.c.bf16 %v3842_v23, %v3839_v37  ;;  %v10407_v36 = vpack.c.bf16 %v3858_v42, %v3855_v61  ;;  %v3911_v37 = vld [vmem:[%s16313_s8 + $0x610] sm:$0xff]  ;;  %v3914_v23 = vld [vmem:[%s16313_s8 + $0x628] sm:$0xff]  ;;  %v10531_v61 = vpack.c.bf16 %v3932_v14, %v3929_v11  ;;  %v3892_v42 = vld [vmem:[%s16313_s8 + $0x578] sm:$0xff] }
 0x757   :  { %4021 = vmatprep.mubr.f32.mxu0 %v13237_v45  ;;  %10392 = vmatpush1.bf16.msra.mxu0 %v10391_v1  ;;  %v10519_v1 = vpack.c.bf16 %v3860_v30, %v3857_v9  ;;  %v3895_v9 = vld [vmem:[%s16313_s8 + $0x590] sm:$0xff] }
 0x758   :  { %4302 = vmatprep.mubr.f32.mxu1 %v13237_v45  ;;  %10504 = vmatpush3.bf16.msra.mxu1 %v10503_v38  ;;  %v3848_v45 = vld [vmem:[%s16313_s8 + $0x418] sm:$0xff]  ;;  %v10409_v38 = vpack.c.bf16 %v3865_v54, %v3862_v16  ;;  %v10429_v30 = vpack.c.bf16 %v3895_v9, %v3892_v42  ;;  %v3891_v16 = vld [vmem:[%s16313_s8 + $0x570] sm:$0xff]  ;;  %v3894_v54 = vld [vmem:[%s16313_s8 + $0x588] sm:$0xff] }
 0x759   :  { %10394 = vmatprep.subr.bf16.mxu0 %v10393_v48  ;;  %10506 = vmatprep.subr.bf16.mxu1 %v10505_v22  ;;  %v10511_v51 = vpack.c.bf16 %v3848_v45, %v3845_v55  ;;  %v3868_v48 = vld [vmem:[%s16313_s8 + $0x4b8] sm:$0xff]  ;;  %v3871_v22 = vld [vmem:[%s16313_s8 + $0x4d0] sm:$0xff]  ;;  %v3873_v45 = vld [vmem:[%s16313_s8 + $0x4e0] sm:$0xff] }
 0x75a   :  { %4022 = vmatmul.mubr.f32.gmra.mrb[78].mxu0 %v13261_v28  ;;  %4303 = vmatmul.mubr.f32.gmra.mrb[68].mxu1 %v13261_v28  ;;  %v3849_v28 = vld [vmem:[%s16313_s8 + $0x420] sm:$0xff]  ;;  %v10413_v49 = vpack.c.bf16 %v3871_v22, %v3868_v48  ;;  %v3920_v55 = vld [vmem:[%s16313_s8 + $0x658] sm:$0xff] }
 0x75b   :  { %10396 = vmatpush1.bf16.msra.mxu0 %v10395_v34  ;;  %4092 = vmatprep.mubr.f32.mxu0 %v13277_v29  ;;  %v10403_v0 = vpack.c.bf16 %v3852_v33, %v3849_v28  ;;  %v10522_v34 = vpack.c.bf16 %v3914_v23, %v3911_v37  ;;  %v10525_v4 = vpack.c.bf16 %v3920_v55, %v3917_v3  ;;  %v3879_v33 = vld [vmem:[%s16313_s8 + $0x510] sm:$0xff]  ;;  %v3900_v48 = vld [vmem:[%s16313_s8 + $0x5b8] sm:$0xff]  ;;  %v3909_v3 = vld [vmem:[%s16313_s8 + $0x600] sm:$0xff] }
 0x75c   :  { %10508 = vmatpush3.bf16.msra.mxu1 %v10507_v60  ;;  %4372 = vmatprep.mubr.f32.mxu1 %v13277_v29  ;;  %v3854_v29 = vld [vmem:[%s16313_s8 + $0x448] sm:$0xff]  ;;  %v10421_v28 = vpack.c.bf16 %v3883_v19, %v3880_v50  ;;  %v3904_v22 = vld [vmem:[%s16313_s8 + $0x5d8] sm:$0xff]  ;;  %v3907_v37 = vld [vmem:[%s16313_s8 + $0x5f0] sm:$0xff]  ;;  %v10435_v23 = vpack.c.bf16 %v3900_v48, %v3897_v57 }
 0x75d   :  { %10398 = vmatprep.subr.bf16.mxu0 %v10397_v21  ;;  %10510 = vmatprep.subr.bf16.mxu1 %v10509_v62  ;;  %v10515_v12 = vpack.c.bf16 %v3854_v29, %v3851_v24  ;;  %v3874_v60 = vld [vmem:[%s16313_s8 + $0x4e8] sm:$0xff]  ;;  %v10415_v21 = vpack.c.bf16 %v3870_v13, %v3867_v44  ;;  %v3912_v55 = vld [vmem:[%s16313_s8 + $0x618] sm:$0xff] }
 0x75e   :  { %v10417_v62 = vpack.c.bf16 %v3877_v46, %v3874_v60  ;;  %v3882_v24 = vld [vmem:[%s16313_s8 + $0x528] sm:$0xff] }
 0x75f   :  { %10400 = vmatpush1.bf16.msra.mxu0 %v10399_v35  ;;  %v3923_v35 = vld [vmem:[%s16313_s8 + $0x670] sm:$0xff]  ;;  %v3886_v29 = vld [vmem:[%s16313_s8 + $0x548] sm:$0xff]  ;;  %v10423_v39 = vpack.c.bf16 %v3882_v24, %v3879_v33 }
 0x760   :  { %10512 = vmatpush3.bf16.msra.mxu1 %v10511_v51  ;;  %10402 = vmatprep.subr.bf16.mxu0 %v10401_v32  ;;  %v3926_v51 = vld [vmem:[%s16313_s8 + $0x688] sm:$0xff]  ;;  %v10419_v32 = vpack.c.bf16 %v3876_v43, %v3873_v45  ;;  %v10443_v45 = vpack.c.bf16 %v3912_v55, %v3909_v3  ;;  %v3931_v33 = vld [vmem:[%s16313_s8 + $0x6b0] sm:$0xff] }
 0x761   :  { %10514 = vmatprep.subr.bf16.mxu1 %v10513_v17  ;;  %v10528_v17 = vpack.c.bf16 %v3926_v51, %v3923_v35  ;;  %v3906_v44 = vld [vmem:[%s16313_s8 + $0x5e8] sm:$0xff]  ;;  %v3925_v35 = vld [vmem:[%s16313_s8 + $0x680] sm:$0xff] }
 0x762   :  { %v3910_v13 = vld [vmem:[%s16313_s8 + $0x608] sm:$0xff] }
 0x763   :  { %10404 = vmatpush1.bf16.msra.mxu0 %v10403_v0  ;;  %v10425_v0 = vpack.c.bf16 %v3889_v58, %v3886_v29  ;;  %v3918_v50 = vld [vmem:[%s16313_s8 + $0x648] sm:$0xff] }
 0x764   :  { %10516 = vmatpush3.bf16.msra.mxu1 %v10515_v12  ;;  %10406 = vmatprep.subr.bf16.mxu0 %v10405_v59  ;;  %v3885_v12 = vld [vmem:[%s16313_s8 + $0x540] sm:$0xff]  ;;  %v3888_v59 = vld [vmem:[%s16313_s8 + $0x558] sm:$0xff]  ;;  %v3922_v19 = vld [vmem:[%s16313_s8 + $0x668] sm:$0xff] }
 0x765   :  { %10518 = vmatprep.subr.bf16.mxu1 %v10517_v26  ;;  %v10427_v26 = vpack.c.bf16 %v3888_v59, %v3885_v12  ;;  %v3930_v29 = vld [vmem:[%s16313_s8 + $0x6a8] sm:$0xff] }
 0x767   :  { %10408 = vmatpush1.bf16.msra.mxu0 %v10407_v36  ;;  %v3898_v36 = vld [vmem:[%s16313_s8 + $0x5a8] sm:$0xff] }
 0x768   :  { %10520 = vmatpush3.bf16.msra.mxu1 %v10519_v1  ;;  %10410 = vmatprep.subr.bf16.mxu0 %v10409_v38  ;;  %v3901_v1 = vld [vmem:[%s16313_s8 + $0x5c0] sm:$0xff]  ;;  %v10431_v38 = vpack.c.bf16 %v3894_v54, %v3891_v16 }
 0x769   :  { %10521 = vmatprep.subr.bf16.mxu1 %v16401_v7  ;;  %v10433_v41 = vpack.c.bf16 %v3901_v1, %v3898_v36 }
 0x76b   :  { %4373 = vmatmul.mubr.f32.vlgmr.msra.gmra.mrb[70].mxu1 %v13356_v27  ;;  %10412 = vmatpush1.bf16.msra.mxu0 %v10411_v25  ;;  %v10437_v25 = vpack.c.bf16 %v3907_v37, %v3904_v22 }
 0x76c   :  { %4377 = vmatprep.mubr.f32.mxu1 %v13370_v53  ;;  %10414 = vmatprep.subr.bf16.mxu0 %v10413_v49  ;;  %v3903_v49 = vld [vmem:[%s16313_s8 + $0x5d0] sm:$0xff] }
 0x76d   :  { %10523 = vmatpush3.bf16.msra.mxu1 %v10522_v34  ;;  %v3913_v34 = vld [vmem:[%s16313_s8 + $0x620] sm:$0xff]  ;;  %v10439_v60 = vpack.c.bf16 %v3906_v44, %v3903_v49 }
 0x76e   :  { %10524 = vmatprep.subr.bf16.mxu1 %v16401_v7  ;;  %v10441_v46 = vpack.c.bf16 %v3913_v34, %v3910_v13 }
 0x76f   :  { %4378 = vmatmul.mubr.f32.gmra.mrb[72].mxu1 %v13386_v8  ;;  %10416 = vmatpush1.bf16.msra.mxu0 %v10415_v21  ;;  %v3916_v21 = vld [vmem:[%s16313_s8 + $0x638] sm:$0xff] }
 0x770   :  { %4382 = vmatprep.mubr.f32.mxu1 %v13401_v31  ;;  %10418 = vmatprep.subr.bf16.mxu0 %v10417_v62  ;;  %v3919_v62 = vld [vmem:[%s16313_s8 + $0x650] sm:$0xff] }
 0x771   :  { %10526 = vmatpush3.bf16.msra.mxu1 %v10525_v4  ;;  %v10445_v43 = vpack.c.bf16 %v3919_v62, %v3916_v21  ;;  %v3915_v4 = vld [vmem:[%s16313_s8 + $0x630] sm:$0xff] }
 0x772   :  { %10527 = vmatprep.subr.bf16.mxu1 %v16401_v7  ;;  %v10447_v51 = vpack.c.bf16 %v3918_v50, %v3915_v4 }
 0x773   :  { %4383 = vmatmul.mubr.f32.gmra.mrb[74].mxu1 %v13417_v2  ;;  %10420 = vmatpush1.bf16.msra.mxu0 %v10419_v32  ;;  %v3921_v32 = vld [vmem:[%s16313_s8 + $0x660] sm:$0xff] }
 0x774   :  { %4387 = vmatprep.mubr.f32.mxu1 %v13434_v10  ;;  %10422 = vmatprep.subr.bf16.mxu0 %v10421_v28  ;;  %v3924_v28 = vld [vmem:[%s16313_s8 + $0x678] sm:$0xff] }
 0x775   :  { %10529 = vmatpush3.bf16.msra.mxu1 %v10528_v17  ;;  %v10451_v24 = vpack.c.bf16 %v3924_v28, %v3921_v32 }
 0x776   :  { %10530 = vmatprep.subr.bf16.mxu1 %v16401_v7 }
 0x777   :  { %4388 = vmatmul.mubr.f32.gmra.mrb[76].mxu1 %v13453_v40  ;;  %10424 = vmatpush1.bf16.msra.mxu0 %v10423_v39 }
 0x778   :  { %4392 = vmatprep.mubr.f32.mxu1 %v13465_v6  ;;  %10426 = vmatprep.subr.bf16.mxu0 %v10425_v0 }
 0x779   :  { %10532 = vmatpush3.bf16.msra.mxu1 %v10531_v61 }
 0x77b   :  { %4393 = vmatmul.mubr.f32.gmra.mrb[78].mxu1 %v13482_v15  ;;  %10428 = vmatpush1.bf16.msra.mxu0 %v10427_v26 }
 0x77c   :  { %9522 = vmatprep.mubr.msk.f32.mxu1 %vm11315_vm0, %v16394_v5  ;;  %10430 = vmatprep.subr.bf16.mxu0 %v10429_v30 }
 0x77f   :  { %9523 = vmatmul.mubr.msk.f32.vlgmr.msra.gmra.mrb[80].mxu1 %vm1541_vm4, %v13514_v63  ;;  %10432 = vmatpush1.bf16.msra.mxu0 %v10431_v38 }
 0x780   :  { %9525 = vmatprep.mubr.msk.f32.mxu1 %vm11315_vm0, %v16394_v5  ;;  %10434 = vmatprep.subr.bf16.mxu0 %v10433_v41 }
 0x783   :  { %9526 = vmatmul.mubr.msk.f32.gmra.mrb[82].mxu1 %vm1541_vm4, %v13547_v52  ;;  %10436 = vmatpush1.bf16.msra.mxu0 %v10435_v23 }
 0x784   :  { %9528 = vmatprep.mubr.msk.f32.mxu1 %vm11315_vm0, %v16394_v5  ;;  %10438 = vmatprep.subr.bf16.mxu0 %v10437_v25 }
 0x787   :  { %9529 = vmatmul.mubr.msk.f32.gmra.mrb[84].mxu1 %vm1541_vm4, %v13574_v56  ;;  %10440 = vmatpush1.bf16.msra.mxu0 %v10439_v60 }
 0x788   :  { %9531 = vmatprep.mubr.msk.f32.mxu1 %vm11315_vm0, %v16394_v5  ;;  %10442 = vmatprep.subr.bf16.mxu0 %v10441_v46 }
 0x78a   :  { %4093 = vmatmul.mubr.f32.vlgmr.msra.gmra.mrb[70].mxu0 %v13356_v27  ;;  %v10449_v27 = vpack.c.bf16 %v3925_v35, %v3922_v19 }
 0x78b   :  { %9532 = vmatmul.mubr.msk.f32.gmra.mrb[86].mxu1 %vm1541_vm4, %v13601_v18  ;;  %4098 = vmatprep.mubr.f32.mxu0 %v13370_v53  ;;  %v3928_v53 = vld [vmem:[%s16313_s8 + $0x698] sm:$0xff] }
 0x78c   :  { %9534 = vmatprep.mubr.msk.f32.mxu1 %vm11315_vm0, %v16394_v5  ;;  %10444 = vmatpush1.bf16.msra.mxu0 %v10443_v45  ;;  %v10453_v17 = vpack.c.bf16 %v3931_v33, %v3928_v53 }
 0x78d   :  { %10446 = vmatprep.subr.bf16.mxu0 %v10445_v43 }
 0x78e   :  { %4099 = vmatmul.mubr.f32.gmra.mrb[72].mxu0 %v13386_v8  ;;  %v3927_v8 = vld [vmem:[%s16313_s8 + $0x690] sm:$0xff] }
 0x78f   :  { %9535 = vmatmul.mubr.msk.f32.gmra.mrb[88].mxu1 %vm1541_vm4, %v13642_v47  ;;  %4104 = vmatprep.mubr.f32.mxu0 %v13401_v31  ;;  %v10455_v31 = vpack.c.bf16 %v3930_v29, %v3927_v8 }
 0x790   :  { %10448 = vmatpush1.bf16.msra.mxu0 %v10447_v51  ;;  %4589 = vmatprep.mubr.f32.mxu1 %v16394_v5 }
 0x791   :  { %10450 = vmatprep.subr.bf16.mxu0 %v10449_v27 }
 0x792   :  { %4105 = vmatmul.mubr.f32.gmra.mrb[74].mxu0 %v13417_v2 }
 0x793   :  { %4110 = vmatprep.mubr.f32.mxu0 %v13434_v10 }
 0x794   :  { %10452 = vmatpush1.bf16.msra.mxu0 %v10451_v24 }
 0x795   :  { %10454 = vmatprep.subr.bf16.mxu0 %v10453_v17 }
 0x796   :  { %4111 = vmatmul.mubr.f32.gmra.mrb[76].mxu0 %v13453_v40 }
 0x797   :  { %4116 = vmatprep.mubr.f32.mxu0 %v13465_v6 }
 0x798   :  { %10456 = vmatpush1.bf16.msra.mxu0 %v10455_v31 }
 0x799   :  { %10541 = vmatprep.subr.bf16.mxu0 %v16401_v7 }
 0x79a   :  { %4117 = vmatmul.mubr.f32.gmra.mrb[78].mxu0 %v13482_v15 }
 0x79b   :  { %4187 = vmatprep.mubr.f32.mxu0 %v16394_v5 }
 0x79e   :  { %8208 = vmatmul.mubr.msk.f32.vlgmr.msra.gmra.mrb[70].mxu0 %vm1541_vm4, %v13514_v63 }
 0x79f   :  { %4193 = vmatprep.mubr.f32.mxu0 %v16394_v5 }
 0x7a2   :  { %8209 = vmatmul.mubr.msk.f32.gmra.mrb[72].mxu0 %vm1541_vm4, %v13547_v52 }
 0x7a3   :  { %4199 = vmatprep.mubr.f32.mxu0 %v16394_v5 }
 0x7a6   :  { %8210 = vmatmul.mubr.msk.f32.gmra.mrb[74].mxu0 %vm1541_vm4, %v13574_v56 }
 0x7a7   :  { %4205 = vmatprep.mubr.f32.mxu0 %v16394_v5 }
 0x7a9   :  { %v8783_v2 = vpop.f32.mrb[40].mxu0 }
 0x7aa   :  { %8211 = vmatmul.mubr.msk.f32.gmra.mrb[76].mxu0 %vm1541_vm4, %v13601_v18  ;;  %v8784_v10 = vpop.f32.mrb[41].mxu0 }
 0x7ab   :  { %v8785_v40 = vadd.f32 %v8784_v10, %v8783_v2  ;;  %4211 = vmatprep.mubr.f32.mxu0 %v16394_v5 }
 0x7ad   :  { %v8786_v6 = vpop.f32.mrb[42].mxu0 }
 0x7ae   :  { %8212 = vmatmul.mubr.msk.f32.gmra.mrb[78].mxu0 %vm1541_vm4, %v13642_v47  ;;  %v8787_v15 = vpop.f32.mrb[43].mxu0  ;;  %vm4506_vm4 = vcmask 293888  }
 0x7af   :  { %v8788_v63 = vadd.f32 %v8787_v15, %v8786_v6  ;;  %9547 = vmatprep.mubr.msk.f32.mxu0 %vm11315_vm0, %v16394_v5 }
 0x7b1   :  { %v8789_v52 = vpop.f32.mrb[44].mxu0 }
 0x7b2   :  { %v8790_v56 = vpop.f32.mrb[45].mxu0 }
 0x7b3   :  { %v8791_v58 = vadd.f32 %v8790_v56, %v8789_v52 }
 0x7b5   :  { %v8792_v11 = vpop.f32.mrb[46].mxu0 }
 0x7b6   :  { %v8793_v14 = vpop.f32.mrb[47].mxu0 }
 0x7b7   :  { %v8794_v39 = vadd.f32 %v8793_v14, %v8792_v11 }
 0x7b9   :  { %v8795_v18 = vpop.f32.mrb[48].mxu0 }
 0x7ba   :  { %v8796_v0 = vpop.f32.mrb[49].mxu0 }
 0x7bb   :  { %v8797_v12 = vadd.f32 %v8796_v0, %v8795_v18 }
 0x7c9   :  { %v8830_v59 = vpop.f32.mrb[50].mxu0 }
 0x7ca   :  { %v8831_v61 = vpop.f32.mrb[51].mxu0 }
 0x7cb   :  { %v8832_v42 = vadd.f32 %v8831_v61, %v8830_v59 }
 0x7cd   :  { %v8833_v9 = vpop.f32.mrb[52].mxu0  ;;  %v3604_v26 = vadd.f32 %v8832_v42, %v8785_v40 }
 0x7ce   :  { %v8834_v47 = vpop.f32.mrb[53].mxu0 }
 0x7cf   :  { %v8835_v30 = vadd.f32 %v8834_v47, %v8833_v9 }
 0x7d1   :  { %v8836_v16 = vpop.f32.mrb[54].mxu0  ;;  %v3609_v54 = vadd.f32 %v8835_v30, %v8788_v63 }
 0x7d2   :  { %v8837_v36 = vpop.f32.mrb[55].mxu0 }
 0x7d3   :  { %v8838_v1 = vadd.f32 %v8837_v36, %v8836_v16 }
 0x7d5   :  { %v8839_v38 = vpop.f32.mrb[56].mxu0  ;;  %v3614_v41 = vadd.f32 %v8838_v1, %v8791_v58 }
 0x7d6   :  { %v8840_v57 = vpop.f32.mrb[57].mxu0 }
 0x7d7   :  { %v8841_v48 = vadd.f32 %v8840_v57, %v8839_v38 }
 0x7d9   :  { %v8842_v22 = vpop.f32.mrb[58].mxu0  ;;  %v3619_v37 = vadd.f32 %v8841_v48, %v8794_v39 }
 0x7da   :  { %v8843_v23 = vpop.f32.mrb[59].mxu0 }
 0x7db   :  { %v8844_v25 = vadd.f32 %v8843_v23, %v8842_v22 }
 0x7dd   :  { %v3693_v49 = vpop.f32.mrb[60].mxu0  ;;  %v3624_v44 = vadd.f32 %v8844_v25, %v8797_v12 }
 0x7de   :  { %v14345_v13 = vadd.f32 %v3693_v49, %v3604_v26  ;;  %v9493_v34 = vpop.f32.mrb[61].mxu0 }
 0x7e1   :  { %v3698_v60 = vpop.f32.mrb[62].mxu0 }
 0x7e2   :  { %v14347_v46 = vadd.f32 %v3698_v60, %v3609_v54  ;;  %v9496_v3 = vpop.f32.mrb[63].mxu0 }
 0x7e5   :  { %v3703_v55 = vpop.f32.mrb[64].mxu0 }
 0x7e6   :  { %v14349_v21 = vadd.f32 %v3703_v55, %v3614_v41  ;;  %v9499_v62 = vpop.f32.mrb[65].mxu0 }
 0x7e9   :  { %v3708_v45 = vpop.f32.mrb[66].mxu0 }
 0x7ea   :  { %v14351_v43 = vadd.f32 %v3708_v45, %v3619_v37  ;;  %v9502_v4 = vpop.f32.mrb[67].mxu0 }
 0x7ed   :  { %v3713_v50 = vpop.f32.mrb[68].mxu0 }
 0x7ee   :  { %v14353_v19 = vadd.f32 %v3713_v50, %v3624_v44  ;;  %v9505_v35 = vpop.f32.mrb[69].mxu0 }
 0x7fd   :  { %v14355_v51 = vpop.f32.mrb[50].mxu1 }
 0x7fe   :  { %v14357_v27 = vpop.f32.mrb[51].mxu1 }
 0x801   :  { %v14359_v32 = vpop.f32.mrb[52].mxu1 }
 0x802   :  { %v14361_v28 = vpop.f32.mrb[53].mxu1 }
 0x805   :  { %v14363_v53 = vpop.f32.mrb[54].mxu1 }
 0x806   :  { %v14365_v33 = vpop.f32.mrb[55].mxu1 }
 0x809   :  { %v14367_v24 = vpop.f32.mrb[56].mxu1 }
 0x80a   :  { %v14369_v17 = vpop.f32.mrb[57].mxu1 }
 0x80d   :  { %v14371_v8 = vpop.f32.mrb[58].mxu1 }
 0x80e   :  { %v14373_v29 = vpop.f32.mrb[59].mxu1 }
 0x81d   :  { %v8890_v31 = vpop.f32.mrb[60].mxu1 }
 0x81e   :  { %v8891_v2 = vpop.f32.mrb[61].mxu1 }
 0x81f   :  { %v8892_v10 = vadd.f32 %v8891_v2, %v8890_v31 }
 0x821   :  { %v8893_v40 = vpop.f32.mrb[62].mxu1 }
 0x822   :  { %v8894_v6 = vpop.f32.mrb[63].mxu1 }
 0x823   :  { %v8895_v15 = vadd.f32 %v8894_v6, %v8893_v40 }
 0x825   :  { %v8896_v63 = vpop.f32.mrb[64].mxu1 }
 0x826   :  { %v8897_v52 = vpop.f32.mrb[65].mxu1 }
 0x827   :  { %v8898_v56 = vadd.f32 %v8897_v52, %v8896_v63 }
 0x829   :  { %v8899_v58 = vpop.f32.mrb[66].mxu1 }
 0x82a   :  { %v8900_v11 = vpop.f32.mrb[67].mxu1 }
 0x82b   :  { %v8901_v14 = vadd.f32 %v8900_v11, %v8899_v58 }
 0x82d   :  { %v8902_v39 = vpop.f32.mrb[68].mxu1 }
 0x82e   :  { %v8903_v18 = vpop.f32.mrb[69].mxu1 }
 0x82f   :  { %v8904_v0 = vadd.f32 %v8903_v18, %v8902_v39  ;;  %v4688_v18 = vld [vmem:[%s16315_s10] sm:$0xff] }
 0x83e   :  { %v8937_v12 = vpop.f32.mrb[70].mxu1 }
 0x83f   :  { %v8938_v59 = vpop.f32.mrb[71].mxu1 }
 0x840   :  { %v8939_v61 = vadd.f32 %v8938_v59, %v8937_v12 }
 0x842   :  { %v8940_v42 = vpop.f32.mrb[72].mxu1  ;;  %v4375_v9 = vadd.f32 %v8939_v61, %v8892_v10 }
 0x843   :  { %v8941_v26 = vpop.f32.mrb[73].mxu1 }
 0x844   :  { %v8942_v47 = vadd.f32 %v8941_v26, %v8940_v42 }
 0x846   :  { %v8943_v30 = vpop.f32.mrb[74].mxu1  ;;  %v4380_v16 = vadd.f32 %v8942_v47, %v8895_v15 }
 0x847   :  { %v8944_v54 = vpop.f32.mrb[75].mxu1 }
 0x848   :  { %v8945_v36 = vadd.f32 %v8944_v54, %v8943_v30 }
 0x84a   :  { %v8946_v1 = vpop.f32.mrb[76].mxu1  ;;  %v4385_v38 = vadd.f32 %v8945_v36, %v8898_v56 }
 0x84b   :  { %v8947_v41 = vpop.f32.mrb[77].mxu1 }
 0x84c   :  { %v8948_v57 = vadd.f32 %v8947_v41, %v8946_v1 }
 0x84e   :  { %v8949_v48 = vpop.f32.mrb[78].mxu1  ;;  %v4390_v22 = vadd.f32 %v8948_v57, %v8901_v14 }
 0x84f   :  { %v8950_v37 = vpop.f32.mrb[79].mxu1 }
 0x850   :  { %v8951_v23 = vadd.f32 %v8950_v37, %v8949_v48 }
 0x852   :  { %v4464_v25 = vpop.f32.mrb[80].mxu1  ;;  %v4395_v49 = vadd.f32 %v8951_v23, %v8904_v0 }
 0x853   :  { %v4465_v44 = vadd.f32 %v4464_v25, %v4375_v9  ;;  %v9524_v34 = vpop.f32.mrb[81].mxu1 }
 0x855   :  { %v4490_v60 = vmax.f32 %v14345_v13, %v4465_v44 }
 0x856   :  { %v4469_v3 = vpop.f32.mrb[82].mxu1 }
 0x857   :  { %v4470_v55 = vadd.f32 %v4469_v3, %v4380_v16  ;;  %v9527_v62 = vpop.f32.mrb[83].mxu1 }
 0x859   :  { %v4493_v45 = vmax.f32 %v14347_v46, %v4470_v55 }
 0x85a   :  { %v4474_v4 = vpop.f32.mrb[84].mxu1 }
 0x85b   :  { %v10542_v50 = vpack.c.bf16 %v4493_v45, %v4490_v60  ;;  %v4475_v35 = vadd.f32 %v4474_v4, %v4385_v38  ;;  %v9530_v31 = vpop.f32.mrb[85].mxu1  ;;  %v14459_v45 = vld [vmem:[%s16316_s14] sm:$0xff]  ;;  %v8307_v4 = vld [vmem:[%s16317_s11 + $0x4f0] sm:$0xff] }
 0x85c   :  { %v14479_v31 = vld [vmem:[%s16316_s14 + $0x8] sm:$0xff] }
 0x85d   :  { %v4496_v2 = vmax.f32 %v14349_v21, %v4475_v35  ;;  %10543 = vmatpush3.bf16.msra.mxu0 %v10542_v50  ;;  %v4503_v21 = vld [vmem:[%s16314_s9] sm:$0xff] }
 0x85e   :  { %v4479_v10 = vpop.f32.mrb[86].mxu1  ;;  %10544 = vmatprep.subr.bf16.mxu0 %v16401_v7 }
 0x85f   :  { %v4480_v40 = vadd.f32 %v4479_v10, %v4390_v22  ;;  %v9533_v6 = vpop.f32.mrb[87].mxu1 }
 0x860   :  { %v8262_v6 = vld [vmem:[%s16317_s11 + $0x388] sm:$0xff] }
 0x861   :  { %v4499_v15 = vmax.f32 %v14351_v43, %v4480_v40  ;;  %v4504_v43 = vld [vmem:[%s16314_s9 + $0x8] sm:$0xff]  ;;  %v8259_v40 = vld [vmem:[%s16317_s11 + $0x370] sm:$0xff] }
 0x862   :  { %v4484_v13 = vpop.f32.mrb[88].mxu1 }
 0x863   :  { %v10545_v63 = vpack.c.bf16 %v4499_v15, %v4496_v2  ;;  %v4485_v52 = vadd.f32 %v4484_v13, %v4395_v49  ;;  %v9536_v56 = vpop.f32.mrb[89].mxu1  ;;  %v14498_v15 = vld [vmem:[%s16316_s14 + $0x10] sm:$0x3f]  ;;  %v8313_v13 = vld [vmem:[%s16317_s11 + $0x520] sm:$0xff] }
 0x864   :  { %v10649_v56 = vpack.c.bf16 %v8262_v6, %v8259_v40  ;;  %v8260_v6 = vld [vmem:[%s16317_s11 + $0x378] sm:$0xff] }
 0x865   :  { %v4502_v46 = vmax.f32 %v14353_v19, %v4485_v52  ;;  %10546 = vmatpush3.bf16.msra.mxu0 %v10545_v63  ;;  %v4505_v19 = vld [vmem:[%s16314_s9 + $0x10] sm:$0x3] }
 0x866   :  { %9545 = vmatprep.subr.mxu0 %v16394_v5 }
 0x869   :  { %9546 = vmatpush3.msk.msra.mxu0 %vm1499_vm3, %v4502_v46 }
 0x86a   :  { %10555 = vmatprep.subr.bf16.mxu0 %v16401_v7  ;;  %9548 = vmatmul.mubr.msk.f32.vlgmr.msra.gmra.mrb[80].mxu0 %vm4506_vm4, %v4503_v21 }
 0x86b   :  { %10557 = vmatpush3.bf16.msra.mxu0 %v10542_v50  ;;  %9550 = vmatprep.mubr.msk.f32.mxu0 %vm11315_vm0, %v16394_v5  ;;  %v8310_v50 = vld [vmem:[%s16317_s11 + $0x508] sm:$0xff] }
 0x86c   :  { %10558 = vmatprep.subr.bf16.mxu0 %v16401_v7  ;;  %v10647_v35 = vpack.c.bf16 %v8310_v50, %v8307_v4  ;;  %v8289_v4 = vld [vmem:[%s16317_s11 + $0x460] sm:$0xff]  ;;  %v8292_v50 = vld [vmem:[%s16317_s11 + $0x478] sm:$0xff] }
 0x86e   :  { %9551 = vmatmul.mubr.msk.f32.gmra.mrb[82].mxu0 %vm4506_vm4, %v4504_v43 }
 0x86f   :  { %10560 = vmatpush3.bf16.msra.mxu0 %v10545_v63  ;;  %9553 = vmatprep.mubr.msk.f32.mxu0 %vm11315_vm0, %v16394_v5  ;;  %v8316_v63 = vld [vmem:[%s16317_s11 + $0x538] sm:$0xff] }
 0x870   :  { %9564 = vmatprep.subr.mxu0 %v16394_v5 }
 0x871   :  { %v4189_v58 = vpop.f32.mrb[70].mxu0 }
 0x872   :  { %v4488_v11 = vmax.f32 %v14355_v51, %v4189_v58  ;;  %v4191_v14 = vpop.f32.mrb[71].mxu0  ;;  %9554 = vmatmul.mubr.msk.f32.gmra.mrb[84].mxu0 %vm4506_vm4, %v4505_v19  ;;  %v14519_v58 = vld [vmem:[%s16316_s14 + $0x18] sm:$0xff] }
 0x873   :  { %v4489_v39 = vmax.f32 %v14357_v27, %v4191_v14  ;;  %9565 = vmatpush3.msk.msra.mxu0 %vm1499_vm3, %v4502_v46  ;;  %9566 = vmatprep.mubr.msk.f32.mxu0 %vm11315_vm0, %v16394_v5  ;;  %v4689_v27 = vld [vmem:[%s16315_s10 + $0x8] sm:$0xff] }
 0x874   :  { %10565 = vmatprep.subr.bf16.mxu0 %v16401_v7  ;;  %v8322_v14 = vld [vmem:[%s16317_s11 + $0x568] sm:$0xff] }
 0x875   :  { %v4195_v0 = vpop.f32.mrb[72].mxu0 }
 0x876   :  { %v4491_v12 = vmax.f32 %v14359_v32, %v4195_v0  ;;  %v4197_v51 = vpop.f32.mrb[73].mxu0  ;;  %9567 = vmatmul.mubr.msk.f32.vlgmr.msra.gmra.mrb[86].mxu0 %vm4506_vm4, %v4688_v18 }
 0x877   :  { %v4492_v59 = vmax.f32 %v14361_v28, %v4197_v51  ;;  %9569 = vmatprep.mubr.msk.f32.mxu0 %vm11315_vm0, %v16394_v5  ;;  %v4690_v28 = vld [vmem:[%s16315_s10 + $0x10] sm:$0x3] }
 0x878   :  { %v10535_v61 = vpack.c.bf16 %v4491_v12, %v4488_v11  ;;  %v8319_v11 = vld [vmem:[%s16317_s11 + $0x550] sm:$0xff] }
 0x879   :  { %v10533_v42 = vpack.c.bf16 %v4492_v59, %v4489_v39  ;;  %v4201_v9 = vpop.f32.mrb[74].mxu0  ;;  %v10655_v12 = vpack.c.bf16 %v8322_v14, %v8319_v11  ;;  %v8271_v51 = vld [vmem:[%s16317_s11 + $0x3d0] sm:$0xff]  ;;  %v8274_v59 = vld [vmem:[%s16317_s11 + $0x3e8] sm:$0xff]  ;;  %v8269_v11 = vld [vmem:[%s16317_s11 + $0x3c0] sm:$0xff] }
 0x87a   :  { %v4494_v26 = vmax.f32 %v14363_v53, %v4201_v9  ;;  %v4203_v47 = vpop.f32.mrb[75].mxu0  ;;  %9570 = vmatmul.mubr.msk.f32.gmra.mrb[88].mxu0 %vm4506_vm4, %v4689_v27  ;;  %v8272_v14 = vld [vmem:[%s16317_s11 + $0x3d8] sm:$0xff] }
 0x87b   :  { %v4495_v32 = vmax.f32 %v14365_v33, %v4203_v47  ;;  %10534 = vmatprep.subr.bf16.mxu1 %v10533_v42  ;;  %9572 = vmatprep.mubr.msk.f32.mxu0 %vm11315_vm0, %v16394_v5 }
 0x87c   :  { %10536 = vmatpush1.bf16.msra.mxu1 %v10535_v61 }
 0x87d   :  { %v4207_v30 = vpop.f32.mrb[76].mxu0 }
 0x87e   :  { %v4497_v16 = vmax.f32 %v14367_v24, %v4207_v30  ;;  %v4209_v54 = vpop.f32.mrb[77].mxu0  ;;  %9573 = vmatmul.mubr.msk.f32.gmra.mrb[90].mxu0 %vm4506_vm4, %v4690_v28  ;;  %v8277_v30 = vld [vmem:[%s16317_s11 + $0x400] sm:$0xff] }
 0x87f   :  { %v4498_v53 = vmax.f32 %v14369_v17, %v4209_v54  ;;  %9581 = vmatprep.mubr.msk.f32.mxu0 %vm11315_vm0, %v16394_v5 }
 0x880   :  { %v10539_v33 = vpack.c.bf16 %v4497_v16, %v4494_v26  ;;  %v10657_v26 = vpack.c.bf16 %v8274_v59, %v8271_v51  ;;  %v8280_v16 = vld [vmem:[%s16317_s11 + $0x418] sm:$0xff]  ;;  %v8278_v51 = vld [vmem:[%s16317_s11 + $0x408] sm:$0xff] }
 0x881   :  { %v10537_v36 = vpack.c.bf16 %v4498_v53, %v4495_v32  ;;  %v4213_v1 = vpop.f32.mrb[78].mxu0  ;;  %v14562_v53 = vld [vmem:[%s16316_s14 + $0x28] sm:$0x3f] }
 0x882   :  { %v4500_v38 = vmax.f32 %v14371_v8, %v4213_v1  ;;  %v4215_v41 = vpop.f32.mrb[79].mxu0  ;;  %v8282_v59 = vld [vmem:[%s16317_s11 + $0x428] sm:$0xff] }
 0x883   :  { %v4501_v57 = vmax.f32 %v14373_v29, %v4215_v41  ;;  %10538 = vmatprep.subr.bf16.mxu1 %v10537_v36 }
 0x884   :  { %10540 = vmatpush1.bf16.msra.mxu1 %v10539_v33 }
 0x885   :  { %8218 = vmatprep.subr.msk.mxu1 %vm1499_vm3, %v4501_v57 }
 0x888   :  { %8219 = vmatpush1.msk.msra.mxu1 %vm1499_vm3, %v4500_v38 }
 0x889   :  { %8220 = vmatmul.mubr.msk.f32.vlgmr.msra.gmra.mrb[90].mxu1 %vm4506_vm4, %v4503_v21  ;;  %10548 = vmatprep.subr.bf16.mxu1 %v10533_v42  ;;  %v10651_v21 = vpack.c.bf16 %v8316_v63, %v8313_v13  ;;  %v8328_v42 = vld [vmem:[%s16317_s11 + $0x598] sm:$0xff] }
 0x88a   :  { %10550 = vmatpush1.bf16.msra.mxu1 %v10535_v61  ;;  %4595 = vmatprep.mubr.f32.mxu1 %v16394_v5  ;;  %v8325_v61 = vld [vmem:[%s16317_s11 + $0x580] sm:$0xff]  ;;  %v8264_v13 = vld [vmem:[%s16317_s11 + $0x398] sm:$0xff] }
 0x88b   :  { %10552 = vmatprep.subr.bf16.mxu1 %v10537_v36  ;;  %v8334_v36 = vld [vmem:[%s16317_s11 + $0x5c8] sm:$0xff] }
 0x88d   :  { %8221 = vmatmul.mubr.msk.f32.gmra.mrb[92].mxu1 %vm4506_vm4, %v4504_v43  ;;  %v8265_v43 = vld [vmem:[%s16317_s11 + $0x3a0] sm:$0xff] }
 0x88e   :  { %10554 = vmatpush1.bf16.msra.mxu1 %v10539_v33  ;;  %4601 = vmatprep.mubr.f32.mxu1 %v16394_v5  ;;  %v8331_v33 = vld [vmem:[%s16317_s11 + $0x5b0] sm:$0xff] }
 0x88f   :  { %8227 = vmatprep.subr.msk.mxu1 %vm1499_vm3, %v4501_v57 }
 0x891   :  { %8222 = vmatmul.mubr.msk.f32.gmra.mrb[94].mxu1 %vm4506_vm4, %v4505_v19  ;;  %v8268_v19 = vld [vmem:[%s16317_s11 + $0x3b8] sm:$0xff] }
 0x892   :  { %8228 = vmatpush1.msk.msra.mxu1 %vm1499_vm3, %v4500_v38  ;;  %4764 = vmatprep.mubr.f32.mxu1 %v16394_v5  ;;  %vm4885_vm3 = vcmask 1041408   ;;  %v10661_v38 = vpack.c.bf16 %v8280_v16, %v8277_v30  ;;  %v8287_v16 = vld [vmem:[%s16317_s11 + $0x450] sm:$0xff] }
 0x895   :  { %8229 = vmatmul.mubr.msk.f32.vlgmr.msra.gmra.mrb[96].mxu1 %vm4506_vm4, %v4688_v18  ;;  %v10653_v18 = vpack.c.bf16 %v8268_v19, %v8265_v43 }
 0x896   :  { %4770 = vmatprep.mubr.f32.mxu1 %v16394_v5 }
 0x899   :  { %8230 = vmatmul.mubr.msk.f32.gmra.mrb[98].mxu1 %vm4506_vm4, %v4689_v27  ;;  %v14540_v27 = vld [vmem:[%s16316_s14 + $0x20] sm:$0xff] }
 0x89a   :  { %4776 = vmatprep.mubr.f32.mxu1 %v16394_v5 }
 0x89d   :  { %8231 = vmatmul.mubr.msk.f32.gmra.mrb[100].mxu1 %vm4506_vm4, %v4690_v28  ;;  %v10659_v28 = vpack.c.bf16 %v8328_v42, %v8325_v61 }
 0x89e   :  { %4959 = vmatprep.mubr.f32.mxu1 %v16394_v5 }
 0x93d   :  { %v4674_v24 = vpop.f32.mrb[80].mxu0 }
 0x93e   :  { %v9549_v17 = vpop.f32.mrb[81].mxu0 }
 0x93f   :  { %v8283_v17 = vld [vmem:[%s16317_s11 + $0x430] sm:$0xff] }
 0x941   :  { %v4679_v8 = vpop.f32.mrb[82].mxu0 }
 0x942   :  { %v9552_v29 = vpop.f32.mrb[83].mxu0 }
 0x945   :  { %v4684_v48 = vpop.f32.mrb[84].mxu0 }
 0x946   :  { %v9555_v22 = vpop.f32.mrb[85].mxu0 }
 0x947   :  { %v8340_v22 = vld [vmem:[%s16317_s11 + $0x5f8] sm:$0xff] }
 0x949   :  { %v4849_v37 = vpop.f32.mrb[86].mxu0 }
 0x94a   :  { %v4865_v23 = vmax.f32 %v4674_v24, %v4849_v37  ;;  %v9568_v25 = vpop.f32.mrb[87].mxu0  ;;  %v10663_v24 = vpack.c.bf16 %v8334_v36, %v8331_v33  ;;  %v8297_v33 = vld [vmem:[%s16317_s11 + $0x4a0] sm:$0xff] }
 0x94d   :  { %v4854_v49 = vpop.f32.mrb[88].mxu0 }
 0x94e   :  { %v4868_v44 = vmax.f32 %v4679_v8, %v4854_v49  ;;  %v9571_v34 = vpop.f32.mrb[89].mxu0  ;;  %v8286_v8 = vld [vmem:[%s16317_s11 + $0x448] sm:$0xff] }
 0x94f   :  { %v10665_v49 = vpack.c.bf16 %v8286_v8, %v8283_v17 }
 0x950   :  { %v14450_v60 = vpack.c.bf16 %v4868_v44, %v4865_v23 }
 0x951   :  { %v4859_v3 = vpop.f32.mrb[90].mxu0 }
 0x952   :  { %10567 = vmatpush3.bf16.msra.mxu0 %v14450_v60  ;;  %v14453_v55 = vmax.f32 %v4684_v48, %v4859_v3  ;;  %v9574_v62 = vpop.f32.mrb[91].mxu0  ;;  %v8337_v48 = vld [vmem:[%s16317_s11 + $0x5e0] sm:$0xff] }
 0x953   :  { %9579 = vmatprep.subr.mxu0 %v16394_v5  ;;  %v10667_v3 = vpack.c.bf16 %v8340_v22, %v8337_v48  ;;  %v8302_v48 = vld [vmem:[%s16317_s11 + $0x4c8] sm:$0xff] }
 0x954   :  { %v8306_v22 = vld [vmem:[%s16317_s11 + $0x4e8] sm:$0xff] }
 0x956   :  { %9580 = vmatpush3.msk.msra.mxu0 %vm4885_vm3, %v14453_v55 }
 0x957   :  { %10572 = vmatprep.subr.bf16.mxu0 %v16401_v7  ;;  %9582 = vmatmul.mubr.msk.f32.vlgmr.msra.gmra.mrb[92].mxu0 %vm4875_vm7, %v14459_v45 }
 0x958   :  { %10574 = vmatpush3.bf16.msra.mxu0 %v14450_v60  ;;  %9584 = vmatprep.mubr.msk.f32.mxu0 %vm11315_vm0, %v16394_v5 }
 0x959   :  { %9594 = vmatprep.subr.mxu0 %v16394_v5 }
 0x95b   :  { %9585 = vmatmul.mubr.msk.f32.gmra.mrb[94].mxu0 %vm4875_vm7, %v14479_v31 }
 0x95c   :  { %v14483_v2 = vpop.f32.mrb[90].mxu1  ;;  %9595 = vmatpush3.msk.msra.mxu0 %vm4885_vm3, %v14453_v55  ;;  %9587 = vmatprep.mubr.msk.f32.mxu0 %vm11315_vm0, %v16394_v5 }
 0x95d   :  { %v4593_v10 = vpop.f32.mrb[91].mxu1  ;;  %10648 = vmatprep.subr.bf16.mxu0 %v10647_v35  ;;  %v10669_v35 = vpack.c.bf16 %v8292_v50, %v8289_v4  ;;  %v8308_v4 = vld [vmem:[%s16317_s11 + $0x4f8] sm:$0xff] }
 0x95e   :  { %v8312_v50 = vld [vmem:[%s16317_s11 + $0x518] sm:$0xff] }
 0x95f   :  { %9588 = vmatmul.mubr.msk.f32.gmra.mrb[96].mxu0 %vm4875_vm7, %v14498_v15 }
 0x960   :  { %v4597_v52 = vpop.f32.mrb[92].mxu1  ;;  %9596 = vmatprep.mubr.msk.f32.mxu0 %vm11315_vm0, %v16394_v5 }
 0x961   :  { %v4599_v46 = vpop.f32.mrb[93].mxu1 }
 0x963   :  { %9597 = vmatmul.mubr.msk.f32.vlgmr.msra.gmra.mrb[98].mxu0 %vm4875_vm7, %v14519_v58 }
 0x964   :  { %v4603_v39 = vpop.f32.mrb[94].mxu1  ;;  %9599 = vmatprep.mubr.msk.f32.mxu0 %vm11315_vm0, %v16394_v5  ;;  %10650 = vmatpush3.bf16.msra.mxu0 %v10649_v56  ;;  %v8263_v56 = vld [vmem:[%s16317_s11 + $0x390] sm:$0xff] }
 0x965   :  { %v4605_v0 = vpop.f32.mrb[95].mxu1  ;;  %10652 = vmatprep.subr.bf16.mxu0 %v10651_v21  ;;  %v8270_v21 = vld [vmem:[%s16317_s11 + $0x3c8] sm:$0xff] }
 0x967   :  { %9600 = vmatmul.mubr.msk.f32.gmra.mrb[100].mxu0 %vm4875_vm7, %v14540_v27 }
 0x968   :  { %v4766_v9 = vpop.f32.mrb[96].mxu1  ;;  %9602 = vmatprep.mubr.msk.f32.mxu0 %vm11315_vm0, %v16394_v5  ;;  %10654 = vmatpush3.bf16.msra.mxu0 %v10653_v18  ;;  %v10585_v18 = vpack.c.bf16 %v8272_v14, %v8269_v11  ;;  %v8326_v11 = vld [vmem:[%s16317_s11 + $0x588] sm:$0xff] }
 0x969   :  { %v4863_v47 = vmax.f32 %v14483_v2, %v4766_v9  ;;  %v4768_v32 = vpop.f32.mrb[97].mxu1  ;;  %10656 = vmatprep.subr.bf16.mxu0 %v10655_v12  ;;  %v8258_v2 = vld [vmem:[%s16317_s11 + $0x368] sm:$0xff]  ;;  %v8275_v12 = vld [vmem:[%s16317_s11 + $0x3f0] sm:$0xff]  ;;  %v8281_v9 = vld [vmem:[%s16317_s11 + $0x420] sm:$0xff] }
 0x96a   :  { %v4864_v54 = vmax.f32 %v4593_v10, %v4768_v32  ;;  %v8261_v10 = vld [vmem:[%s16317_s11 + $0x380] sm:$0xff]  ;;  %v10589_v61 = vpack.c.bf16 %v8278_v51, %v8275_v12  ;;  %v8291_v32 = vld [vmem:[%s16317_s11 + $0x470] sm:$0xff]  ;;  %v8330_v14 = vld [vmem:[%s16317_s11 + $0x5a8] sm:$0xff] }
 0x96b   :  { %9603 = vmatmul.mubr.msk.f32.gmra.mrb[102].mxu0 %vm4875_vm7, %v14562_v53  ;;  %v10575_v40 = vpack.c.bf16 %v8261_v10, %v8258_v2  ;;  %v8332_v12 = vld [vmem:[%s16317_s11 + $0x5b8] sm:$0xff] }
 0x96c   :  { %v4772_v1 = vpop.f32.mrb[98].mxu1  ;;  %10658 = vmatpush3.bf16.msra.mxu0 %v10657_v26  ;;  %v8284_v26 = vld [vmem:[%s16317_s11 + $0x438] sm:$0xff] }
 0x96d   :  { %v4866_v41 = vmax.f32 %v4597_v52, %v4772_v1  ;;  %v4774_v57 = vpop.f32.mrb[99].mxu1  ;;  %10660 = vmatprep.subr.bf16.mxu0 %v10659_v28  ;;  %v10593_v28 = vpack.c.bf16 %v8284_v26, %v8281_v9  ;;  %v8336_v51 = vld [vmem:[%s16317_s11 + $0x5d8] sm:$0xff]  ;;  %v8338_v9 = vld [vmem:[%s16317_s11 + $0x5e8] sm:$0xff] }
 0x96e   :  { %v4867_v29 = vmax.f32 %v4599_v46, %v4774_v57  ;;  %v8266_v46 = vld [vmem:[%s16317_s11 + $0x3a8] sm:$0xff]  ;;  %v8300_v57 = vld [vmem:[%s16317_s11 + $0x4b8] sm:$0xff] }
 0x96f   :  { %v14584_v37 = vpack.c.bf16 %v4866_v41, %v4863_v47  ;;  %v10581_v43 = vpack.c.bf16 %v8266_v46, %v8263_v56  ;;  %v8288_v47 = vld [vmem:[%s16317_s11 + $0x458] sm:$0xff] }
 0x970   :  { %v14586_v23 = vpack.c.bf16 %v4867_v29, %v4864_v54  ;;  %v4778_v25 = vpop.f32.mrb[100].mxu1  ;;  %10662 = vmatpush3.bf16.msra.mxu0 %v10661_v38  ;;  %v10595_v30 = vpack.c.bf16 %v8291_v32, %v8288_v47  ;;  %v8290_v54 = vld [vmem:[%s16317_s11 + $0x468] sm:$0xff]  ;;  %v8293_v38 = vld [vmem:[%s16317_s11 + $0x480] sm:$0xff]  ;;  %v8296_v41 = vld [vmem:[%s16317_s11 + $0x498] sm:$0xff] }
 0x971   :  { %v14588_v44 = vmax.f32 %v4603_v39, %v4778_v25  ;;  %v4780_v34 = vpop.f32.mrb[101].mxu1  ;;  %10664 = vmatprep.subr.bf16.mxu0 %v10663_v24  ;;  %v8276_v39 = vld [vmem:[%s16317_s11 + $0x3f8] sm:$0xff]  ;;  %v10597_v36 = vpack.c.bf16 %v8290_v54, %v8287_v16  ;;  %v8303_v24 = vld [vmem:[%s16317_s11 + $0x4d0] sm:$0xff]  ;;  %v10601_v17 = vpack.c.bf16 %v8296_v41, %v8293_v38  ;;  %v8309_v25 = vld [vmem:[%s16317_s11 + $0x500] sm:$0xff] }
 0x972   :  { %v14590_v62 = vmax.f32 %v4605_v0, %v4780_v34  ;;  %10562 = vmatprep.subr.bf16.mxu1 %v14586_v23  ;;  %v10603_v8 = vpack.c.bf16 %v8303_v24, %v8300_v57  ;;  %v8299_v29 = vld [vmem:[%s16317_s11 + $0x4b0] sm:$0xff]  ;;  %v10607_v34 = vpack.c.bf16 %v8309_v25, %v8306_v22  ;;  %v8320_v56 = vld [vmem:[%s16317_s11 + $0x558] sm:$0xff]  ;;  %v8342_v47 = vld [vmem:[%s16317_s11 + $0x608] sm:$0xff] }
 0x973   :  { %10564 = vmatpush1.bf16.msra.mxu1 %v14584_v37  ;;  %v8324_v46 = vld [vmem:[%s16317_s11 + $0x578] sm:$0xff]  ;;  %v8345_v32 = vld [vmem:[%s16317_s11 + $0x620] sm:$0xff]  ;;  %v8346_v16 = vld [vmem:[%s16317_s11 + $0x628] sm:$0xff] }
 0x974   :  { %8236 = vmatprep.subr.msk.mxu1 %vm4885_vm3, %v14590_v62  ;;  %10666 = vmatpush3.bf16.msra.mxu0 %v10665_v49  ;;  %v10605_v49 = vpack.c.bf16 %v8302_v48, %v8299_v29  ;;  %v8298_v38 = vld [vmem:[%s16317_s11 + $0x4a8] sm:$0xff]  ;;  %v8348_v57 = vld [vmem:[%s16317_s11 + $0x638] sm:$0xff]  ;;  %v8351_v24 = vld [vmem:[%s16317_s11 + $0x650] sm:$0xff] }
 0x975   :  { %10668 = vmatprep.subr.bf16.mxu0 %v10667_v3  ;;  %v8305_v3 = vld [vmem:[%s16317_s11 + $0x4e0] sm:$0xff]  ;;  %v8352_v29 = vld [vmem:[%s16317_s11 + $0x658] sm:$0xff]  ;;  %v8347_v22 = vld [vmem:[%s16317_s11 + $0x630] sm:$0xff] }
 0x976   :  { %v10609_v2 = vpack.c.bf16 %v8308_v4, %v8305_v3  ;;  %v8350_v25 = vld [vmem:[%s16317_s11 + $0x648] sm:$0xff]  ;;  %v8304_v3 = vld [vmem:[%s16317_s11 + $0x4d8] sm:$0xff] }
 0x977   :  { %8237 = vmatpush1.msk.msra.mxu1 %vm4885_vm3, %v14588_v44 }
 0x978   :  { %8238 = vmatmul.mubr.msk.f32.vlgmr.msra.gmra.mrb[102].mxu1 %vm4875_vm7, %v14459_v45  ;;  %10569 = vmatprep.subr.bf16.mxu1 %v14586_v23  ;;  %v8257_v45 = vld [vmem:[%s16317_s11 + $0x360] sm:$0xff] }
 0x979   :  { %10571 = vmatpush1.bf16.msra.mxu1 %v14584_v37  ;;  %4965 = vmatprep.mubr.f32.mxu1 %v16394_v5  ;;  %v10577_v63 = vpack.c.bf16 %v8260_v6, %v8257_v45  ;;  %v8314_v45 = vld [vmem:[%s16317_s11 + $0x528] sm:$0xff] }
 0x97a   :  { %8248 = vmatprep.subr.msk.mxu1 %vm4885_vm3, %v14590_v62  ;;  %10670 = vmatpush3.bf16.msra.mxu0 %v10669_v35  ;;  %v8315_v35 = vld [vmem:[%s16317_s11 + $0x530] sm:$0xff]  ;;  %v8318_v6 = vld [vmem:[%s16317_s11 + $0x548] sm:$0xff] }
 0x97b   :  { %v10611_v10 = vpack.c.bf16 %v8315_v35, %v8312_v50  ;;  %v8354_v50 = vld [vmem:[%s16317_s11 + $0x668] sm:$0xff]  ;;  %v8357_v35 = vld [vmem:[%s16317_s11 + $0x680] sm:$0xff] }
 0x97c   :  { %8239 = vmatmul.mubr.msk.f32.gmra.mrb[104].mxu1 %vm4875_vm7, %v14479_v31  ;;  %v8267_v31 = vld [vmem:[%s16317_s11 + $0x3b0] sm:$0xff] }
 0x97d   :  { %8249 = vmatpush1.msk.msra.mxu1 %vm4885_vm3, %v14588_v44  ;;  %4971 = vmatprep.mubr.f32.mxu1 %v16394_v5  ;;  %v10579_v52 = vpack.c.bf16 %v8267_v31, %v8264_v13  ;;  %v8321_v13 = vld [vmem:[%s16317_s11 + $0x560] sm:$0xff] }
 0x97e   :  { %10576 = vmatprep.subr.bf16.mxu1 %v10575_v40  ;;  %v8311_v40 = vld [vmem:[%s16317_s11 + $0x510] sm:$0xff] }
 0x97f   :  { %v10613_v31 = vpack.c.bf16 %v8314_v45, %v8311_v40 }
 0x980   :  { %8240 = vmatmul.mubr.msk.f32.gmra.mrb[106].mxu1 %vm4875_vm7, %v14498_v15  ;;  %v8273_v15 = vld [vmem:[%s16317_s11 + $0x3e0] sm:$0xff] }
 0x981   :  { %5243 = vmatprep.mubr.f32.mxu1 %v16394_v5  ;;  %v10583_v19 = vpack.c.bf16 %v8273_v15, %v8270_v21  ;;  %v8327_v21 = vld [vmem:[%s16317_s11 + $0x590] sm:$0xff] }
 0x984   :  { %8250 = vmatmul.mubr.msk.f32.vlgmr.msra.gmra.mrb[108].mxu1 %vm4875_vm7, %v14519_v58  ;;  %v8279_v58 = vld [vmem:[%s16317_s11 + $0x410] sm:$0xff] }
 0x985   :  { %5249 = vmatprep.mubr.f32.mxu1 %v16394_v5  ;;  %10578 = vmatpush1.bf16.msra.mxu1 %v10577_v63  ;;  %v10587_v0 = vpack.c.bf16 %v8279_v58, %v8276_v39  ;;  %v10615_v63 = vpack.c.bf16 %v8321_v13, %v8318_v6  ;;  %v8333_v39 = vld [vmem:[%s16317_s11 + $0x5c0] sm:$0xff] }
 0x986   :  { %10580 = vmatprep.subr.bf16.mxu1 %v10579_v52  ;;  %v8317_v52 = vld [vmem:[%s16317_s11 + $0x540] sm:$0xff] }
 0x987   :  { %v10617_v15 = vpack.c.bf16 %v8320_v56, %v8317_v52 }
 0x988   :  { %8251 = vmatmul.mubr.msk.f32.gmra.mrb[110].mxu1 %vm4875_vm7, %v14540_v27  ;;  %v8285_v27 = vld [vmem:[%s16317_s11 + $0x440] sm:$0xff] }
 0x989   :  { %5255 = vmatprep.mubr.f32.mxu1 %v16394_v5  ;;  %10582 = vmatpush1.bf16.msra.mxu1 %v10581_v43  ;;  %v10591_v42 = vpack.c.bf16 %v8285_v27, %v8282_v59  ;;  %v10619_v43 = vpack.c.bf16 %v8327_v21, %v8324_v46  ;;  %v8339_v59 = vld [vmem:[%s16317_s11 + $0x5f0] sm:$0xff] }
 0x98a   :  { %10584 = vmatprep.subr.bf16.mxu1 %v10583_v19  ;;  %v8323_v19 = vld [vmem:[%s16317_s11 + $0x570] sm:$0xff] }
 0x98b   :  { %v10621_v58 = vpack.c.bf16 %v8326_v11, %v8323_v19 }
 0x98c   :  { %8252 = vmatmul.mubr.msk.f32.gmra.mrb[112].mxu1 %vm4875_vm7, %v14562_v53  ;;  %v8294_v53 = vld [vmem:[%s16317_s11 + $0x488] sm:$0xff] }
 0x98d   :  { %10586 = vmatpush1.bf16.msra.mxu1 %v10585_v18  ;;  %v10599_v1 = vpack.c.bf16 %v8297_v33, %v8294_v53  ;;  %v10623_v18 = vpack.c.bf16 %v8333_v39, %v8330_v14  ;;  %v8341_v53 = vld [vmem:[%s16317_s11 + $0x600] sm:$0xff]  ;;  %v8344_v33 = vld [vmem:[%s16317_s11 + $0x618] sm:$0xff] }
 0x98e   :  { %10588 = vmatprep.subr.bf16.mxu1 %v10587_v0  ;;  %v8329_v0 = vld [vmem:[%s16317_s11 + $0x5a0] sm:$0xff] }
 0x98f   :  { %v10625_v27 = vpack.c.bf16 %v8332_v12, %v8329_v0  ;;  %v8356_v0 = vld [vmem:[%s16317_s11 + $0x678] sm:$0xff]  ;;  %v8355_v12 = vld [vmem:[%s16317_s11 + $0x670] sm:$0xff] }
 0x991   :  { %10590 = vmatpush1.bf16.msra.mxu1 %v10589_v61  ;;  %v10627_v61 = vpack.c.bf16 %v8339_v59, %v8336_v51  ;;  %v8358_v51 = vld [vmem:[%s16317_s11 + $0x688] sm:$0xff]  ;;  %v8360_v59 = vld [vmem:[%s16317_s11 + $0x698] sm:$0xff] }
 0x992   :  { %10592 = vmatprep.subr.bf16.mxu1 %v10591_v42  ;;  %v8335_v42 = vld [vmem:[%s16317_s11 + $0x5d0] sm:$0xff] }
 0x993   :  { %v10629_v26 = vpack.c.bf16 %v8338_v9, %v8335_v42  ;;  %v10680_v9 = vpack.c.bf16 %v8358_v51, %v8355_v12  ;;  %v5120_v12 = vld [vmem:[%s16317_s11 + $0x1f0] sm:$0xff]  ;;  %v5123_v51 = vld [vmem:[%s16317_s11 + $0x208] sm:$0xff] }
 0x995   :  { %10594 = vmatpush1.bf16.msra.mxu1 %v10593_v28  ;;  %v8343_v28 = vld [vmem:[%s16317_s11 + $0x610] sm:$0xff] }
 0x996   :  { %10596 = vmatprep.subr.bf16.mxu1 %v10595_v30  ;;  %v10631_v30 = vpack.c.bf16 %v8345_v32, %v8342_v47  ;;  %v10671_v54 = vpack.c.bf16 %v8346_v16, %v8343_v28  ;;  %v8362_v47 = vld [vmem:[%s16317_s11 + $0x6a8] sm:$0xff]  ;;  %v8364_v16 = vld [vmem:[%s16317_s11 + $0x6b8] sm:$0xff] }
 0x998   :  { %10672 = vmatprep.subr.bf16.mxu0 %v10671_v54  ;;  %v5059_v54 = vld [vmem:[%s16317_s11 + $0x8] sm:$0xff] }
 0x999   :  { %10598 = vmatpush1.bf16.msra.mxu1 %v10597_v36  ;;  %v8295_v36 = vld [vmem:[%s16317_s11 + $0x490] sm:$0xff] }
 0x99a   :  { %10600 = vmatprep.subr.bf16.mxu1 %v10599_v1  ;;  %v10633_v1 = vpack.c.bf16 %v8344_v33, %v8341_v53  ;;  %v10673_v41 = vpack.c.bf16 %v8298_v38, %v8295_v36  ;;  %v5062_v53 = vld [vmem:[%s16317_s11 + $0x20] sm:$0xff]  ;;  %v5108_v33 = vld [vmem:[%s16317_s11 + $0x190] sm:$0xff]  ;;  %v5111_v36 = vld [vmem:[%s16317_s11 + $0x1a8] sm:$0xff] }
 0x99c   :  { %10674 = vmatpush3.bf16.msra.mxu0 %v10673_v41 }
 0x99d   :  { %10602 = vmatpush1.bf16.msra.mxu1 %v10601_v17  ;;  %v8349_v17 = vld [vmem:[%s16317_s11 + $0x640] sm:$0xff] }
 0x99e   :  { %10604 = vmatprep.subr.bf16.mxu1 %v10603_v8  ;;  %v10635_v8 = vpack.c.bf16 %v8351_v24, %v8348_v57  ;;  %v10675_v48 = vpack.c.bf16 %v8352_v29, %v8349_v17  ;;  %v10685_v24 = vpack.c.bf16 %v5062_v53, %v5059_v54  ;;  %v10757_v17 = vpack.c.bf16 %v5111_v36, %v5108_v33  ;;  %v5058_v29 = vld [vmem:[%s16317_s11] sm:$0xff]  ;;  %v5079_v33 = vld [vmem:[%s16317_s11 + $0xa8] sm:$0xff] }
 0x99f   :  { %v5078_v36 = vld [vmem:[%s16317_s11 + $0xa0] sm:$0xff] }
 0x9a0   :  { %10676 = vmatprep.subr.bf16.mxu0 %v10675_v48 }
 0x9a1   :  { %10606 = vmatpush1.bf16.msra.mxu1 %v10605_v49  ;;  %v8301_v49 = vld [vmem:[%s16317_s11 + $0x4c0] sm:$0xff] }
 0x9a2   :  { %10608 = vmatprep.subr.bf16.mxu1 %v10607_v34  ;;  %v10637_v34 = vpack.c.bf16 %v8350_v25, %v8347_v22  ;;  %v10677_v4 = vpack.c.bf16 %v8304_v3, %v8301_v49  ;;  %v5061_v22 = vld [vmem:[%s16317_s11 + $0x18] sm:$0xff]  ;;  %v5060_v25 = vld [vmem:[%s16317_s11 + $0x10] sm:$0xff]  ;;  %v5063_v49 = vld [vmem:[%s16317_s11 + $0x28] sm:$0xff] }
 0x9a3   :  { %v5068_v3 = vld [vmem:[%s16317_s11 + $0x50] sm:$0xff] }
 0x9a4   :  { %10678 = vmatpush3.bf16.msra.mxu0 %v10677_v4  ;;  %v5114_v4 = vld [vmem:[%s16317_s11 + $0x1c0] sm:$0xff] }
 0x9a5   :  { %10610 = vmatpush1.bf16.msra.mxu1 %v10609_v2  ;;  %10679 = vmatprep.subr.bf16.mxu0 %v16401_v7  ;;  %v10639_v2 = vpack.c.bf16 %v8357_v35, %v8354_v50  ;;  %v5117_v50 = vld [vmem:[%s16317_s11 + $0x1d8] sm:$0xff]  ;;  %v10687_v35 = vpack.c.bf16 %v5061_v22, %v5058_v29  ;;  %v5082_v22 = vld [vmem:[%s16317_s11 + $0xc0] sm:$0xff] }
 0x9a6   :  { %10612 = vmatprep.subr.bf16.mxu1 %v10611_v10 }
 0x9a9   :  { %10614 = vmatpush1.bf16.msra.mxu1 %v10613_v31 }
 0x9aa   :  { %10616 = vmatprep.subr.bf16.mxu1 %v10615_v63 }
 0x9ad   :  { %10618 = vmatpush1.bf16.msra.mxu1 %v10617_v15 }
 0x9ae   :  { %10620 = vmatprep.subr.bf16.mxu1 %v10619_v43 }
 0x9b1   :  { %10622 = vmatpush1.bf16.msra.mxu1 %v10621_v58  ;;  %v8353_v58 = vld [vmem:[%s16317_s11 + $0x660] sm:$0xff] }
 0x9b2   :  { %10624 = vmatprep.subr.bf16.mxu1 %v10623_v18  ;;  %v10641_v42 = vpack.c.bf16 %v8356_v0, %v8353_v58  ;;  %v5071_v58 = vld [vmem:[%s16317_s11 + $0x68] sm:$0xff]  ;;  %v5074_v0 = vld [vmem:[%s16317_s11 + $0x80] sm:$0xff] }
 0x9b5   :  { %10626 = vmatpush1.bf16.msra.mxu1 %v10625_v27  ;;  %v8363_v27 = vld [vmem:[%s16317_s11 + $0x6b0] sm:$0xff] }
 0x9b6   :  { %10628 = vmatprep.subr.bf16.mxu1 %v10627_v61  ;;  %v10643_v28 = vpack.c.bf16 %v8363_v27, %v8360_v59 }
 0x9b9   :  { %10630 = vmatpush1.bf16.msra.mxu1 %v10629_v26  ;;  %v8359_v26 = vld [vmem:[%s16317_s11 + $0x690] sm:$0xff] }
 0x9ba   :  { %10632 = vmatprep.subr.bf16.mxu1 %v10631_v30  ;;  %v8361_v30 = vld [vmem:[%s16317_s11 + $0x6a0] sm:$0xff]  ;;  %v10645_v38 = vpack.c.bf16 %v8362_v47, %v8359_v26  ;;  %v10693_v26 = vpack.c.bf16 %v5074_v0, %v5071_v58  ;;  %v10765_v47 = vpack.c.bf16 %v5123_v51, %v5120_v12  ;;  %v5093_v58 = vld [vmem:[%s16317_s11 + $0x118] sm:$0xff]  ;;  %v5095_v0 = vld [vmem:[%s16317_s11 + $0x128] sm:$0xff] }
 0x9bb   :  { %v10683_v41 = vpack.c.bf16 %v8364_v16, %v8361_v30  ;;  %v5126_v30 = vld [vmem:[%s16317_s11 + $0x220] sm:$0xff]  ;;  %v5129_v16 = vld [vmem:[%s16317_s11 + $0x238] sm:$0xff]  ;;  %v5144_v51 = vld [vmem:[%s16317_s11 + $0x2b0] sm:$0xff] }
 0x9bc   :  { %v5098_v12 = vld [vmem:[%s16317_s11 + $0x140] sm:$0xff] }
 0x9bd   :  { %10634 = vmatpush1.bf16.msra.mxu1 %v10633_v1 }
 0x9be   :  { %10636 = vmatprep.subr.bf16.mxu1 %v10635_v8 }
 0x9c1   :  { %10638 = vmatpush1.bf16.msra.mxu1 %v10637_v34  ;;  %v5065_v34 = vld [vmem:[%s16317_s11 + $0x38] sm:$0xff] }
 0x9c2   :  { %10640 = vmatprep.subr.bf16.mxu1 %v10639_v2  ;;  %v10759_v2 = vpack.c.bf16 %v5063_v49, %v5060_v25  ;;  %v5085_v25 = vld [vmem:[%s16317_s11 + $0xd8] sm:$0xff] }
 0xa2a   :  { %v14850_v10 = vpop.f32.mrb[92].mxu0 }
 0xa2b   :  { %v9583_v40 = vpop.f32.mrb[93].mxu0 }
 0xa2c   :  { %v5064_v40 = vld [vmem:[%s16317_s11 + $0x30] sm:$0xff] }
 0xa2e   :  { %v14852_v45 = vpop.f32.mrb[94].mxu0 }
 0xa2f   :  { %v9586_v6 = vpop.f32.mrb[95].mxu0 }
 0xa30   :  { %v5067_v6 = vld [vmem:[%s16317_s11 + $0x48] sm:$0xff] }
 0xa31   :  { %v10691_v59 = vpack.c.bf16 %v5067_v6, %v5064_v40  ;;  %v5088_v6 = vld [vmem:[%s16317_s11 + $0xf0] sm:$0xff] }
 0xa32   :  { %v14854_v13 = vpop.f32.mrb[96].mxu0 }
 0xa33   :  { %v9589_v31 = vpop.f32.mrb[97].mxu0 }
 0xa34   :  { %v5066_v31 = vld [vmem:[%s16317_s11 + $0x40] sm:$0xff] }
 0xa36   :  { %v14856_v63 = vpop.f32.mrb[98].mxu0 }
 0xa37   :  { %v9598_v52 = vpop.f32.mrb[99].mxu0 }
 0xa38   :  { %v5069_v52 = vld [vmem:[%s16317_s11 + $0x58] sm:$0xff] }
 0xa39   :  { %v10763_v27 = vpack.c.bf16 %v5069_v52, %v5066_v31  ;;  %v5091_v31 = vld [vmem:[%s16317_s11 + $0x108] sm:$0xff] }
 0xa3a   :  { %v14858_v56 = vpop.f32.mrb[100].mxu0 }
 0xa3b   :  { %v9601_v46 = vpop.f32.mrb[101].mxu0 }
 0xa3c   :  { %v10689_v46 = vpack.c.bf16 %v5068_v3, %v5065_v34  ;;  %v5087_v3 = vld [vmem:[%s16317_s11 + $0xe8] sm:$0xff] }
 0xa3e   :  { %v14860_v21 = vpop.f32.mrb[102].mxu0 }
 0xa3f   :  { %v9604_v15 = vpop.f32.mrb[103].mxu0 }
 0xa40   :  { %v10761_v15 = vpack.c.bf16 %v5117_v50, %v5114_v4  ;;  %v5089_v4 = vld [vmem:[%s16317_s11 + $0xf8] sm:$0xff]  ;;  %v5138_v50 = vld [vmem:[%s16317_s11 + $0x280] sm:$0xff] }
 0xa4b   :  { %v14862_v43 = vpop.f32.mrb[102].mxu1 }
 0xa4c   :  { %v14864_v19 = vpop.f32.mrb[103].mxu1 }
 0xa4f   :  { %v14866_v11 = vpop.f32.mrb[104].mxu1 }
 0xa50   :  { %v14868_v14 = vpop.f32.mrb[105].mxu1 }
 0xa53   :  { %v14870_v39 = vpop.f32.mrb[106].mxu1 }
 0xa54   :  { %v14875_v18 = vpop.f32.mrb[107].mxu1 }
 0xa57   :  { %v5245_v61 = vpop.f32.mrb[108].mxu1 }
 0xa58   :  { %v5247_v32 = vpop.f32.mrb[109].mxu1 }
 0xa59   :  { %5524 = vmatprep.mubr.f32.mxu1 %v5247_v32  ;;  %5690 = vmatprep.mubr.f32.mxu0 %v5247_v32  ;;  %v5077_v32 = vld [vmem:[%s16317_s11 + $0x98] sm:$0xff] }
 0xa5a   :  { %5525 = vmatmul.mubr.f32.vlgmr.msra.gmra.mrb[114].mxu1 %v5245_v61  ;;  %5691 = vmatmul.mubr.f32.vlgmr.msra.gmra.mrb[104].mxu0 %v5245_v61  ;;  %v5073_v61 = vld [vmem:[%s16317_s11 + $0x78] sm:$0xff] }
 0xa5b   :  { %v5251_v1 = vpop.f32.mrb[110].mxu1  ;;  %10642 = vmatpush1.bf16.msra.mxu1 %v10641_v42  ;;  %10681 = vmatpush3.bf16.msra.mxu0 %v10680_v9  ;;  %v5072_v42 = vld [vmem:[%s16317_s11 + $0x70] sm:$0xff]  ;;  %v5075_v9 = vld [vmem:[%s16317_s11 + $0x88] sm:$0xff] }
 0xa5c   :  { %v5253_v57 = vpop.f32.mrb[111].mxu1  ;;  %10644 = vmatprep.subr.bf16.mxu1 %v10643_v28  ;;  %10682 = vmatprep.subr.bf16.mxu0 %v16401_v7  ;;  %v5080_v28 = vld [vmem:[%s16317_s11 + $0xb0] sm:$0xff]  ;;  %v10767_v53 = vpack.c.bf16 %v5075_v9, %v5072_v42  ;;  %v5097_v42 = vld [vmem:[%s16317_s11 + $0x138] sm:$0xff]  ;;  %v10709_v9 = vpack.c.bf16 %v5098_v12, %v5095_v0  ;;  %v5118_v0 = vld [vmem:[%s16317_s11 + $0x1e0] sm:$0xff] }
 0xa5d   :  { %5530 = vmatprep.mubr.f32.mxu1 %v5253_v57  ;;  %5695 = vmatprep.mubr.f32.mxu0 %v5253_v57  ;;  %v10769_v57 = vpack.c.bf16 %v5129_v16, %v5126_v30  ;;  %v5104_v30 = vld [vmem:[%s16317_s11 + $0x170] sm:$0xff]  ;;  %v5150_v16 = vld [vmem:[%s16317_s11 + $0x2e0] sm:$0xff]  ;;  %v5121_v12 = vld [vmem:[%s16317_s11 + $0x1f8] sm:$0xff] }
 0xa5e   :  { %5531 = vmatmul.mubr.f32.gmra.mrb[116].mxu1 %v5251_v1  ;;  %5696 = vmatmul.mubr.f32.gmra.mrb[106].mxu0 %v5251_v1  ;;  %v5081_v1 = vld [vmem:[%s16317_s11 + $0xb8] sm:$0xff] }
 0xa5f   :  { %v5257_v8 = vpop.f32.mrb[112].mxu1  ;;  %10646 = vmatpush1.bf16.msra.mxu1 %v10645_v38  ;;  %10684 = vmatpush3.bf16.msra.mxu0 %v10683_v41  ;;  %v5083_v38 = vld [vmem:[%s16317_s11 + $0xc8] sm:$0xff]  ;;  %v10697_v41 = vpack.c.bf16 %v5080_v28, %v5077_v32  ;;  %v5101_v28 = vld [vmem:[%s16317_s11 + $0x158] sm:$0xff] }
 0xa60   :  { %v5259_v48 = vpop.f32.mrb[113].mxu1  ;;  %10686 = vmatprep.subr.bf16.mxu1 %v10685_v24  ;;  %10758 = vmatprep.subr.bf16.mxu0 %v10757_v17  ;;  %v5086_v24 = vld [vmem:[%s16317_s11 + $0xe0] sm:$0xff]  ;;  %v5132_v17 = vld [vmem:[%s16317_s11 + $0x250] sm:$0xff]  ;;  %v5099_v32 = vld [vmem:[%s16317_s11 + $0x148] sm:$0xff] }
 0xa61   :  { %5536 = vmatprep.mubr.f32.mxu1 %v5259_v48  ;;  %5700 = vmatprep.mubr.f32.mxu0 %v5259_v48  ;;  %v10771_v48 = vpack.c.bf16 %v5081_v1, %v5078_v36  ;;  %v10701_v49 = vpack.c.bf16 %v5086_v24, %v5083_v38  ;;  %v10713_v36 = vpack.c.bf16 %v5104_v30, %v5101_v28  ;;  %v5103_v38 = vld [vmem:[%s16317_s11 + $0x168] sm:$0xff]  ;;  %v5137_v30 = vld [vmem:[%s16317_s11 + $0x278] sm:$0xff] }
 0xa62   :  { %5537 = vmatmul.mubr.f32.gmra.mrb[118].mxu1 %v5257_v8  ;;  %5701 = vmatmul.mubr.f32.gmra.mrb[108].mxu0 %v5257_v8  ;;  %v5135_v8 = vld [vmem:[%s16317_s11 + $0x268] sm:$0xff] }
 0xa63   :  { %5607 = vmatprep.mubr.f32.mxu1 %v16394_v5  ;;  %9613 = vmatprep.mubr.msk.f32.mxu0 %vm11315_vm0, %v16394_v5  ;;  %v10773_v34 = vpack.c.bf16 %v5135_v8, %v5132_v17  ;;  %v5107_v24 = vld [vmem:[%s16317_s11 + $0x188] sm:$0xff]  ;;  %v5110_v17 = vld [vmem:[%s16317_s11 + $0x1a0] sm:$0xff] }
 0xa66   :  { %8365 = vmatmul.mubr.msk.f32.vlgmr.msra.gmra.mrb[114].mxu1 %vm71_vm1, %v14856_v63  ;;  %9614 = vmatmul.mubr.msk.f32.vlgmr.msra.gmra.mrb[110].mxu0 %vm71_vm1, %v14856_v63  ;;  %v5070_v63 = vld [vmem:[%s16317_s11 + $0x60] sm:$0xff] }
 0xa67   :  { %10688 = vmatpush1.bf16.msra.mxu1 %v10687_v35  ;;  %10760 = vmatpush3.bf16.msra.mxu0 %v10759_v2  ;;  %v10695_v54 = vpack.c.bf16 %v5073_v61, %v5070_v63  ;;  %v5141_v35 = vld [vmem:[%s16317_s11 + $0x298] sm:$0xff]  ;;  %v10703_v2 = vpack.c.bf16 %v5085_v25, %v5082_v22  ;;  %v5094_v61 = vld [vmem:[%s16317_s11 + $0x120] sm:$0xff] }
 0xa68   :  { %5613 = vmatprep.mubr.f32.mxu1 %v16394_v5  ;;  %9616 = vmatprep.mubr.msk.f32.mxu0 %vm11315_vm0, %v16394_v5  ;;  %v5106_v22 = vld [vmem:[%s16317_s11 + $0x180] sm:$0xff]  ;;  %v5109_v25 = vld [vmem:[%s16317_s11 + $0x198] sm:$0xff] }
 0xa69   :  { %10690 = vmatprep.subr.bf16.mxu1 %v10689_v46  ;;  %10762 = vmatprep.subr.bf16.mxu0 %v10761_v15  ;;  %v10777_v46 = vpack.c.bf16 %v5141_v35, %v5138_v50  ;;  %v5090_v15 = vld [vmem:[%s16317_s11 + $0x100] sm:$0xff]  ;;  %v5112_v35 = vld [vmem:[%s16317_s11 + $0x1b0] sm:$0xff] }
 0xa6a   :  { %8366 = vmatmul.mubr.msk.f32.gmra.mrb[116].mxu1 %vm71_vm1, %v14858_v56  ;;  %9617 = vmatmul.mubr.msk.f32.gmra.mrb[112].mxu0 %vm71_vm1, %v14858_v56  ;;  %v5076_v56 = vld [vmem:[%s16317_s11 + $0x90] sm:$0xff]  ;;  %v10779_v63 = vpack.c.bf16 %v5093_v58, %v5090_v15 }
 0xa6b   :  { %10692 = vmatpush1.bf16.msra.mxu1 %v10691_v59  ;;  %10764 = vmatpush3.bf16.msra.mxu0 %v10763_v27  ;;  %v10699_v29 = vpack.c.bf16 %v5079_v33, %v5076_v56  ;;  %v5147_v59 = vld [vmem:[%s16317_s11 + $0x2c8] sm:$0xff]  ;;  %v10707_v27 = vpack.c.bf16 %v5091_v31, %v5088_v6  ;;  %v5100_v33 = vld [vmem:[%s16317_s11 + $0x150] sm:$0xff]  ;;  %v5165_v6 = vld [vmem:[%s16317_s11 + $0x358] sm:$0xff] }
 0xa6c   :  { %5619 = vmatprep.mubr.f32.mxu1 %v16394_v5  ;;  %9619 = vmatprep.mubr.msk.f32.mxu0 %vm11315_vm0, %v16394_v5  ;;  %v10715_v8 = vpack.c.bf16 %v5103_v38, %v5100_v33  ;;  %v5119_v31 = vld [vmem:[%s16317_s11 + $0x1e8] sm:$0xff]  ;;  %v5142_v38 = vld [vmem:[%s16317_s11 + $0x2a0] sm:$0xff] }
 0xa6d   :  { %10694 = vmatprep.subr.bf16.mxu1 %v10693_v26  ;;  %10766 = vmatprep.subr.bf16.mxu0 %v10765_v47  ;;  %v10781_v26 = vpack.c.bf16 %v5147_v59, %v5144_v51  ;;  %v5096_v47 = vld [vmem:[%s16317_s11 + $0x130] sm:$0xff]  ;;  %v5125_v51 = vld [vmem:[%s16317_s11 + $0x218] sm:$0xff]  ;;  %v5139_v33 = vld [vmem:[%s16317_s11 + $0x288] sm:$0xff] }
 0xa6e   :  { %8367 = vmatmul.mubr.msk.f32.gmra.mrb[118].mxu1 %vm71_vm1, %v14860_v21  ;;  %9620 = vmatmul.mubr.msk.f32.gmra.mrb[114].mxu0 %vm71_vm1, %v14860_v21  ;;  %v5084_v21 = vld [vmem:[%s16317_s11 + $0xd0] sm:$0xff]  ;;  %v10783_v56 = vpack.c.bf16 %v5099_v32, %v5096_v47  ;;  %v5133_v32 = vld [vmem:[%s16317_s11 + $0x258] sm:$0xff] }
 0xa6f   :  { %10696 = vmatpush1.bf16.msra.mxu1 %v10695_v54  ;;  %10768 = vmatpush3.bf16.msra.mxu0 %v10767_v53  ;;  %v10775_v40 = vpack.c.bf16 %v5087_v3, %v5084_v21  ;;  %v5153_v54 = vld [vmem:[%s16317_s11 + $0x2f8] sm:$0xff]  ;;  %v10711_v53 = vpack.c.bf16 %v5097_v42, %v5094_v61  ;;  %v5116_v3 = vld [vmem:[%s16317_s11 + $0x1d0] sm:$0xff]  ;;  %v5127_v42 = vld [vmem:[%s16317_s11 + $0x228] sm:$0xff] }
 0xa70   :  { %5859 = vmatprep.mubr.f32.mxu1 %v14864_v19  ;;  %6025 = vmatprep.mubr.f32.mxu0 %v14864_v19  ;;  %v5092_v19 = vld [vmem:[%s16317_s11 + $0x110] sm:$0xff]  ;;  %v10785_v1 = vpack.c.bf16 %v5153_v54, %v5150_v16  ;;  %v5113_v21 = vld [vmem:[%s16317_s11 + $0x1b8] sm:$0xff] }
 0xa71   :  { %10698 = vmatprep.subr.bf16.mxu1 %v10697_v41  ;;  %10770 = vmatprep.subr.bf16.mxu0 %v10769_v57  ;;  %v10705_v52 = vpack.c.bf16 %v5092_v19, %v5089_v4  ;;  %v5102_v41 = vld [vmem:[%s16317_s11 + $0x160] sm:$0xff]  ;;  %v5105_v57 = vld [vmem:[%s16317_s11 + $0x178] sm:$0xff]  ;;  %v10719_v4 = vpack.c.bf16 %v5109_v25, %v5106_v22  ;;  %v10721_v50 = vpack.c.bf16 %v5116_v3, %v5113_v21  ;;  %v5128_v59 = vld [vmem:[%s16317_s11 + $0x230] sm:$0xff] }
 0xa72   :  { %v5124_v61 = vld [vmem:[%s16317_s11 + $0x210] sm:$0xff]  ;;  %v5155_v22 = vld [vmem:[%s16317_s11 + $0x308] sm:$0xff]  ;;  %v5158_v25 = vld [vmem:[%s16317_s11 + $0x320] sm:$0xff] }
 0xa73   :  { %10700 = vmatpush1.bf16.msra.mxu1 %v10699_v29  ;;  %10772 = vmatpush3.bf16.msra.mxu0 %v10771_v48  ;;  %v10787_v29 = vpack.c.bf16 %v5105_v57, %v5102_v41  ;;  %v10717_v48 = vpack.c.bf16 %v5110_v17, %v5107_v24  ;;  %v10731_v47 = vpack.c.bf16 %v5127_v42, %v5124_v61  ;;  %v5140_v16 = vld [vmem:[%s16317_s11 + $0x290] sm:$0xff]  ;;  %v5145_v41 = vld [vmem:[%s16317_s11 + $0x2b8] sm:$0xff]  ;;  %v5154_v3 = vld [vmem:[%s16317_s11 + $0x300] sm:$0xff] }
 0xa74   :  { %10702 = vmatprep.subr.bf16.mxu1 %v10701_v49  ;;  %10774 = vmatprep.subr.bf16.mxu0 %v10773_v34  ;;  %v5156_v49 = vld [vmem:[%s16317_s11 + $0x310] sm:$0xff]  ;;  %v5159_v34 = vld [vmem:[%s16317_s11 + $0x328] sm:$0xff]  ;;  %v10743_v17 = vpack.c.bf16 %v5145_v41, %v5142_v38  ;;  %v10749_v21 = vpack.c.bf16 %v5158_v25, %v5155_v22 }
 0xa75   :  { %v10790_v19 = vpack.c.bf16 %v5159_v34, %v5156_v49  ;;  %v5152_v57 = vld [vmem:[%s16317_s11 + $0x2f0] sm:$0xff]  ;;  %v8378_v49 = vld [vmem:[%s16316_s14 + $0x38] sm:$0xff]  ;;  %v8426_v38 = vld [vmem:[%s16317_s11 + $0x7e8] sm:$0xff] }
 0xa76   :  { %v8377_v24 = vld [vmem:[%s16316_s14 + $0x30] sm:$0xff] }
 0xa77   :  { %10704 = vmatpush1.bf16.msra.mxu1 %v10703_v2  ;;  %10776 = vmatpush3.bf16.msra.mxu0 %v10775_v40  ;;  %v5115_v2 = vld [vmem:[%s16317_s11 + $0x1c8] sm:$0xff]  ;;  %v5162_v40 = vld [vmem:[%s16317_s11 + $0x340] sm:$0xff]  ;;  %v8411_v61 = vld [vmem:[%s16317_s11 + $0x770] sm:$0xff] }
 0xa78   :  { %10706 = vmatprep.subr.bf16.mxu1 %v10705_v52  ;;  %10778 = vmatprep.subr.bf16.mxu0 %v10777_v46  ;;  %v5122_v52 = vld [vmem:[%s16317_s11 + $0x200] sm:$0xff]  ;;  %v10723_v46 = vpack.c.bf16 %v5115_v2, %v5112_v35  ;;  %v10793_v15 = vpack.c.bf16 %v5165_v6, %v5162_v40  ;;  %v5160_v40 = vld [vmem:[%s16317_s11 + $0x330] sm:$0xff]  ;;  %v5163_v6 = vld [vmem:[%s16317_s11 + $0x348] sm:$0xff] }
 0xa79   :  { %v10725_v58 = vpack.c.bf16 %v5122_v52, %v5119_v31  ;;  %v8396_v52 = vld [vmem:[%s16317_s11 + $0x6f8] sm:$0xff] }
 0xa7b   :  { %10708 = vmatpush1.bf16.msra.mxu1 %v10707_v27  ;;  %10780 = vmatpush3.bf16.msra.mxu0 %v10779_v63  ;;  %v10727_v27 = vpack.c.bf16 %v5121_v12, %v5118_v0  ;;  %v10729_v63 = vpack.c.bf16 %v5128_v59, %v5125_v51  ;;  %v8402_v12 = vld [vmem:[%s16317_s11 + $0x728] sm:$0xff]  ;;  %v8405_v51 = vld [vmem:[%s16317_s11 + $0x740] sm:$0xff] }
 0xa7c   :  { %10710 = vmatprep.subr.bf16.mxu1 %v10709_v9  ;;  %10782 = vmatprep.subr.bf16.mxu0 %v10781_v26  ;;  %v5131_v9 = vld [vmem:[%s16317_s11 + $0x248] sm:$0xff]  ;;  %v5134_v26 = vld [vmem:[%s16317_s11 + $0x260] sm:$0xff] }
 0xa7d   :  { %v10733_v28 = vpack.c.bf16 %v5134_v26, %v5131_v9  ;;  %v8401_v59 = vld [vmem:[%s16317_s11 + $0x720] sm:$0xff]  ;;  %v8407_v26 = vld [vmem:[%s16317_s11 + $0x750] sm:$0xff] }
 0xa7f   :  { %10712 = vmatpush1.bf16.msra.mxu1 %v10711_v53  ;;  %10784 = vmatpush3.bf16.msra.mxu0 %v10783_v56  ;;  %v10737_v53 = vpack.c.bf16 %v5140_v16, %v5137_v30  ;;  %v5136_v56 = vld [vmem:[%s16317_s11 + $0x270] sm:$0xff]  ;;  %v8413_v16 = vld [vmem:[%s16317_s11 + $0x780] sm:$0xff] }
 0xa80   :  { %10714 = vmatprep.subr.bf16.mxu1 %v10713_v36  ;;  %10786 = vmatprep.subr.bf16.mxu0 %v10785_v1  ;;  %v10739_v36 = vpack.c.bf16 %v5139_v33, %v5136_v56  ;;  %v8439_v56 = vld [vmem:[%s16317_s11 + $0x850] sm:$0xff] }
 0xa83   :  { %10716 = vmatpush1.bf16.msra.mxu1 %v10715_v8  ;;  %10788 = vmatpush3.bf16.msra.mxu0 %v10787_v29  ;;  %v5148_v8 = vld [vmem:[%s16317_s11 + $0x2d0] sm:$0xff]  ;;  %v5151_v29 = vld [vmem:[%s16317_s11 + $0x2e8] sm:$0xff] }
 0xa84   :  { %10718 = vmatprep.subr.bf16.mxu1 %v10717_v48  ;;  %10789 = vmatprep.subr.bf16.mxu0 %v16401_v7  ;;  %v10747_v34 = vpack.c.bf16 %v5151_v29, %v5148_v8  ;;  %v8445_v8 = vld [vmem:[%s16317_s11 + $0x880] sm:$0xff]  ;;  %v8448_v29 = vld [vmem:[%s16317_s11 + $0x898] sm:$0xff] }
 0xa86   :  { %6026 = vmatmul.mubr.f32.vlgmr.msra.gmra.mrb[116].mxu0 %v14862_v43 }
 0xa87   :  { %10720 = vmatpush1.bf16.msra.mxu1 %v10719_v4  ;;  %6030 = vmatprep.mubr.f32.mxu0 %v14868_v14  ;;  %v5157_v4 = vld [vmem:[%s16317_s11 + $0x318] sm:$0xff] }
 0xa88   :  { %10791 = vmatpush3.bf16.msra.mxu0 %v10790_v19  ;;  %10722 = vmatprep.subr.bf16.mxu1 %v10721_v50  ;;  %v5164_v19 = vld [vmem:[%s16317_s11 + $0x350] sm:$0xff]  ;;  %v8379_v50 = vld [vmem:[%s16316_s14 + $0x40] sm:$0x3f]  ;;  %v10751_v35 = vpack.c.bf16 %v5157_v4, %v5154_v3 }
 0xa89   :  { %10792 = vmatprep.subr.bf16.mxu0 %v16401_v7  ;;  %v8435_v3 = vld [vmem:[%s16317_s11 + $0x830] sm:$0xff] }
 0xa8a   :  { %6031 = vmatmul.mubr.f32.gmra.mrb[118].mxu0 %v14866_v11 }
 0xa8b   :  { %10724 = vmatpush1.bf16.msra.mxu1 %v10723_v46  ;;  %6035 = vmatprep.mubr.f32.mxu0 %v14875_v18  ;;  %v8399_v46 = vld [vmem:[%s16317_s11 + $0x710] sm:$0xff] }
 0xa8c   :  { %10794 = vmatpush3.bf16.msra.mxu0 %v10793_v15  ;;  %10726 = vmatprep.subr.bf16.mxu1 %v10725_v58  ;;  %v8395_v15 = vld [vmem:[%s16317_s11 + $0x6f0] sm:$0xff]  ;;  %v10806_v58 = vpack.c.bf16 %v8399_v46, %v8396_v52  ;;  %v8446_v52 = vld [vmem:[%s16317_s11 + $0x888] sm:$0xff]  ;;  %v8397_v46 = vld [vmem:[%s16317_s11 + $0x700] sm:$0xff] }
 0xa8d   :  { %10796 = vmatprep.subr.bf16.mxu0 %v14586_v23  ;;  %v5130_v23 = vld [vmem:[%s16317_s11 + $0x240] sm:$0xff] }
 0xa8e   :  { %6036 = vmatmul.mubr.f32.gmra.mrb[120].mxu0 %v14870_v39  ;;  %v10735_v54 = vpack.c.bf16 %v5133_v32, %v5130_v23  ;;  %v8414_v23 = vld [vmem:[%s16317_s11 + $0x788] sm:$0xff]  ;;  %v8417_v32 = vld [vmem:[%s16317_s11 + $0x7a0] sm:$0xff] }
 0xa8f   :  { %10728 = vmatpush1.bf16.msra.mxu1 %v10727_v27  ;;  %9630 = vmatprep.mubr.msk.f32.mxu0 %vm11315_vm0, %v16394_v5  ;;  %v10810_v27 = vpack.c.bf16 %v8405_v51, %v8402_v12  ;;  %v10818_v30 = vpack.c.bf16 %v8417_v32, %v8414_v23  ;;  %v8453_v12 = vld [vmem:[%s16317_s11 + $0x8c0] sm:$0xff]  ;;  %v8451_v51 = vld [vmem:[%s16317_s11 + $0x8b0] sm:$0xff]  ;;  %v8456_v23 = vld [vmem:[%s16317_s11 + $0x8d8] sm:$0xff] }
 0xa90   :  { %10730 = vmatprep.subr.bf16.mxu1 %v10729_v63  ;;  %v8408_v63 = vld [vmem:[%s16317_s11 + $0x758] sm:$0xff]  ;;  %v8459_v32 = vld [vmem:[%s16317_s11 + $0x8f0] sm:$0xff] }
 0xa91   :  { %v10814_v9 = vpack.c.bf16 %v8411_v61, %v8408_v63  ;;  %v8452_v63 = vld [vmem:[%s16317_s11 + $0x8b8] sm:$0xff] }
 0xa92   :  { %9631 = vmatmul.mubr.msk.f32.vlgmr.msra.gmra.mrb[110].mxu0 %vm71_vm1, %v14850_v10 }
 0xa93   :  { %10798 = vmatpush1.bf16.msra.mxu0 %v14584_v37  ;;  %10732 = vmatpush1.bf16.msra.mxu1 %v10731_v47  ;;  %v5143_v37 = vld [vmem:[%s16317_s11 + $0x2a8] sm:$0xff] }
 0xa94   :  { %8380 = vmatprep.subr.msk.mxu0 %vm4885_vm3, %v14590_v62  ;;  %9633 = vmatprep.mubr.msk.f32.mxu0 %vm11315_vm0, %v16394_v5  ;;  %v5146_v62 = vld [vmem:[%s16317_s11 + $0x2c0] sm:$0xff]  ;;  %v8410_v47 = vld [vmem:[%s16317_s11 + $0x768] sm:$0xff] }
 0xa95   :  { %10734 = vmatprep.subr.bf16.mxu1 %v10733_v28  ;;  %v10741_v1 = vpack.c.bf16 %v5146_v62, %v5143_v37  ;;  %v10816_v28 = vpack.c.bf16 %v8410_v47, %v8407_v26  ;;  %v8419_v37 = vld [vmem:[%s16317_s11 + $0x7b0] sm:$0xff]  ;;  %v8422_v62 = vld [vmem:[%s16317_s11 + $0x7c8] sm:$0xff] }
 0xa96   :  { %9634 = vmatmul.mubr.msk.f32.gmra.mrb[112].mxu0 %vm71_vm1, %v14852_v45  ;;  %v10824_v22 = vpack.c.bf16 %v8422_v62, %v8419_v37  ;;  %v8406_v26 = vld [vmem:[%s16317_s11 + $0x748] sm:$0xff]  ;;  %v8412_v37 = vld [vmem:[%s16317_s11 + $0x778] sm:$0xff] }
 0xa97   :  { %8381 = vmatpush1.msk.msra.mxu0 %vm4885_vm3, %v14588_v44  ;;  %10736 = vmatpush1.bf16.msra.mxu1 %v10735_v54  ;;  %v5149_v44 = vld [vmem:[%s16317_s11 + $0x2d8] sm:$0xff] }
 0xa98   :  { %9636 = vmatprep.mubr.msk.f32.mxu0 %vm11315_vm0, %v16394_v5  ;;  %10738 = vmatprep.subr.bf16.mxu1 %v10737_v53  ;;  %v10745_v48 = vpack.c.bf16 %v5152_v57, %v5149_v44  ;;  %v8420_v54 = vld [vmem:[%s16317_s11 + $0x7b8] sm:$0xff]  ;;  %v8423_v53 = vld [vmem:[%s16317_s11 + $0x7d0] sm:$0xff]  ;;  %v8394_v57 = vld [vmem:[%s16317_s11 + $0x6e8] sm:$0xff] }
 0xa99   :  { %10799 = vmatprep.subr.bf16.mxu0 %v16401_v7  ;;  %v8391_v44 = vld [vmem:[%s16317_s11 + $0x6d0] sm:$0xff] }
 0xa9a   :  { %9637 = vmatmul.mubr.msk.f32.gmra.mrb[114].mxu0 %vm71_vm1, %v14854_v13 }
 0xa9b   :  { %10740 = vmatpush1.bf16.msra.mxu1 %v10739_v36  ;;  %6198 = vmatprep.mubr.f32.mxu0 %v16394_v5  ;;  %v8442_v36 = vld [vmem:[%s16317_s11 + $0x868] sm:$0xff] }
 0xa9c   :  { %10742 = vmatprep.subr.bf16.mxu1 %v10741_v1  ;;  %v10822_v1 = vpack.c.bf16 %v8423_v53, %v8420_v54  ;;  %v10874_v41 = vpack.c.bf16 %v8442_v36, %v8439_v56  ;;  %v8458_v54 = vld [vmem:[%s16317_s11 + $0x8e8] sm:$0xff] }
 0xa9d   :  { %v8462_v36 = vld [vmem:[%s16317_s11 + $0x908] sm:$0xff] }
 0xa9e   :  { %8382 = vmatmul.mubr.msk.f32.vlgmr.msra.gmra.mrb[122].mxu0 %vm4875_vm7, %v8377_v24 }
 0xa9f   :  { %10801 = vmatpush3.bf16.msra.mxu0 %v14450_v60  ;;  %10744 = vmatpush1.bf16.msra.mxu1 %v10743_v17  ;;  %v5161_v60 = vld [vmem:[%s16317_s11 + $0x338] sm:$0xff]  ;;  %v10876_v17 = vpack.c.bf16 %v8394_v57, %v8391_v44  ;;  %v8466_v44 = vld [vmem:[%s16317_s11 + $0x928] sm:$0xff]  ;;  %v8461_v57 = vld [vmem:[%s16317_s11 + $0x900] sm:$0xff] }
 0xaa0   :  { %6204 = vmatprep.mubr.f32.mxu0 %v16394_v5  ;;  %9643 = vmatprep.subr.mxu0 %v16394_v5  ;;  %v10753_v2 = vpack.c.bf16 %v5164_v19, %v5161_v60  ;;  %v8431_v19 = vld [vmem:[%s16317_s11 + $0x810] sm:$0xff] }
 0xaa1   :  { %10746 = vmatprep.subr.bf16.mxu1 %v10745_v48  ;;  %v10878_v48 = vpack.c.bf16 %v8448_v29, %v8445_v8  ;;  %v8415_v29 = vld [vmem:[%s16317_s11 + $0x790] sm:$0xff] }
 0xaa2   :  { %8383 = vmatmul.mubr.msk.f32.gmra.mrb[124].mxu0 %vm4875_vm7, %v8378_v49 }
 0xaa3   :  { %9644 = vmatpush3.msk.msra.mxu0 %vm4885_vm3, %v14453_v55  ;;  %10748 = vmatpush1.bf16.msra.mxu1 %v10747_v34  ;;  %v10755_v55 = vpack.c.bf16 %v5163_v6, %v5160_v40  ;;  %v8428_v34 = vld [vmem:[%s16317_s11 + $0x7f8] sm:$0xff] }
 0xaa4   :  { %6210 = vmatprep.mubr.f32.mxu0 %v16394_v5  ;;  %10750 = vmatprep.subr.bf16.mxu1 %v10749_v21  ;;  %v8432_v21 = vld [vmem:[%s16317_s11 + $0x818] sm:$0xff] }
 0xaa5   :  { %10875 = vmatprep.subr.bf16.mxu0 %v10874_v41  ;;  %v10830_v60 = vpack.c.bf16 %v8435_v3, %v8432_v21  ;;  %v8472_v21 = vld [vmem:[%s16317_s11 + $0x958] sm:$0xff] }
 0xaa6   :  { %5860 = vmatmul.mubr.f32.vlgmr.msra.gmra.mrb[114].mxu1 %v14862_v43  ;;  %8384 = vmatmul.mubr.msk.f32.gmra.mrb[126].mxu0 %vm4875_vm7, %v8379_v50  ;;  %v8390_v43 = vld [vmem:[%s16317_s11 + $0x6c8] sm:$0xff] }
 0xaa7   :  { %5865 = vmatprep.mubr.f32.mxu1 %v14868_v14  ;;  %10752 = vmatpush1.bf16.msra.mxu1 %v10751_v35  ;;  %v8389_v14 = vld [vmem:[%s16317_s11 + $0x6c0] sm:$0xff]  ;;  %v8438_v35 = vld [vmem:[%s16317_s11 + $0x848] sm:$0xff] }
 0xaa8   :  { %9645 = vmatprep.mubr.msk.f32.mxu0 %vm11315_vm0, %v16394_v5  ;;  %10754 = vmatprep.subr.bf16.mxu1 %v10753_v2  ;;  %v8441_v2 = vld [vmem:[%s16317_s11 + $0x860] sm:$0xff] }
 0xaa9   :  { %v10834_v6 = vpack.c.bf16 %v8441_v2, %v8438_v35  ;;  %v8424_v2 = vld [vmem:[%s16317_s11 + $0x7d8] sm:$0xff] }
 0xaaa   :  { %5866 = vmatmul.mubr.f32.gmra.mrb[116].mxu1 %v14866_v11  ;;  %9646 = vmatmul.mubr.msk.f32.vlgmr.msra.gmra.mrb[128].mxu0 %vm4875_vm7, %v8377_v24  ;;  %v8393_v11 = vld [vmem:[%s16317_s11 + $0x6e0] sm:$0xff] }
 0xaab   :  { %5871 = vmatprep.mubr.f32.mxu1 %v14875_v18  ;;  %10756 = vmatpush1.bf16.msra.mxu1 %v10755_v55  ;;  %v8392_v18 = vld [vmem:[%s16317_s11 + $0x6d8] sm:$0xff]  ;;  %v8429_v24 = vld [vmem:[%s16317_s11 + $0x800] sm:$0xff] }
 0xaac   :  { %9648 = vmatprep.mubr.msk.f32.mxu0 %vm11315_vm0, %v16394_v5  ;;  %v10804_v31 = vpack.c.bf16 %v8392_v18, %v8389_v14  ;;  %10877 = vmatpush3.bf16.msra.mxu0 %v10876_v17  ;;  %v10826_v25 = vpack.c.bf16 %v8429_v24, %v8426_v38  ;;  %v8437_v55 = vld [vmem:[%s16317_s11 + $0x840] sm:$0xff]  ;;  %v8447_v14 = vld [vmem:[%s16317_s11 + $0x890] sm:$0xff]  ;;  %v8464_v24 = vld [vmem:[%s16317_s11 + $0x918] sm:$0xff] }
 0xaad   :  { %10879 = vmatprep.subr.bf16.mxu0 %v10878_v48  ;;  %v8463_v38 = vld [vmem:[%s16317_s11 + $0x910] sm:$0xff]  ;;  %v10852_v8 = vpack.c.bf16 %v8464_v24, %v8461_v57  ;;  %v8418_v48 = vld [vmem:[%s16317_s11 + $0x7a8] sm:$0xff] }
 0xaae   :  { %5872 = vmatmul.mubr.f32.gmra.mrb[118].mxu1 %v14870_v39  ;;  %9649 = vmatmul.mubr.msk.f32.gmra.mrb[130].mxu0 %vm4875_vm7, %v8378_v49  ;;  %v10802_v39 = vpack.c.bf16 %v8393_v11, %v8390_v43  ;;  %v8425_v49 = vld [vmem:[%s16317_s11 + $0x7e0] sm:$0xff]  ;;  %v8440_v43 = vld [vmem:[%s16317_s11 + $0x858] sm:$0xff]  ;;  %v10890_v17 = vpack.c.bf16 %v8466_v44, %v8463_v38 }
 0xaaf   :  { %5942 = vmatprep.mubr.f32.mxu1 %v16394_v5  ;;  %9651 = vmatprep.mubr.msk.f32.mxu0 %vm11315_vm0, %v16394_v5  ;;  %v10828_v4 = vpack.c.bf16 %v8428_v34, %v8425_v49  ;;  %v8444_v11 = vld [vmem:[%s16317_s11 + $0x878] sm:$0xff]  ;;  %v8471_v49 = vld [vmem:[%s16317_s11 + $0x950] sm:$0xff]  ;;  %v8469_v34 = vld [vmem:[%s16317_s11 + $0x940] sm:$0xff] }
 0xab0   :  { %10803 = vmatprep.subr.bf16.mxu1 %v10802_v39  ;;  %v10836_v39 = vpack.c.bf16 %v8440_v43, %v8437_v55  ;;  %v10838_v18 = vpack.c.bf16 %v8447_v14, %v8444_v11  ;;  %v8475_v11 = vld [vmem:[%s16317_s11 + $0x970] sm:$0xff]  ;;  %v8478_v14 = vld [vmem:[%s16317_s11 + $0x988] sm:$0xff] }
 0xab2   :  { %8371 = vmatmul.mubr.msk.f32.vlgmr.msra.gmra.mrb[114].mxu1 %vm71_vm1, %v14850_v10  ;;  %9652 = vmatmul.mubr.msk.f32.gmra.mrb[132].mxu0 %vm4875_vm7, %v8379_v50  ;;  %v8398_v10 = vld [vmem:[%s16317_s11 + $0x708] sm:$0xff] }
 0xab3   :  { %5948 = vmatprep.mubr.f32.mxu1 %v16394_v5  ;;  %10805 = vmatpush1.bf16.msra.mxu1 %v10804_v31  ;;  %v10808_v0 = vpack.c.bf16 %v8398_v10, %v8395_v15  ;;  %v8434_v50 = vld [vmem:[%s16317_s11 + $0x828] sm:$0xff]  ;;  %v8443_v31 = vld [vmem:[%s16317_s11 + $0x870] sm:$0xff] }
 0xab4   :  { %10807 = vmatprep.subr.bf16.mxu1 %v10806_v58  ;;  %v10832_v40 = vpack.c.bf16 %v8434_v50, %v8431_v19  ;;  %v10840_v15 = vpack.c.bf16 %v8446_v52, %v8443_v31  ;;  %v8400_v58 = vld [vmem:[%s16317_s11 + $0x718] sm:$0xff]  ;;  %v8470_v19 = vld [vmem:[%s16317_s11 + $0x948] sm:$0xff]  ;;  %v8421_v50 = vld [vmem:[%s16317_s11 + $0x7c0] sm:$0xff] }
 0xab5   :  { %v10880_v10 = vpack.c.bf16 %v8400_v58, %v8397_v46  ;;  %v10896_v55 = vpack.c.bf16 %v8424_v2, %v8421_v50  ;;  %v8476_v31 = vld [vmem:[%s16317_s11 + $0x978] sm:$0xff]  ;;  %v8427_v52 = vld [vmem:[%s16317_s11 + $0x7f0] sm:$0xff]  ;;  %v8430_v46 = vld [vmem:[%s16317_s11 + $0x808] sm:$0xff] }
 0xab6   :  { %8372 = vmatmul.mubr.msk.f32.gmra.mrb[116].mxu1 %vm71_vm1, %v14852_v45  ;;  %v8404_v45 = vld [vmem:[%s16317_s11 + $0x738] sm:$0xff]  ;;  %v8491_v50 = vld [vmem:[%s16317_s11 + $0x9f0] sm:$0xff] }
 0xab7   :  { %5954 = vmatprep.mubr.f32.mxu1 %v16394_v5  ;;  %10809 = vmatpush1.bf16.msra.mxu1 %v10808_v0  ;;  %v10812_v42 = vpack.c.bf16 %v8404_v45, %v8401_v59  ;;  %v8450_v0 = vld [vmem:[%s16317_s11 + $0x8a8] sm:$0xff]  ;;  %v8449_v45 = vld [vmem:[%s16317_s11 + $0x8a0] sm:$0xff]  ;;  %v8480_v58 = vld [vmem:[%s16317_s11 + $0x998] sm:$0xff] }
 0xab8   :  { %10811 = vmatprep.subr.bf16.mxu1 %v10810_v27  ;;  %10881 = vmatpush3.bf16.msra.mxu0 %v10880_v10  ;;  %v10842_v59 = vpack.c.bf16 %v8453_v12, %v8450_v0  ;;  %v8454_v27 = vld [vmem:[%s16317_s11 + $0x8c8] sm:$0xff]  ;;  %v8483_v10 = vld [vmem:[%s16317_s11 + $0x9b0] sm:$0xff]  ;;  %v8481_v0 = vld [vmem:[%s16317_s11 + $0x9a0] sm:$0xff]  ;;  %v10900_v12 = vpack.c.bf16 %v8430_v46, %v8427_v52 }
 0xab9   :  { %v10882_v61 = vpack.c.bf16 %v8454_v27, %v8451_v51  ;;  %v10862_v51 = vpack.c.bf16 %v8483_v10, %v8480_v58 }
 0xaba   :  { %8373 = vmatmul.mubr.msk.f32.gmra.mrb[118].mxu1 %vm71_vm1, %v14854_v13  ;;  %v8416_v13 = vld [vmem:[%s16317_s11 + $0x798] sm:$0xff] }
 0xabb   :  { %10813 = vmatpush1.bf16.msra.mxu1 %v10812_v42  ;;  %v10820_v33 = vpack.c.bf16 %v8416_v13, %v8413_v16  ;;  %v10844_v42 = vpack.c.bf16 %v8452_v63, %v8449_v45  ;;  %10883 = vmatprep.subr.bf16.mxu0 %v10882_v61  ;;  %v8460_v16 = vld [vmem:[%s16317_s11 + $0x8f8] sm:$0xff]  ;;  %v8455_v13 = vld [vmem:[%s16317_s11 + $0x8d0] sm:$0xff]  ;;  %v8482_v63 = vld [vmem:[%s16317_s11 + $0x9a8] sm:$0xff] }
 0xabc   :  { %10815 = vmatprep.subr.bf16.mxu1 %v10814_v9  ;;  %v8403_v9 = vld [vmem:[%s16317_s11 + $0x730] sm:$0xff]  ;;  %v10848_v56 = vpack.c.bf16 %v8458_v54, %v8455_v13  ;;  %v8433_v61 = vld [vmem:[%s16317_s11 + $0x820] sm:$0xff] }
 0xabd   :  { %v10884_v47 = vpack.c.bf16 %v8406_v26, %v8403_v9  ;;  %v8479_v45 = vld [vmem:[%s16317_s11 + $0x990] sm:$0xff]  ;;  %v8436_v9 = vld [vmem:[%s16317_s11 + $0x838] sm:$0xff] }
 0xabe   :  { %v10904_v26 = vpack.c.bf16 %v8436_v9, %v8433_v61  ;;  %v6770_v61 = vld [vmem:[%s16318_s15 + $0x90] sm:$0xff] }
 0xabf   :  { %10817 = vmatpush1.bf16.msra.mxu1 %v10816_v28  ;;  %v8457_v28 = vld [vmem:[%s16317_s11 + $0x8e0] sm:$0xff]  ;;  %10885 = vmatpush3.bf16.msra.mxu0 %v10884_v47  ;;  %v8486_v47 = vld [vmem:[%s16317_s11 + $0x9c8] sm:$0xff]  ;;  %v6754_v9 = vld [vmem:[%s16318_s15 + $0x10] sm:$0xff] }
 0xac0   :  { %10819 = vmatprep.subr.bf16.mxu1 %v10818_v30  ;;  %v10846_v30 = vpack.c.bf16 %v8459_v32, %v8456_v23  ;;  %v10886_v53 = vpack.c.bf16 %v8460_v16, %v8457_v28  ;;  %v8489_v23 = vld [vmem:[%s16317_s11 + $0x9e0] sm:$0xff] }
 0xac1   :  { %v10866_v32 = vpack.c.bf16 %v8489_v23, %v8486_v47  ;;  %v6755_v47 = vld [vmem:[%s16318_s15 + $0x18] sm:$0xff] }
 0xac2   :  { %10887 = vmatprep.subr.bf16.mxu0 %v10886_v53  ;;  %v10918_v23 = vpack.c.bf16 %v6755_v47, %v6754_v9 }
 0xac3   :  { %10821 = vmatpush1.bf16.msra.mxu1 %v10820_v33  ;;  %v8409_v33 = vld [vmem:[%s16317_s11 + $0x760] sm:$0xff] }
 0xac4   :  { %10823 = vmatprep.subr.bf16.mxu1 %v10822_v1  ;;  %v10888_v62 = vpack.c.bf16 %v8412_v37, %v8409_v33  ;;  %v8465_v1 = vld [vmem:[%s16317_s11 + $0x920] sm:$0xff] }
 0xac5   :  { %v10850_v41 = vpack.c.bf16 %v8465_v1, %v8462_v36 }
 0xac6   :  { %10889 = vmatpush3.bf16.msra.mxu0 %v10888_v62 }
 0xac7   :  { %10825 = vmatpush1.bf16.msra.mxu1 %v10824_v22  ;;  %v8468_v22 = vld [vmem:[%s16317_s11 + $0x938] sm:$0xff]  ;;  %10891 = vmatprep.subr.bf16.mxu0 %v10890_v17 }
 0xac8   :  { %10827 = vmatprep.subr.bf16.mxu1 %v10826_v25  ;;  %v10892_v25 = vpack.c.bf16 %v8418_v48, %v8415_v29  ;;  %v10854_v3 = vpack.c.bf16 %v8471_v49, %v8468_v22  ;;  %v8485_v22 = vld [vmem:[%s16317_s11 + $0x9c0] sm:$0xff]  ;;  %v8487_v49 = vld [vmem:[%s16317_s11 + $0x9d0] sm:$0xff] }
 0xaca   :  { %10893 = vmatpush3.bf16.msra.mxu0 %v10892_v25  ;;  %v8488_v25 = vld [vmem:[%s16317_s11 + $0x9d8] sm:$0xff] }
 0xacb   :  { %10829 = vmatpush1.bf16.msra.mxu1 %v10828_v4  ;;  %v10894_v4 = vpack.c.bf16 %v8472_v21, %v8469_v34  ;;  %v8490_v34 = vld [vmem:[%s16317_s11 + $0x9e8] sm:$0xff]  ;;  %v8492_v21 = vld [vmem:[%s16317_s11 + $0x9f8] sm:$0xff] }
 0xacc   :  { %10831 = vmatprep.subr.bf16.mxu1 %v10830_v60  ;;  %v8467_v60 = vld [vmem:[%s16317_s11 + $0x930] sm:$0xff] }
 0xacd   :  { %v10856_v35 = vpack.c.bf16 %v8470_v19, %v8467_v60  ;;  %10895 = vmatprep.subr.bf16.mxu0 %v10894_v4  ;;  %v10868_v60 = vpack.c.bf16 %v8488_v25, %v8485_v22  ;;  %v10907_v19 = vpack.c.bf16 %v8490_v34, %v8487_v49  ;;  %v6762_v49 = vld [vmem:[%s16318_s15 + $0x50] sm:$0xff]  ;;  %v6763_v34 = vld [vmem:[%s16318_s15 + $0x58] sm:$0xff] }
 0xace   :  { %10897 = vmatpush3.bf16.msra.mxu0 %v10896_v55  ;;  %v8496_v55 = vld [vmem:[%s16317_s11 + $0xa18] sm:$0xff] }
 0xacf   :  { %10833 = vmatpush1.bf16.msra.mxu1 %v10832_v40  ;;  %v8474_v40 = vld [vmem:[%s16317_s11 + $0x968] sm:$0xff] }
 0xad0   :  { %10835 = vmatprep.subr.bf16.mxu1 %v10834_v6  ;;  %v8477_v6 = vld [vmem:[%s16317_s11 + $0x980] sm:$0xff] }
 0xad1   :  { %v10858_v43 = vpack.c.bf16 %v8477_v6, %v8474_v40  ;;  %v8494_v40 = vld [vmem:[%s16317_s11 + $0xa08] sm:$0xff]  ;;  %v8493_v6 = vld [vmem:[%s16317_s11 + $0xa00] sm:$0xff] }
 0xad3   :  { %10837 = vmatpush1.bf16.msra.mxu1 %v10836_v39  ;;  %v8473_v39 = vld [vmem:[%s16317_s11 + $0x960] sm:$0xff] }
 0xad4   :  { %10839 = vmatprep.subr.bf16.mxu1 %v10838_v18  ;;  %v10898_v18 = vpack.c.bf16 %v8478_v14, %v8475_v11  ;;  %v10872_v11 = vpack.c.bf16 %v8494_v40, %v8491_v50  ;;  %v10910_v14 = vpack.c.bf16 %v8496_v55, %v8493_v6  ;;  %v6765_v50 = vld [vmem:[%s16318_s15 + $0x68] sm:$0xff]  ;;  %v6766_v55 = vld [vmem:[%s16318_s15 + $0x70] sm:$0xff] }
 0xad6   :  { %10899 = vmatprep.subr.bf16.mxu0 %v10898_v18 }
 0xad7   :  { %10841 = vmatpush1.bf16.msra.mxu1 %v10840_v15  ;;  %v10860_v15 = vpack.c.bf16 %v8476_v31, %v8473_v39  ;;  %10901 = vmatpush3.bf16.msra.mxu0 %v10900_v12  ;;  %v6768_v12 = vld [vmem:[%s16318_s15 + $0x80] sm:$0xff] }
 0xad8   :  { %10843 = vmatprep.subr.bf16.mxu1 %v10842_v59  ;;  %v8484_v59 = vld [vmem:[%s16317_s11 + $0x9b8] sm:$0xff] }
 0xad9   :  { %v10902_v27 = vpack.c.bf16 %v8484_v59, %v8481_v0  ;;  %v6752_v59 = vld [vmem:[%s16318_s15] sm:$0xff] }
 0xadb   :  { %10845 = vmatpush1.bf16.msra.mxu1 %v10844_v42  ;;  %v10864_v42 = vpack.c.bf16 %v8482_v63, %v8479_v45  ;;  %10903 = vmatprep.subr.bf16.mxu0 %v10902_v27  ;;  %v6753_v45 = vld [vmem:[%s16318_s15 + $0x8] sm:$0xff] }
 0xadc   :  { %10847 = vmatprep.subr.bf16.mxu1 %v10846_v30  ;;  %10905 = vmatpush3.bf16.msra.mxu0 %v10904_v26  ;;  %v10914_v63 = vpack.c.bf16 %v6753_v45, %v6752_v59 }
 0xadd   :  { %10906 = vmatprep.subr.bf16.mxu0 %v16401_v7 }
 0xadf   :  { %10849 = vmatpush1.bf16.msra.mxu1 %v10848_v56 }
 0xae0   :  { %10851 = vmatprep.subr.bf16.mxu1 %v10850_v41 }
 0xae3   :  { %10853 = vmatpush1.bf16.msra.mxu1 %v10852_v8 }
 0xae4   :  { %10855 = vmatprep.subr.bf16.mxu1 %v10854_v3  ;;  %v8495_v3 = vld [vmem:[%s16317_s11 + $0xa10] sm:$0xff] }
 0xae5   :  { %v10870_v2 = vpack.c.bf16 %v8495_v3, %v8492_v21  ;;  %v6780_v21 = vld [vmem:[%s16318_s15 + $0xe0] sm:$0xff]  ;;  %v6781_v3 = vld [vmem:[%s16318_s15 + $0xe8] sm:$0xff] }
 0xae7   :  { %10857 = vmatpush1.bf16.msra.mxu1 %v10856_v35 }
 0xae8   :  { %10859 = vmatprep.subr.bf16.mxu1 %v10858_v43 }
 0xaeb   :  { %10861 = vmatpush1.bf16.msra.mxu1 %v10860_v15 }
 0xaec   :  { %10863 = vmatprep.subr.bf16.mxu1 %v10862_v51  ;;  %v6769_v51 = vld [vmem:[%s16318_s15 + $0x88] sm:$0xff] }
 0xaed   :  { %v10912_v27 = vpack.c.bf16 %v6769_v51, %v6768_v12 }
 0xaef   :  { %10865 = vmatpush1.bf16.msra.mxu1 %v10864_v42  ;;  %v6771_v42 = vld [vmem:[%s16318_s15 + $0x98] sm:$0xff] }
 0xaf0   :  { %10867 = vmatprep.subr.bf16.mxu1 %v10866_v32  ;;  %v10916_v26 = vpack.c.bf16 %v6771_v42, %v6770_v61  ;;  %v6772_v32 = vld [vmem:[%s16318_s15 + $0xa0] sm:$0xff] }
 0xb2d   :  { %v9025_v28 = vpop.f32.mrb[104].mxu0 }
 0xb2e   :  { %v9026_v30 = vpop.f32.mrb[105].mxu0 }
 0xb2f   :  { %v9027_v16 = vadd.f32 %v9026_v30, %v9025_v28  ;;  %v6773_v28 = vld [vmem:[%s16318_s15 + $0xa8] sm:$0xff]  ;;  %v6756_v30 = vld [vmem:[%s16318_s15 + $0x20] sm:$0xff] }
 0xb31   :  { %v9028_v13 = vpop.f32.mrb[106].mxu0 }
 0xb32   :  { %v9029_v54 = vpop.f32.mrb[107].mxu0 }
 0xb33   :  { %v9030_v53 = vadd.f32 %v9029_v54, %v9028_v13  ;;  %v6757_v13 = vld [vmem:[%s16318_s15 + $0x28] sm:$0xff] }
 0xb34   :  { %v10922_v54 = vpack.c.bf16 %v6757_v13, %v6756_v30 }
 0xb35   :  { %v9031_v56 = vpop.f32.mrb[108].mxu0 }
 0xb36   :  { %v9032_v33 = vpop.f32.mrb[109].mxu0 }
 0xb37   :  { %v9033_v37 = vadd.f32 %v9032_v33, %v9031_v56  ;;  %v6775_v56 = vld [vmem:[%s16318_s15 + $0xb8] sm:$0xff]  ;;  %v6758_v33 = vld [vmem:[%s16318_s15 + $0x30] sm:$0xff] }
 0xb59   :  { %v9073_v62 = vpop.f32.mrb[116].mxu0 }
 0xb5a   :  { %v9074_v36 = vpop.f32.mrb[117].mxu0 }
 0xb5b   :  { %v9075_v1 = vadd.f32 %v9074_v36, %v9073_v62  ;;  %v6759_v62 = vld [vmem:[%s16318_s15 + $0x38] sm:$0xff] }
 0xb5c   :  { %v10926_v36 = vpack.c.bf16 %v6759_v62, %v6758_v33 }
 0xb5d   :  { %v15615_v38 = vadd.f32 %v9075_v1, %v9027_v16  ;;  %v9076_v41 = vpop.f32.mrb[118].mxu0  ;;  %v10920_v16 = vpack.c.bf16 %v6773_v28, %v6772_v32  ;;  %v6776_v1 = vld [vmem:[%s16318_s15 + $0xc0] sm:$0xff] }
 0xb5e   :  { %v9077_v44 = vpop.f32.mrb[119].mxu0 }
 0xb5f   :  { %v9078_v57 = vadd.f32 %v9077_v44, %v9076_v41  ;;  %v6777_v41 = vld [vmem:[%s16318_s15 + $0xc8] sm:$0xff]  ;;  %v6760_v44 = vld [vmem:[%s16318_s15 + $0x40] sm:$0xff] }
 0xb61   :  { %v15617_v24 = vadd.f32 %v9078_v57, %v9030_v53  ;;  %v9079_v17 = vpop.f32.mrb[120].mxu0  ;;  %v6774_v53 = vld [vmem:[%s16318_s15 + $0xb0] sm:$0xff]  ;;  %v10928_v57 = vpack.c.bf16 %v6777_v41, %v6776_v1 }
 0xb62   :  { %v9080_v8 = vpop.f32.mrb[121].mxu0 }
 0xb63   :  { %v9081_v29 = vadd.f32 %v9080_v8, %v9079_v17  ;;  %v6761_v17 = vld [vmem:[%s16318_s15 + $0x48] sm:$0xff]  ;;  %v6778_v8 = vld [vmem:[%s16318_s15 + $0xd0] sm:$0xff] }
 0xb64   :  { %v10930_v22 = vpack.c.bf16 %v6761_v17, %v6760_v44 }
 0xb65   :  { %v15619_v48 = vadd.f32 %v9081_v29, %v9033_v37  ;;  %v10924_v37 = vpack.c.bf16 %v6775_v56, %v6774_v53  ;;  %v6779_v29 = vld [vmem:[%s16318_s15 + $0xd8] sm:$0xff] }
 0xb66   :  { %v10932_v25 = vpack.c.bf16 %v6779_v29, %v6778_v8  ;;  %v6784_v29 = vld [vmem:[%s16318_s15 + $0x100] sm:$0xff] }
 0xb71   :  { %v6200_v4 = vpop.f32.mrb[122].mxu0 }
 0xb72   :  { %v6202_v35 = vpop.f32.mrb[123].mxu0 }
 0xb73   :  { %6479 = vmatprep.mubr.f32.mxu1 %v6202_v35  ;;  %6645 = vmatprep.mubr.f32.mxu0 %v6202_v35  ;;  %v6782_v35 = vld [vmem:[%s16318_s15 + $0xf0] sm:$0xff] }
 0xb74   :  { %6480 = vmatmul.mubr.f32.vlgmr.msra.gmra.mrb[114].mxu1 %v6200_v4  ;;  %6646 = vmatmul.mubr.f32.vlgmr.msra.gmra.mrb[134].mxu0 %v6200_v4  ;;  %v10934_v4 = vpack.c.bf16 %v6763_v34, %v6762_v49 }
 0xb75   :  { %v6206_v43 = vpop.f32.mrb[124].mxu0  ;;  %10869 = vmatpush1.bf16.msra.mxu1 %v10868_v60  ;;  %10908 = vmatpush3.bf16.msra.mxu0 %v10907_v19  ;;  %v10936_v60 = vpack.c.bf16 %v6781_v3, %v6780_v21  ;;  %v6764_v19 = vld [vmem:[%s16318_s15 + $0x60] sm:$0xff] }
 0xb76   :  { %v6208_v39 = vpop.f32.mrb[125].mxu0  ;;  %10871 = vmatprep.subr.bf16.mxu1 %v10870_v2  ;;  %10909 = vmatprep.subr.bf16.mxu0 %v16401_v7  ;;  %v6783_v2 = vld [vmem:[%s16318_s15 + $0xf8] sm:$0xff]  ;;  %v10938_v40 = vpack.c.bf16 %v6765_v50, %v6764_v19  ;;  %v6786_v50 = vld [vmem:[%s16318_s15 + $0x110] sm:$0xff] }
 0xb77   :  { %6485 = vmatprep.mubr.f32.mxu1 %v6208_v39  ;;  %6650 = vmatprep.mubr.f32.mxu0 %v6208_v39  ;;  %v10940_v6 = vpack.c.bf16 %v6783_v2, %v6782_v35  ;;  %v6787_v35 = vld [vmem:[%s16318_s15 + $0x118] sm:$0xff] }
 0xb78   :  { %6486 = vmatmul.mubr.f32.gmra.mrb[116].mxu1 %v6206_v43  ;;  %6651 = vmatmul.mubr.f32.gmra.mrb[136].mxu0 %v6206_v43  ;;  %v6767_v43 = vld [vmem:[%s16318_s15 + $0x78] sm:$0xff]  ;;  %v15815_v2 = vpack.c.bf16 %v6787_v35, %v6786_v50 }
 0xb79   :  { %v6212_v18 = vpop.f32.mrb[126].mxu0  ;;  %10873 = vmatpush1.bf16.msra.mxu1 %v10872_v11  ;;  %10911 = vmatpush3.bf16.msra.mxu0 %v10910_v14  ;;  %v10942_v11 = vpack.c.bf16 %v6767_v43, %v6766_v55  ;;  %v6789_v55 = vld [vmem:[%s16318_s15 + $0x128] sm:$0xff] }
 0xb7a   :  { %v6214_v31 = vpop.f32.mrb[127].mxu0  ;;  %10913 = vmatprep.subr.bf16.mxu0 %v10912_v27  ;;  %10977 = vmatprep.subr.bf16.mxu1 %v10912_v27 }
 0xb7b   :  { %6491 = vmatprep.mubr.f32.mxu1 %v6214_v31  ;;  %6655 = vmatprep.mubr.f32.mxu0 %v6214_v31 }
 0xb7c   :  { %6492 = vmatmul.mubr.f32.gmra.mrb[118].mxu1 %v6212_v18  ;;  %6656 = vmatmul.mubr.f32.gmra.mrb[138].mxu0 %v6212_v18 }
 0xb7d   :  { %v6283_v52 = vpop.f32.mrb[128].mxu0  ;;  %6562 = vmatprep.mubr.f32.mxu1 %v16394_v5  ;;  %9662 = vmatprep.mubr.msk.f32.mxu0 %vm11315_vm0, %v16394_v5 }
 0xb7e   :  { %v9647_v46 = vpop.f32.mrb[129].mxu0 }
 0xb80   :  { %8497 = vmatmul.mubr.msk.f32.vlgmr.msra.gmra.mrb[114].mxu1 %vm71_vm1, %v6283_v52  ;;  %9663 = vmatmul.mubr.msk.f32.vlgmr.msra.gmra.mrb[110].mxu0 %vm71_vm1, %v6283_v52 }
 0xb81   :  { %v6288_v15 = vpop.f32.mrb[130].mxu0  ;;  %6568 = vmatprep.mubr.f32.mxu1 %v16394_v5  ;;  %9665 = vmatprep.mubr.msk.f32.mxu0 %vm11315_vm0, %v16394_v5 }
 0xb82   :  { %v9650_v58 = vpop.f32.mrb[131].mxu0  ;;  %10915 = vmatpush3.bf16.msra.mxu0 %v10914_v63  ;;  %10979 = vmatpush3.bf16.msra.mxu1 %v10914_v63 }
 0xb83   :  { %10917 = vmatprep.subr.bf16.mxu0 %v10916_v26  ;;  %10981 = vmatprep.subr.bf16.mxu1 %v10916_v26 }
 0xb84   :  { %8498 = vmatmul.mubr.msk.f32.gmra.mrb[116].mxu1 %vm71_vm1, %v6288_v15  ;;  %9666 = vmatmul.mubr.msk.f32.gmra.mrb[112].mxu0 %vm71_vm1, %v6288_v15 }
 0xb85   :  { %v6293_v10 = vpop.f32.mrb[132].mxu0  ;;  %6574 = vmatprep.mubr.f32.mxu1 %v16394_v5  ;;  %9668 = vmatprep.mubr.msk.f32.mxu0 %vm11315_vm0, %v16394_v5 }
 0xb86   :  { %v9653_v0 = vpop.f32.mrb[133].mxu0  ;;  %10919 = vmatpush3.bf16.msra.mxu0 %v10918_v23  ;;  %10983 = vmatpush3.bf16.msra.mxu1 %v10918_v23 }
 0xb87   :  { %10921 = vmatprep.subr.bf16.mxu0 %v10920_v16  ;;  %10985 = vmatprep.subr.bf16.mxu1 %v10920_v16 }
 0xb88   :  { %8499 = vmatmul.mubr.msk.f32.gmra.mrb[118].mxu1 %vm71_vm1, %v6293_v10  ;;  %9669 = vmatmul.mubr.msk.f32.gmra.mrb[114].mxu0 %vm71_vm1, %v6293_v10 }
 0xb8a   :  { %10923 = vmatpush3.bf16.msra.mxu0 %v10922_v54  ;;  %10987 = vmatpush3.bf16.msra.mxu1 %v10922_v54 }
 0xb8b   :  { %10925 = vmatprep.subr.bf16.mxu0 %v10924_v37  ;;  %10989 = vmatprep.subr.bf16.mxu1 %v10924_v37 }
 0xb8e   :  { %10927 = vmatpush3.bf16.msra.mxu0 %v10926_v36  ;;  %10991 = vmatpush3.bf16.msra.mxu1 %v10926_v36 }
 0xb8f   :  { %10929 = vmatprep.subr.bf16.mxu0 %v10928_v57  ;;  %10993 = vmatprep.subr.bf16.mxu1 %v10928_v57 }
 0xb92   :  { %10931 = vmatpush3.bf16.msra.mxu0 %v10930_v22  ;;  %10995 = vmatpush3.bf16.msra.mxu1 %v10930_v22  ;;  %v6785_v22 = vld [vmem:[%s16318_s15 + $0x108] sm:$0xff] }
 0xb93   :  { %10933 = vmatprep.subr.bf16.mxu0 %v10932_v25  ;;  %10997 = vmatprep.subr.bf16.mxu1 %v10932_v25 }
 0xb96   :  { %10935 = vmatpush3.bf16.msra.mxu0 %v10934_v4  ;;  %10999 = vmatpush3.bf16.msra.mxu1 %v10934_v4  ;;  %v15806_v4 = vpack.c.bf16 %v6785_v22, %v6784_v29  ;;  %v6804_v22 = vld [vmem:[%s16319_s16 + $0x40] sm:$0xff] }
 0xb97   :  { %10937 = vmatprep.subr.bf16.mxu0 %v10936_v60  ;;  %11001 = vmatprep.subr.bf16.mxu1 %v10936_v60 }
 0xb9a   :  { %10939 = vmatpush3.bf16.msra.mxu0 %v10938_v40  ;;  %11003 = vmatpush3.bf16.msra.mxu1 %v10938_v40 }
 0xb9b   :  { %10941 = vmatprep.subr.bf16.mxu0 %v10940_v6  ;;  %11005 = vmatprep.subr.bf16.mxu1 %v10940_v6  ;;  %v6788_v6 = vld [vmem:[%s16318_s15 + $0x120] sm:$0xff] }
 0xb9c   :  { %v15827_v43 = vpack.c.bf16 %v6789_v55, %v6788_v6 }
 0xb9e   :  { %10943 = vmatpush3.bf16.msra.mxu0 %v10942_v11  ;;  %11007 = vmatpush3.bf16.msra.mxu1 %v10942_v11 }
 0xb9f   :  { %10944 = vmatprep.subr.bf16.mxu0 %v16401_v7  ;;  %11034 = vmatprep.subr.bf16.mxu1 %v16401_v7 }
 0xc47   :  { %v9127_v14 = vpop.f32.mrb[134].mxu0 }
 0xc48   :  { %v9128_v39 = vpop.f32.mrb[135].mxu0 }
 0xc49   :  { %v9129_v18 = vadd.f32 %v9128_v39, %v9127_v14  ;;  %v6790_v14 = vld [vmem:[%s16318_s15 + $0x130] sm:$0xff]  ;;  %v6791_v39 = vld [vmem:[%s16318_s15 + $0x138] sm:$0xff] }
 0xc4b   :  { %v9130_v31 = vpop.f32.mrb[136].mxu0  ;;  %v11151_v52 = vadd.f32 %v15615_v38, %v9129_v18  ;;  %v15837_v18 = vpack.c.bf16 %v6791_v39, %v6790_v14 }
 0xc4c   :  { %v9131_v46 = vpop.f32.mrb[137].mxu0 }
 0xc4d   :  { %v9132_v15 = vadd.f32 %v9131_v46, %v9130_v31  ;;  %v6793_v46 = vld [vmem:[%s16318_s15 + $0x148] sm:$0xff] }
 0xc4f   :  { %v9133_v58 = vpop.f32.mrb[138].mxu0  ;;  %v11154_v10 = vadd.f32 %v15617_v24, %v9132_v15 }
 0xc50   :  { %v9134_v0 = vpop.f32.mrb[139].mxu0 }
 0xc51   :  { %v9135_v12 = vadd.f32 %v9134_v0, %v9133_v58  ;;  %v6795_v0 = vld [vmem:[%s16318_s15 + $0x158] sm:$0xff] }
 0xc53   :  { %v15767_v51 = vpop.f32.mrb[114].mxu1  ;;  %v6727_v59 = vpop.f32.mrb[110].mxu0  ;;  %v11157_v27 = vadd.f32 %v15619_v48, %v9135_v12 }
 0xc54   :  { %v15770_v45 = vadd.f32 %v11151_v52, %v6727_v59  ;;  %v15772_v63 = vpop.f32.mrb[115].mxu1  ;;  %v9664_v61 = vpop.f32.mrb[111].mxu0  ;;  %v6792_v52 = vld [vmem:[%s16318_s15 + $0x140] sm:$0xff] }
 0xc55   :  { %v10957_v15 = vpack.c.bf16 %v6793_v46, %v6792_v52  ;;  %v6797_v61 = vld [vmem:[%s16319_s16 + $0x8] sm:$0xff] }
 0xc56   :  { %v6828_v25 = vsel %vm6827_vm9, %v15770_v45, 0.0 }
 0xc57   :  { %v15774_v42 = vpop.f32.mrb[116].mxu1  ;;  %v6732_v38 = vpop.f32.mrb[112].mxu0 }
 0xc58   :  { %v6808_v9 = vadd.f32 %v15774_v42, %v15767_v51  ;;  %v15778_v26 = vadd.f32 %v11154_v10, %v6732_v38  ;;  %v15780_v24 = vpop.f32.mrb[117].mxu1  ;;  %v9667_v47 = vpop.f32.mrb[113].mxu0  ;;  %v6794_v10 = vld [vmem:[%s16318_s15 + $0x150] sm:$0xff]  ;;  %v6800_v38 = vld [vmem:[%s16319_s16 + $0x20] sm:$0xff] }
 0xc59   :  { %v6818_v23 = vadd.f32 %v15780_v24, %v15772_v63  ;;  %v10960_v12 = vpack.c.bf16 %v6795_v0, %v6794_v10  ;;  %v15866_v47 = vpack.c.bf16 %v6800_v38, %v6797_v61 }
 0xc5a   :  { %v6829_v57 = vsel %vm6827_vm9, %v15778_v26, 0.0 }
 0xc5b   :  { %v15784_v48 = vpop.f32.mrb[118].mxu1  ;;  %v6737_v32 = vpop.f32.mrb[114].mxu0  ;;  %v6830_v21 = vadd.f32 %v6829_v57, %v6828_v25  ;;  %v6807_v25 = vld [vmem:[%s16319_s16 + $0x58] sm:$0xff] }
 0xc5c   :  { %v6810_v28 = vsel %vm6809_vm8, %v15784_v48, 0.0  ;;  %v15788_v30 = vadd.f32 %v11157_v27, %v6737_v32  ;;  %v15790_v16 = vpop.f32.mrb[119].mxu1  ;;  %v9670_v13 = vpop.f32.mrb[115].mxu0 }
 0xc5d   :  { %v6811_v54 = vadd.f32 %v6810_v28, %v6808_v9  ;;  %v6819_v53 = vsel %vm6809_vm8, %v15790_v16, 0.0  ;;  %v6796_v9 = vld [vmem:[%s16319_s16] sm:$0xff]  ;;  %v6803_v28 = vld [vmem:[%s16319_s16 + $0x38] sm:$0xff]  ;;  %v6806_v13 = vld [vmem:[%s16319_s16 + $0x50] sm:$0xff] }
 0xc5e   :  { %v6820_v56 = vadd.f32 %v6819_v53, %v6818_v23  ;;  %v6832_v49 = vsel %vm6831_vm10, %v15788_v30, 0.0  ;;  %v6799_v23 = vld [vmem:[%s16319_s16 + $0x18] sm:$0xff]  ;;  %v15884_v53 = vpack.c.bf16 %v6806_v13, %v6803_v28 }
 0xc5f   :  { %v6812_v33 = vrot.slane %v6811_v54, 4  ;;  %v6833_v19 = vadd.f32 %v6832_v49, %v6830_v21  ;;  %v15871_v32 = vpack.c.bf16 %v6799_v23, %v6796_v9  ;;  %v15913_v49 = vpack.c.bf16 %v6807_v25, %v6804_v22 }
 0xc60   :  { %v6821_v37 = vrot.slane %v6820_v56, 4 }
 0xc61   :  { %v6813_v62 = vadd.f32 %v6812_v33, %v6811_v54  ;;  %v6834_v40 = vrot.slane %v6833_v19, 4  ;;  %v6802_v54 = vld [vmem:[%s16319_s16 + $0x30] sm:$0xff] }
 0xc62   :  { %v6822_v36 = vadd.f32 %v6821_v37, %v6820_v56  ;;  %v6805_v56 = vld [vmem:[%s16319_s16 + $0x48] sm:$0xff] }
 0xc63   :  { %v6814_v1 = vrot.slane %v6813_v62, 2  ;;  %v6835_v11 = vadd.f32 %v6834_v40, %v6833_v19  ;;  %v15889_v33 = vpack.c.bf16 %v6805_v56, %v6802_v54 }
 0xc64   :  { %v6823_v41 = vrot.slane %v6822_v36, 2 }
 0xc65   :  { %v6815_v44 = vadd.f32 %v6814_v1, %v6813_v62  ;;  %v6836_v31 = vrot.slane %v6835_v11, 2  ;;  %v6798_v1 = vld [vmem:[%s16319_s16 + $0x10] sm:$0xff] }
 0xc66   :  { %v6824_v17 = vadd.f32 %v6823_v41, %v6822_v36  ;;  %v6801_v41 = vld [vmem:[%s16319_s16 + $0x28] sm:$0xff] }
 0xc67   :  { %v6816_v8 = vrot.slane %v6815_v44, 1  ;;  %v6837_v58 = vadd.f32 %v6836_v31, %v6835_v11 }
 0xc68   :  { %v6825_v34 = vrot.slane %v6824_v17, 1 }
 0xc69   :  { %v6817_v60 = vadd.f32 %v6816_v8, %v6815_v44  ;;  %v6838_v59 = vrot.slane %v6837_v58, 1  ;;  %v15900_v8 = vpack.c.bf16 %v6801_v41, %v6798_v1 }
 0xc6a   :  { %v6826_v3 = vadd.f32 %v6825_v34, %v6824_v17 }
 0xc6b   :  { %v6839_v27 = vadd.f32 %v6838_v59, %v6837_v58 }
 0xc6c   :  { %6907 = vmatprep.mubr.f32.mxu0 %v6826_v3 }
 0xc6d   :  { %6908 = vmatmul.mubr.f32.vlgmr.msra.gmra.mrb[140].mxu0 %v6817_v60 }
 0xc6e   :  { %10946 = vmatpush3.bf16.msra.mxu0 %v15806_v4  ;;  %9695 = vmatprep.mubr.msk.f32.mxu0 %vm11315_vm0, %v16394_v5 }
 0xc6f   :  { %10947 = vmatprep.subr.bf16.mxu0 %v16401_v7 }
 0xc72   :  { %10949 = vmatpush3.bf16.msra.mxu0 %v15815_v2 }
 0xc73   :  { %10950 = vmatprep.subr.bf16.mxu0 %v16401_v7 }
 0xc76   :  { %10952 = vmatpush3.bf16.msra.mxu0 %v15827_v43 }
 0xc77   :  { %10953 = vmatprep.subr.bf16.mxu0 %v16401_v7 }
 0xc7a   :  { %10955 = vmatpush3.bf16.msra.mxu0 %v15837_v18 }
 0xc7b   :  { %10956 = vmatprep.subr.bf16.mxu0 %v16401_v7 }
 0xc7e   :  { %10958 = vmatpush3.bf16.msra.mxu0 %v10957_v15 }
 0xc7f   :  { %10959 = vmatprep.subr.bf16.mxu0 %v16401_v7 }
 0xc82   :  { %10961 = vmatpush3.bf16.msra.mxu0 %v10960_v12 }
 0xc83   :  { %10963 = vmatprep.subr.bf16.mxu0 %v15866_v47 }
 0xc85   :  { %9696 = vmatmul.mubr.msk.f32.vlgmr.msra.gmra.mrb[142].mxu0 %vm6827_vm9, %v6839_v27 }
 0xc86   :  { %7051 = vmatprep.mubr.f32.mxu0 %v16394_v5  ;;  %10965 = vmatpush1.bf16.msra.mxu0 %v15871_v32 }
 0xc87   :  { %10967 = vmatprep.subr.bf16.mxu0 %v15884_v53 }
 0xc8a   :  { %10969 = vmatpush1.bf16.msra.mxu0 %v15889_v33 }
 0xc8b   :  { %10970 = vmatprep.subr.bf16.mxu0 %v16401_v7 }
 0xd40   :  { %v9175_v37 = vpop.f32.mrb[140].mxu0 }
 0xd41   :  { %v9176_v62 = vpop.f32.mrb[141].mxu0 }
 0xd42   :  { %v9177_v36 = vadd.f32 %v9176_v62, %v9175_v37 }
 0xd58   :  { %v6979_v44 = vpop.f32.mrb[142].mxu0 }
 0xd59   :  { %v6980_v57 = vadd.f32 %v9177_v36, %v6979_v44  ;;  %v9697_v17 = vpop.f32.mrb[143].mxu0 }
 0xd5b   :  { %v15902_v29 = vmul.f32 0.004132231, %v6980_v57 }
 0xd5d   :  { %8504 = vmatmul.mubr.msk.f32.vlgmr.msra.gmra.mrb[144].mxu0 %vm71_vm1, %v15902_v29 }
 0xd5e   :  { %10972 = vmatpush3.bf16.msra.mxu0 %v15900_v8  ;;  %9706 = vmatprep.mubr.msk.f32.mxu0 %vm11315_vm0, %v16394_v5 }
 0xd5f   :  { %10973 = vmatprep.subr.bf16.mxu0 %v16401_v7 }
 0xd62   :  { %10975 = vmatpush3.bf16.msra.mxu0 %v15913_v49 }
 0xd63   :  { %11008 = vmatprep.subr.bf16.mxu0 %v16401_v7 }
 0xd65   :  { %9707 = vmatmul.mubr.msk.f32.vlgmr.msra.gmra.mrb[146].mxu0 %vm71_vm1, %v15902_v29 }
 0xd66   :  { %11010 = vmatpush3.bf16.msra.mxu0 %v15806_v4  ;;  %9733 = vmatprep.mubr.msk.f32.mxu0 %vm11315_vm0, %v16394_v5 }
 0xd67   :  { %11011 = vmatprep.subr.bf16.mxu0 %v16401_v7 }
 0xd6a   :  { %11013 = vmatpush3.bf16.msra.mxu0 %v15815_v2 }
 0xd6b   :  { %11014 = vmatprep.subr.bf16.mxu0 %v16401_v7 }
 0xd6e   :  { %11016 = vmatpush3.bf16.msra.mxu0 %v15827_v43 }
 0xd6f   :  { %11017 = vmatprep.subr.bf16.mxu0 %v16401_v7 }
 0xd72   :  { %11019 = vmatpush3.bf16.msra.mxu0 %v15837_v18 }
 0xd73   :  { %11020 = vmatprep.subr.bf16.mxu0 %v16401_v7 }
 0xd76   :  { %11022 = vmatpush3.bf16.msra.mxu0 %v10957_v15 }
 0xd77   :  { %11023 = vmatprep.subr.bf16.mxu0 %v16401_v7 }
 0xd7a   :  { %11025 = vmatpush3.bf16.msra.mxu0 %v10960_v12 }
 0xd7b   :  { %11027 = vmatprep.subr.bf16.mxu0 %v15866_v47 }
 0xe30   :  { %v7053_v34 = vpop.f32.mrb[144].mxu0 }
 0xe31   :  { %v7131_v21 = vrot.slane %v7053_v34, %v12504_v20  ;;  %v7055_v3 = vpop.f32.mrb[145].mxu0 }
 0xe32   :  { %v7135_v4 = vrot.slane %v7055_v3, %v12504_v20 }
 0xe33   :  { %v7140_v60 = vsub.f32 %v15767_v51, %v7131_v21  ;;  %v7143_v19 = vsub.f32 %v15774_v42, %v7131_v21  ;;  %v7146_v50 = vsub.f32 %v15784_v48, %v7131_v21 }
 0xe34   :  { %v7141_v35 = vsub.f32 %v15772_v63, %v7135_v4  ;;  %v7144_v2 = vsub.f32 %v15780_v24, %v7135_v4  ;;  %v7147_v40 = vsub.f32 %v15790_v16, %v7135_v4 }
 0xe35   :  { %v7149_v6 = vmul.f32 %v7140_v60, %v7140_v60  ;;  %v7152_v55 = vmul.f32 %v7143_v19, %v7143_v19  ;;  %v7155_v43 = vmul.f32 %v7146_v50, %v7146_v50 }
 0xe36   :  { %v7150_v11 = vmul.f32 %v7141_v35, %v7141_v35  ;;  %v7153_v14 = vmul.f32 %v7144_v2, %v7144_v2  ;;  %v7156_v39 = vmul.f32 %v7147_v40, %v7147_v40 }
 0xe37   :  { %v7158_v18 = vadd.f32 %v7152_v55, %v7149_v6  ;;  %v7159_v31 = vsel %vm6809_vm8, %v7155_v43, 0.0 }
 0xe38   :  { %v7167_v52 = vadd.f32 %v7153_v14, %v7150_v11  ;;  %v7168_v46 = vsel %vm6809_vm8, %v7156_v39, 0.0  ;;  %v7124_v15 = vpop.f32.mrb[146].mxu0 }
 0xe39   :  { %v7160_v58 = vadd.f32 %v7159_v31, %v7158_v18  ;;  %v7139_v10 = vrot.slane %v7124_v15, %v12504_v20  ;;  %v9708_v0 = vpop.f32.mrb[147].mxu0 }
 0xe3a   :  { %v7169_v12 = vadd.f32 %v7168_v46, %v7167_v52  ;;  %v6750_v52 = vld [vmem:[%s16320_s12] sm:$0x1] }
 0xe3b   :  { %v7161_v59 = vrot.slane %v7160_v58, 4  ;;  %v7142_v27 = vsub.f32 %v15770_v45, %v7139_v10  ;;  %v7145_v61 = vsub.f32 %v15778_v26, %v7139_v10  ;;  %v7148_v38 = vsub.f32 %v15788_v30, %v7139_v10 }
 0xe3c   :  { %v7170_v9 = vrot.slane %v7169_v12, 4 }
 0xe3d   :  { %v7162_v23 = vadd.f32 %v7161_v59, %v7160_v58  ;;  %v7151_v28 = vmul.f32 %v7142_v27, %v7142_v27  ;;  %v7154_v13 = vmul.f32 %v7145_v61, %v7145_v61  ;;  %v7157_v54 = vmul.f32 %v7148_v38, %v7148_v38  ;;  %v7699_v58 = vld [vmem:[%s16321_s17 + $0x18] sm:$0xff]  ;;  %v7698_v59 = vld [vmem:[%s16321_s17 + $0x10] sm:$0xff]  ;;  %v7700_v61 = vld [vmem:[%s16321_s17 + $0x20] sm:$0xff] }
 0xe3e   :  { %v7171_v56 = vadd.f32 %v7170_v9, %v7169_v12  ;;  %v7696_v12 = vld [vmem:[%s16321_s17] sm:$0xff]  ;;  %v7702_v38 = vld [vmem:[%s16321_s17 + $0x30] sm:$0xff]  ;;  %v7705_v9 = vld [vmem:[%s16321_s17 + $0x48] sm:$0xff] }
 0xe3f   :  { %v7163_v37 = vrot.slane %v7162_v23, 2  ;;  %v7176_v62 = vsel %vm6827_vm9, %v7151_v28, 0.0  ;;  %v7177_v36 = vsel %vm6827_vm9, %v7154_v13, 0.0  ;;  %v7179_v57 = vsel %vm6831_vm10, %v7157_v54, 0.0  ;;  %v7704_v28 = vld [vmem:[%s16321_s17 + $0x40] sm:$0xff]  ;;  %v7706_v13 = vld [vmem:[%s16321_s17 + $0x50] sm:$0xff] }
 0xe40   :  { %v7178_v1 = vadd.f32 %v7177_v36, %v7176_v62  ;;  %v7172_v41 = vrot.slane %v7171_v56, 2  ;;  %v7709_v54 = vld [vmem:[%s16321_s17 + $0x68] sm:$0xff]  ;;  %v7708_v36 = vld [vmem:[%s16321_s17 + $0x60] sm:$0xff] }
 0xe41   :  { %v7164_v44 = vadd.f32 %v7163_v37, %v7162_v23  ;;  %v11064_v37 = vpack.c.bf16 %v7706_v13, %v7704_v28  ;;  %v7740_v13 = vld [vmem:[%s16321_s17 + $0x160] sm:$0xff] }
 0xe42   :  { %v7180_v17 = vadd.f32 %v7179_v57, %v7178_v1  ;;  %v7173_v22 = vadd.f32 %v7172_v41, %v7171_v56  ;;  %v7711_v56 = vld [vmem:[%s16321_s17 + $0x78] sm:$0xff]  ;;  %v7710_v1 = vld [vmem:[%s16321_s17 + $0x70] sm:$0xff]  ;;  %v7713_v41 = vld [vmem:[%s16321_s17 + $0x88] sm:$0xff] }
 0xe43   :  { %v7165_v25 = vrot.slane %v7164_v44, 1  ;;  %v11066_v62 = vpack.c.bf16 %v7711_v56, %v7709_v54  ;;  %v11068_v57 = vpack.c.bf16 %v7710_v1, %v7708_v36  ;;  %v7742_v54 = vld [vmem:[%s16321_s17 + $0x170] sm:$0xff]  ;;  %v7744_v1 = vld [vmem:[%s16321_s17 + $0x180] sm:$0xff] }
 0xe44   :  { %v7181_v34 = vrot.slane %v7180_v17, 4  ;;  %v7174_v21 = vrot.slane %v7173_v22, 1  ;;  %v11100_v56 = vpack.c.bf16 %v7742_v54, %v7740_v13  ;;  %v7760_v54 = vld [vmem:[%s16321_s17 + $0x200] sm:$0xff] }
 0xe45   :  { %v7166_v60 = vadd.f32 %v7165_v25, %v7164_v44  ;;  %v7715_v44 = vld [vmem:[%s16321_s17 + $0x98] sm:$0xff]  ;;  %v7714_v25 = vld [vmem:[%s16321_s17 + $0x90] sm:$0xff] }
 0xe46   :  { %v7182_v3 = vadd.f32 %v7181_v34, %v7180_v17  ;;  %v7175_v4 = vadd.f32 %v7174_v21, %v7173_v22  ;;  %v11070_v17 = vpack.c.bf16 %v7715_v44, %v7713_v41  ;;  %v7712_v22 = vld [vmem:[%s16321_s17 + $0x80] sm:$0xff]  ;;  %v7717_v34 = vld [vmem:[%s16321_s17 + $0xa8] sm:$0xff]  ;;  %v7719_v21 = vld [vmem:[%s16321_s17 + $0xb8] sm:$0xff] }
 0xe47   :  { %v7746_v41 = vld [vmem:[%s16321_s17 + $0x190] sm:$0xff]  ;;  %v7749_v44 = vld [vmem:[%s16321_s17 + $0x1a8] sm:$0xff] }
 0xe48   :  { %v7183_v19 = vrot.slane %v7182_v3, 2  ;;  %7254 = vmatprep.mubr.f32.mxu1 %v7175_v4  ;;  %v11074_v4 = vpack.c.bf16 %v7719_v21, %v7717_v34 }
 0xe49   :  { %7255 = vmatmul.mubr.f32.vlgmr.msra.gmra.mrb[120].mxu1 %v7166_v60  ;;  %v7716_v60 = vld [vmem:[%s16321_s17 + $0xa0] sm:$0xff] }
 0xe4a   :  { %v7184_v50 = vadd.f32 %v7183_v19, %v7182_v3  ;;  %11036 = vmatpush3.bf16.msra.mxu1 %v15900_v8  ;;  %9744 = vmatprep.mubr.msk.f32.mxu1 %vm11315_vm0, %v16394_v5  ;;  %v11072_v3 = vpack.c.bf16 %v7714_v25, %v7712_v22  ;;  %v7718_v19 = vld [vmem:[%s16321_s17 + $0xb0] sm:$0xff]  ;;  %v7748_v22 = vld [vmem:[%s16321_s17 + $0x1a0] sm:$0xff] }
 0xe4b   :  { %11037 = vmatprep.subr.bf16.mxu1 %v16401_v7  ;;  %v7750_v25 = vld [vmem:[%s16321_s17 + $0x1b0] sm:$0xff] }
 0xe4c   :  { %v7185_v35 = vrot.slane %v7184_v50, 1  ;;  %v11108_v21 = vpack.c.bf16 %v7750_v25, %v7748_v22 }
 0xe4e   :  { %v7186_v2 = vadd.f32 %v7185_v35, %v7184_v50  ;;  %11039 = vmatpush3.bf16.msra.mxu1 %v15913_v49  ;;  %v7721_v50 = vld [vmem:[%s16321_s17 + $0xc8] sm:$0xff]  ;;  %v7723_v35 = vld [vmem:[%s16321_s17 + $0xd8] sm:$0xff] }
 0xe4f   :  { %11048 = vmatprep.subr.bf16.mxu1 %v16401_v7 }
 0xe50   :  { %9734 = vmatmul.mubr.msk.f32.vlgmr.msra.gmra.mrb[148].mxu0 %vm6827_vm9, %v7186_v2  ;;  %v11076_v2 = vpack.c.bf16 %v7718_v19, %v7716_v60  ;;  %v7752_v60 = vld [vmem:[%s16321_s17 + $0x1c0] sm:$0xff] }
 0xe51   :  { %11029 = vmatpush1.bf16.msra.mxu0 %v15871_v32  ;;  %7404 = vmatprep.mubr.f32.mxu0 %v16394_v5 }
 0xe52   :  { %11031 = vmatprep.subr.bf16.mxu0 %v15884_v53 }
 0xe55   :  { %11033 = vmatpush1.bf16.msra.mxu0 %v15889_v33 }
 0xe56   :  { %11041 = vmatprep.subr.bf16.mxu0 %v15866_v47  ;;  %v7697_v47 = vld [vmem:[%s16321_s17 + $0x8] sm:$0xff] }
 0xe57   :  { %v11054_v0 = vpack.c.bf16 %v7699_v58, %v7697_v47  ;;  %v7728_v58 = vld [vmem:[%s16321_s17 + $0x100] sm:$0xff] }
 0xf1c   :  { %v9228_v40 = vpop.f32.mrb[120].mxu1 }
 0xf1d   :  { %v9229_v6 = vpop.f32.mrb[121].mxu1 }
 0xf1e   :  { %v9230_v55 = vadd.f32 %v9229_v6, %v9228_v40  ;;  %v11078_v40 = vpack.c.bf16 %v7723_v35, %v7721_v50  ;;  %v7720_v6 = vld [vmem:[%s16321_s17 + $0xc0] sm:$0xff]  ;;  %v7754_v50 = vld [vmem:[%s16321_s17 + $0x1d0] sm:$0xff]  ;;  %v7757_v35 = vld [vmem:[%s16321_s17 + $0x1e8] sm:$0xff] }
 0xf23   :  { %v7326_v43 = vpop.f32.mrb[148].mxu0 }
 0xf24   :  { %v7327_v11 = vadd.f32 %v9230_v55, %v7326_v43  ;;  %v9735_v14 = vpop.f32.mrb[149].mxu0  ;;  %v7722_v55 = vld [vmem:[%s16321_s17 + $0xd0] sm:$0xff]  ;;  %v7725_v43 = vld [vmem:[%s16321_s17 + $0xe8] sm:$0xff] }
 0xf25   :  { %v11080_v14 = vpack.c.bf16 %v7722_v55, %v7720_v6  ;;  %v7756_v55 = vld [vmem:[%s16321_s17 + $0x1e0] sm:$0xff] }
 0xf26   :  { %v7330_v39 = vmul.f32 0.004132231, %v7327_v11  ;;  %v7727_v11 = vld [vmem:[%s16321_s17 + $0xf8] sm:$0xff] }
 0xf28   :  { %v7331_v18 = vmax.f32 %v7330_v39, 0.0  ;;  %v11082_v39 = vpack.c.bf16 %v7727_v11, %v7725_v43  ;;  %v7758_v43 = vld [vmem:[%s16321_s17 + $0x1f0] sm:$0xff] }
 0xf29   :  { %v11116_v11 = vpack.c.bf16 %v7758_v43, %v7756_v55  ;;  %v7775_v55 = vld [vmem:[%s16321_s17 + $0x278] sm:$0xff] }
 0xf2a   :  { %v7332_v31 = vadd.f32 1e-05, %v7331_v18  ;;  %v7724_v18 = vld [vmem:[%s16321_s17 + $0xe0] sm:$0xff] }
 0xf2c   :  { %11312 = vrsqrt.f32 %v7332_v31  ;;  %v7726_v31 = vld [vmem:[%s16321_s17 + $0xf0] sm:$0xff] }
 0xf36   :  { %v11313_v46 = vpop.eup %11312 }
 0xf37   :  { %v7334_v15 = vmul.f32 %v11313_v46, %v6750_v52  ;;  %v7729_v52 = vld [vmem:[%s16321_s17 + $0x108] sm:$0xff]  ;;  %v7731_v46 = vld [vmem:[%s16321_s17 + $0x118] sm:$0xff] }
 0xf38   :  { %v11086_v47 = vpack.c.bf16 %v7731_v46, %v7729_v52 }
 0xf39   :  { %8507 = vmatmul.mubr.msk.f32.vlgmr.msra.gmra.mrb[150].mxu0 %vm71_vm1, %v7334_v15  ;;  %9745 = vmatmul.mubr.msk.f32.vlgmr.msra.gmra.mrb[122].mxu1 %vm71_vm1, %v7334_v15  ;;  %v7335_v10 = vmul.f32 %v7334_v15, %v15902_v29  ;;  %v11084_v15 = vpack.c.bf16 %v7726_v31, %v7724_v18 }
 0xf3a   :  { %11043 = vmatpush1.bf16.msra.mxu0 %v15871_v32  ;;  %11050 = vmatpush3.bf16.msra.mxu1 %v15900_v8  ;;  %v7701_v32 = vld [vmem:[%s16321_s17 + $0x28] sm:$0xff]  ;;  %v11056_v8 = vpack.c.bf16 %v7698_v59, %v7696_v12  ;;  %v7735_v12 = vld [vmem:[%s16321_s17 + $0x138] sm:$0xff] }
 0xf3b   :  { %11045 = vmatprep.subr.bf16.mxu0 %v15884_v53  ;;  %11051 = vmatprep.subr.bf16.mxu1 %v16401_v7  ;;  %v6751_v7 = vld [vmem:[%s16322_s13] sm:$0x1]  ;;  %v7703_v53 = vld [vmem:[%s16321_s17 + $0x38] sm:$0xff] }
 0xf3c   :  { %7548 = vmatprep.mubr.f32.mxu0 %v16394_v5  ;;  %9755 = vmatprep.mubr.msk.f32.mxu1 %vm11315_vm0, %v16394_v5  ;;  %v7336_v29 = vsub.f32 %v6751_v7, %v7335_v10  ;;  %v11058_v27 = vpack.c.bf16 %v7703_v53, %v7701_v32  ;;  %v7730_v10 = vld [vmem:[%s16321_s17 + $0x110] sm:$0xff]  ;;  %v7732_v32 = vld [vmem:[%s16321_s17 + $0x120] sm:$0xff] }
 0xf3d   :  { %v11088_v59 = vpack.c.bf16 %v7730_v10, %v7728_v58  ;;  %v7734_v53 = vld [vmem:[%s16321_s17 + $0x130] sm:$0xff] }
 0xf3e   :  { %11047 = vmatpush1.bf16.msra.mxu0 %v15889_v33  ;;  %11053 = vmatpush3.bf16.msra.mxu1 %v15913_v49  ;;  %v7707_v33 = vld [vmem:[%s16321_s17 + $0x58] sm:$0xff]  ;;  %v11060_v49 = vpack.c.bf16 %v7702_v38, %v7700_v61  ;;  %v7736_v38 = vld [vmem:[%s16321_s17 + $0x140] sm:$0xff] }
 0xf3f   :  { %11055 = vmatprep.subr.bf16.mxu0 %v11054_v0  ;;  %v11062_v23 = vpack.c.bf16 %v7707_v33, %v7705_v9  ;;  %v7733_v0 = vld [vmem:[%s16321_s17 + $0x128] sm:$0xff]  ;;  %v7738_v9 = vld [vmem:[%s16321_s17 + $0x150] sm:$0xff] }
 0xf40   :  { %v11090_v7 = vpack.c.bf16 %v7735_v12, %v7733_v0  ;;  %v7741_v33 = vld [vmem:[%s16321_s17 + $0x168] sm:$0xff] }
 0xf41   :  { %8509 = vmatmul.mubr.msk.f32.vlgmr.msra.gmra.mrb[152].mxu0 %vm71_vm1, %v7336_v29  ;;  %9756 = vmatmul.mubr.msk.f32.vlgmr.msra.gmra.mrb[124].mxu1 %vm71_vm1, %v7336_v29  ;;  %v7739_v29 = vld [vmem:[%s16321_s17 + $0x158] sm:$0xff] }
 0xf42   :  { %11057 = vmatpush1.bf16.msra.mxu0 %v11056_v8  ;;  %8036 = vmatprep.mubr.f32.mxu1 %v16394_v5  ;;  %v7737_v8 = vld [vmem:[%s16321_s17 + $0x148] sm:$0xff] }
 0xf43   :  { %11059 = vmatprep.subr.bf16.mxu0 %v11058_v27  ;;  %v11092_v27 = vpack.c.bf16 %v7734_v53, %v7732_v32  ;;  %v11094_v61 = vpack.c.bf16 %v7739_v29, %v7737_v8 }
 0xf46   :  { %11061 = vmatpush1.bf16.msra.mxu0 %v11060_v49  ;;  %v7743_v49 = vld [vmem:[%s16321_s17 + $0x178] sm:$0xff] }
 0xf47   :  { %11063 = vmatprep.subr.bf16.mxu0 %v11062_v23  ;;  %v11096_v23 = vpack.c.bf16 %v7738_v9, %v7736_v38  ;;  %v11098_v28 = vpack.c.bf16 %v7743_v49, %v7741_v33 }
 0xf4a   :  { %11065 = vmatpush1.bf16.msra.mxu0 %v11064_v37  ;;  %v7745_v37 = vld [vmem:[%s16321_s17 + $0x188] sm:$0xff] }
 0xf4b   :  { %11067 = vmatprep.subr.bf16.mxu0 %v11066_v62  ;;  %v7747_v62 = vld [vmem:[%s16321_s17 + $0x198] sm:$0xff] }
 0xf4c   :  { %v11102_v36 = vpack.c.bf16 %v7747_v62, %v7745_v37 }
 0xf4e   :  { %11069 = vmatpush1.bf16.msra.mxu0 %v11068_v57  ;;  %v11104_v57 = vpack.c.bf16 %v7746_v41, %v7744_v1 }
 0xf4f   :  { %11071 = vmatprep.subr.bf16.mxu0 %v11070_v17  ;;  %v7751_v17 = vld [vmem:[%s16321_s17 + $0x1b8] sm:$0xff] }
 0xf50   :  { %v11106_v34 = vpack.c.bf16 %v7751_v17, %v7749_v44  ;;  %v7766_v17 = vld [vmem:[%s16321_s17 + $0x230] sm:$0xff] }
 0xf52   :  { %11073 = vmatpush1.bf16.msra.mxu0 %v11072_v3  ;;  %v7753_v3 = vld [vmem:[%s16321_s17 + $0x1c8] sm:$0xff] }
 0xf53   :  { %11075 = vmatprep.subr.bf16.mxu0 %v11074_v4  ;;  %v7755_v4 = vld [vmem:[%s16321_s17 + $0x1d8] sm:$0xff] }
 0xf54   :  { %v11110_v19 = vpack.c.bf16 %v7755_v4, %v7753_v3 }
 0xf56   :  { %11077 = vmatpush1.bf16.msra.mxu0 %v11076_v2  ;;  %v7759_v2 = vld [vmem:[%s16321_s17 + $0x1f8] sm:$0xff] }
 0xf57   :  { %11079 = vmatprep.subr.bf16.mxu0 %v11078_v40  ;;  %v11112_v40 = vpack.c.bf16 %v7754_v50, %v7752_v60  ;;  %v11114_v6 = vpack.c.bf16 %v7759_v2, %v7757_v35  ;;  %v7768_v50 = vld [vmem:[%s16321_s17 + $0x240] sm:$0xff]  ;;  %v7770_v35 = vld [vmem:[%s16321_s17 + $0x250] sm:$0xff] }
 0xf5a   :  { %11081 = vmatpush1.bf16.msra.mxu0 %v11080_v14  ;;  %v7761_v14 = vld [vmem:[%s16321_s17 + $0x208] sm:$0xff] }
 0xf5b   :  { %11083 = vmatprep.subr.bf16.mxu0 %v11082_v39  ;;  %v7763_v39 = vld [vmem:[%s16321_s17 + $0x218] sm:$0xff] }
 0xf5c   :  { %v11118_v18 = vpack.c.bf16 %v7763_v39, %v7761_v14  ;;  %v7772_v39 = vld [vmem:[%s16321_s17 + $0x260] sm:$0xff] }
 0xf5e   :  { %11085 = vmatpush1.bf16.msra.mxu0 %v11084_v15 }
 0xf5f   :  { %11087 = vmatprep.subr.bf16.mxu0 %v11086_v47 }
 0xf62   :  { %11089 = vmatpush1.bf16.msra.mxu0 %v11088_v59 }
 0xf63   :  { %11091 = vmatprep.subr.bf16.mxu0 %v11090_v7 }
 0xf66   :  { %11093 = vmatpush1.bf16.msra.mxu0 %v11092_v27 }
 0xf67   :  { %11095 = vmatprep.subr.bf16.mxu0 %v11094_v61 }
 0xf6a   :  { %11097 = vmatpush1.bf16.msra.mxu0 %v11096_v23 }
 0xf6b   :  { %11099 = vmatprep.subr.bf16.mxu0 %v11098_v28 }
 0xf6e   :  { %11101 = vmatpush1.bf16.msra.mxu0 %v11100_v56  ;;  %v7767_v56 = vld [vmem:[%s16321_s17 + $0x238] sm:$0xff] }
 0xf6f   :  { %11103 = vmatprep.subr.bf16.mxu0 %v11102_v36 }
 0xf72   :  { %11105 = vmatpush1.bf16.msra.mxu0 %v11104_v57  ;;  %v7764_v57 = vld [vmem:[%s16321_s17 + $0x220] sm:$0xff] }
 0xf73   :  { %11107 = vmatprep.subr.bf16.mxu0 %v11106_v34  ;;  %v7769_v34 = vld [vmem:[%s16321_s17 + $0x248] sm:$0xff]  ;;  %v11124_v60 = vpack.c.bf16 %v7766_v17, %v7764_v57 }
 0xf76   :  { %11109 = vmatpush1.bf16.msra.mxu0 %v11108_v21  ;;  %v7771_v21 = vld [vmem:[%s16321_s17 + $0x258] sm:$0xff] }
 0xf77   :  { %11111 = vmatprep.subr.bf16.mxu0 %v11110_v19  ;;  %v11126_v19 = vpack.c.bf16 %v7771_v21, %v7769_v34 }
 0xf7a   :  { %11113 = vmatpush1.bf16.msra.mxu0 %v11112_v40 }
 0xf7b   :  { %11115 = vmatprep.subr.bf16.mxu0 %v11114_v6  ;;  %v7773_v6 = vld [vmem:[%s16321_s17 + $0x268] sm:$0xff] }
 0xf7c   :  { %v11130_v14 = vpack.c.bf16 %v7775_v55, %v7773_v6 }
 0xf7e   :  { %11117 = vmatpush1.bf16.msra.mxu0 %v11116_v11  ;;  %v11128_v11 = vpack.c.bf16 %v7770_v35, %v7768_v50 }
 0xf7f   :  { %11119 = vmatprep.subr.bf16.mxu0 %v11118_v18  ;;  %v7774_v18 = vld [vmem:[%s16321_s17 + $0x270] sm:$0xff] }
0x100c   :  { %v7406_v31 = vpop.f32.mrb[150].mxu0  ;;  %v7477_v52 = vpop.f32.mrb[122].mxu1 }
0x100d   :  { %v7628_v46 = vrot.slane %v7406_v31, %v12504_v20  ;;  %v7408_v15 = vpop.f32.mrb[151].mxu0  ;;  %v9746_v47 = vpop.f32.mrb[123].mxu1  ;;  %v7636_v32 = vrot.slane %v7477_v52, %v12504_v20  ;;  %v7777_v52 = vld [vmem:[%s16321_s17 + $0x288] sm:$0xff] }
0x100e   :  { %v7632_v58 = vrot.slane %v7408_v15, %v12504_v20  ;;  %v11132_v15 = vpack.c.bf16 %v7774_v18, %v7772_v39 }
0x100f   :  { %v7637_v10 = vmul.f32 %v7628_v46, %v15767_v51  ;;  %v7640_v0 = vmul.f32 %v7628_v46, %v15774_v42  ;;  %v7643_v12 = vmul.f32 %v7628_v46, %v15784_v48  ;;  %v7639_v27 = vmul.f32 %v15770_v45, %v7636_v32  ;;  %v7779_v46 = vld [vmem:[%s16321_s17 + $0x298] sm:$0xff] }
0x1010   :  { %v7638_v59 = vmul.f32 %v7632_v58, %v15772_v63  ;;  %v7641_v7 = vmul.f32 %v7632_v58, %v15780_v24  ;;  %v7644_v53 = vmul.f32 %v7632_v58, %v15790_v16  ;;  %v7642_v48 = vmul.f32 %v15778_v26, %v7636_v32  ;;  %v7762_v26 = vld [vmem:[%s16321_s17 + $0x210] sm:$0xff]  ;;  %v7776_v58 = vld [vmem:[%s16321_s17 + $0x280] sm:$0xff] }
0x1011   :  { %v7645_v63 = vmul.f32 %v15788_v30, %v7636_v32  ;;  %v7765_v30 = vld [vmem:[%s16321_s17 + $0x228] sm:$0xff]  ;;  %v11120_v36 = vpack.c.bf16 %v7762_v26, %v7760_v54  ;;  %v11134_v47 = vpack.c.bf16 %v7779_v46, %v7777_v52  ;;  %v7780_v32 = vld [vmem:[%s16321_s17 + $0x2a0] sm:$0xff] }
0x1012   :  { %v11122_v44 = vpack.c.bf16 %v7767_v56, %v7765_v30 }
0x1014   :  { %v7550_v8 = vpop.f32.mrb[152].mxu0  ;;  %v7621_v29 = vpop.f32.mrb[124].mxu1 }
0x1015   :  { %v7649_v61 = vrot.slane %v7550_v8, %v12504_v20  ;;  %v7657_v51 = vrot.slane %v7621_v29, %v12504_v20  ;;  %v7552_v38 = vpop.f32.mrb[153].mxu0  ;;  %v9757_v42 = vpop.f32.mrb[125].mxu1 }
0x1016   :  { %v7653_v24 = vrot.slane %v7552_v38, %v12504_v20 }
0x1017   :  { %v7658_v9 = vadd.f32 %v7649_v61, %v7637_v10  ;;  %v7661_v33 = vadd.f32 %v7649_v61, %v7640_v0  ;;  %v7664_v49 = vadd.f32 %v7649_v61, %v7643_v12  ;;  %v16197_v16 = vadd.f32 %v7657_v51, %v7639_v27  ;;  %v7778_v10 = vld [vmem:[%s16321_s17 + $0x290] sm:$0xff]  ;;  %v7781_v0 = vld [vmem:[%s16321_s17 + $0x2a8] sm:$0xff]  ;;  %v7783_v12 = vld [vmem:[%s16321_s17 + $0x2b8] sm:$0xff] }
0x1018   :  { %v16199_v23 = vadd.f32 %v7657_v51, %v7642_v48  ;;  %v16201_v45 = vadd.f32 %v7657_v51, %v7645_v63  ;;  %v7659_v28 = vadd.f32 %v7653_v24, %v7638_v59  ;;  %v7662_v13 = vadd.f32 %v7653_v24, %v7641_v7 }
0x1019   :  { %v7665_v20 = vadd.f32 %v7653_v24, %v7644_v53  ;;  %vm7667_vm1 = vcmp.ge.f32.partialorder %v7658_v9, 0.0  ;;  %v7676_v62 = vmul.f32 0.01, %v7658_v9  ;;  %v7679_v25 = vmul.f32 0.01, %v7661_v33  ;;  %v7782_v53 = vld [vmem:[%s16321_s17 + $0x2b0] sm:$0xff] }
0x101a   :  { %vm7668_vm0 = vcmp.ge.f32.partialorder %v7659_v28, 0.0  ;;  %v7677_v37 = vmul.f32 0.01, %v7659_v28  ;;  %vm7671_vm11 = vcmp.ge.f32.partialorder %v7662_v13, 0.0  ;;  %v7680_v1 = vmul.f32 0.01, %v7662_v13 }
0x101b   :  { %v7685_v22 = vsel %vm7667_vm1, %v7658_v9, %v7676_v62  ;;  %vm7670_vm12 = vcmp.ge.f32.partialorder %v7661_v33, 0.0  ;;  %v7683_v4 = vmul.f32 0.01, %v7665_v20  ;;  %vm7674_vm13 = vcmp.ge.f32.partialorder %v7665_v20, 0.0 }
0x101c   :  { %v7686_v41 = vsel %vm7668_vm0, %v7659_v28, %v7677_v37  ;;  %v7689_v3 = vsel %vm7671_vm11, %v7662_v13, %v7680_v1  ;;  %v7688_v2 = vsel %vm7670_vm12, %v7661_v33, %v7679_v25  ;;  %v7682_v40 = vmul.f32 0.01, %v7664_v49  ;;  %v7694_v28 = vld [vmem:[%s16323_s18] sm:$0xff] }
0x101d   :  { %7857 = vmatprep.mubr.f32.mxu0 %v7686_v41  ;;  %v7692_v43 = vsel %vm7674_vm13, %v7665_v20, %v7683_v4  ;;  %vm7673_vm14 = vcmp.ge.f32.partialorder %v7664_v49, 0.0  ;;  %v11136_v59 = vpack.c.bf16 %v7778_v10, %v7776_v58  ;;  %v11138_v7 = vpack.c.bf16 %v7783_v12, %v7781_v0 }
0x101e   :  { %7858 = vmatmul.mubr.f32.vlgmr.msra.gmra.mrb[154].mxu0 %v7685_v22  ;;  %v7691_v31 = vsel %vm7673_vm14, %v7664_v49, %v7682_v40  ;;  %v11140_v8 = vpack.c.bf16 %v7782_v53, %v7780_v32  ;;  %v7678_v29 = vmul.f32 0.01, %v16197_v16  ;;  %vm7669_vm15 = vcmp.ge.f32.partialorder %v16197_v16, 0.0 }
0x101f   :  { %11121 = vmatpush1.bf16.msra.mxu0 %v11120_v36  ;;  %7863 = vmatprep.mubr.f32.mxu0 %v7689_v3  ;;  %v7681_v61 = vmul.f32 0.01, %v16199_v23  ;;  %vm7672_vm2 = vcmp.ge.f32.partialorder %v16199_v23, 0.0  ;;  %v7684_v38 = vmul.f32 0.01, %v16201_v45  ;;  %vm7675_vm5 = vcmp.ge.f32.partialorder %v16201_v45, 0.0 }
0x1020   :  { %11123 = vmatprep.subr.bf16.mxu0 %v11122_v44  ;;  %v7687_v27 = vsel %vm7669_vm15, %v16197_v16, %v7678_v29 }
0x1021   :  { %v7690_v51 = vsel %vm7672_vm2, %v16199_v23, %v7681_v61  ;;  %v7693_v42 = vsel %vm7675_vm5, %v16201_v45, %v7684_v38  ;;  %v7695_v45 = vld [vmem:[%s16323_s18 + $0x8] sm:$0xff] }
0x1022   :  { %7864 = vmatmul.mubr.f32.gmra.mrb[156].mxu0 %v7688_v2 }
0x1023   :  { %11125 = vmatpush1.bf16.msra.mxu0 %v11124_v60  ;;  %7869 = vmatprep.mubr.f32.mxu0 %v7692_v43 }
0x1024   :  { %11127 = vmatprep.subr.bf16.mxu0 %v11126_v19 }
0x1026   :  { %7870 = vmatmul.mubr.f32.gmra.mrb[158].mxu0 %v7691_v31 }
0x1027   :  { %11129 = vmatpush1.bf16.msra.mxu0 %v11128_v11  ;;  %7940 = vmatprep.mubr.f32.mxu0 %v16394_v5 }
0x1028   :  { %11131 = vmatprep.subr.bf16.mxu0 %v11130_v14 }
0x102b   :  { %11133 = vmatpush1.bf16.msra.mxu0 %v11132_v15 }
0x102c   :  { %11135 = vmatprep.subr.bf16.mxu0 %v11134_v47 }
0x102f   :  { %11137 = vmatpush1.bf16.msra.mxu0 %v11136_v59 }
0x1030   :  { %11139 = vmatprep.subr.bf16.mxu0 %v11138_v7 }
0x1033   :  { %11141 = vmatpush1.bf16.msra.mxu0 %v11140_v8 }
0x1036   :  { %8511 = vmatmul.mubr.msk.f32.vlgmr.msra.gmra.mrb[154].mxu0 %vm6827_vm9, %v7687_v27 }
0x1037   :  { %7946 = vmatprep.mubr.f32.mxu0 %v16394_v5 }
0x103a   :  { %8512 = vmatmul.mubr.msk.f32.gmra.mrb[156].mxu0 %vm6827_vm9, %v7690_v51 }
0x103b   :  { %7952 = vmatprep.mubr.f32.mxu0 %v16394_v5 }
0x103e   :  { %8513 = vmatmul.mubr.msk.f32.gmra.mrb[158].mxu0 %vm6827_vm9, %v7693_v42 }
0x1109   :  { %v7942_v48 = vpop.f32.mrb[154].mxu0 }
0x110a   :  { %v7944_v63 = vpop.f32.mrb[155].mxu0 }
0x110d   :  { %v7948_v24 = vpop.f32.mrb[156].mxu0 }
0x110e   :  { %v11144_v9 = vpack.c.bf16 %v7948_v24, %v7942_v48  ;;  %v7950_v33 = vpop.f32.mrb[157].mxu0 }
0x110f   :  { %v11142_v49 = vpack.c.bf16 %v7950_v33, %v7944_v63 }
0x1111   :  { %v7954_v16 = vpop.f32.mrb[158].mxu0  ;;  %11143 = vmatprep.subr.bf16.mxu1 %v11142_v49 }
0x1112   :  { %v7956_v23 = vpop.f32.mrb[159].mxu0  ;;  %11145 = vmatpush1.bf16.msra.mxu1 %v11144_v9 }
0x1113   :  { %8514 = vmatprep.subr.msk.mxu1 %vm6809_vm8, %v7956_v23 }
0x1116   :  { %8515 = vmatpush1.msk.msra.mxu1 %vm6809_vm8, %v7954_v16 }
0x1117   :  { %8516 = vmatmul.mubr.msk.f32.vlgmr.msra.gmra.mrb[126].mxu1 %vm7959_vm6, %v7694_v28 }
0x1118   :  { %8042 = vmatprep.mubr.f32.mxu1 %v16394_v5 }
0x111b   :  { %8517 = vmatmul.mubr.msk.f32.gmra.mrb[128].mxu1 %vm7959_vm6, %v7695_v45 }
0x11ea   :  { %v8038_v13 = vpop.f32.mrb[126].mxu1 }
0x11eb   :  { %8049 = vst [vmem:[%s16324_s19] sm:$0xff] %v8038_v13  ;;  %v8040_v54 = vpop.f32.mrb[127].mxu1 }
0x11ec   :  { %8050 = vst [vmem:[%s16324_s19 + $0x8] sm:$0xff] %v8040_v54 }
0x11ee   :  { %v8044_v26 = vpop.f32.mrb[128].mxu1 }
0x11ef   :  { %8051 = vst [vmem:[%s16324_s19 + $0x10] sm:$0xff] %v8044_v26  ;;  %v8046_v5 = vpop.f32.mrb[129].mxu1 }
0x11f0   :  { %8052 = vst [vmem:[%s16324_s19 + $0x18] sm:$0xff] %v8046_v5 }

</bundles_post_ra>
